<compile_context>
chip_gen: v5e
topology: v5e:2x2
jax: 0.10.0
libtpu: 0.0.40
codegen_flags: <defaults>
</compile_context>

<pallas_src>
import functools

import jax
import jax.numpy as jnp
from jax.experimental import pallas as pl
from jax.experimental.pallas import tpu as pltpu

EPS = 1e-5


# ---------------------------------------------------------------------------
# Kernel 1: ConvTranspose2d(k=2, s=2) as one matmul (channel-minor columns).
#   col = (dy*2 + dx)*Chalf + co   ->   out[n, 2h+dy, 2w+dx, co]
# ---------------------------------------------------------------------------
def _up_matmul_kernel(x_ref, w_ref, b_ref, o_ref):
    acc = jnp.dot(x_ref[...], w_ref[...], preferred_element_type=jnp.float32)
    o_ref[...] = (acc + b_ref[...]).astype(o_ref.dtype)


def conv_transpose_2x2_s2(x_nhwc, w_t, b, *, row_tile=512):
    """x_nhwc: (N,H,W,Cin) bf16; w_t: (Cin,Chalf,2,2) PyTorch layout; b: (Chalf,)."""
    N, H, W, Cin = x_nhwc.shape
    Chalf = w_t.shape[1]
    rows = N * H * W
    row_tile = min(row_tile, rows)

    x_flat = x_nhwc.reshape(rows, Cin)
    # channel-minor (lane) column order: col = tap*Chalf + co
    w_flat = jnp.transpose(w_t, (0, 2, 3, 1)).reshape(Cin, 4 * Chalf)
    w_flat = w_flat.astype(jnp.bfloat16)
    b_flat = jnp.tile(b, 4)[None, :].astype(jnp.float32)

    out = pl.pallas_call(
        _up_matmul_kernel,
        out_shape=jax.ShapeDtypeStruct((rows, 4 * Chalf), jnp.bfloat16),
        grid=(pl.cdiv(rows, row_tile),),
        in_specs=[
            pl.BlockSpec((row_tile, Cin), lambda i: (i, 0)),
            pl.BlockSpec((Cin, 4 * Chalf), lambda i: (0, 0)),
            pl.BlockSpec((1, 4 * Chalf), lambda i: (0, 0)),
        ],
        out_specs=pl.BlockSpec((row_tile, 4 * Chalf), lambda i: (i, 0)),
        compiler_params=pltpu.CompilerParams(dimension_semantics=("parallel",)),
    )(x_flat, w_flat, b_flat)

    # pixel shuffle (channel stays on the minor/lane axis the whole way).
    out = out.reshape(N, H, W, 2, 2, Chalf)
    out = out.transpose(0, 1, 3, 2, 4, 5).reshape(N, 2 * H, 2 * W, Chalf)
    return out


# ---------------------------------------------------------------------------
# Shared conv body: 3x3 conv (9 bf16 MXU matmuls, f32 accumulation) + bias on
# an already padded VMEM slab, plus per-tile BN partial sums (sum, sum_sq).
# ---------------------------------------------------------------------------
def _conv3x3_body(xp_ref, w_ref, b_ref, y_ref, st_ref, H, W, Cin, Cout):
    xp = xp_ref[...]                                   # (H+2, W+2, Cin) f32
    acc = jnp.zeros((H * W, Cout), jnp.float32)
    for ky in range(3):
        for kx in range(3):
            patch = xp[ky:ky + H, kx:kx + W, :].reshape(H * W, Cin)
            acc = acc + jnp.dot(patch.astype(jnp.bfloat16), w_ref[ky, kx],
                                preferred_element_type=jnp.float32)
    acc = acc + b_ref[...]                             # (1, Cout) f32 bias
    y_ref[0] = acc.reshape(H, W, Cout)
    st_ref[0, 0:1, :] = jnp.sum(acc, axis=0, keepdims=True)
    st_ref[0, 1:2, :] = jnp.sum(acc * acc, axis=0, keepdims=True)


def _bn_scale_shift(st, g, beta, count):
    """st: (N,2,C) per-tile partial sums -> per-channel (scale, shift), (1,C)."""
    tot = jnp.sum(st, axis=0)                          # (2, C)
    inv = 1.0 / count
    mean = tot[0:1, :] * inv
    ex2 = tot[1:2, :] * inv
    var = ex2 - mean * mean                            # biased variance
    scale = g * jax.lax.rsqrt(var + EPS)
    shift = beta - mean * scale
    return scale, shift


# ---------------------------------------------------------------------------
# Kernel 2: fused [zero-pad + channel-concat(x2, x1_up)] + conv1 + bias,
#           emitting raw conv output and BN partial sums.
# ---------------------------------------------------------------------------
def _concat_conv_stats_kernel(xa_ref, xb_ref, w_ref, b_ref, y_ref, st_ref,
                              xp_ref, *, H, W, Ca, Cb, Cout):
    Cin = Ca + Cb
    xp_ref[...] = jnp.zeros_like(xp_ref)                       # halo = zeros
    xp_ref[1:H + 1, 1:W + 1, 0:Ca] = xa_ref[0].astype(jnp.float32)
    xp_ref[1:H + 1, 1:W + 1, Ca:Cin] = xb_ref[0].astype(jnp.float32)
    _conv3x3_body(xp_ref, w_ref, b_ref, y_ref, st_ref, H, W, Cin, Cout)


# ---------------------------------------------------------------------------
# Kernel 3: BN1(global stats) + ReLU applied to the raw conv1 output, then
#           fused zero-pad + conv2 + bias, emitting raw output + BN2 partials.
# ---------------------------------------------------------------------------
def _bnrelu_conv_stats_kernel(st1_ref, y1_ref, g_ref, be_ref, w_ref, b_ref,
                              y2_ref, st2_ref, xp_ref,
                              *, H, W, Cmid, Cout, count):
    scale, shift = _bn_scale_shift(st1_ref[...], g_ref[...], be_ref[...], count)
    scale = scale.reshape(1, 1, Cmid)
    shift = shift.reshape(1, 1, Cmid)
    yn = jnp.maximum(y1_ref[0] * scale + shift, 0.0)           # (H, W, Cmid) f32
    xp_ref[...] = jnp.zeros_like(xp_ref)
    xp_ref[1:H + 1, 1:W + 1, :] = yn
    _conv3x3_body(xp_ref, w_ref, b_ref, y2_ref, st2_ref, H, W, Cmid, Cout)


# ---------------------------------------------------------------------------
# Kernel 4: final BN2(global stats) + ReLU.
# ---------------------------------------------------------------------------
def _bnrelu_kernel(st_ref, y_ref, g_ref, be_ref, o_ref, *, Cout, count):
    scale, shift = _bn_scale_shift(st_ref[...], g_ref[...], be_ref[...], count)
    scale = scale.reshape(1, 1, Cout)
    shift = shift.reshape(1, 1, Cout)
    o_ref[0] = jnp.maximum(y_ref[0] * scale + shift, 0.0).astype(o_ref.dtype)


# ---------------------------------------------------------------------------
# Up.forward
# ---------------------------------------------------------------------------
def up_forward(x1_nchw, x2_nchw, p):
    x1 = jnp.transpose(x1_nchw, (0, 2, 3, 1)).astype(jnp.bfloat16)   # NHWC bf16
    x2 = jnp.transpose(x2_nchw, (0, 2, 3, 1)).astype(jnp.bfloat16)

    x1u = conv_transpose_2x2_s2(x1, p["up_w"], p["up_b"])            # (N,2H,2W,Chalf) bf16

    N, H, W, Ca = x2.shape
    Cb = x1u.shape[-1]
    Cin = Ca + Cb
    Cmid = p["w1"].shape[-1]
    Cout = p["w2"].shape[-1]
    count = float(N * H * W)

    w1 = p["w1"].astype(jnp.bfloat16)
    w2 = p["w2"].astype(jnp.bfloat16)
    b1 = p["b1"][None, :].astype(jnp.float32)
    b2 = p["b2"][None, :].astype(jnp.float32)
    g1 = p["g1"][None, :].astype(jnp.float32)
    g2 = p["g2"][None, :].astype(jnp.float32)
    be1 = p["beta1"][None, :].astype(jnp.float32)
    be2 = p["beta2"][None, :].astype(jnp.float32)

    parallel = pltpu.CompilerParams(dimension_semantics=("parallel",))

    # --- conv1 (+ fused pad/concat) + BN1 partial sums ----------------------
    k2 = functools.partial(_concat_conv_stats_kernel,
                           H=H, W=W, Ca=Ca, Cb=Cb, Cout=Cmid)
    y1, st1 = pl.pallas_call(
        k2,
        out_shape=(jax.ShapeDtypeStruct((N, H, W, Cmid), jnp.float32),
                   jax.ShapeDtypeStruct((N, 2, Cmid), jnp.float32)),
        grid=(N,),
        in_specs=[
            pl.BlockSpec((1, H, W, Ca), lambda n: (n, 0, 0, 0)),
            pl.BlockSpec((1, H, W, Cb), lambda n: (n, 0, 0, 0)),
            pl.BlockSpec((3, 3, Cin, Cmid), lambda n: (0, 0, 0, 0)),
            pl.BlockSpec((1, Cmid), lambda n: (0, 0)),
        ],
        out_specs=(pl.BlockSpec((1, H, W, Cmid), lambda n: (n, 0, 0, 0)),
                   pl.BlockSpec((1, 2, Cmid), lambda n: (n, 0, 0))),
        scratch_shapes=[pltpu.VMEM((H + 2, W + 2, Cin), jnp.float32)],
        compiler_params=parallel,
    )(x2, x1u, w1, b1)

    # --- BN1+ReLU finalize, conv2 (+ fused pad) + BN2 partial sums ----------
    k3 = functools.partial(_bnrelu_conv_stats_kernel,
                           H=H, W=W, Cmid=Cmid, Cout=Cout, count=count)
    y2, st2 = pl.pallas_call(
        k3,
        out_shape=(jax.ShapeDtypeStruct((N, H, W, Cout), jnp.float32),
                   jax.ShapeDtypeStruct((N, 2, Cout), jnp.float32)),
        grid=(N,),
        in_specs=[
            pl.BlockSpec((N, 2, Cmid), lambda n: (0, 0, 0)),
            pl.BlockSpec((1, H, W, Cmid), lambda n: (n, 0, 0, 0)),
            pl.BlockSpec((1, Cmid), lambda n: (0, 0)),
            pl.BlockSpec((1, Cmid), lambda n: (0, 0)),
            pl.BlockSpec((3, 3, Cmid, Cout), lambda n: (0, 0, 0, 0)),
            pl.BlockSpec((1, Cout), lambda n: (0, 0)),
        ],
        out_specs=(pl.BlockSpec((1, H, W, Cout), lambda n: (n, 0, 0, 0)),
                   pl.BlockSpec((1, 2, Cout), lambda n: (n, 0, 0))),
        scratch_shapes=[pltpu.VMEM((H + 2, W + 2, Cmid), jnp.float32)],
        compiler_params=parallel,
    )(st1, y1, g1, be1, w2, b2)

    # --- BN2 + ReLU finalize -------------------------------------------------
    k4 = functools.partial(_bnrelu_kernel, Cout=Cout, count=count)
    out = pl.pallas_call(
        k4,
        out_shape=jax.ShapeDtypeStruct((N, H, W, Cout), jnp.float32),
        grid=(N,),
        in_specs=[
            pl.BlockSpec((N, 2, Cout), lambda n: (0, 0, 0)),
            pl.BlockSpec((1, H, W, Cout), lambda n: (n, 0, 0, 0)),
            pl.BlockSpec((1, Cout), lambda n: (0, 0)),
            pl.BlockSpec((1, Cout), lambda n: (0, 0)),
        ],
        out_specs=pl.BlockSpec((1, H, W, Cout), lambda n: (n, 0, 0, 0)),
        compiler_params=parallel,
    )(st2, y2, g2, be2)

    return jnp.transpose(out, (0, 3, 1, 2))            # NHWC -> NCHW


# ---------------------------------------------------------------------------
# Pure-JAX reference (same bf16-operand / f32-accumulate precision choices).
# ---------------------------------------------------------------------------
def _bn_relu_ref(y, g, b):
    mean = y.mean(axis=(0, 1, 2), keepdims=True)
    var = ((y - mean) ** 2).mean(axis=(0, 1, 2), keepdims=True)
    return jnp.maximum((y - mean) * jax.lax.rsqrt(var + EPS) * g + b, 0.0)


def up_forward_ref(x1_nchw, x2_nchw, p):
    x1 = jnp.transpose(x1_nchw, (0, 2, 3, 1))
    x2 = jnp.transpose(x2_nchw, (0, 2, 3, 1))
    N, H, W, _ = x1.shape
    Chalf = p["up_w"].shape[1]
    up = jnp.einsum("nhwi,iofg->nhfwgo",
                    x1.astype(jnp.bfloat16), p["up_w"].astype(jnp.bfloat16),
                    preferred_element_type=jnp.float32)
    up = up.reshape(N, 2 * H, 2 * W, Chalf) + p["up_b"]
    up = up.astype(jnp.bfloat16)
    x = jnp.concatenate([x2.astype(jnp.bfloat16), up], axis=-1)
    dn = ("NHWC", "HWIO", "NHWC")
    h = jax.lax.conv_general_dilated(x, p["w1"].astype(jnp.bfloat16), (1, 1),
                                     "SAME", dimension_numbers=dn,
                                     preferred_element_type=jnp.float32) + p["b1"]
    h = _bn_relu_ref(h, p["g1"], p["beta1"])
    h = jax.lax.conv_general_dilated(h.astype(jnp.bfloat16),
                                     p["w2"].astype(jnp.bfloat16), (1, 1),
                                     "SAME", dimension_numbers=dn,
                                     preferred_element_type=jnp.float32) + p["b2"]
    h = _bn_relu_ref(h, p["g2"], p["beta2"])
    return jnp.transpose(h, (0, 3, 1, 2))


def make_params(key, in_channels, out_channels):
    chalf = in_channels // 2
    mid = out_channels
    ks = jax.random.split(key, 8)
    # PyTorch ConvTranspose2d weight: (Cin, Cout, 2, 2)
    up_w = 0.2 * jax.random.normal(ks[0], (in_channels, chalf, 2, 2), jnp.float32)
    up_b = 0.1 * jax.random.normal(ks[1], (chalf,), jnp.float32)
    # PyTorch Conv2d weight (Cout, Cin, 3, 3) -> HWIO (3, 3, Cin, Cout)
    w1 = 0.2 * jax.random.normal(ks[2], (mid, in_channels, 3, 3), jnp.float32)
    w2 = 0.2 * jax.random.normal(ks[3], (out_channels, mid, 3, 3), jnp.float32)
    return dict(
        up_w=up_w, up_b=up_b,
        w1=jnp.transpose(w1, (2, 3, 1, 0)),
        b1=0.1 * jax.random.normal(ks[4], (mid,), jnp.float32),
        g1=1.0 + 0.1 * jax.random.normal(ks[5], (mid,), jnp.float32),
        beta1=jnp.zeros((mid,), jnp.float32),
        w2=jnp.transpose(w2, (2, 3, 1, 0)),
        b2=0.1 * jax.random.normal(ks[6], (out_channels,), jnp.float32),
        g2=1.0 + 0.1 * jax.random.normal(ks[7], (out_channels,), jnp.float32),
        beta2=jnp.zeros((out_channels,), jnp.float32),
    )


if __name__ == "__main__":
    key = jax.random.PRNGKey(0)
    k1, k2, kp = jax.random.split(key, 3)

    in_channels, out_channels = 8, 4
    N, H, W = 2, 8, 8                       # x1 spatial; x2 is 2x larger
    x1 = jax.random.normal(k1, (N, in_channels, H, W), jnp.float32)          # NCHW
    x2 = jax.random.normal(k2, (N, in_channels // 2, 2 * H, 2 * W), jnp.float32)

    params = make_params(kp, in_channels, out_channels)

    out = jax.block_until_ready(jax.jit(up_forward)(x1, x2, params))
    assert out.shape == (N, out_channels, 2 * H, 2 * W), out.shape

    ref = jax.block_until_ready(jax.jit(up_forward_ref)(x1, x2, params))
    err = float(jnp.max(jnp.abs(out - ref)))
    # bf16 MXU operands (f32 accumulation) -> slightly looser tolerance.
    assert err < 2e-2, err

    print("KERNEL_OK")
</pallas_src>

<mosaic_0001>
module attributes {stable_mosaic.version = 11 : i64} {
  func.func @_up_matmul_kernel(%arg0: i32, %arg1: memref<128x8xbf16, #tpu.memory_space<vmem>>, %arg2: memref<8x16xbf16, #tpu.memory_space<vmem>>, %arg3: memref<1x16xf32, #tpu.memory_space<vmem>>, %arg4: memref<128x16xbf16, #tpu.memory_space<vmem>>) attributes {dimension_semantics = [#tpu.dimension_semantics<parallel>], iteration_bounds = array<i64: 1>, scalar_prefetch = 0 : i64, scratch_operands = 0 : i64, tpu.core_type = #tpu.core_type<tc>, window_params = [{transform_indices = @transform_0, window_bounds = array<i64: 128, 8>}, {pipeline_mode = #tpu.pipeline_mode<synchronous>, transform_indices = @transform_1, window_bounds = array<i64: 8, 16>}, {pipeline_mode = #tpu.pipeline_mode<synchronous>, transform_indices = @transform_2, window_bounds = array<i64: 1, 16>}, {transform_indices = @transform_3, window_bounds = array<i64: 128, 16>}]} {
    %c0 = arith.constant 0 : index
    %c0_0 = arith.constant 0 : index
    %0 = vector.load %arg1[%c0, %c0_0] : memref<128x8xbf16, #tpu.memory_space<vmem>>, vector<128x8xbf16>
    %c0_1 = arith.constant 0 : index
    %c0_2 = arith.constant 0 : index
    %1 = vector.load %arg2[%c0_1, %c0_2] : memref<8x16xbf16, #tpu.memory_space<vmem>>, vector<8x16xbf16>
    %cst = arith.constant dense<0.000000e+00> : vector<128x16xf32>
    %2 = tpu.matmul %0, %1, %cst {dimension_numbers = #tpu.dot_dimension_numbers<[1], [0], [0], [1], [0, 0, 1, 1], [], []>} : vector<128x8xbf16>, vector<8x16xbf16>, vector<128x16xf32> -> vector<128x16xf32>
    %c0_3 = arith.constant 0 : index
    %c0_4 = arith.constant 0 : index
    %3 = vector.load %arg3[%c0_3, %c0_4] : memref<1x16xf32, #tpu.memory_space<vmem>>, vector<1x16xf32>
    %4 = vector.broadcast %3 : vector<1x16xf32> to vector<128x16xf32>
    %5 = arith.addf %2, %4 : vector<128x16xf32>
    %6 = arith.truncf %5 : vector<128x16xf32> to vector<128x16xbf16>
    %c0_5 = arith.constant 0 : index
    %c0_6 = arith.constant 0 : index
    %7 = vector.load %arg4[%c0_5, %c0_6] : memref<128x16xbf16, #tpu.memory_space<vmem>>, vector<128x16xbf16>
    tpu.vector_store %arg4[%c0_5, %c0_6], %6 {strides = array<i32>} : memref<128x16xbf16, #tpu.memory_space<vmem>>, vector<128x16xbf16>,
    return
  }
  func.func @transform_0(%arg0: i32) -> (i32, i32) {
    %c0_i32 = arith.constant 0 : i32
    %c0_i32_0 = arith.constant 0 : i32
    return %arg0, %c0_i32 : i32, i32
  }
  func.func @transform_1(%arg0: i32) -> (i32, i32) {
    %c0_i32 = arith.constant 0 : i32
    %c0_i32_0 = arith.constant 0 : i32
    %c0_i32_1 = arith.constant 0 : i32
    return %c0_i32, %c0_i32_0 : i32, i32
  }
  func.func @transform_2(%arg0: i32) -> (i32, i32) {
    %c0_i32 = arith.constant 0 : i32
    %c0_i32_0 = arith.constant 0 : i32
    %c0_i32_1 = arith.constant 0 : i32
    return %c0_i32, %c0_i32_0 : i32, i32
  }
  func.func @transform_3(%arg0: i32) -> (i32, i32) {
    %c0_i32 = arith.constant 0 : i32
    %c0_i32_0 = arith.constant 0 : i32
    return %arg0, %c0_i32 : i32, i32
  }
}

module attributes {stable_mosaic.version = 11 : i64} {
  func.func @_concat_conv_stats_kernel(%arg0: i32, %arg1: memref<1x16x16x4xbf16, #tpu.memory_space<vmem>>, %arg2: memref<1x16x16x4xbf16, #tpu.memory_space<vmem>>, %arg3: memref<3x3x8x4xbf16, #tpu.memory_space<vmem>>, %arg4: memref<1x4xf32, #tpu.memory_space<vmem>>, %arg5: memref<1x16x16x4xf32, #tpu.memory_space<vmem>>, %arg6: memref<1x2x4xf32, #tpu.memory_space<vmem>>, %arg7: memref<18x18x8xf32, #tpu.memory_space<vmem>>) attributes {dimension_semantics = [#tpu.dimension_semantics<parallel>], iteration_bounds = array<i64: 2>, scalar_prefetch = 0 : i64, scratch_operands = 1 : i64, tpu.core_type = #tpu.core_type<tc>, window_params = [{transform_indices = @transform_0, window_bounds = array<i64: 1, 16, 16, 4>}, {transform_indices = @transform_1, window_bounds = array<i64: 1, 16, 16, 4>}, {pipeline_mode = #tpu.pipeline_mode<synchronous>, transform_indices = @transform_2, window_bounds = array<i64: 3, 3, 8, 4>}, {pipeline_mode = #tpu.pipeline_mode<synchronous>, transform_indices = @transform_3, window_bounds = array<i64: 1, 4>}, {transform_indices = @transform_4, window_bounds = array<i64: 1, 16, 16, 4>}, {transform_indices = @transform_5, window_bounds = array<i64: 1, 2, 4>}]} {
    %cst = arith.constant 0.000000e+00 : f32
    %0 = vector.broadcast %cst : f32 to vector<18x18x8xf32>
    %c0 = arith.constant 0 : index
    %c0_0 = arith.constant 0 : index
    %c0_1 = arith.constant 0 : index
    %1 = vector.load %arg7[%c0, %c0_0, %c0_1] : memref<18x18x8xf32, #tpu.memory_space<vmem>>, vector<18x18x8xf32>
    tpu.vector_store %arg7[%c0, %c0_0, %c0_1], %0 {strides = array<i32>} : memref<18x18x8xf32, #tpu.memory_space<vmem>>, vector<18x18x8xf32>,
    %c0_2 = arith.constant 0 : index
    %c0_3 = arith.constant 0 : index
    %c0_4 = arith.constant 0 : index
    %c0_5 = arith.constant 0 : index
    %2 = vector.load %arg1[%c0_2, %c0_3, %c0_4, %c0_5] : memref<1x16x16x4xbf16, #tpu.memory_space<vmem>>, vector<1x16x16x4xbf16>
    %3 = vector.shape_cast %2 : vector<1x16x16x4xbf16> to vector<16x16x4xbf16>
    %4 = arith.extf %3 : vector<16x16x4xbf16> to vector<16x16x4xf32>
    %c1 = arith.constant 1 : index
    %c1_6 = arith.constant 1 : index
    %c0_7 = arith.constant 0 : index
    %5 = vector.load %arg7[%c1, %c1_6, %c0_7] : memref<18x18x8xf32, #tpu.memory_space<vmem>>, vector<16x16x4xf32>
    tpu.vector_store %arg7[%c1, %c1_6, %c0_7], %4 {strides = array<i32>} : memref<18x18x8xf32, #tpu.memory_space<vmem>>, vector<16x16x4xf32>,
    %c0_8 = arith.constant 0 : index
    %c0_9 = arith.constant 0 : index
    %c0_10 = arith.constant 0 : index
    %c0_11 = arith.constant 0 : index
    %6 = vector.load %arg2[%c0_8, %c0_9, %c0_10, %c0_11] : memref<1x16x16x4xbf16, #tpu.memory_space<vmem>>, vector<1x16x16x4xbf16>
    %7 = vector.shape_cast %6 : vector<1x16x16x4xbf16> to vector<16x16x4xbf16>
    %8 = arith.extf %7 : vector<16x16x4xbf16> to vector<16x16x4xf32>
    %c1_12 = arith.constant 1 : index
    %c1_13 = arith.constant 1 : index
    %c4 = arith.constant 4 : index
    %9 = vector.load %arg7[%c1_12, %c1_13, %c4] : memref<18x18x8xf32, #tpu.memory_space<vmem>>, vector<16x16x4xf32>
    tpu.vector_store %arg7[%c1_12, %c1_13, %c4], %8 {strides = array<i32>} : memref<18x18x8xf32, #tpu.memory_space<vmem>>, vector<16x16x4xf32>,
    %c0_14 = arith.constant 0 : index
    %c0_15 = arith.constant 0 : index
    %c0_16 = arith.constant 0 : index
    %10 = vector.load %arg7[%c0_14, %c0_15, %c0_16] : memref<18x18x8xf32, #tpu.memory_space<vmem>>, vector<18x18x8xf32>
    %cst_17 = arith.constant 0.000000e+00 : f32
    %11 = vector.broadcast %cst_17 : f32 to vector<256x4xf32>
    %12 = vector.extract_strided_slice %10 {offsets = [0, 0, 0], sizes = [16, 16, 8], strides = [1, 1, 1]} : vector<18x18x8xf32> to vector<16x16x8xf32>
    %13 = vector.shape_cast %12 : vector<16x16x8xf32> to vector<256x8xf32>
    %14 = arith.truncf %13 : vector<256x8xf32> to vector<256x8xbf16>
    %c0_18 = arith.constant 0 : index
    %c0_19 = arith.constant 0 : index
    %c0_20 = arith.constant 0 : index
    %c0_21 = arith.constant 0 : index
    %15 = vector.load %arg3[%c0_18, %c0_19, %c0_20, %c0_21] : memref<3x3x8x4xbf16, #tpu.memory_space<vmem>>, vector<1x1x8x4xbf16>
    %16 = vector.shape_cast %15 : vector<1x1x8x4xbf16> to vector<8x4xbf16>
    %cst_22 = arith.constant dense<0.000000e+00> : vector<256x4xf32>
    %17 = tpu.matmul %14, %16, %cst_22 {dimension_numbers = #tpu.dot_dimension_numbers<[1], [0], [0], [1], [0, 0, 1, 1], [], []>} : vector<256x8xbf16>, vector<8x4xbf16>, vector<256x4xf32> -> vector<256x4xf32>
    %18 = arith.addf %11, %17 : vector<256x4xf32>
    %19 = vector.extract_strided_slice %10 {offsets = [0, 1, 0], sizes = [16, 16, 8], strides = [1, 1, 1]} : vector<18x18x8xf32> to vector<16x16x8xf32>
    %20 = vector.shape_cast %19 : vector<16x16x8xf32> to vector<256x8xf32>
    %21 = arith.truncf %20 : vector<256x8xf32> to vector<256x8xbf16>
    %c0_23 = arith.constant 0 : index
    %c1_24 = arith.constant 1 : index
    %c0_25 = arith.constant 0 : index
    %c0_26 = arith.constant 0 : index
    %22 = vector.load %arg3[%c0_23, %c1_24, %c0_25, %c0_26] : memref<3x3x8x4xbf16, #tpu.memory_space<vmem>>, vector<1x1x8x4xbf16>
    %23 = vector.shape_cast %22 : vector<1x1x8x4xbf16> to vector<8x4xbf16>
    %cst_27 = arith.constant dense<0.000000e+00> : vector<256x4xf32>
    %24 = tpu.matmul %21, %23, %cst_27 {dimension_numbers = #tpu.dot_dimension_numbers<[1], [0], [0], [1], [0, 0, 1, 1], [], []>} : vector<256x8xbf16>, vector<8x4xbf16>, vector<256x4xf32> -> vector<256x4xf32>
    %25 = arith.addf %18, %24 : vector<256x4xf32>
    %26 = vector.extract_strided_slice %10 {offsets = [0, 2, 0], sizes = [16, 16, 8], strides = [1, 1, 1]} : vector<18x18x8xf32> to vector<16x16x8xf32>
    %27 = vector.shape_cast %26 : vector<16x16x8xf32> to vector<256x8xf32>
    %28 = arith.truncf %27 : vector<256x8xf32> to vector<256x8xbf16>
    %c0_28 = arith.constant 0 : index
    %c2 = arith.constant 2 : index
    %c0_29 = arith.constant 0 : index
    %c0_30 = arith.constant 0 : index
    %29 = vector.load %arg3[%c0_28, %c2, %c0_29, %c0_30] : memref<3x3x8x4xbf16, #tpu.memory_space<vmem>>, vector<1x1x8x4xbf16>
    %30 = vector.shape_cast %29 : vector<1x1x8x4xbf16> to vector<8x4xbf16>
    %cst_31 = arith.constant dense<0.000000e+00> : vector<256x4xf32>
    %31 = tpu.matmul %28, %30, %cst_31 {dimension_numbers = #tpu.dot_dimension_numbers<[1], [0], [0], [1], [0, 0, 1, 1], [], []>} : vector<256x8xbf16>, vector<8x4xbf16>, vector<256x4xf32> -> vector<256x4xf32>
    %32 = arith.addf %25, %31 : vector<256x4xf32>
    %33 = vector.extract_strided_slice %10 {offsets = [1, 0, 0], sizes = [16, 16, 8], strides = [1, 1, 1]} : vector<18x18x8xf32> to vector<16x16x8xf32>
    %34 = vector.shape_cast %33 : vector<16x16x8xf32> to vector<256x8xf32>
    %35 = arith.truncf %34 : vector<256x8xf32> to vector<256x8xbf16>
    %c1_32 = arith.constant 1 : index
    %c0_33 = arith.constant 0 : index
    %c0_34 = arith.constant 0 : index
    %c0_35 = arith.constant 0 : index
    %36 = vector.load %arg3[%c1_32, %c0_33, %c0_34, %c0_35] : memref<3x3x8x4xbf16, #tpu.memory_space<vmem>>, vector<1x1x8x4xbf16>
    %37 = vector.shape_cast %36 : vector<1x1x8x4xbf16> to vector<8x4xbf16>
    %cst_36 = arith.constant dense<0.000000e+00> : vector<256x4xf32>
    %38 = tpu.matmul %35, %37, %cst_36 {dimension_numbers = #tpu.dot_dimension_numbers<[1], [0], [0], [1], [0, 0, 1, 1], [], []>} : vector<256x8xbf16>, vector<8x4xbf16>, vector<256x4xf32> -> vector<256x4xf32>
    %39 = arith.addf %32, %38 : vector<256x4xf32>
    %40 = vector.extract_strided_slice %10 {offsets = [1, 1, 0], sizes = [16, 16, 8], strides = [1, 1, 1]} : vector<18x18x8xf32> to vector<16x16x8xf32>
    %41 = vector.shape_cast %40 : vector<16x16x8xf32> to vector<256x8xf32>
    %42 = arith.truncf %41 : vector<256x8xf32> to vector<256x8xbf16>
    %c1_37 = arith.constant 1 : index
    %c1_38 = arith.constant 1 : index
    %c0_39 = arith.constant 0 : index
    %c0_40 = arith.constant 0 : index
    %43 = vector.load %arg3[%c1_37, %c1_38, %c0_39, %c0_40] : memref<3x3x8x4xbf16, #tpu.memory_space<vmem>>, vector<1x1x8x4xbf16>
    %44 = vector.shape_cast %43 : vector<1x1x8x4xbf16> to vector<8x4xbf16>
    %cst_41 = arith.constant dense<0.000000e+00> : vector<256x4xf32>
    %45 = tpu.matmul %42, %44, %cst_41 {dimension_numbers = #tpu.dot_dimension_numbers<[1], [0], [0], [1], [0, 0, 1, 1], [], []>} : vector<256x8xbf16>, vector<8x4xbf16>, vector<256x4xf32> -> vector<256x4xf32>
    %46 = arith.addf %39, %45 : vector<256x4xf32>
    %47 = vector.extract_strided_slice %10 {offsets = [1, 2, 0], sizes = [16, 16, 8], strides = [1, 1, 1]} : vector<18x18x8xf32> to vector<16x16x8xf32>
    %48 = vector.shape_cast %47 : vector<16x16x8xf32> to vector<256x8xf32>
    %49 = arith.truncf %48 : vector<256x8xf32> to vector<256x8xbf16>
    %c1_42 = arith.constant 1 : index
    %c2_43 = arith.constant 2 : index
    %c0_44 = arith.constant 0 : index
    %c0_45 = arith.constant 0 : index
    %50 = vector.load %arg3[%c1_42, %c2_43, %c0_44, %c0_45] : memref<3x3x8x4xbf16, #tpu.memory_space<vmem>>, vector<1x1x8x4xbf16>
    %51 = vector.shape_cast %50 : vector<1x1x8x4xbf16> to vector<8x4xbf16>
    %cst_46 = arith.constant dense<0.000000e+00> : vector<256x4xf32>
    %52 = tpu.matmul %49, %51, %cst_46 {dimension_numbers = #tpu.dot_dimension_numbers<[1], [0], [0], [1], [0, 0, 1, 1], [], []>} : vector<256x8xbf16>, vector<8x4xbf16>, vector<256x4xf32> -> vector<256x4xf32>
    %53 = arith.addf %46, %52 : vector<256x4xf32>
    %54 = vector.extract_strided_slice %10 {offsets = [2, 0, 0], sizes = [16, 16, 8], strides = [1, 1, 1]} : vector<18x18x8xf32> to vector<16x16x8xf32>
    %55 = vector.shape_cast %54 : vector<16x16x8xf32> to vector<256x8xf32>
    %56 = arith.truncf %55 : vector<256x8xf32> to vector<256x8xbf16>
    %c2_47 = arith.constant 2 : index
    %c0_48 = arith.constant 0 : index
    %c0_49 = arith.constant 0 : index
    %c0_50 = arith.constant 0 : index
    %57 = vector.load %arg3[%c2_47, %c0_48, %c0_49, %c0_50] : memref<3x3x8x4xbf16, #tpu.memory_space<vmem>>, vector<1x1x8x4xbf16>
    %58 = vector.shape_cast %57 : vector<1x1x8x4xbf16> to vector<8x4xbf16>
    %cst_51 = arith.constant dense<0.000000e+00> : vector<256x4xf32>
    %59 = tpu.matmul %56, %58, %cst_51 {dimension_numbers = #tpu.dot_dimension_numbers<[1], [0], [0], [1], [0, 0, 1, 1], [], []>} : vector<256x8xbf16>, vector<8x4xbf16>, vector<256x4xf32> -> vector<256x4xf32>
    %60 = arith.addf %53, %59 : vector<256x4xf32>
    %61 = vector.extract_strided_slice %10 {offsets = [2, 1, 0], sizes = [16, 16, 8], strides = [1, 1, 1]} : vector<18x18x8xf32> to vector<16x16x8xf32>
    %62 = vector.shape_cast %61 : vector<16x16x8xf32> to vector<256x8xf32>
    %63 = arith.truncf %62 : vector<256x8xf32> to vector<256x8xbf16>
    %c2_52 = arith.constant 2 : index
    %c1_53 = arith.constant 1 : index
    %c0_54 = arith.constant 0 : index
    %c0_55 = arith.constant 0 : index
    %64 = vector.load %arg3[%c2_52, %c1_53, %c0_54, %c0_55] : memref<3x3x8x4xbf16, #tpu.memory_space<vmem>>, vector<1x1x8x4xbf16>
    %65 = vector.shape_cast %64 : vector<1x1x8x4xbf16> to vector<8x4xbf16>
    %cst_56 = arith.constant dense<0.000000e+00> : vector<256x4xf32>
    %66 = tpu.matmul %63, %65, %cst_56 {dimension_numbers = #tpu.dot_dimension_numbers<[1], [0], [0], [1], [0, 0, 1, 1], [], []>} : vector<256x8xbf16>, vector<8x4xbf16>, vector<256x4xf32> -> vector<256x4xf32>
    %67 = arith.addf %60, %66 : vector<256x4xf32>
    %68 = vector.extract_strided_slice %10 {offsets = [2, 2, 0], sizes = [16, 16, 8], strides = [1, 1, 1]} : vector<18x18x8xf32> to vector<16x16x8xf32>
    %69 = vector.shape_cast %68 : vector<16x16x8xf32> to vector<256x8xf32>
    %70 = arith.truncf %69 : vector<256x8xf32> to vector<256x8xbf16>
    %c2_57 = arith.constant 2 : index
    %c2_58 = arith.constant 2 : index
    %c0_59 = arith.constant 0 : index
    %c0_60 = arith.constant 0 : index
    %71 = vector.load %arg3[%c2_57, %c2_58, %c0_59, %c0_60] : memref<3x3x8x4xbf16, #tpu.memory_space<vmem>>, vector<1x1x8x4xbf16>
    %72 = vector.shape_cast %71 : vector<1x1x8x4xbf16> to vector<8x4xbf16>
    %cst_61 = arith.constant dense<0.000000e+00> : vector<256x4xf32>
    %73 = tpu.matmul %70, %72, %cst_61 {dimension_numbers = #tpu.dot_dimension_numbers<[1], [0], [0], [1], [0, 0, 1, 1], [], []>} : vector<256x8xbf16>, vector<8x4xbf16>, vector<256x4xf32> -> vector<256x4xf32>
    %74 = arith.addf %67, %73 : vector<256x4xf32>
    %c0_62 = arith.constant 0 : index
    %c0_63 = arith.constant 0 : index
    %75 = vector.load %arg4[%c0_62, %c0_63] : memref<1x4xf32, #tpu.memory_space<vmem>>, vector<1x4xf32>
    %76 = vector.broadcast %75 : vector<1x4xf32> to vector<256x4xf32>
    %77 = arith.addf %74, %76 : vector<256x4xf32>
    %78 = vector.shape_cast %77 : vector<256x4xf32> to vector<16x16x4xf32>
    %c0_64 = arith.constant 0 : index
    %c0_65 = arith.constant 0 : index
    %c0_66 = arith.constant 0 : index
    %c0_67 = arith.constant 0 : index
    %79 = vector.load %arg5[%c0_64, %c0_65, %c0_66, %c0_67] : memref<1x16x16x4xf32, #tpu.memory_space<vmem>>, vector<1x16x16x4xf32>
    %80 = vector.shape_cast %79 : vector<1x16x16x4xf32> to vector<16x16x4xf32>
    %81 = vector.shape_cast %78 : vector<16x16x4xf32> to vector<1x16x16x4xf32>
    tpu.vector_store %arg5[%c0_64, %c0_65, %c0_66, %c0_67], %81 {strides = array<i32>} : memref<1x16x16x4xf32, #tpu.memory_space<vmem>>, vector<1x16x16x4xf32>,
    %cst_68 = arith.constant dense<0.000000e+00> : vector<4xf32>
    %82 = vector.multi_reduction <add>, %77, %cst_68 [0] : vector<256x4xf32> to vector<4xf32>
    %83 = vector.shape_cast %82 : vector<4xf32> to vector<1x4xf32>
    %c0_69 = arith.constant 0 : index
    %c0_70 = arith.constant 0 : index
    %c0_71 = arith.constant 0 : index
    %84 = vector.load %arg6[%c0_69, %c0_70, %c0_71] : memref<1x2x4xf32, #tpu.memory_space<vmem>>, vector<1x1x4xf32>
    %85 = vector.shape_cast %84 : vector<1x1x4xf32> to vector<1x4xf32>
    %86 = vector.shape_cast %83 : vector<1x4xf32> to vector<1x1x4xf32>
    tpu.vector_store %arg6[%c0_69, %c0_70, %c0_71], %86 {strides = array<i32>} : memref<1x2x4xf32, #tpu.memory_space<vmem>>, vector<1x1x4xf32>,
    %87 = arith.mulf %77, %77 : vector<256x4xf32>
    %cst_72 = arith.constant dense<0.000000e+00> : vector<4xf32>
    %88 = vector.multi_reduction <add>, %87, %cst_72 [0] : vector<256x4xf32> to vector<4xf32>
    %89 = vector.shape_cast %88 : vector<4xf32> to vector<1x4xf32>
    %c0_73 = arith.constant 0 : index
    %c1_74 = arith.constant 1 : index
    %c0_75 = arith.constant 0 : index
    %90 = vector.load %arg6[%c0_73, %c1_74, %c0_75] : memref<1x2x4xf32, #tpu.memory_space<vmem>>, vector<1x1x4xf32>
    %91 = vector.shape_cast %90 : vector<1x1x4xf32> to vector<1x4xf32>
    %92 = vector.shape_cast %89 : vector<1x4xf32> to vector<1x1x4xf32>
    tpu.vector_store %arg6[%c0_73, %c1_74, %c0_75], %92 {strides = array<i32>} : memref<1x2x4xf32, #tpu.memory_space<vmem>>, vector<1x1x4xf32>,
    return
  }
  func.func @transform_0(%arg0: i32) -> (i32, i32, i32, i32) {
    %c0_i32 = arith.constant 0 : i32
    %c0_i32_0 = arith.constant 0 : i32
    %c0_i32_1 = arith.constant 0 : i32
    %c0_i32_2 = arith.constant 0 : i32
    return %arg0, %c0_i32, %c0_i32_0, %c0_i32_1 : i32, i32, i32, i32
  }
  func.func @transform_1(%arg0: i32) -> (i32, i32, i32, i32) {
    %c0_i32 = arith.constant 0 : i32
    %c0_i32_0 = arith.constant 0 : i32
    %c0_i32_1 = arith.constant 0 : i32
    %c0_i32_2 = arith.constant 0 : i32
    return %arg0, %c0_i32, %c0_i32_0, %c0_i32_1 : i32, i32, i32, i32
  }
  func.func @transform_2(%arg0: i32) -> (i32, i32, i32, i32) {
    %c0_i32 = arith.constant 0 : i32
    %c0_i32_0 = arith.constant 0 : i32
    %c0_i32_1 = arith.constant 0 : i32
    %c0_i32_2 = arith.constant 0 : i32
    %c0_i32_3 = arith.constant 0 : i32
    return %c0_i32, %c0_i32_0, %c0_i32_1, %c0_i32_2 : i32, i32, i32, i32
  }
  func.func @transform_3(%arg0: i32) -> (i32, i32) {
    %c0_i32 = arith.constant 0 : i32
    %c0_i32_0 = arith.constant 0 : i32
    %c0_i32_1 = arith.constant 0 : i32
    return %c0_i32, %c0_i32_0 : i32, i32
  }
  func.func @transform_4(%arg0: i32) -> (i32, i32, i32, i32) {
    %c0_i32 = arith.constant 0 : i32
    %c0_i32_0 = arith.constant 0 : i32
    %c0_i32_1 = arith.constant 0 : i32
    %c0_i32_2 = arith.constant 0 : i32
    return %arg0, %c0_i32, %c0_i32_0, %c0_i32_1 : i32, i32, i32, i32
  }
  func.func @transform_5(%arg0: i32) -> (i32, i32, i32) {
    %c0_i32 = arith.constant 0 : i32
    %c0_i32_0 = arith.constant 0 : i32
    %c0_i32_1 = arith.constant 0 : i32
    return %arg0, %c0_i32, %c0_i32_0 : i32, i32, i32
  }
}

module attributes {stable_mosaic.version = 11 : i64} {
  func.func @_bnrelu_kernel(%arg0: i32, %arg1: memref<2x2x4xf32, #tpu.memory_space<vmem>>, %arg2: memref<1x16x16x4xf32, #tpu.memory_space<vmem>>, %arg3: memref<1x4xf32, #tpu.memory_space<vmem>>, %arg4: memref<1x4xf32, #tpu.memory_space<vmem>>, %arg5: memref<1x16x16x4xf32, #tpu.memory_space<vmem>>) attributes {dimension_semantics = [#tpu.dimension_semantics<parallel>], iteration_bounds = array<i64: 2>, scalar_prefetch = 0 : i64, scratch_operands = 0 : i64, tpu.core_type = #tpu.core_type<tc>, window_params = [{pipeline_mode = #tpu.pipeline_mode<synchronous>, transform_indices = @transform_0, window_bounds = array<i64: 2, 2, 4>}, {transform_indices = @transform_1, window_bounds = array<i64: 1, 16, 16, 4>}, {pipeline_mode = #tpu.pipeline_mode<synchronous>, transform_indices = @transform_2, window_bounds = array<i64: 1, 4>}, {pipeline_mode = #tpu.pipeline_mode<synchronous>, transform_indices = @transform_3, window_bounds = array<i64: 1, 4>}, {transform_indices = @transform_4, window_bounds = array<i64: 1, 16, 16, 4>}]} {
    %c0 = arith.constant 0 : index
    %c0_0 = arith.constant 0 : index
    %c0_1 = arith.constant 0 : index
    %0 = vector.load %arg1[%c0, %c0_0, %c0_1] : memref<2x2x4xf32, #tpu.memory_space<vmem>>, vector<2x2x4xf32>
    %c0_2 = arith.constant 0 : index
    %c0_3 = arith.constant 0 : index
    %1 = vector.load %arg3[%c0_2, %c0_3] : memref<1x4xf32, #tpu.memory_space<vmem>>, vector<1x4xf32>
    %c0_4 = arith.constant 0 : index
    %c0_5 = arith.constant 0 : index
    %2 = vector.load %arg4[%c0_4, %c0_5] : memref<1x4xf32, #tpu.memory_space<vmem>>, vector<1x4xf32>
    %cst = arith.constant dense<0.000000e+00> : vector<2x4xf32>
    %3 = vector.multi_reduction <add>, %0, %cst [0] : vector<2x2x4xf32> to vector<2x4xf32>
    %4 = vector.extract_strided_slice %3 {offsets = [0, 0], sizes = [1, 4], strides = [1, 1]} : vector<2x4xf32> to vector<1x4xf32>
    %cst_6 = arith.constant 0.001953125 : f32
    %5 = vector.broadcast %cst_6 : f32 to vector<1x4xf32>
    %6 = arith.mulf %4, %5 : vector<1x4xf32>
    %7 = vector.extract_strided_slice %3 {offsets = [1, 0], sizes = [1, 4], strides = [1, 1]} : vector<2x4xf32> to vector<1x4xf32>
    %cst_7 = arith.constant 0.001953125 : f32
    %8 = vector.broadcast %cst_7 : f32 to vector<1x4xf32>
    %9 = arith.mulf %7, %8 : vector<1x4xf32>
    %10 = arith.mulf %6, %6 : vector<1x4xf32>
    %11 = arith.subf %9, %10 : vector<1x4xf32>
    %cst_8 = arith.constant 9.99999974E-6 : f32
    %12 = vector.broadcast %cst_8 : f32 to vector<1x4xf32>
    %13 = arith.addf %11, %12 : vector<1x4xf32>
    %14 = math.rsqrt %13 : vector<1x4xf32>
    %15 = arith.mulf %1, %14 : vector<1x4xf32>
    %16 = arith.mulf %6, %15 : vector<1x4xf32>
    %17 = arith.subf %2, %16 : vector<1x4xf32>
    %18 = vector.shape_cast %15 : vector<1x4xf32> to vector<1x1x4xf32>
    %19 = vector.shape_cast %17 : vector<1x4xf32> to vector<1x1x4xf32>
    %c0_9 = arith.constant 0 : index
    %c0_10 = arith.constant 0 : index
    %c0_11 = arith.constant 0 : index
    %c0_12 = arith.constant 0 : index
    %20 = vector.load %arg2[%c0_9, %c0_10, %c0_11, %c0_12] : memref<1x16x16x4xf32, #tpu.memory_space<vmem>>, vector<1x16x16x4xf32>
    %21 = vector.shape_cast %20 : vector<1x16x16x4xf32> to vector<16x16x4xf32>
    %22 = vector.broadcast %18 : vector<1x1x4xf32> to vector<16x16x4xf32>
    %23 = arith.mulf %21, %22 : vector<16x16x4xf32>
    %24 = vector.broadcast %19 : vector<1x1x4xf32> to vector<16x16x4xf32>
    %25 = arith.addf %23, %24 : vector<16x16x4xf32>
    %cst_13 = arith.constant 0.000000e+00 : f32
    %26 = vector.broadcast %cst_13 : f32 to vector<16x16x4xf32>
    %27 = arith.maximumf %25, %26 : vector<16x16x4xf32>
    %c0_14 = arith.constant 0 : index
    %c0_15 = arith.constant 0 : index
    %c0_16 = arith.constant 0 : index
    %c0_17 = arith.constant 0 : index
    %28 = vector.load %arg5[%c0_14, %c0_15, %c0_16, %c0_17] : memref<1x16x16x4xf32, #tpu.memory_space<vmem>>, vector<1x16x16x4xf32>
    %29 = vector.shape_cast %28 : vector<1x16x16x4xf32> to vector<16x16x4xf32>
    %30 = vector.shape_cast %27 : vector<16x16x4xf32> to vector<1x16x16x4xf32>
    tpu.vector_store %arg5[%c0_14, %c0_15, %c0_16, %c0_17], %30 {strides = array<i32>} : memref<1x16x16x4xf32, #tpu.memory_space<vmem>>, vector<1x16x16x4xf32>,
    return
  }
  func.func @transform_0(%arg0: i32) -> (i32, i32, i32) {
    %c0_i32 = arith.constant 0 : i32
    %c0_i32_0 = arith.constant 0 : i32
    %c0_i32_1 = arith.constant 0 : i32
    %c0_i32_2 = arith.constant 0 : i32
    return %c0_i32, %c0_i32_0, %c0_i32_1 : i32, i32, i32
  }
  func.func @transform_1(%arg0: i32) -> (i32, i32, i32, i32) {
    %c0_i32 = arith.constant 0 : i32
    %c0_i32_0 = arith.constant 0 : i32
    %c0_i32_1 = arith.constant 0 : i32
    %c0_i32_2 = arith.constant 0 : i32
    return %arg0, %c0_i32, %c0_i32_0, %c0_i32_1 : i32, i32, i32, i32
  }
  func.func @transform_2(%arg0: i32) -> (i32, i32) {
    %c0_i32 = arith.constant 0 : i32
    %c0_i32_0 = arith.constant 0 : i32
    %c0_i32_1 = arith.constant 0 : i32
    return %c0_i32, %c0_i32_0 : i32, i32
  }
  func.func @transform_3(%arg0: i32) -> (i32, i32) {
    %c0_i32 = arith.constant 0 : i32
    %c0_i32_0 = arith.constant 0 : i32
    %c0_i32_1 = arith.constant 0 : i32
    return %c0_i32, %c0_i32_0 : i32, i32
  }
  func.func @transform_4(%arg0: i32) -> (i32, i32, i32, i32) {
    %c0_i32 = arith.constant 0 : i32
    %c0_i32_0 = arith.constant 0 : i32
    %c0_i32_1 = arith.constant 0 : i32
    %c0_i32_2 = arith.constant 0 : i32
    return %arg0, %c0_i32, %c0_i32_0, %c0_i32_1 : i32, i32, i32, i32
  }
}

module attributes {stable_mosaic.version = 11 : i64} {
  func.func @_bnrelu_conv_stats_kernel(%arg0: i32, %arg1: memref<2x2x4xf32, #tpu.memory_space<vmem>>, %arg2: memref<1x16x16x4xf32, #tpu.memory_space<vmem>>, %arg3: memref<1x4xf32, #tpu.memory_space<vmem>>, %arg4: memref<1x4xf32, #tpu.memory_space<vmem>>, %arg5: memref<3x3x4x4xbf16, #tpu.memory_space<vmem>>, %arg6: memref<1x4xf32, #tpu.memory_space<vmem>>, %arg7: memref<1x16x16x4xf32, #tpu.memory_space<vmem>>, %arg8: memref<1x2x4xf32, #tpu.memory_space<vmem>>, %arg9: memref<18x18x4xf32, #tpu.memory_space<vmem>>) attributes {dimension_semantics = [#tpu.dimension_semantics<parallel>], iteration_bounds = array<i64: 2>, scalar_prefetch = 0 : i64, scratch_operands = 1 : i64, tpu.core_type = #tpu.core_type<tc>, window_params = [{pipeline_mode = #tpu.pipeline_mode<synchronous>, transform_indices = @transform_0, window_bounds = array<i64: 2, 2, 4>}, {transform_indices = @transform_1, window_bounds = array<i64: 1, 16, 16, 4>}, {pipeline_mode = #tpu.pipeline_mode<synchronous>, transform_indices = @transform_2, window_bounds = array<i64: 1, 4>}, {pipeline_mode = #tpu.pipeline_mode<synchronous>, transform_indices = @transform_3, window_bounds = array<i64: 1, 4>}, {pipeline_mode = #tpu.pipeline_mode<synchronous>, transform_indices = @transform_4, window_bounds = array<i64: 3, 3, 4, 4>}, {pipeline_mode = #tpu.pipeline_mode<synchronous>, transform_indices = @transform_5, window_bounds = array<i64: 1, 4>}, {transform_indices = @transform_6, window_bounds = array<i64: 1, 16, 16, 4>}, {transform_indices = @transform_7, window_bounds = array<i64: 1, 2, 4>}]} {
    %c0 = arith.constant 0 : index
    %c0_0 = arith.constant 0 : index
    %c0_1 = arith.constant 0 : index
    %0 = vector.load %arg1[%c0, %c0_0, %c0_1] : memref<2x2x4xf32, #tpu.memory_space<vmem>>, vector<2x2x4xf32>
    %c0_2 = arith.constant 0 : index
    %c0_3 = arith.constant 0 : index
    %1 = vector.load %arg3[%c0_2, %c0_3] : memref<1x4xf32, #tpu.memory_space<vmem>>, vector<1x4xf32>
    %c0_4 = arith.constant 0 : index
    %c0_5 = arith.constant 0 : index
    %2 = vector.load %arg4[%c0_4, %c0_5] : memref<1x4xf32, #tpu.memory_space<vmem>>, vector<1x4xf32>
    %cst = arith.constant dense<0.000000e+00> : vector<2x4xf32>
    %3 = vector.multi_reduction <add>, %0, %cst [0] : vector<2x2x4xf32> to vector<2x4xf32>
    %4 = vector.extract_strided_slice %3 {offsets = [0, 0], sizes = [1, 4], strides = [1, 1]} : vector<2x4xf32> to vector<1x4xf32>
    %cst_6 = arith.constant 0.001953125 : f32
    %5 = vector.broadcast %cst_6 : f32 to vector<1x4xf32>
    %6 = arith.mulf %4, %5 : vector<1x4xf32>
    %7 = vector.extract_strided_slice %3 {offsets = [1, 0], sizes = [1, 4], strides = [1, 1]} : vector<2x4xf32> to vector<1x4xf32>
    %cst_7 = arith.constant 0.001953125 : f32
    %8 = vector.broadcast %cst_7 : f32 to vector<1x4xf32>
    %9 = arith.mulf %7, %8 : vector<1x4xf32>
    %10 = arith.mulf %6, %6 : vector<1x4xf32>
    %11 = arith.subf %9, %10 : vector<1x4xf32>
    %cst_8 = arith.constant 9.99999974E-6 : f32
    %12 = vector.broadcast %cst_8 : f32 to vector<1x4xf32>
    %13 = arith.addf %11, %12 : vector<1x4xf32>
    %14 = math.rsqrt %13 : vector<1x4xf32>
    %15 = arith.mulf %1, %14 : vector<1x4xf32>
    %16 = arith.mulf %6, %15 : vector<1x4xf32>
    %17 = arith.subf %2, %16 : vector<1x4xf32>
    %18 = vector.shape_cast %15 : vector<1x4xf32> to vector<1x1x4xf32>
    %19 = vector.shape_cast %17 : vector<1x4xf32> to vector<1x1x4xf32>
    %c0_9 = arith.constant 0 : index
    %c0_10 = arith.constant 0 : index
    %c0_11 = arith.constant 0 : index
    %c0_12 = arith.constant 0 : index
    %20 = vector.load %arg2[%c0_9, %c0_10, %c0_11, %c0_12] : memref<1x16x16x4xf32, #tpu.memory_space<vmem>>, vector<1x16x16x4xf32>
    %21 = vector.shape_cast %20 : vector<1x16x16x4xf32> to vector<16x16x4xf32>
    %22 = vector.broadcast %18 : vector<1x1x4xf32> to vector<16x16x4xf32>
    %23 = arith.mulf %21, %22 : vector<16x16x4xf32>
    %24 = vector.broadcast %19 : vector<1x1x4xf32> to vector<16x16x4xf32>
    %25 = arith.addf %23, %24 : vector<16x16x4xf32>
    %cst_13 = arith.constant 0.000000e+00 : f32
    %26 = vector.broadcast %cst_13 : f32 to vector<16x16x4xf32>
    %27 = arith.maximumf %25, %26 : vector<16x16x4xf32>
    %cst_14 = arith.constant 0.000000e+00 : f32
    %28 = vector.broadcast %cst_14 : f32 to vector<18x18x4xf32>
    %c0_15 = arith.constant 0 : index
    %c0_16 = arith.constant 0 : index
    %c0_17 = arith.constant 0 : index
    %29 = vector.load %arg9[%c0_15, %c0_16, %c0_17] : memref<18x18x4xf32, #tpu.memory_space<vmem>>, vector<18x18x4xf32>
    tpu.vector_store %arg9[%c0_15, %c0_16, %c0_17], %28 {strides = array<i32>} : memref<18x18x4xf32, #tpu.memory_space<vmem>>, vector<18x18x4xf32>,
    %c1 = arith.constant 1 : index
    %c1_18 = arith.constant 1 : index
    %c0_19 = arith.constant 0 : index
    %30 = vector.load %arg9[%c1, %c1_18, %c0_19] : memref<18x18x4xf32, #tpu.memory_space<vmem>>, vector<16x16x4xf32>
    tpu.vector_store %arg9[%c1, %c1_18, %c0_19], %27 {strides = array<i32>} : memref<18x18x4xf32, #tpu.memory_space<vmem>>, vector<16x16x4xf32>,
    %c0_20 = arith.constant 0 : index
    %c0_21 = arith.constant 0 : index
    %c0_22 = arith.constant 0 : index
    %31 = vector.load %arg9[%c0_20, %c0_21, %c0_22] : memref<18x18x4xf32, #tpu.memory_space<vmem>>, vector<18x18x4xf32>
    %cst_23 = arith.constant 0.000000e+00 : f32
    %32 = vector.broadcast %cst_23 : f32 to vector<256x4xf32>
    %33 = vector.extract_strided_slice %31 {offsets = [0, 0, 0], sizes = [16, 16, 4], strides = [1, 1, 1]} : vector<18x18x4xf32> to vector<16x16x4xf32>
    %34 = vector.shape_cast %33 : vector<16x16x4xf32> to vector<256x4xf32>
    %35 = arith.truncf %34 : vector<256x4xf32> to vector<256x4xbf16>
    %c0_24 = arith.constant 0 : index
    %c0_25 = arith.constant 0 : index
    %c0_26 = arith.constant 0 : index
    %c0_27 = arith.constant 0 : index
    %36 = vector.load %arg5[%c0_24, %c0_25, %c0_26, %c0_27] : memref<3x3x4x4xbf16, #tpu.memory_space<vmem>>, vector<1x1x4x4xbf16>
    %37 = vector.shape_cast %36 : vector<1x1x4x4xbf16> to vector<4x4xbf16>
    %cst_28 = arith.constant dense<0.000000e+00> : vector<256x4xf32>
    %38 = tpu.matmul %35, %37, %cst_28 {dimension_numbers = #tpu.dot_dimension_numbers<[1], [0], [0], [1], [0, 0, 1, 1], [], []>} : vector<256x4xbf16>, vector<4x4xbf16>, vector<256x4xf32> -> vector<256x4xf32>
    %39 = arith.addf %32, %38 : vector<256x4xf32>
    %40 = vector.extract_strided_slice %31 {offsets = [0, 1, 0], sizes = [16, 16, 4], strides = [1, 1, 1]} : vector<18x18x4xf32> to vector<16x16x4xf32>
    %41 = vector.shape_cast %40 : vector<16x16x4xf32> to vector<256x4xf32>
    %42 = arith.truncf %41 : vector<256x4xf32> to vector<256x4xbf16>
    %c0_29 = arith.constant 0 : index
    %c1_30 = arith.constant 1 : index
    %c0_31 = arith.constant 0 : index
    %c0_32 = arith.constant 0 : index
    %43 = vector.load %arg5[%c0_29, %c1_30, %c0_31, %c0_32] : memref<3x3x4x4xbf16, #tpu.memory_space<vmem>>, vector<1x1x4x4xbf16>
    %44 = vector.shape_cast %43 : vector<1x1x4x4xbf16> to vector<4x4xbf16>
    %cst_33 = arith.constant dense<0.000000e+00> : vector<256x4xf32>
    %45 = tpu.matmul %42, %44, %cst_33 {dimension_numbers = #tpu.dot_dimension_numbers<[1], [0], [0], [1], [0, 0, 1, 1], [], []>} : vector<256x4xbf16>, vector<4x4xbf16>, vector<256x4xf32> -> vector<256x4xf32>
    %46 = arith.addf %39, %45 : vector<256x4xf32>
    %47 = vector.extract_strided_slice %31 {offsets = [0, 2, 0], sizes = [16, 16, 4], strides = [1, 1, 1]} : vector<18x18x4xf32> to vector<16x16x4xf32>
    %48 = vector.shape_cast %47 : vector<16x16x4xf32> to vector<256x4xf32>
    %49 = arith.truncf %48 : vector<256x4xf32> to vector<256x4xbf16>
    %c0_34 = arith.constant 0 : index
    %c2 = arith.constant 2 : index
    %c0_35 = arith.constant 0 : index
    %c0_36 = arith.constant 0 : index
    %50 = vector.load %arg5[%c0_34, %c2, %c0_35, %c0_36] : memref<3x3x4x4xbf16, #tpu.memory_space<vmem>>, vector<1x1x4x4xbf16>
    %51 = vector.shape_cast %50 : vector<1x1x4x4xbf16> to vector<4x4xbf16>
    %cst_37 = arith.constant dense<0.000000e+00> : vector<256x4xf32>
    %52 = tpu.matmul %49, %51, %cst_37 {dimension_numbers = #tpu.dot_dimension_numbers<[1], [0], [0], [1], [0, 0, 1, 1], [], []>} : vector<256x4xbf16>, vector<4x4xbf16>, vector<256x4xf32> -> vector<256x4xf32>
    %53 = arith.addf %46, %52 : vector<256x4xf32>
    %54 = vector.extract_strided_slice %31 {offsets = [1, 0, 0], sizes = [16, 16, 4], strides = [1, 1, 1]} : vector<18x18x4xf32> to vector<16x16x4xf32>
    %55 = vector.shape_cast %54 : vector<16x16x4xf32> to vector<256x4xf32>
    %56 = arith.truncf %55 : vector<256x4xf32> to vector<256x4xbf16>
    %c1_38 = arith.constant 1 : index
    %c0_39 = arith.constant 0 : index
    %c0_40 = arith.constant 0 : index
    %c0_41 = arith.constant 0 : index
    %57 = vector.load %arg5[%c1_38, %c0_39, %c0_40, %c0_41] : memref<3x3x4x4xbf16, #tpu.memory_space<vmem>>, vector<1x1x4x4xbf16>
    %58 = vector.shape_cast %57 : vector<1x1x4x4xbf16> to vector<4x4xbf16>
    %cst_42 = arith.constant dense<0.000000e+00> : vector<256x4xf32>
    %59 = tpu.matmul %56, %58, %cst_42 {dimension_numbers = #tpu.dot_dimension_numbers<[1], [0], [0], [1], [0, 0, 1, 1], [], []>} : vector<256x4xbf16>, vector<4x4xbf16>, vector<256x4xf32> -> vector<256x4xf32>
    %60 = arith.addf %53, %59 : vector<256x4xf32>
    %61 = vector.extract_strided_slice %31 {offsets = [1, 1, 0], sizes = [16, 16, 4], strides = [1, 1, 1]} : vector<18x18x4xf32> to vector<16x16x4xf32>
    %62 = vector.shape_cast %61 : vector<16x16x4xf32> to vector<256x4xf32>
    %63 = arith.truncf %62 : vector<256x4xf32> to vector<256x4xbf16>
    %c1_43 = arith.constant 1 : index
    %c1_44 = arith.constant 1 : index
    %c0_45 = arith.constant 0 : index
    %c0_46 = arith.constant 0 : index
    %64 = vector.load %arg5[%c1_43, %c1_44, %c0_45, %c0_46] : memref<3x3x4x4xbf16, #tpu.memory_space<vmem>>, vector<1x1x4x4xbf16>
    %65 = vector.shape_cast %64 : vector<1x1x4x4xbf16> to vector<4x4xbf16>
    %cst_47 = arith.constant dense<0.000000e+00> : vector<256x4xf32>
    %66 = tpu.matmul %63, %65, %cst_47 {dimension_numbers = #tpu.dot_dimension_numbers<[1], [0], [0], [1], [0, 0, 1, 1], [], []>} : vector<256x4xbf16>, vector<4x4xbf16>, vector<256x4xf32> -> vector<256x4xf32>
    %67 = arith.addf %60, %66 : vector<256x4xf32>
    %68 = vector.extract_strided_slice %31 {offsets = [1, 2, 0], sizes = [16, 16, 4], strides = [1, 1, 1]} : vector<18x18x4xf32> to vector<16x16x4xf32>
    %69 = vector.shape_cast %68 : vector<16x16x4xf32> to vector<256x4xf32>
    %70 = arith.truncf %69 : vector<256x4xf32> to vector<256x4xbf16>
    %c1_48 = arith.constant 1 : index
    %c2_49 = arith.constant 2 : index
    %c0_50 = arith.constant 0 : index
    %c0_51 = arith.constant 0 : index
    %71 = vector.load %arg5[%c1_48, %c2_49, %c0_50, %c0_51] : memref<3x3x4x4xbf16, #tpu.memory_space<vmem>>, vector<1x1x4x4xbf16>
    %72 = vector.shape_cast %71 : vector<1x1x4x4xbf16> to vector<4x4xbf16>
    %cst_52 = arith.constant dense<0.000000e+00> : vector<256x4xf32>
    %73 = tpu.matmul %70, %72, %cst_52 {dimension_numbers = #tpu.dot_dimension_numbers<[1], [0], [0], [1], [0, 0, 1, 1], [], []>} : vector<256x4xbf16>, vector<4x4xbf16>, vector<256x4xf32> -> vector<256x4xf32>
    %74 = arith.addf %67, %73 : vector<256x4xf32>
    %75 = vector.extract_strided_slice %31 {offsets = [2, 0, 0], sizes = [16, 16, 4], strides = [1, 1, 1]} : vector<18x18x4xf32> to vector<16x16x4xf32>
    %76 = vector.shape_cast %75 : vector<16x16x4xf32> to vector<256x4xf32>
    %77 = arith.truncf %76 : vector<256x4xf32> to vector<256x4xbf16>
    %c2_53 = arith.constant 2 : index
    %c0_54 = arith.constant 0 : index
    %c0_55 = arith.constant 0 : index
    %c0_56 = arith.constant 0 : index
    %78 = vector.load %arg5[%c2_53, %c0_54, %c0_55, %c0_56] : memref<3x3x4x4xbf16, #tpu.memory_space<vmem>>, vector<1x1x4x4xbf16>
    %79 = vector.shape_cast %78 : vector<1x1x4x4xbf16> to vector<4x4xbf16>
    %cst_57 = arith.constant dense<0.000000e+00> : vector<256x4xf32>
    %80 = tpu.matmul %77, %79, %cst_57 {dimension_numbers = #tpu.dot_dimension_numbers<[1], [0], [0], [1], [0, 0, 1, 1], [], []>} : vector<256x4xbf16>, vector<4x4xbf16>, vector<256x4xf32> -> vector<256x4xf32>
    %81 = arith.addf %74, %80 : vector<256x4xf32>
    %82 = vector.extract_strided_slice %31 {offsets = [2, 1, 0], sizes = [16, 16, 4], strides = [1, 1, 1]} : vector<18x18x4xf32> to vector<16x16x4xf32>
    %83 = vector.shape_cast %82 : vector<16x16x4xf32> to vector<256x4xf32>
    %84 = arith.truncf %83 : vector<256x4xf32> to vector<256x4xbf16>
    %c2_58 = arith.constant 2 : index
    %c1_59 = arith.constant 1 : index
    %c0_60 = arith.constant 0 : index
    %c0_61 = arith.constant 0 : index
    %85 = vector.load %arg5[%c2_58, %c1_59, %c0_60, %c0_61] : memref<3x3x4x4xbf16, #tpu.memory_space<vmem>>, vector<1x1x4x4xbf16>
    %86 = vector.shape_cast %85 : vector<1x1x4x4xbf16> to vector<4x4xbf16>
    %cst_62 = arith.constant dense<0.000000e+00> : vector<256x4xf32>
    %87 = tpu.matmul %84, %86, %cst_62 {dimension_numbers = #tpu.dot_dimension_numbers<[1], [0], [0], [1], [0, 0, 1, 1], [], []>} : vector<256x4xbf16>, vector<4x4xbf16>, vector<256x4xf32> -> vector<256x4xf32>
    %88 = arith.addf %81, %87 : vector<256x4xf32>
    %89 = vector.extract_strided_slice %31 {offsets = [2, 2, 0], sizes = [16, 16, 4], strides = [1, 1, 1]} : vector<18x18x4xf32> to vector<16x16x4xf32>
    %90 = vector.shape_cast %89 : vector<16x16x4xf32> to vector<256x4xf32>
    %91 = arith.truncf %90 : vector<256x4xf32> to vector<256x4xbf16>
    %c2_63 = arith.constant 2 : index
    %c2_64 = arith.constant 2 : index
    %c0_65 = arith.constant 0 : index
    %c0_66 = arith.constant 0 : index
    %92 = vector.load %arg5[%c2_63, %c2_64, %c0_65, %c0_66] : memref<3x3x4x4xbf16, #tpu.memory_space<vmem>>, vector<1x1x4x4xbf16>
    %93 = vector.shape_cast %92 : vector<1x1x4x4xbf16> to vector<4x4xbf16>
    %cst_67 = arith.constant dense<0.000000e+00> : vector<256x4xf32>
    %94 = tpu.matmul %91, %93, %cst_67 {dimension_numbers = #tpu.dot_dimension_numbers<[1], [0], [0], [1], [0, 0, 1, 1], [], []>} : vector<256x4xbf16>, vector<4x4xbf16>, vector<256x4xf32> -> vector<256x4xf32>
    %95 = arith.addf %88, %94 : vector<256x4xf32>
    %c0_68 = arith.constant 0 : index
    %c0_69 = arith.constant 0 : index
    %96 = vector.load %arg6[%c0_68, %c0_69] : memref<1x4xf32, #tpu.memory_space<vmem>>, vector<1x4xf32>
    %97 = vector.broadcast %96 : vector<1x4xf32> to vector<256x4xf32>
    %98 = arith.addf %95, %97 : vector<256x4xf32>
    %99 = vector.shape_cast %98 : vector<256x4xf32> to vector<16x16x4xf32>
    %c0_70 = arith.constant 0 : index
    %c0_71 = arith.constant 0 : index
    %c0_72 = arith.constant 0 : index
    %c0_73 = arith.constant 0 : index
    %100 = vector.load %arg7[%c0_70, %c0_71, %c0_72, %c0_73] : memref<1x16x16x4xf32, #tpu.memory_space<vmem>>, vector<1x16x16x4xf32>
    %101 = vector.shape_cast %100 : vector<1x16x16x4xf32> to vector<16x16x4xf32>
    %102 = vector.shape_cast %99 : vector<16x16x4xf32> to vector<1x16x16x4xf32>
    tpu.vector_store %arg7[%c0_70, %c0_71, %c0_72, %c0_73], %102 {strides = array<i32>} : memref<1x16x16x4xf32, #tpu.memory_space<vmem>>, vector<1x16x16x4xf32>,
    %cst_74 = arith.constant dense<0.000000e+00> : vector<4xf32>
    %103 = vector.multi_reduction <add>, %98, %cst_74 [0] : vector<256x4xf32> to vector<4xf32>
    %104 = vector.shape_cast %103 : vector<4xf32> to vector<1x4xf32>
    %c0_75 = arith.constant 0 : index
    %c0_76 = arith.constant 0 : index
    %c0_77 = arith.constant 0 : index
    %105 = vector.load %arg8[%c0_75, %c0_76, %c0_77] : memref<1x2x4xf32, #tpu.memory_space<vmem>>, vector<1x1x4xf32>
    %106 = vector.shape_cast %105 : vector<1x1x4xf32> to vector<1x4xf32>
    %107 = vector.shape_cast %104 : vector<1x4xf32> to vector<1x1x4xf32>
    tpu.vector_store %arg8[%c0_75, %c0_76, %c0_77], %107 {strides = array<i32>} : memref<1x2x4xf32, #tpu.memory_space<vmem>>, vector<1x1x4xf32>,
    %108 = arith.mulf %98, %98 : vector<256x4xf32>
    %cst_78 = arith.constant dense<0.000000e+00> : vector<4xf32>
    %109 = vector.multi_reduction <add>, %108, %cst_78 [0] : vector<256x4xf32> to vector<4xf32>
    %110 = vector.shape_cast %109 : vector<4xf32> to vector<1x4xf32>
    %c0_79 = arith.constant 0 : index
    %c1_80 = arith.constant 1 : index
    %c0_81 = arith.constant 0 : index
    %111 = vector.load %arg8[%c0_79, %c1_80, %c0_81] : memref<1x2x4xf32, #tpu.memory_space<vmem>>, vector<1x1x4xf32>
    %112 = vector.shape_cast %111 : vector<1x1x4xf32> to vector<1x4xf32>
    %113 = vector.shape_cast %110 : vector<1x4xf32> to vector<1x1x4xf32>
    tpu.vector_store %arg8[%c0_79, %c1_80, %c0_81], %113 {strides = array<i32>} : memref<1x2x4xf32, #tpu.memory_space<vmem>>, vector<1x1x4xf32>,
    return
  }
  func.func @transform_0(%arg0: i32) -> (i32, i32, i32) {
    %c0_i32 = arith.constant 0 : i32
    %c0_i32_0 = arith.constant 0 : i32
    %c0_i32_1 = arith.constant 0 : i32
    %c0_i32_2 = arith.constant 0 : i32
    return %c0_i32, %c0_i32_0, %c0_i32_1 : i32, i32, i32
  }
  func.func @transform_1(%arg0: i32) -> (i32, i32, i32, i32) {
    %c0_i32 = arith.constant 0 : i32
    %c0_i32_0 = arith.constant 0 : i32
    %c0_i32_1 = arith.constant 0 : i32
    %c0_i32_2 = arith.constant 0 : i32
    return %arg0, %c0_i32, %c0_i32_0, %c0_i32_1 : i32, i32, i32, i32
  }
  func.func @transform_2(%arg0: i32) -> (i32, i32) {
    %c0_i32 = arith.constant 0 : i32
    %c0_i32_0 = arith.constant 0 : i32
    %c0_i32_1 = arith.constant 0 : i32
    return %c0_i32, %c0_i32_0 : i32, i32
  }
  func.func @transform_3(%arg0: i32) -> (i32, i32) {
    %c0_i32 = arith.constant 0 : i32
    %c0_i32_0 = arith.constant 0 : i32
    %c0_i32_1 = arith.constant 0 : i32
    return %c0_i32, %c0_i32_0 : i32, i32
  }
  func.func @transform_4(%arg0: i32) -> (i32, i32, i32, i32) {
    %c0_i32 = arith.constant 0 : i32
    %c0_i32_0 = arith.constant 0 : i32
    %c0_i32_1 = arith.constant 0 : i32
    %c0_i32_2 = arith.constant 0 : i32
    %c0_i32_3 = arith.constant 0 : i32
    return %c0_i32, %c0_i32_0, %c0_i32_1, %c0_i32_2 : i32, i32, i32, i32
  }
  func.func @transform_5(%arg0: i32) -> (i32, i32) {
    %c0_i32 = arith.constant 0 : i32
    %c0_i32_0 = arith.constant 0 : i32
    %c0_i32_1 = arith.constant 0 : i32
    return %c0_i32, %c0_i32_0 : i32, i32
  }
  func.func @transform_6(%arg0: i32) -> (i32, i32, i32, i32) {
    %c0_i32 = arith.constant 0 : i32
    %c0_i32_0 = arith.constant 0 : i32
    %c0_i32_1 = arith.constant 0 : i32
    %c0_i32_2 = arith.constant 0 : i32
    return %arg0, %c0_i32, %c0_i32_0, %c0_i32_1 : i32, i32, i32, i32
  }
  func.func @transform_7(%arg0: i32) -> (i32, i32, i32) {
    %c0_i32 = arith.constant 0 : i32
    %c0_i32_0 = arith.constant 0 : i32
    %c0_i32_1 = arith.constant 0 : i32
    return %arg0, %c0_i32, %c0_i32_0 : i32, i32, i32
  }
}

</mosaic_0001>

<bundles_post_ra>
// kernel: tile.8
= control target key start
LH: loop header
LB: loop body
LE: loop exit
PB: predicated region body
PF: predicated region fallthrough
CT: control target
= control target key end

     0   :  { %s22_s0 = inlined_call_operand.vmem [shape: f32[4], index: 0, kind: input, shape index: {}]   ;;  %s23_s1 = inlined_call_operand.vmem [shape: f32[4,4], index: 1, kind: output, shape index: {}]  }
   0x1   :  { %v4_v0 = vld [vmem:[%s22_s0] ss:$0 sm:$0xff] }
   0x2   :  { %5 = vst [vmem:[%s23_s1] sm:$0xf] %v4_v0 }

// kernel: tile.9
= control target key start
LH: loop header
LB: loop body
LE: loop exit
PB: predicated region body
PF: predicated region fallthrough
CT: control target
= control target key end

     0   :  { %s37_s8 = smov 4   ;;  %s38_s9 = smov 8   ;;  %vm7_vm0 = vcmask 31744   ;;  %vm13_vm1 = vcmask 130144   ;;  %vm19_vm2 = vcmask 97344   ;;  %vm25_vm3 = vcmask 64544   ;;  %s55_s0 = inlined_call_operand.vmem [shape: f32[4,4], index: 0, kind: input, shape index: {}]   ;;  %s56_s1 = inlined_call_operand.vmem [shape: f32[1,16], index: 1, kind: output, shape index: {}]  }
   0x1   :  { %v4_v0 = vld [vmem:[%s55_s0] sm:$0xf]  ;;  %s36_s0 = smov 12  }
   0x2   :  { %5 = vst [vmem:[#allocation1] sm:$0xf] %v4_v0 }
   0x9   :  { %v10_v1 = vld [vmem:[#allocation1 + $0x3] sm:$0x1]   ;;  %v22_v2 = vld [vmem:[#allocation1 + $0x1] sm:$0x1]   ;;  %v16_v3 = vld [vmem:[#allocation1 + $0x2] sm:$0x1]  }
   0xa   :  { %11 = vrot.lane.b32.xlu0 %v10_v1, %s36_s0  ;;  %23 = vrot.lane.b32.xlu1 %v22_v2, %s37_s8  ;;  %v6_v4 = vld [vmem:[#allocation1] sm:$0x1]  }
   0xb   :  { %8 = vst.msk [vmem:[#allocation0] sm:$0x1] %vm7_vm0, %v6_v4  }
  0x12   :  { %17 = vrot.lane.b32.xlu0 %v16_v3, %s38_s9 }
  0x7c   :  { %v12_v5 = vpop.permute.xlu0 %11   ;;  %v24_v6 = vpop.permute.xlu1 %23  }
  0x7d   :  { %14 = vst.msk [vmem:[#allocation0] sm:$0x1] %vm13_vm1, %v12_v5  }
  0x84   :  { %v18_v7 = vpop.permute.xlu0 %17  }
  0x85   :  { %20 = vst.msk [vmem:[#allocation0] sm:$0x1] %vm19_vm2, %v18_v7  }
  0x86   :  { %26 = vst.msk [vmem:[#allocation0] sm:$0x1] %vm25_vm3, %v24_v6  }
  0x8d   :  { %v29_v8 = vld [vmem:[#allocation0] sm:$0x1] }
  0x8e   :  { %32 = vst [vmem:[%s56_s1] sm:$0x1] %v29_v8 }

// kernel: up_forward.4
= control target key start
LH: loop header
LB: loop body
LE: loop exit
PB: predicated region body
PF: predicated region fallthrough
CT: control target
= control target key end

     0   :  { %vm101_vm0 = vcmask 1043456   ;;  %vm76_vm1 = vcmask 64512   ;;  %vm170_vm2 = vcmask 125952   ;;  %s365_s1 = inlined_call_operand.vmem [shape: bf16[8,16], index: 1, kind: input, shape index: {}]   ;;  %s366_s0 = inlined_call_operand.vmem [shape: bf16[128,8], index: 0, kind: input, shape index: {}]   ;;  %s367_s2 = inlined_call_operand.vmem [shape: f32[1,16], index: 2, kind: input, shape index: {}]   ;;  %s368_s3 = inlined_call_operand.vmem [shape: bf16[128,16], index: 3, kind: output, shape index: {}]  }
   0x1   :  { %v31_v0 = vld [vmem:[%s365_s1] sm:$0xf]  ;;  %v233_v3 = vld [vmem:[%s366_s0 + $0x10] sm:$0xff]  ;;  %v232_v6 = vld [vmem:[%s366_s0 + $0x8] sm:$0xff] }
   0x2   :  { %v103_v1 = vsel %vm101_vm0, %v31_v0, 0  ;;  %v231_v2 = vld [vmem:[%s366_s0] sm:$0xff]  ;;  %v237_v5 = vld [vmem:[%s366_s0 + $0x30] sm:$0xff]  ;;  %v234_v7 = vld [vmem:[%s366_s0 + $0x18] sm:$0xff] }
   0x3   :  { %112 = vmatpush.bf16.msra.mxu0 %v103_v1  ;;  %239 = vmatpush.bf16.msra.mxu1 %v103_v1  ;;  %v235_v4 = vld [vmem:[%s366_s0 + $0x20] sm:$0xff]  ;;  %v236_v8 = vld [vmem:[%s366_s0 + $0x28] sm:$0xff]  ;;  %v238_v9 = vld [vmem:[%s366_s0 + $0x38] sm:$0xff] }
   0x4   :  { %240 = vmatpush.bf16.msra.mxu2 %v103_v1  ;;  %241 = vmatpush.bf16.msra.mxu3 %v103_v1  ;;  %v242_v10 = vld [vmem:[%s367_s2] ss:$0 sm:$0xff] }
   0x6   :  { %223 = vmatmul.msk.bf16.vlgmr.msra.gmra.mxu0 %vm76_vm1, %v231_v2  ;;  %225 = vmatmul.msk.bf16.vlgmr.msra.gmra.mxu1 %vm76_vm1, %v233_v3 }
   0x7   :  { %227 = vmatmul.msk.bf16.vlgmr.msra.gmra.mxu2 %vm76_vm1, %v235_v4  ;;  %229 = vmatmul.msk.bf16.vlgmr.msra.gmra.mxu3 %vm76_vm1, %v237_v5 }
  0x16   :  { %224 = vmatmul.msk.bf16.gmra.mxu0 %vm76_vm1, %v232_v6  ;;  %226 = vmatmul.msk.bf16.gmra.mxu1 %vm76_vm1, %v234_v7 }
  0x17   :  { %228 = vmatmul.msk.bf16.gmra.mxu2 %vm76_vm1, %v236_v8  ;;  %230 = vmatmul.msk.bf16.gmra.mxu3 %vm76_vm1, %v238_v9 }
  0x83   :  { %v114_v11 = vpop.f32.mrf.mxu0  ;;  %v124_v12 = vpop.f32.mrf.mxu1 }
  0x84   :  { %v115_v13 = vadd.f32 %v242_v10, %v114_v11  ;;  %v125_v14 = vadd.f32 %v242_v10, %v124_v12 }
  0x86   :  { %v154_v15 = vpack.c.bf16 %v115_v13, %v115_v13  ;;  %v158_v16 = vpack.c.bf16 %v125_v14, %v125_v14 }
  0x88   :  { %171 = vst.msk [vmem:[%s368_s3] sm:$0xf] %vm170_vm2, %v154_v15 }
  0x89   :  { %175 = vst.msk [vmem:[%s368_s3 + $0x10] sm:$0xf] %vm170_vm2, %v158_v16 }
  0x8a   :  { %v134_v17 = vpop.f32.mrf.mxu2  ;;  %v144_v18 = vpop.f32.mrf.mxu3 }
  0x8b   :  { %v135_v19 = vadd.f32 %v242_v10, %v134_v17  ;;  %v145_v20 = vadd.f32 %v242_v10, %v144_v18  ;;  %v116_v21 = vpop.f32.mrf.mxu0  ;;  %v126_v22 = vpop.f32.mrf.mxu1 }
  0x8c   :  { %v117_v23 = vadd.f32 %v242_v10, %v116_v21  ;;  %v127_v24 = vadd.f32 %v242_v10, %v126_v22 }
  0x8d   :  { %v162_v25 = vpack.c.bf16 %v135_v19, %v135_v19  ;;  %v166_v26 = vpack.c.bf16 %v145_v20, %v145_v20 }
  0x8e   :  { %v155_v27 = vpack.c.bf16 %v117_v23, %v117_v23  ;;  %v159_v28 = vpack.c.bf16 %v127_v24, %v127_v24 }
  0x8f   :  { %179 = vst.msk [vmem:[%s368_s3 + $0x20] sm:$0xf] %vm170_vm2, %v162_v25 }
  0x90   :  { %183 = vst.msk [vmem:[%s368_s3 + $0x30] sm:$0xf] %vm170_vm2, %v166_v26 }
  0x91   :  { %172 = vst.msk [vmem:[%s368_s3 + $0x4] sm:$0xf] %vm170_vm2, %v155_v27 }
  0x92   :  { %176 = vst.msk [vmem:[%s368_s3 + $0x14] sm:$0xf] %vm170_vm2, %v159_v28  ;;  %v136_v29 = vpop.f32.mrf.mxu2  ;;  %v146_v30 = vpop.f32.mrf.mxu3 }
  0x93   :  { %v137_v31 = vadd.f32 %v242_v10, %v136_v29  ;;  %v147_v32 = vadd.f32 %v242_v10, %v146_v30  ;;  %v119_v33 = vpop.f32.mrf.mxu0  ;;  %v129_v34 = vpop.f32.mrf.mxu1 }
  0x94   :  { %v120_v35 = vadd.f32 %v242_v10, %v119_v33  ;;  %v130_v36 = vadd.f32 %v242_v10, %v129_v34 }
  0x95   :  { %v163_v37 = vpack.c.bf16 %v137_v31, %v137_v31  ;;  %v167_v38 = vpack.c.bf16 %v147_v32, %v147_v32 }
  0x96   :  { %v156_v39 = vpack.c.bf16 %v120_v35, %v120_v35  ;;  %v160_v40 = vpack.c.bf16 %v130_v36, %v130_v36 }
  0x97   :  { %180 = vst.msk [vmem:[%s368_s3 + $0x24] sm:$0xf] %vm170_vm2, %v163_v37 }
  0x98   :  { %184 = vst.msk [vmem:[%s368_s3 + $0x34] sm:$0xf] %vm170_vm2, %v167_v38 }
  0x99   :  { %173 = vst.msk [vmem:[%s368_s3 + $0x8] sm:$0xf] %vm170_vm2, %v156_v39 }
  0x9a   :  { %177 = vst.msk [vmem:[%s368_s3 + $0x18] sm:$0xf] %vm170_vm2, %v160_v40  ;;  %v139_v41 = vpop.f32.mrf.mxu2  ;;  %v149_v42 = vpop.f32.mrf.mxu3 }
  0x9b   :  { %v140_v43 = vadd.f32 %v242_v10, %v139_v41  ;;  %v150_v44 = vadd.f32 %v242_v10, %v149_v42  ;;  %v121_v45 = vpop.f32.mrf.mxu0  ;;  %v131_v46 = vpop.f32.mrf.mxu1 }
  0x9c   :  { %v122_v47 = vadd.f32 %v242_v10, %v121_v45  ;;  %v132_v48 = vadd.f32 %v242_v10, %v131_v46 }
  0x9d   :  { %v164_v49 = vpack.c.bf16 %v140_v43, %v140_v43  ;;  %v168_v50 = vpack.c.bf16 %v150_v44, %v150_v44 }
  0x9e   :  { %v157_v51 = vpack.c.bf16 %v122_v47, %v122_v47  ;;  %v161_v52 = vpack.c.bf16 %v132_v48, %v132_v48 }
  0x9f   :  { %181 = vst.msk [vmem:[%s368_s3 + $0x28] sm:$0xf] %vm170_vm2, %v164_v49 }
  0xa0   :  { %185 = vst.msk [vmem:[%s368_s3 + $0x38] sm:$0xf] %vm170_vm2, %v168_v50 }
  0xa1   :  { %174 = vst.msk [vmem:[%s368_s3 + $0xc] sm:$0xf] %vm170_vm2, %v157_v51 }
  0xa2   :  { %178 = vst.msk [vmem:[%s368_s3 + $0x1c] sm:$0xf] %vm170_vm2, %v161_v52  ;;  %v141_v53 = vpop.f32.mrf.mxu2  ;;  %v151_v54 = vpop.f32.mrf.mxu3 }
  0xa3   :  { %v142_v55 = vadd.f32 %v242_v10, %v141_v53  ;;  %v152_v56 = vadd.f32 %v242_v10, %v151_v54 }
  0xa5   :  { %v165_v57 = vpack.c.bf16 %v142_v55, %v142_v55  ;;  %v169_v58 = vpack.c.bf16 %v152_v56, %v152_v56 }
  0xa7   :  { %182 = vst.msk [vmem:[%s368_s3 + $0x2c] sm:$0xf] %vm170_vm2, %v165_v57 }
  0xa8   :  { %186 = vst.msk [vmem:[%s368_s3 + $0x3c] sm:$0xf] %vm170_vm2, %v169_v58 }

// kernel: up_forward.7
= control target key start
LH: loop header
LB: loop body
LE: loop exit
PB: predicated region body
PF: predicated region fallthrough
CT: control target
= control target key end

     0   :  { %s509_s15 = smov 0   ;;  %s713_s0 = inlined_call_operand.vmem [shape: f32[2,2,4], index: 0, kind: input, shape index: {}]   ;;  %s714_s1 = inlined_call_operand.vmem [shape: f32[2,16,16,4], index: 1, kind: input, shape index: {}]   ;;  %s715_s2 = inlined_call_operand.vmem [shape: f32[1,4], index: 2, kind: input, shape index: {}]   ;;  %s716_s3 = inlined_call_operand.vmem [shape: f32[1,4], index: 3, kind: input, shape index: {}]   ;;  %s717_s4 = inlined_call_operand.vmem [shape: f32[2,16,16,4], index: 4, kind: output, shape index: {}]  }
   0x1 LB: > { %s453_s16 = sadd.s32 4294967295, %s482_s15   ;;  %p457_p0 = scmp.ge.s32.totalorder %s482_s15, 1  ;;  %s482_s15 = sphi %s509_s15, %s14_s15  }
   0x2   : > { %p162_p1 = scmp.lt.s32.totalorder %s482_s15, 3 }
   0x4   : > { %p163_p2 = pnand %p457_p0, %p162_p1 }
   0x5   : > { %p188_p3 = scmp.lt.s32.totalorder (!%p163_p2), %s453_s16, 1 }
   0x6   : > { %166 = sbr.rel (%p163_p2) target bundleno = 95 (0x5f), region = 36 }
   0xb   : > { %v198_v0 = vld [vmem:[%s713_s0] sm:$0x3]  ;;  %v199_v1 = vld [vmem:[%s713_s0 + $0x2] sm:$0x3]  ;;  %vm202_vm0 = vcmask 25600   ;;  %s719_s16 = smov (!%p188_p3, %s453_s16), 1 }
   0xc   : > { %v203_v2 = vsel %vm202_vm0, %v198_v0, 0.0  ;;  %v204_v3 = vsel %vm202_vm0, %v199_v1, 0.0  ;;  %s464_s21 = sshll.u32 %s719_s16, 8  ;;  %v200_v17 = vld [vmem:[%s715_s2] sm:$0x1]  ;;  %vm365_vm4 = vcmask 31744  }
   0xd   : > { %v205_v4 = vadd.f32 %v204_v3, %v203_v2  ;;  %s534_s26 = scalar_lea.vmem %s714_s1, %s464_s21  ;;  %v201_v20 = vld [vmem:[%s716_s3] sm:$0x1]  ;;  %s569_s5 = scalar_lea.vmem %s717_s4, %s464_s21 }
   0xe   : > { %v231_v23 = vld [vmem:[%s534_s26] sm:$0xff]  ;;  %v232_v24 = vld [vmem:[%s534_s26 + $0x8] sm:$0xff]  ;;  %v233_v25 = vld [vmem:[%s534_s26 + $0x10] sm:$0xff] }
   0xf   : > { %v206_v5 = vmul.f32 0.001953125, %v205_v4  ;;  %v234_v26 = vld [vmem:[%s534_s26 + $0x18] sm:$0xff]  ;;  %v235_v28 = vld [vmem:[%s534_s26 + $0x20] sm:$0xff]  ;;  %v236_v29 = vld [vmem:[%s534_s26 + $0x28] sm:$0xff] }
  0x10   : > { %v237_v30 = vld [vmem:[%s534_s26 + $0x30] sm:$0xff]  ;;  %v238_v36 = vld [vmem:[%s534_s26 + $0x38] sm:$0xff]  ;;  %v239_v37 = vld [vmem:[%s534_s26 + $0x40] sm:$0xff] }
  0x11   : > { %v207_v6 = vmul.f32 %v206_v5, %v206_v5  ;;  %v240_v45 = vld [vmem:[%s534_s26 + $0x48] sm:$0xff]  ;;  %v241_v50 = vld [vmem:[%s534_s26 + $0x50] sm:$0xff]  ;;  %v242_v55 = vld [vmem:[%s534_s26 + $0x58] sm:$0xff] }
  0x12   : > { %v243_v59 = vld [vmem:[%s534_s26 + $0x60] sm:$0xff]  ;;  %v244_v63 = vld [vmem:[%s534_s26 + $0x68] sm:$0xff]  ;;  %v245_v3 = vld [vmem:[%s534_s26 + $0x70] sm:$0xff] }
  0x13   : > { %v209_v7 = vrot.slane %v207_v6, 7 }
  0x15   : > { %v211_v8 = vsub.f32 %v206_v5, %v209_v7  ;;  %v246_v7 = vld [vmem:[%s534_s26 + $0x78] sm:$0xff] }
  0x17   : > { %v212_v9 = vadd.f32 1e-05, %v211_v8 }
  0x19   : > { %474 = vrsqrt.f32 %v212_v9  ;;  %vm219_vm1 = vweird.f32 %v212_v9 }
  0x1f   : > { %v475_v10 = vpop.eup %474 }
  0x20   : > { %v214_v11 = vmul.f32 %v475_v10, %v212_v9  ;;  %vm220_vm2 = vweird.f32 %v475_v10 }
  0x21   : > { %vm221_vm3 = vmor %vm219_vm1, %vm220_vm2 }
  0x22   : > { %v215_v12 = vmul.f32 %v475_v10, %v214_v11  ;;  %v247_v11 = vld [vmem:[%s534_s26 + $0x80] sm:$0xff] }
  0x24   : > { %v216_v13 = vmul.f32 0.5, %v215_v12 }
  0x26   : > { %v217_v14 = vsub.f32 1.5, %v216_v13 }
  0x28   : > { %v218_v15 = vmul.f32 %v475_v10, %v217_v14 }
  0x2a   : > { %v222_v16 = vsel %vm221_vm3, %v475_v10, %v218_v15  ;;  %v248_v15 = vld [vmem:[%s534_s26 + $0x88] sm:$0xff] }
  0x2b   : > { %224 = vst [vmem:[#allocation1] sm:$0xff] %v222_v16 }
  0x32   : > { %v226_v18 = vld [vmem:[#allocation1 + $0x1] ss:$9 sm:$0xff] }
  0x33   : > { %v228_v19 = vmul.f32 %v226_v18, %v200_v17 }
  0x35   : > { %v229_v21 = vmul.f32 %v228_v19, %v206_v5  ;;  %v539_v22 = vperm.slane %v228_v19, 0  ;;  %v249_v19 = vld [vmem:[%s534_s26 + $0x90] sm:$0xff] }
  0x37   : > { %v230_v27 = vsub.f32 %v201_v20, %v229_v21  ;;  %v266_v31 = vmul.f32 %v539_v22, %v231_v23  ;;  %v267_v33 = vmul.f32 %v539_v22, %v232_v24  ;;  %v268_v34 = vmul.f32 %v539_v22, %v233_v25  ;;  %v250_v24 = vld [vmem:[%s534_s26 + $0x98] sm:$0xff] }
  0x38   : > { %v269_v35 = vmul.f32 %v539_v22, %v234_v26  ;;  %v270_v38 = vmul.f32 %v539_v22, %v235_v28  ;;  %v271_v39 = vmul.f32 %v539_v22, %v236_v29  ;;  %v272_v40 = vmul.f32 %v539_v22, %v237_v30  ;;  %v251_v28 = vld [vmem:[%s534_s26 + $0xa0] sm:$0xff] }
  0x39   : > { %v549_v32 = vperm.slane %v230_v27, 0  ;;  %v273_v48 = vmul.f32 %v539_v22, %v238_v36  ;;  %v274_v49 = vmul.f32 %v539_v22, %v239_v37  ;;  %v275_v58 = vmul.f32 %v539_v22, %v240_v45  ;;  %v253_v37 = vld [vmem:[%s534_s26 + $0xb0] sm:$0xff]  ;;  %v255_v45 = vld [vmem:[%s534_s26 + $0xc0] sm:$0xff] }
  0x3a   : > { %v276_v62 = vmul.f32 %v539_v22, %v241_v50  ;;  %v277_v2 = vmul.f32 %v539_v22, %v242_v55  ;;  %v278_v6 = vmul.f32 %v539_v22, %v243_v59  ;;  %v279_v10 = vmul.f32 %v539_v22, %v244_v63 }
  0x3b   : > { %v301_v41 = vadd.f32 %v549_v32, %v266_v31  ;;  %v302_v42 = vadd.f32 %v549_v32, %v267_v33  ;;  %v303_v43 = vadd.f32 %v549_v32, %v268_v34  ;;  %v304_v44 = vadd.f32 %v549_v32, %v269_v35  ;;  %v252_v33 = vld [vmem:[%s534_s26 + $0xa8] sm:$0xff] }
  0x3c   : > { %v305_v46 = vadd.f32 %v549_v32, %v270_v38  ;;  %v306_v47 = vadd.f32 %v549_v32, %v271_v39  ;;  %v307_v54 = vadd.f32 %v549_v32, %v272_v40  ;;  %v308_v57 = vadd.f32 %v549_v32, %v273_v48 }
  0x3d   : > { %v333_v51 = vmax.f32 %v301_v41, 0.0  ;;  %v334_v52 = vmax.f32 %v302_v42, 0.0  ;;  %v335_v53 = vmax.f32 %v303_v43, 0.0  ;;  %v336_v56 = vmax.f32 %v304_v44, 0.0  ;;  %v254_v41 = vld [vmem:[%s534_s26 + $0xb8] sm:$0xff] }
  0x3e   : > { %v337_v60 = vmax.f32 %v305_v46, 0.0  ;;  %v309_v61 = vadd.f32 %v549_v32, %v274_v49  ;;  %v338_v0 = vmax.f32 %v306_v47, 0.0  ;;  %v310_v1 = vadd.f32 %v549_v32, %v275_v58  ;;  %v256_v49 = vld [vmem:[%s534_s26 + $0xc8] sm:$0xff] }
  0x3f   : > { %366 = vst.msk [vmem:[%s569_s5] sm:$0xff] %vm365_vm4, %v333_v51  ;;  %v339_v4 = vmax.f32 %v307_v54, 0.0  ;;  %v311_v5 = vadd.f32 %v549_v32, %v276_v62  ;;  %v340_v8 = vmax.f32 %v308_v57, 0.0  ;;  %v312_v9 = vadd.f32 %v549_v32, %v277_v2  ;;  %v258_v57 = vld [vmem:[%s534_s26 + $0xd8] sm:$0xff] }
  0x40   : > { %367 = vst.msk [vmem:[%s569_s5 + $0x8] sm:$0xff] %vm365_vm4, %v334_v52  ;;  %v341_v12 = vmax.f32 %v309_v61, 0.0  ;;  %v313_v13 = vadd.f32 %v549_v32, %v278_v6  ;;  %v280_v14 = vmul.f32 %v539_v22, %v245_v3  ;;  %v342_v16 = vmax.f32 %v310_v1, 0.0  ;;  %v259_v61 = vld [vmem:[%s534_s26 + $0xe0] sm:$0xff]  ;;  %v260_v1 = vld [vmem:[%s534_s26 + $0xe8] sm:$0xff] }
  0x41   : > { %368 = vst.msk [vmem:[%s569_s5 + $0x10] sm:$0xff] %vm365_vm4, %v335_v53  ;;  %v314_v17 = vadd.f32 %v549_v32, %v279_v10  ;;  %v281_v18 = vmul.f32 %v539_v22, %v246_v7  ;;  %v343_v20 = vmax.f32 %v311_v5, 0.0  ;;  %v282_v23 = vmul.f32 %v539_v22, %v247_v11  ;;  %v257_v53 = vld [vmem:[%s534_s26 + $0xd0] sm:$0xff] }
  0x42   : > { %369 = vst.msk [vmem:[%s569_s5 + $0x18] sm:$0xff] %vm365_vm4, %v336_v56  ;;  %v315_v21 = vadd.f32 %v549_v32, %v280_v14  ;;  %v344_v25 = vmax.f32 %v312_v9, 0.0  ;;  %v283_v27 = vmul.f32 %v539_v22, %v248_v15  ;;  %v345_v29 = vmax.f32 %v313_v13, 0.0  ;;  %v261_v5 = vld [vmem:[%s534_s26 + $0xf0] sm:$0xff]  ;;  %v262_v9 = vld [vmem:[%s534_s26 + $0xf8] sm:$0xff] }
  0x43   : > { %370 = vst.msk [vmem:[%s569_s5 + $0x20] sm:$0xff] %vm365_vm4, %v337_v60  ;;  %v316_v26 = vadd.f32 %v549_v32, %v281_v18  ;;  %v317_v30 = vadd.f32 %v549_v32, %v282_v23  ;;  %v284_v31 = vmul.f32 %v539_v22, %v249_v19  ;;  %v346_v34 = vmax.f32 %v314_v17, 0.0 }
  0x44   : > { %371 = vst.msk [vmem:[%s569_s5 + $0x28] sm:$0xff] %vm365_vm4, %v338_v0  ;;  %v318_v35 = vadd.f32 %v549_v32, %v283_v27  ;;  %v285_v36 = vmul.f32 %v539_v22, %v250_v24  ;;  %v347_v38 = vmax.f32 %v315_v21, 0.0  ;;  %v286_v40 = vmul.f32 %v539_v22, %v251_v28 }
  0x45   : > { %372 = vst.msk [vmem:[%s569_s5 + $0x30] sm:$0xff] %vm365_vm4, %v339_v4  ;;  %v319_v39 = vadd.f32 %v549_v32, %v284_v31  ;;  %v348_v42 = vmax.f32 %v316_v26, 0.0  ;;  %v287_v44 = vmul.f32 %v539_v22, %v252_v33  ;;  %v349_v46 = vmax.f32 %v317_v30, 0.0 }
  0x46   : > { %373 = vst.msk [vmem:[%s569_s5 + $0x38] sm:$0xff] %vm365_vm4, %v340_v8  ;;  %v320_v43 = vadd.f32 %v549_v32, %v285_v36  ;;  %v321_v47 = vadd.f32 %v549_v32, %v286_v40  ;;  %v288_v48 = vmul.f32 %v539_v22, %v253_v37  ;;  %v350_v50 = vmax.f32 %v318_v35, 0.0 }
  0x47   : > { %374 = vst.msk [vmem:[%s569_s5 + $0x40] sm:$0xff] %vm365_vm4, %v341_v12  ;;  %v322_v51 = vadd.f32 %v549_v32, %v287_v44  ;;  %v289_v52 = vmul.f32 %v539_v22, %v254_v41  ;;  %v351_v54 = vmax.f32 %v319_v39, 0.0  ;;  %v290_v56 = vmul.f32 %v539_v22, %v255_v45 }
  0x48   : > { %375 = vst.msk [vmem:[%s569_s5 + $0x48] sm:$0xff] %vm365_vm4, %v342_v16  ;;  %v323_v55 = vadd.f32 %v549_v32, %v288_v48  ;;  %v352_v58 = vmax.f32 %v320_v43, 0.0  ;;  %v291_v60 = vmul.f32 %v539_v22, %v256_v49  ;;  %v353_v62 = vmax.f32 %v321_v47, 0.0 }
  0x49   : > { %376 = vst.msk [vmem:[%s569_s5 + $0x50] sm:$0xff] %vm365_vm4, %v343_v20  ;;  %v324_v59 = vadd.f32 %v549_v32, %v289_v52  ;;  %v325_v63 = vadd.f32 %v549_v32, %v290_v56  ;;  %v292_v0 = vmul.f32 %v539_v22, %v257_v53  ;;  %v354_v2 = vmax.f32 %v322_v51, 0.0 }
  0x4a   : > { %377 = vst.msk [vmem:[%s569_s5 + $0x58] sm:$0xff] %vm365_vm4, %v344_v25  ;;  %v326_v3 = vadd.f32 %v549_v32, %v291_v60  ;;  %v293_v4 = vmul.f32 %v539_v22, %v258_v57  ;;  %v355_v6 = vmax.f32 %v323_v55, 0.0  ;;  %v294_v8 = vmul.f32 %v539_v22, %v259_v61 }
  0x4b   : > { %378 = vst.msk [vmem:[%s569_s5 + $0x60] sm:$0xff] %vm365_vm4, %v345_v29  ;;  %v327_v7 = vadd.f32 %v549_v32, %v292_v0  ;;  %v356_v10 = vmax.f32 %v324_v59, 0.0  ;;  %v295_v12 = vmul.f32 %v539_v22, %v260_v1  ;;  %v357_v13 = vmax.f32 %v325_v63, 0.0 }
  0x4c   : > { %379 = vst.msk [vmem:[%s569_s5 + $0x68] sm:$0xff] %vm365_vm4, %v346_v34  ;;  %v328_v11 = vadd.f32 %v549_v32, %v293_v4  ;;  %v329_v14 = vadd.f32 %v549_v32, %v294_v8  ;;  %v296_v15 = vmul.f32 %v539_v22, %v261_v5  ;;  %v358_v16 = vmax.f32 %v326_v3, 0.0 }
  0x4d   : > { %380 = vst.msk [vmem:[%s569_s5 + $0x70] sm:$0xff] %vm365_vm4, %v347_v38  ;;  %v330_v17 = vadd.f32 %v549_v32, %v295_v12  ;;  %v297_v18 = vmul.f32 %v539_v22, %v262_v9  ;;  %v359_v19 = vmax.f32 %v327_v7, 0.0 }
  0x4e   : > { %381 = vst.msk [vmem:[%s569_s5 + $0x78] sm:$0xff] %vm365_vm4, %v348_v42  ;;  %v331_v20 = vadd.f32 %v549_v32, %v296_v15  ;;  %v360_v21 = vmax.f32 %v328_v11, 0.0  ;;  %v361_v24 = vmax.f32 %v329_v14, 0.0 }
  0x4f   : > { %382 = vst.msk [vmem:[%s569_s5 + $0x80] sm:$0xff] %vm365_vm4, %v349_v46  ;;  %v332_v23 = vadd.f32 %v549_v32, %v297_v18  ;;  %v362_v25 = vmax.f32 %v330_v17, 0.0 }
  0x50   : > { %383 = vst.msk [vmem:[%s569_s5 + $0x88] sm:$0xff] %vm365_vm4, %v350_v50  ;;  %v363_v22 = vmax.f32 %v331_v20, 0.0 }
  0x51   : > { %384 = vst.msk [vmem:[%s569_s5 + $0x90] sm:$0xff] %vm365_vm4, %v351_v54  ;;  %v364_v26 = vmax.f32 %v332_v23, 0.0 }
  0x52   : > { %385 = vst.msk [vmem:[%s569_s5 + $0x98] sm:$0xff] %vm365_vm4, %v352_v58 }
  0x53   : > { %386 = vst.msk [vmem:[%s569_s5 + $0xa0] sm:$0xff] %vm365_vm4, %v353_v62 }
  0x54   : > { %387 = vst.msk [vmem:[%s569_s5 + $0xa8] sm:$0xff] %vm365_vm4, %v354_v2 }
  0x55   : > { %388 = vst.msk [vmem:[%s569_s5 + $0xb0] sm:$0xff] %vm365_vm4, %v355_v6 }
  0x56   : > { %389 = vst.msk [vmem:[%s569_s5 + $0xb8] sm:$0xff] %vm365_vm4, %v356_v10 }
  0x57   : > { %390 = vst.msk [vmem:[%s569_s5 + $0xc0] sm:$0xff] %vm365_vm4, %v357_v13 }
  0x58   : > { %391 = vst.msk [vmem:[%s569_s5 + $0xc8] sm:$0xff] %vm365_vm4, %v358_v16 }
  0x59   : > { %392 = vst.msk [vmem:[%s569_s5 + $0xd0] sm:$0xff] %vm365_vm4, %v359_v19 }
  0x5a   : > { %393 = vst.msk [vmem:[%s569_s5 + $0xd8] sm:$0xff] %vm365_vm4, %v360_v21 }
  0x5b   : > { %394 = vst.msk [vmem:[%s569_s5 + $0xe0] sm:$0xff] %vm365_vm4, %v361_v24 }
  0x5c   : > { %395 = vst.msk [vmem:[%s569_s5 + $0xe8] sm:$0xff] %vm365_vm4, %v362_v25 }
  0x5d   : > { %396 = vst.msk [vmem:[%s569_s5 + $0xf0] sm:$0xff] %vm365_vm4, %v363_v22 }
  0x5e   : > { %397 = vst.msk [vmem:[%s569_s5 + $0xf8] sm:$0xff] %vm365_vm4, %v364_v26 }
  0x5f PF: > { %s14_s15 = sadd.s32 1, %s482_s15  }
  0x60   : > { %p11_p4 = scmp.ge.s32.totalorder %s14_s15, 4  }
  0x62   :  { %13 = sbr.rel (!%p11_p4) target bundleno = 1 (0x1), region = 67 }

// kernel: up_forward.5
= control target key start
LH: loop header
LB: loop body
LE: loop exit
PB: predicated region body
PF: predicated region fallthrough
CT: control target
= control target key end

     0   :  { %s3084_s18 = smov 0   ;;  %s4369_s0 = inlined_call_operand.vmem [shape: bf16[2,16,16,4], index: 0, kind: input, shape index: {}]   ;;  %s4370_s1 = inlined_call_operand.vmem [shape: bf16[2,16,16,4], index: 1, kind: input, shape index: {}]   ;;  %s4371_s2 = inlined_call_operand.vmem [shape: bf16[3,3,8,4], index: 2, kind: input, shape index: {}]   ;;  %s4372_s3 = inlined_call_operand.vmem [shape: f32[1,4], index: 3, kind: input, shape index: {}]   ;;  %s4373_s4 = inlined_call_operand.vmem [shape: f32[2,16,16,4], index: 4, kind: output, shape index: {0}]   ;;  %s4374_s5 = inlined_call_operand.vmem [shape: f32[2,2,4], index: 5, kind: output, shape index: {1}]  }
   0x1 LB: > { %s2623_s19 = sadd.s32 4294967295, %s3050_s18   ;;  %p2627_p0 = scmp.ge.s32.totalorder %s3050_s18, 1  ;;  %s3050_s18 = sphi %s3084_s18, %s16_s18  }
   0x2   : > { %p200_p1 = scmp.lt.s32.totalorder %s3050_s18, 3 }
   0x4   : > { %p201_p2 = pnand %p2627_p0, %p200_p1 }
   0x6   : > { %204 = sbr.rel (%p201_p2) target bundleno = 884 (0x374), region = 36 }
   0xb   : > { %p237_p3 = scmp.lt.s32.totalorder %s2623_s19, 1  ;;  %s3052_s24 = smov 4   ;;  %vm257_vm0 = vcmask 64512   ;;  %vm260_vm1 = vcmask 58368   ;;  %v3053_v30 = vmov 0.0   ;;  %vm378_vm2 = vcmask 31744  }
   0xc   : > { %283 = vst.msk [vmem:[#allocation2 + $0xc0] sm:$0xff] %vm257_vm0, %v3053_v30  ;;  %vm934_vm3 = vcmask 1043456   ;;  %vm755_vm4 = vcmask 1046528   ;;  %vm603_vm5 = vcmask 64544   ;;  %vm1167_vm6 = vcmask 1045504  }
   0xd   : > { %s4499_s19 = smov (!%p237_p3, %s2623_s19), 1  ;;  %284 = vst.msk [vmem:[#allocation2 + $0xc8] sm:$0xff] %vm257_vm0, %v3053_v30  ;;  %vm2421_vm7 = vcmask 24576  }
   0xe   : > { %s2789_s20 = sshll.u32 %s4499_s19, 7  ;;  %285 = vst.msk [vmem:[#allocation2 + $0xd0] sm:$0x3] %vm260_vm1, %v3053_v30  ;;  %s2634_s29 = sshll.u32 %s4499_s19, 1 }
   0xf   : > { %s3100_s23 = scalar_lea.vmem %s4370_s1, %s2789_s20  ;;  %258 = vst.msk [vmem:[#allocation2] sm:$0xff] %vm257_vm0, %v3053_v30  ;;  %s3245_s27 = scalar_lea.vmem %s4369_s0, %s2789_s20 }
  0x10   : > { %v2941_v0 = vld [vmem:[%s3100_s23 + $0x38] sm:$0xff]   ;;  %v2942_v7 = vld [vmem:[%s3100_s23 + $0x40] sm:$0xff]   ;;  %v2943_v24 = vld [vmem:[%s3100_s23 + $0x48] sm:$0xff]   ;;  %259 = vst.msk [vmem:[#allocation2 + $0x8] sm:$0xff] %vm257_vm0, %v3053_v30  ;;  %s255_s7 = scalar_lea.vmem %s4374_s5, %s2634_s29 }
  0x11   : > { %v2937_v1 = vld [vmem:[%s3100_s23 + $0x18] sm:$0xff]   ;;  %v2886_v2 = vunpack.c.l.bf16 %v2941_v0  ;;  %v2887_v3 = vunpack.c.h.bf16 %v2941_v0  ;;  %v2946_v8 = vld [vmem:[%s3100_s23 + $0x60] sm:$0xff]   ;;  %v2890_v13 = vunpack.c.l.bf16 %v2942_v7  ;;  %v2891_v14 = vunpack.c.h.bf16 %v2942_v7  ;;  %v2947_v31 = vld [vmem:[%s3100_s23 + $0x68] sm:$0xff]   ;;  %261 = vst.msk [vmem:[#allocation2 + $0x10] sm:$0x3] %vm260_vm1, %v3053_v30 }
  0x12   : > { %v2870_v4 = vunpack.c.l.bf16 %v2937_v1  ;;  %v2871_v5 = vunpack.c.h.bf16 %v2937_v1  ;;  %v2945_v6 = vld [vmem:[%s3100_s23 + $0x58] sm:$0xff]   ;;  %v2906_v15 = vunpack.c.l.bf16 %v2946_v8  ;;  %v2907_v16 = vunpack.c.h.bf16 %v2946_v8  ;;  %v2938_v17 = vld [vmem:[%s3100_s23 + $0x20] sm:$0xff]   ;;  %v2935_v34 = vld [vmem:[%s3100_s23 + $0x8] sm:$0xff]   ;;  %262 = vst.msk [vmem:[#allocation2 + $0x18] sm:$0xff] %vm257_vm0, %v3053_v30 }
  0x13   : > { %v2963_v9 = vpack.i.bf16 %v2887_v3, %v2886_v2  ;;  %v2902_v11 = vunpack.c.l.bf16 %v2945_v6  ;;  %v2903_v12 = vunpack.c.h.bf16 %v2945_v6  ;;  %v2978_v20 = vpack.i.bf16 %v2891_v14, %v2890_v13  ;;  %v2857_v21 = vld [vmem:[%s3100_s23] sm:$0xff]   ;;  %v2939_v37 = vld [vmem:[%s3100_s23 + $0x28] sm:$0xff]   ;;  %263 = vst.msk [vmem:[#allocation2 + $0x20] sm:$0xff] %vm257_vm0, %v3053_v30  ;;  %v2944_v43 = vld [vmem:[%s3100_s23 + $0x50] sm:$0xff]  }
  0x14   : > { %v2973_v10 = vpack.i.bf16 %v2871_v5, %v2870_v4  ;;  %v2983_v18 = vpack.i.bf16 %v2907_v16, %v2906_v15  ;;  %v2874_v22 = vunpack.c.l.bf16 %v2938_v17  ;;  %v2875_v23 = vunpack.c.h.bf16 %v2938_v17  ;;  %264 = vst.msk [vmem:[#allocation2 + $0x28] sm:$0x3] %vm260_vm1, %v3053_v30  ;;  %v2940_v46 = vld [vmem:[%s3100_s23 + $0x30] sm:$0xff]   ;;  %v2926_v61 = vld [vmem:[%s3245_s27 + $0x38] sm:$0xff]   ;;  %v2931_v3 = vld [vmem:[%s3245_s27 + $0x60] sm:$0xff]  }
  0x15   : > { %2964 = vrot.lane.b32.xlu0 %v2963_v9, %s3052_s24  ;;  %v2968_v19 = vpack.i.bf16 %v2903_v12, %v2902_v11  ;;  %v2858_v25 = vunpack.c.l.bf16 %v2857_v21  ;;  %v2859_v26 = vunpack.c.h.bf16 %v2857_v21  ;;  %v2894_v27 = vunpack.c.l.bf16 %v2943_v24  ;;  %265 = vst.msk [vmem:[#allocation2 + $0x30] sm:$0xff] %vm257_vm0, %v3053_v30  ;;  %v2948_v49 = vld [vmem:[%s3100_s23 + $0x70] sm:$0xff]   ;;  %v2922_v0 = vld [vmem:[%s3245_s27 + $0x18] sm:$0xff]   ;;  %v2923_v17 = vld [vmem:[%s3245_s27 + $0x20] sm:$0xff]  }
  0x16   : > { %2974 = vrot.lane.b32.xlu1 %v2973_v10, %s3052_s24  ;;  %2984 = vrot.lane.b32.xlu2 %v2983_v18, %s3052_s24  ;;  %v2895_v28 = vunpack.c.h.bf16 %v2943_v24  ;;  %v2988_v29 = vpack.i.bf16 %v2875_v23, %v2874_v22  ;;  %v2910_v35 = vunpack.c.l.bf16 %v2947_v31  ;;  %v2911_v36 = vunpack.c.h.bf16 %v2947_v31  ;;  %266 = vst.msk [vmem:[#allocation2 + $0x38] sm:$0xff] %vm257_vm0, %v3053_v30  ;;  %v2936_v55 = vld [vmem:[%s3100_s23 + $0x10] sm:$0xff]   ;;  %v2930_v6 = vld [vmem:[%s3245_s27 + $0x58] sm:$0xff]   ;;  %v3261_v11 = vld [vmem:[#allocation2] sm:$0xff] }
  0x17   : > { %v2993_v32 = vpack.i.bf16 %v2859_v26, %v2858_v25  ;;  %v2862_v38 = vunpack.c.l.bf16 %v2935_v34  ;;  %v2863_v39 = vunpack.c.h.bf16 %v2935_v34  ;;  %v2878_v40 = vunpack.c.l.bf16 %v2939_v37  ;;  %267 = vst.msk [vmem:[#allocation2 + $0x40] sm:$0x3] %vm260_vm1, %v3053_v30  ;;  %v2635_v10 = vld [vmem:[%s4371_s2 + $0x4] sm:$0xf]  ;;  %v3263_v12 = vld [vmem:[#allocation2 + $0x8] sm:$0xff] }
  0x18   : > { %v2998_v33 = vpack.i.bf16 %v2895_v28, %v2894_v27  ;;  %v2879_v41 = vunpack.c.h.bf16 %v2939_v37  ;;  %v3003_v42 = vpack.i.bf16 %v2911_v36, %v2910_v35  ;;  %v2898_v47 = vunpack.c.l.bf16 %v2944_v43  ;;  %268 = vst.msk [vmem:[#allocation2 + $0x48] sm:$0xff] %vm257_vm0, %v3053_v30  ;;  %v3267_v16 = vld [vmem:[#allocation2 + $0x10] sm:$0x3]  ;;  %v2927_v21 = vld [vmem:[%s3245_s27 + $0x40] sm:$0xff]   ;;  %v2685_v34 = vld [vmem:[%s4371_s2 + $0xc] sm:$0xf] }
  0x19   : > { %v3013_v44 = vpack.i.bf16 %v2863_v39, %v2862_v38  ;;  %v2899_v48 = vunpack.c.h.bf16 %v2944_v43  ;;  %269 = vst.msk [vmem:[#allocation2 + $0x50] sm:$0xff] %vm257_vm0, %v3053_v30  ;;  %v2882_v50 = vunpack.c.l.bf16 %v2940_v46  ;;  %v2883_v51 = vunpack.c.h.bf16 %v2940_v46  ;;  %v2928_v35 = vld [vmem:[%s3245_s27 + $0x48] sm:$0xff]   ;;  %v2702_v43 = vld [vmem:[%s4371_s2 + $0x10] sm:$0xf] }
  0x1a   : > { %v3008_v45 = vpack.i.bf16 %v2879_v41, %v2878_v40  ;;  %270 = vst.msk [vmem:[#allocation2 + $0x58] sm:$0x3] %vm260_vm1, %v3053_v30  ;;  %v2914_v52 = vunpack.c.l.bf16 %v2948_v49  ;;  %v2915_v53 = vunpack.c.h.bf16 %v2948_v49  ;;  %v2866_v58 = vunpack.c.l.bf16 %v2936_v55  ;;  %v2920_v49 = vld [vmem:[%s3245_s27 + $0x8] sm:$0xff]  }
  0x1b   : > { %271 = vst.msk [vmem:[#allocation2 + $0x60] sm:$0xff] %vm257_vm0, %v3053_v30  ;;  %v3018_v54 = vpack.i.bf16 %v2899_v48, %v2898_v47  ;;  %v3028_v56 = vpack.i.bf16 %v2883_v51, %v2882_v50  ;;  %v2867_v59 = vunpack.c.h.bf16 %v2936_v55  ;;  %v2822_v62 = vunpack.c.l.bf16 %v2926_v61 }
  0x1c   : > { %272 = vst.msk [vmem:[#allocation2 + $0x68] sm:$0xff] %vm257_vm0, %v3053_v30  ;;  %v3023_v57 = vpack.i.bf16 %v2915_v53, %v2914_v52  ;;  %v2823_v63 = vunpack.c.h.bf16 %v2926_v61  ;;  %v2806_v1 = vunpack.c.l.bf16 %v2922_v0  ;;  %v2807_v2 = vunpack.c.h.bf16 %v2922_v0  ;;  %v2924_v52 = vld [vmem:[%s3245_s27 + $0x28] sm:$0xff]   ;;  %v2929_v0 = vld [vmem:[%s3245_s27 + $0x50] sm:$0xff]  }
  0x1d   : > { %2969 = vrot.lane.b32.xlu0 %v2968_v19, %s3052_s24  ;;  %273 = vst.msk [vmem:[#allocation2 + $0x70] sm:$0x3] %vm260_vm1, %v3053_v30  ;;  %v3033_v60 = vpack.i.bf16 %v2867_v59, %v2866_v58  ;;  %v2842_v4 = vunpack.c.l.bf16 %v2931_v3  ;;  %v2843_v5 = vunpack.c.h.bf16 %v2931_v3  ;;  %v2838_v7 = vunpack.c.l.bf16 %v2930_v6 }
  0x1e   : > { %2979 = vrot.lane.b32.xlu1 %v2978_v20, %s3052_s24  ;;  %2989 = vrot.lane.b32.xlu2 %v2988_v29, %s3052_s24  ;;  %274 = vst.msk [vmem:[#allocation2 + $0x78] sm:$0xff] %vm257_vm0, %v3053_v30  ;;  %v2839_v8 = vunpack.c.h.bf16 %v2930_v6  ;;  %v936_v15 = vsel %vm934_vm3, %v2635_v10, 0  ;;  %v756_v18 = vrot.slane %v3261_v11, 1  ;;  %v757_v19 = vrot.slane %v3263_v12, 1  ;;  %v2793_v29 = vld [vmem:[%s3245_s27] sm:$0xff]  }
  0x1f   : > { %275 = vst.msk [vmem:[#allocation2 + $0x80] sm:$0xff] %vm257_vm0, %v3053_v30  ;;  %945 = vmatpush.bf16.msra.mxu0 %v936_v15  ;;  %2950 = vmatpush.bf16.msra.mxu1 %v936_v15  ;;  %v759_v20 = vrot.slane %v3267_v16, 1  ;;  %v2810_v22 = vunpack.c.l.bf16 %v2923_v17  ;;  %v2811_v23 = vunpack.c.h.bf16 %v2923_v17  ;;  %v2826_v24 = vunpack.c.l.bf16 %v2927_v21 }
  0x20   : > { %276 = vst.msk [vmem:[#allocation2 + $0x88] sm:$0x3] %vm260_vm1, %v3053_v30  ;;  %2951 = vmatpush.bf16.msra.mxu2 %v936_v15  ;;  %2952 = vmatpush.bf16.msra.mxu3 %v936_v15  ;;  %v758_v25 = vsel %vm755_vm4, %v756_v18, %v757_v19  ;;  %v2827_v27 = vunpack.c.h.bf16 %v2927_v21  ;;  %v2795_v31 = vunpack.c.h.bf16 %v2793_v29  ;;  %v1477_v39 = vsel %vm934_vm3, %v2685_v34, 0 }
  0x21   : > { %277 = vst.msk [vmem:[#allocation2 + $0x90] sm:$0xff] %vm257_vm0, %v3053_v30  ;;  %v760_v26 = vsel %vm755_vm4, %v757_v19, %v759_v20  ;;  %v2830_v40 = vunpack.c.l.bf16 %v2928_v35  ;;  %v2831_v41 = vunpack.c.h.bf16 %v2928_v35  ;;  %v1617_v46 = vsel %vm934_vm3, %v2702_v43, 0 }
  0x22   : > { %278 = vst.msk [vmem:[#allocation2 + $0x98] sm:$0xff] %vm257_vm0, %v3053_v30  ;;  %v868_v28 = vpack.c.bf16 %v760_v26, %v758_v25  ;;  %v2798_v50 = vunpack.c.l.bf16 %v2920_v49  ;;  %v2799_v55 = vunpack.c.h.bf16 %v2920_v49  ;;  %v2834_v3 = vunpack.c.l.bf16 %v2929_v0 }
  0x23   : > { %279 = vst.msk [vmem:[#allocation2 + $0xa0] sm:$0x3] %vm260_vm1, %v3053_v30  ;;  %1626 = vmatpush.bf16.msrb.mxu0 %v1617_v46 }
  0x24   : > { %280 = vst.msk [vmem:[#allocation2 + $0xa8] sm:$0xff] %vm257_vm0, %v3053_v30  ;;  %2636 = vmatmul.msk.bf16.vlgmr.msra.gmra.mxu0 %vm257_vm0, %v868_v28  ;;  %1486 = vmatpush.bf16.msrb.mxu3 %v1477_v39 }
  0x25   : > { %2994 = vrot.lane.b32.xlu0 %v2993_v32, %s3052_s24  ;;  %281 = vst.msk [vmem:[#allocation2 + $0xb0] sm:$0xff] %vm257_vm0, %v3053_v30 }
  0x26   : > { %2999 = vrot.lane.b32.xlu1 %v2998_v33, %s3052_s24  ;;  %3004 = vrot.lane.b32.xlu2 %v3003_v42, %s3052_s24  ;;  %282 = vst.msk [vmem:[#allocation2 + $0xb8] sm:$0x3] %vm260_vm1, %v3053_v30  ;;  %v2668_v33 = vld [vmem:[%s4371_s2 + $0x8] sm:$0xf]  ;;  %v706_v42 = vld [vmem:[%s4371_s2] sm:$0xf] }
  0x27   : > { %286 = vst.msk [vmem:[#allocation2 + $0xd8] sm:$0xff] %vm257_vm0, %v3053_v30  ;;  %v1347_v38 = vsel %vm934_vm3, %v2668_v33, 0 }
  0x28   : > { %287 = vst.msk [vmem:[#allocation2 + $0xe0] sm:$0xff] %vm257_vm0, %v3053_v30  ;;  %1356 = vmatpush.bf16.msrb.mxu2 %v1347_v38 }
  0x29   : > { %288 = vst.msk [vmem:[#allocation2 + $0xe8] sm:$0x3] %vm260_vm1, %v3053_v30 }
  0x2a   : > { %289 = vst.msk [vmem:[#allocation2 + $0xf0] sm:$0xff] %vm257_vm0, %v3053_v30 }
  0x2b   : > { %290 = vst.msk [vmem:[#allocation2 + $0xf8] sm:$0xff] %vm257_vm0, %v3053_v30 }
  0x2c   : > { %291 = vst.msk [vmem:[#allocation2 + $0x100] sm:$0x3] %vm260_vm1, %v3053_v30 }
  0x2d   : > { %3009 = vrot.lane.b32.xlu0 %v3008_v45, %s3052_s24  ;;  %292 = vst.msk [vmem:[#allocation2 + $0x108] sm:$0xff] %vm257_vm0, %v3053_v30  ;;  %v1076_v45 = vsel %vm934_vm3, %v706_v42, 0 }
  0x2e   : > { %3014 = vrot.lane.b32.xlu1 %v3013_v44, %s3052_s24  ;;  %3019 = vrot.lane.b32.xlu2 %v3018_v54, %s3052_s24  ;;  %293 = vst.msk [vmem:[#allocation2 + $0x110] sm:$0xff] %vm257_vm0, %v3053_v30  ;;  %v2932_v44 = vld [vmem:[%s3245_s27 + $0x68] sm:$0xff]  }
  0x2f   : > { %294 = vst.msk [vmem:[#allocation2 + $0x118] sm:$0x3] %vm260_vm1, %v3053_v30  ;;  %v2846_v47 = vunpack.c.l.bf16 %v2932_v44  ;;  %v2847_v48 = vunpack.c.h.bf16 %v2932_v44  ;;  %1085 = vmatpush.bf16.msrb.mxu1 %v1076_v45 }
  0x30   : > { %295 = vst.msk [vmem:[#allocation2 + $0x120] sm:$0xff] %vm257_vm0, %v3053_v30 }
  0x31   : > { %296 = vst.msk [vmem:[#allocation2 + $0x128] sm:$0xff] %vm257_vm0, %v3053_v30 }
  0x32   : > { %297 = vst.msk [vmem:[#allocation2 + $0x130] sm:$0x3] %vm260_vm1, %v3053_v30 }
  0x33   : > { %298 = vst.msk [vmem:[#allocation2 + $0x138] sm:$0xff] %vm257_vm0, %v3053_v30 }
  0x34   : > { %299 = vst.msk [vmem:[#allocation2 + $0x140] sm:$0xff] %vm257_vm0, %v3053_v30 }
  0x35   : > { %3024 = vrot.lane.b32.xlu0 %v3023_v57, %s3052_s24  ;;  %300 = vst.msk [vmem:[#allocation2 + $0x148] sm:$0x3] %vm260_vm1, %v3053_v30 }
  0x36   : > { %3029 = vrot.lane.b32.xlu1 %v3028_v56, %s3052_s24  ;;  %3034 = vrot.lane.b32.xlu2 %v3033_v60, %s3052_s24  ;;  %301 = vst.msk [vmem:[#allocation2 + $0x150] sm:$0xff] %vm257_vm0, %v3053_v30  ;;  %v2814_v56 = vunpack.c.l.bf16 %v2924_v52 }
  0x37   : > { %302 = vst.msk [vmem:[#allocation2 + $0x158] sm:$0xff] %vm257_vm0, %v3053_v30 }
  0x38   : > { %303 = vst.msk [vmem:[#allocation2 + $0x160] sm:$0x3] %vm260_vm1, %v3053_v30 }
  0x39   : > { %304 = vst.msk [vmem:[#allocation2 + $0x168] sm:$0xff] %vm257_vm0, %v3053_v30 }
  0x3a   : > { %305 = vst.msk [vmem:[#allocation2 + $0x170] sm:$0xff] %vm257_vm0, %v3053_v30 }
  0x3b   : > { %306 = vst.msk [vmem:[#allocation2 + $0x178] sm:$0x3] %vm260_vm1, %v3053_v30 }
  0x3c   : > { %307 = vst.msk [vmem:[#allocation2 + $0x180] sm:$0xff] %vm257_vm0, %v3053_v30 }
  0x3d   : > { %308 = vst.msk [vmem:[#allocation2 + $0x188] sm:$0xff] %vm257_vm0, %v3053_v30 }
  0x3e   : > { %309 = vst.msk [vmem:[#allocation2 + $0x190] sm:$0x3] %vm260_vm1, %v3053_v30 }
  0x3f   : > { %310 = vst.msk [vmem:[#allocation2 + $0x198] sm:$0xff] %vm257_vm0, %v3053_v30 }
  0x40   : > { %311 = vst.msk [vmem:[#allocation2 + $0x1a0] sm:$0xff] %vm257_vm0, %v3053_v30 }
  0x41   : > { %312 = vst.msk [vmem:[#allocation2 + $0x1a8] sm:$0x3] %vm260_vm1, %v3053_v30  ;;  %v2794_v30 = vunpack.c.l.bf16 %v2793_v29 }
  0x42   : > { %393 = vst.msk [vmem:[#allocation2 + $0xc1] sm:$0xff] %vm378_vm2, %v2822_v62 }
  0x43   : > { %394 = vst.msk [vmem:[#allocation2 + $0xc9] sm:$0xff] %vm378_vm2, %v2823_v63  ;;  %v2815_v63 = vunpack.c.h.bf16 %v2924_v52 }
  0x44   : > { %385 = vst.msk [vmem:[#allocation2 + $0x61] sm:$0xff] %vm378_vm2, %v2806_v1 }
  0x45   : > { %386 = vst.msk [vmem:[#allocation2 + $0x69] sm:$0xff] %vm378_vm2, %v2807_v2 }
  0x46   : > { %403 = vst.msk [vmem:[#allocation2 + $0x139] sm:$0xff] %vm378_vm2, %v2842_v4  ;;  %v2835_v4 = vunpack.c.h.bf16 %v2929_v0  ;;  %v2925_v0 = vld [vmem:[%s3245_s27 + $0x30] sm:$0xff]  }
  0x47   : > { %404 = vst.msk [vmem:[#allocation2 + $0x141] sm:$0xff] %vm378_vm2, %v2843_v5 }
  0x48   : > { %401 = vst.msk [vmem:[#allocation2 + $0x121] sm:$0xff] %vm378_vm2, %v2838_v7 }
  0x49   : > { %402 = vst.msk [vmem:[#allocation2 + $0x129] sm:$0xff] %vm378_vm2, %v2839_v8 }
  0x4a   : > { %387 = vst.msk [vmem:[#allocation2 + $0x79] sm:$0xff] %vm378_vm2, %v2810_v22  ;;  %v2921_v22 = vld [vmem:[%s3245_s27 + $0x10] sm:$0xff]  }
  0x4b   : > { %388 = vst.msk [vmem:[#allocation2 + $0x81] sm:$0xff] %vm378_vm2, %v2811_v23  ;;  %v2803_v44 = vunpack.c.h.bf16 %v2921_v22 }
  0x4c   : > { %395 = vst.msk [vmem:[#allocation2 + $0xd9] sm:$0xff] %vm378_vm2, %v2826_v24 }
  0x4d   : > { %396 = vst.msk [vmem:[#allocation2 + $0xe1] sm:$0xff] %vm378_vm2, %v2827_v27  ;;  %v2802_v27 = vunpack.c.l.bf16 %v2921_v22 }
  0x4e   : > { %379 = vst.msk [vmem:[#allocation2 + $0x19] sm:$0xff] %vm378_vm2, %v2794_v30 }
  0x4f   : > { %380 = vst.msk [vmem:[#allocation2 + $0x21] sm:$0xff] %vm378_vm2, %v2795_v31 }
  0x50   : > { %397 = vst.msk [vmem:[#allocation2 + $0xf1] sm:$0xff] %vm378_vm2, %v2830_v40 }
  0x51   : > { %398 = vst.msk [vmem:[#allocation2 + $0xf9] sm:$0xff] %vm378_vm2, %v2831_v41 }
  0x52   : > { %405 = vst.msk [vmem:[#allocation2 + $0x151] sm:$0xff] %vm378_vm2, %v2846_v47 }
  0x53   : > { %406 = vst.msk [vmem:[#allocation2 + $0x159] sm:$0xff] %vm378_vm2, %v2847_v48 }
  0x54   : > { %381 = vst.msk [vmem:[#allocation2 + $0x31] sm:$0xff] %vm378_vm2, %v2798_v50 }
  0x55   : > { %382 = vst.msk [vmem:[#allocation2 + $0x39] sm:$0xff] %vm378_vm2, %v2799_v55 }
  0x56   : > { %389 = vst.msk [vmem:[#allocation2 + $0x91] sm:$0xff] %vm378_vm2, %v2814_v56 }
  0x57   : > { %390 = vst.msk [vmem:[#allocation2 + $0x99] sm:$0xff] %vm378_vm2, %v2815_v63 }
  0x58   : > { %399 = vst.msk [vmem:[#allocation2 + $0x109] sm:$0xff] %vm378_vm2, %v2834_v3 }
  0x59   : > { %400 = vst.msk [vmem:[#allocation2 + $0x111] sm:$0xff] %vm378_vm2, %v2835_v4 }
  0x5a   : > { %383 = vst.msk [vmem:[#allocation2 + $0x49] sm:$0xff] %vm378_vm2, %v2802_v27  ;;  %v2819_v27 = vunpack.c.h.bf16 %v2925_v0 }
  0x5b   : > { %384 = vst.msk [vmem:[#allocation2 + $0x51] sm:$0xff] %vm378_vm2, %v2803_v44 }
  0x5c   : > { %392 = vst.msk [vmem:[#allocation2 + $0xb1] sm:$0xff] %vm378_vm2, %v2819_v27 }
  0x70   : > { %v2985_v9 = vpop.permute.xlu2 %2984 }
  0x71   : > { %v2987_v13 = vunpack.i.h.bf16 %v2985_v9  ;;  %v2986_v14 = vunpack.i.l.bf16 %v2985_v9 }
  0x73   : > { %628 = vst.msk [vmem:[#allocation2 + $0x139] sm:$0xff] %vm603_vm5, %v2986_v14 }
  0x74   : > { %629 = vst.msk [vmem:[#allocation2 + $0x141] sm:$0xff] %vm603_vm5, %v2987_v13 }
  0x78   : > { %v2990_v32 = vpop.permute.xlu2 %2989 }
  0x79   : > { %v2992_v36 = vunpack.i.h.bf16 %v2990_v32  ;;  %v2991_v37 = vunpack.i.l.bf16 %v2990_v32 }
  0x7b   : > { %612 = vst.msk [vmem:[#allocation2 + $0x79] sm:$0xff] %vm603_vm5, %v2991_v37  ;;  %v3426_v44 = vld [vmem:[#allocation2 + $0x140] sm:$0xff] }
  0x7c   : > { %613 = vst.msk [vmem:[#allocation2 + $0x81] sm:$0xff] %vm603_vm5, %v2992_v36 }
  0x80   : > { %v3005_v51 = vpop.permute.xlu2 %3004 }
  0x81   : > { %v3007_v53 = vunpack.i.h.bf16 %v3005_v51  ;;  %v3006_v54 = vunpack.i.l.bf16 %v3005_v51 }
  0x82   : > { %v3320_v1 = vld [vmem:[#allocation2 + $0x78] sm:$0xff] }
  0x83   : > { %630 = vst.msk [vmem:[#allocation2 + $0x151] sm:$0xff] %vm603_vm5, %v3006_v54  ;;  %v3324_v5 = vld [vmem:[#allocation2 + $0x80] sm:$0xff]  ;;  %v3327_v7 = vld [vmem:[#allocation2 + $0x88] sm:$0x3]  ;;  %v781_v8 = vrot.slane %v3320_v1, 1  ;;  %v1193_v14 = vrot.slane %v3320_v1, 2 }
  0x84   : > { %631 = vst.msk [vmem:[#allocation2 + $0x159] sm:$0xff] %vm603_vm5, %v3007_v53  ;;  %v3333_v13 = vpack.c.bf16 %v3324_v5, %v3320_v1  ;;  %v1194_v15 = vrot.slane %v3324_v5, 2  ;;  %v1196_v17 = vrot.slane %v3327_v7, 2  ;;  %v782_v21 = vrot.slane %v3324_v5, 1 }
  0x85   : > { %v784_v25 = vrot.slane %v3327_v7, 1 }
  0x86   : > { %4409 = vst [vmem:[#allocation3_spill] sm:$0xff] %v3333_v13  ;;  %v1195_v31 = vsel %vm1167_vm6, %v1193_v14, %v1194_v15  ;;  %v1197_v32 = vsel %vm1167_vm6, %v1194_v15, %v1196_v17 }
  0x87   : > { %v2965_v57 = vpop.permute.xlu0 %2964  ;;  %v3349_v39 = vpack.c.bf16 %v1197_v32, %v1195_v31 }
  0x88   : > { %v2975_v58 = vpop.permute.xlu1 %2974  ;;  %v2967_v59 = vunpack.i.h.bf16 %v2965_v57  ;;  %v2966_v60 = vunpack.i.l.bf16 %v2965_v57  ;;  %v3020_v2 = vpop.permute.xlu2 %3019 }
  0x89   : > { %v2976_v61 = vunpack.i.l.bf16 %v2975_v58  ;;  %v2977_v62 = vunpack.i.h.bf16 %v2975_v58  ;;  %v3021_v6 = vunpack.i.l.bf16 %v3020_v2  ;;  %v3022_v26 = vunpack.i.h.bf16 %v3020_v2  ;;  %4410 = vst [vmem:[#allocation4_spill] sm:$0xff] %v3349_v39 }
  0x8a   : > { %618 = vst.msk [vmem:[#allocation2 + $0xc1] sm:$0xff] %vm603_vm5, %v2966_v60 }
  0x8b   : > { %619 = vst.msk [vmem:[#allocation2 + $0xc9] sm:$0xff] %vm603_vm5, %v2967_v59 }
  0x8c   : > { %610 = vst.msk [vmem:[#allocation2 + $0x61] sm:$0xff] %vm603_vm5, %v2976_v61 }
  0x8d   : > { %611 = vst.msk [vmem:[#allocation2 + $0x69] sm:$0xff] %vm603_vm5, %v2977_v62 }
  0x8e   : > { %624 = vst.msk [vmem:[#allocation2 + $0x109] sm:$0xff] %vm603_vm5, %v3021_v6 }
  0x8f   : > { %v2970_v9 = vpop.permute.xlu0 %2969  ;;  %625 = vst.msk [vmem:[#allocation2 + $0x111] sm:$0xff] %vm603_vm5, %v3022_v26  ;;  %v2818_v26 = vunpack.c.l.bf16 %v2925_v0  ;;  %v3466_v0 = vld [vmem:[#allocation2 + $0x158] sm:$0xff] }
  0x90   : > { %v2980_v10 = vpop.permute.xlu1 %2979  ;;  %v2972_v18 = vunpack.i.h.bf16 %v2970_v9  ;;  %v2971_v19 = vunpack.i.l.bf16 %v2970_v9  ;;  %v3347_v38 = vpop.permute.xlu2 %3034 }
  0x91   : > { %v2981_v20 = vunpack.i.l.bf16 %v2980_v10  ;;  %v2982_v23 = vunpack.i.h.bf16 %v2980_v10  ;;  %v660_v24 = vld [vmem:[#allocation2 + $0xc0] sm:$0xff]  ;;  %v3036_v43 = vunpack.i.l.bf16 %v3347_v38  ;;  %v3037_v17 = vunpack.i.h.bf16 %v3347_v38  ;;  %391 = vst.msk [vmem:[#allocation2 + $0xa9] sm:$0xff] %vm378_vm2, %v2818_v26 }
  0x92   : > { %626 = vst.msk [vmem:[#allocation2 + $0x121] sm:$0xff] %vm603_vm5, %v2971_v19  ;;  %v661_v28 = vld [vmem:[#allocation2 + $0xc8] sm:$0xff]  ;;  %v662_v29 = vld [vmem:[#allocation2 + $0xd0] sm:$0x3]  ;;  %v796_v30 = vrot.slane %v660_v24, 1  ;;  %v1208_v33 = vrot.slane %v660_v24, 2 }
  0x93   : > { %627 = vst.msk [vmem:[#allocation2 + $0x129] sm:$0xff] %vm603_vm5, %v2972_v18  ;;  %v648_v34 = vld [vmem:[#allocation2 + $0x60] sm:$0xff]  ;;  %v797_v35 = vrot.slane %v661_v28, 1  ;;  %v799_v36 = vrot.slane %v662_v29, 1  ;;  %v1211_v37 = vrot.slane %v662_v29, 2  ;;  %v3364_v58 = vpack.c.bf16 %v661_v28, %v660_v24  ;;  %v3388_v18 = vld [vmem:[%s3245_s27 + $0x70] sm:$0xff]  }
  0x94   : > { %620 = vst.msk [vmem:[#allocation2 + $0xd9] sm:$0xff] %vm603_vm5, %v2981_v20  ;;  %v649_v40 = vld [vmem:[#allocation2 + $0x68] sm:$0xff]  ;;  %v650_v41 = vld [vmem:[#allocation2 + $0x70] sm:$0x3]  ;;  %v776_v42 = vrot.slane %v648_v34, 1  ;;  %v1188_v45 = vrot.slane %v648_v34, 2  ;;  %v2850_v31 = vunpack.c.l.bf16 %v3388_v18 }
  0x95   : > { %621 = vst.msk [vmem:[#allocation2 + $0xe1] sm:$0xff] %vm603_vm5, %v2982_v23  ;;  %v777_v46 = vrot.slane %v649_v40, 1  ;;  %v779_v47 = vrot.slane %v650_v41, 1  ;;  %v798_v48 = vsel %vm755_vm4, %v796_v30, %v797_v35  ;;  %v800_v49 = vsel %vm755_vm4, %v797_v35, %v799_v36 }
  0x96   : > { %v3356_v50 = vpack.c.bf16 %v800_v49, %v798_v48  ;;  %v3359_v51 = vpack.c.bf16 %v649_v40, %v648_v34  ;;  %v1189_v52 = vrot.slane %v649_v40, 2  ;;  %v1191_v53 = vrot.slane %v650_v41, 2  ;;  %4412 = vst [vmem:[#allocation6_spill] sm:$0xff] %v3364_v58  ;;  %v3418_v40 = vld [vmem:[#allocation2 + $0x138] sm:$0xff]  ;;  %v3436_v49 = vld [vmem:[#allocation2 + $0x148] sm:$0x3] }
  0x97   : > { %v2995_v54 = vpop.permute.xlu0 %2994  ;;  %v778_v55 = vsel %vm755_vm4, %v776_v42, %v777_v46  ;;  %v780_v56 = vsel %vm755_vm4, %v777_v46, %v779_v47  ;;  %v1209_v59 = vrot.slane %v661_v28, 2  ;;  %608 = vst.msk [vmem:[#allocation2 + $0x49] sm:$0xff] %vm603_vm5, %v3036_v43  ;;  %v783_v43 = vsel %vm755_vm4, %v781_v8, %v782_v21 }
  0x98   : > { %4411 = vst [vmem:[#allocation5_spill] sm:$0xff] %v3356_v50  ;;  %v3000_v57 = vpop.permute.xlu1 %2999  ;;  %v2997_v60 = vunpack.i.h.bf16 %v2995_v54  ;;  %v2996_v61 = vunpack.i.l.bf16 %v2995_v54  ;;  %v3366_v62 = vpack.c.bf16 %v780_v56, %v778_v55  ;;  %2644 = vmatmul.msk.bf16.vlgmr.msra.gmra.mxu2 %vm257_vm0, %v3356_v50  ;;  %v1190_v4 = vsel %vm1167_vm6, %v1188_v45, %v1189_v52 }
  0x99   : > { %v3002_v63 = vunpack.i.h.bf16 %v3000_v57  ;;  %v3001_v2 = vunpack.i.l.bf16 %v3000_v57  ;;  %v3372_v3 = vld [vmem:[#allocation2 + $0x120] sm:$0xff]  ;;  %v1192_v6 = vsel %vm1167_vm6, %v1189_v52, %v1191_v53  ;;  %v1210_v9 = vsel %vm1167_vm6, %v1208_v33, %v1209_v59  ;;  %609 = vst.msk [vmem:[#allocation2 + $0x51] sm:$0xff] %vm603_vm5, %v3037_v17 }
  0x9a   : > { %604 = vst.msk [vmem:[#allocation2 + $0x19] sm:$0xff] %vm603_vm5, %v2996_v61  ;;  %2640 = vmatmul.msk.bf16.vlgmr.msra.gmra.mxu1 %vm257_vm0, %v3366_v62  ;;  %v3381_v10 = vld [vmem:[#allocation2 + $0x128] sm:$0xff]  ;;  %v3383_v14 = vld [vmem:[#allocation2 + $0x130] sm:$0x3]  ;;  %v816_v15 = vrot.slane %v3372_v3, 1  ;;  %v3390_v19 = vpack.c.bf16 %v1192_v6, %v1190_v4  ;;  %v1212_v20 = vsel %vm1167_vm6, %v1209_v59, %v1211_v37  ;;  %v785_v48 = vsel %vm755_vm4, %v782_v21, %v784_v25 }
  0x9b   : > { %605 = vst.msk [vmem:[#allocation2 + $0x21] sm:$0xff] %vm603_vm5, %v2997_v60  ;;  %v817_v22 = vrot.slane %v3381_v10, 1  ;;  %v819_v23 = vrot.slane %v3383_v14, 1  ;;  %v3396_v24 = vld [vmem:[#allocation2 + $0xd8] sm:$0xff]  ;;  %v3405_v32 = vpack.c.bf16 %v1212_v20, %v1210_v9  ;;  %v3409_v33 = vpack.c.bf16 %v3381_v10, %v3372_v3  ;;  %v3476_v17 = vld [vmem:[#allocation2 + $0x160] sm:$0x3] }
  0x9c   : > { %622 = vst.msk [vmem:[#allocation2 + $0xf1] sm:$0xff] %vm603_vm5, %v3001_v2  ;;  %v3399_v28 = vld [vmem:[#allocation2 + $0xe0] sm:$0xff]  ;;  %v3401_v29 = vld [vmem:[#allocation2 + $0xe8] sm:$0x3]  ;;  %v801_v30 = vrot.slane %v3396_v24, 1  ;;  %v821_v54 = vrot.slane %v3418_v40, 1  ;;  %v2851_v55 = vunpack.c.h.bf16 %v3388_v18  ;;  %v3471_v6 = vpack.c.bf16 %v785_v48, %v783_v43 }
  0x9d   : > { %4413 = vst [vmem:[#allocation7_spill] sm:$0xff] %v3405_v32  ;;  %v818_v34 = vsel %vm755_vm4, %v816_v15, %v817_v22  ;;  %v820_v35 = vsel %vm755_vm4, %v817_v22, %v819_v23  ;;  %v802_v36 = vrot.slane %v3399_v28, 1  ;;  %v804_v37 = vrot.slane %v3401_v29, 1 }
  0x9e   : > { %4414 = vst [vmem:[#allocation8_spill] sm:$0xff] %v3409_v33  ;;  %v3416_v38 = vpack.c.bf16 %v820_v35, %v818_v34  ;;  %v822_v25 = vrot.slane %v3426_v44, 1  ;;  %v3455_v56 = vpack.c.bf16 %v3399_v28, %v3396_v24  ;;  %v824_v60 = vrot.slane %v3436_v49, 1 }
  0x9f   : > { %623 = vst.msk [vmem:[#allocation2 + $0xf9] sm:$0xff] %vm603_vm5, %v3002_v63  ;;  %v3010_v42 = vpop.permute.xlu0 %3009  ;;  %v803_v52 = vsel %vm755_vm4, %v801_v30, %v802_v36  ;;  %v805_v53 = vsel %vm755_vm4, %v802_v36, %v804_v37  ;;  %v3464_v63 = vld [vmem:[#allocation2 + $0x150] sm:$0xff]  ;;  %v827_v37 = vrot.slane %v3466_v0, 1 }
  0xa0   : > { %4415 = vst [vmem:[#allocation9_spill] sm:$0xff] %v3416_v38  ;;  %v3015_v41 = vpop.permute.xlu1 %3014  ;;  %2648 = vmatmul.msk.bf16.vlgmr.msra.gmra.mxu3 %vm257_vm0, %v3416_v38  ;;  %v3011_v47 = vunpack.i.l.bf16 %v3010_v42  ;;  %v3012_v1 = vunpack.i.h.bf16 %v3010_v42  ;;  %v3462_v61 = vpack.c.bf16 %v805_v53, %v803_v52  ;;  %v823_v20 = vsel %vm755_vm4, %v821_v54, %v822_v25  ;;  %v3502_v53 = vld [vmem:[#allocation2 + $0x48] sm:$0xff]  ;;  %v3504_v54 = vld [vmem:[#allocation2 + $0x50] sm:$0xff] }
  0xa1   : > { %v3017_v45 = vunpack.i.h.bf16 %v3015_v41  ;;  %v3016_v46 = vunpack.i.l.bf16 %v3015_v41  ;;  %v3439_v8 = vld [vmem:[#allocation2 + $0x18] sm:$0xff]  ;;  %407 = vst.msk [vmem:[#allocation2 + $0x169] sm:$0xff] %vm378_vm2, %v2850_v31  ;;  %v825_v31 = vsel %vm755_vm4, %v822_v25, %v824_v60  ;;  %v826_v36 = vrot.slane %v3464_v63, 1 }
  0xa2   : > { %v3446_v5 = vld [vmem:[#allocation2 + $0x20] sm:$0xff]  ;;  %v3448_v7 = vld [vmem:[#allocation2 + $0x28] sm:$0x3]  ;;  %v761_v21 = vrot.slane %v3439_v8, 1  ;;  %4416 = vst [vmem:[#allocation10_spill] sm:$0xff] %v3455_v56  ;;  %v1173_v26 = vrot.slane %v3439_v8, 2 }
  0xa3   : > { %606 = vst.msk [vmem:[#allocation2 + $0x31] sm:$0xff] %vm603_vm5, %v3016_v46  ;;  %v762_v57 = vrot.slane %v3446_v5, 1  ;;  %v764_v59 = vrot.slane %v3448_v7, 1  ;;  %v3474_v15 = vld [vmem:[#allocation2 + $0xf0] sm:$0xff]  ;;  %v1174_v27 = vrot.slane %v3446_v5, 2  ;;  %v828_v9 = vsel %vm755_vm4, %v826_v36, %v827_v37 }
  0xa4   : > { %607 = vst.msk [vmem:[#allocation2 + $0x39] sm:$0xff] %vm603_vm5, %v3017_v45  ;;  %v806_v43 = vrot.slane %v3474_v15, 1  ;;  %v829_v45 = vrot.slane %v3476_v17, 1  ;;  %v771_v60 = vrot.slane %v3502_v53, 1  ;;  %v772_v33 = vrot.slane %v3504_v54, 1 }
  0xa5   : > { %614 = vst.msk [vmem:[#allocation2 + $0x91] sm:$0xff] %vm603_vm5, %v3011_v47  ;;  %v763_v2 = vsel %vm755_vm4, %v761_v21, %v762_v57  ;;  %v765_v4 = vsel %vm755_vm4, %v762_v57, %v764_v59  ;;  %v3508_v21 = vpack.c.bf16 %v825_v31, %v823_v20  ;;  %v3513_v57 = vld [vmem:[#allocation2 + $0x58] sm:$0x3]  ;;  %v1175_v59 = vsel %vm1167_vm6, %v1173_v26, %v1174_v27 }
  0xa6   : > { %4417 = vst [vmem:[#allocation11_spill] sm:$0xff] %v3462_v61  ;;  %v3478_v18 = vpack.c.bf16 %v765_v4, %v763_v2  ;;  %v3481_v22 = vld [vmem:[#allocation2 + $0xf8] sm:$0xff]  ;;  %v3483_v23 = vld [vmem:[#allocation2 + $0x100] sm:$0x3]  ;;  %v1176_v20 = vrot.slane %v3448_v7, 2  ;;  %v830_v26 = vsel %vm755_vm4, %v827_v37, %v829_v45  ;;  %v774_v7 = vrot.slane %v3513_v57, 1 }
  0xa7   : > { %615 = vst.msk [vmem:[#allocation2 + $0x99] sm:$0xff] %vm603_vm5, %v3012_v1  ;;  %v3025_v35 = vpop.permute.xlu0 %3024  ;;  %v807_v47 = vrot.slane %v3481_v22, 1  ;;  %v809_v48 = vrot.slane %v3483_v23, 1 }
  0xa8   : > { %4418 = vst [vmem:[#allocation12_spill] sm:$0xff] %v3471_v6  ;;  %v3030_v34 = vpop.permute.xlu1 %3029  ;;  %2637 = vmatmul.msk.bf16.gmra.mxu0 %vm257_vm0, %v3478_v18  ;;  %2645 = vmatmul.msk.bf16.gmra.mxu2 %vm257_vm0, %v3462_v61  ;;  %v3027_v1 = vunpack.i.h.bf16 %v3025_v35  ;;  %v3026_v52 = vunpack.i.l.bf16 %v3025_v35  ;;  %v1177_v36 = vsel %vm1167_vm6, %v1174_v27, %v1176_v20 }
  0xa9   : > { %408 = vst.msk [vmem:[#allocation2 + $0x171] sm:$0xff] %vm378_vm2, %v2851_v55  ;;  %v3032_v41 = vunpack.i.h.bf16 %v3030_v34  ;;  %v3031_v42 = vunpack.i.l.bf16 %v3030_v34  ;;  %v810_v56 = vsel %vm755_vm4, %v807_v47, %v809_v48  ;;  %v3539_v32 = vpack.c.bf16 %v1177_v36, %v1175_v59 }
  0xaa   : > { %v3498_v46 = vld [vmem:[#allocation2 + $0x30] sm:$0xff]  ;;  %2641 = vmatmul.msk.bf16.gmra.mxu1 %vm257_vm0, %v3471_v6  ;;  %4419 = vst [vmem:[#allocation13_spill] sm:$0xff] %v3508_v21 }
  0xab   : > { %616 = vst.msk [vmem:[#allocation2 + $0xa9] sm:$0xff] %vm603_vm5, %v3031_v42  ;;  %v3511_v25 = vld [vmem:[#allocation2 + $0x38] sm:$0xff]  ;;  %v644_v55 = vld [vmem:[#allocation2 + $0x40] sm:$0x3]  ;;  %v766_v2 = vrot.slane %v3498_v46, 1  ;;  %v1178_v30 = vrot.slane %v3498_v46, 2 }
  0xac   : > { %617 = vst.msk [vmem:[#allocation2 + $0xb1] sm:$0xff] %vm603_vm5, %v3032_v41  ;;  %v767_v4 = vrot.slane %v3511_v25, 1  ;;  %v654_v34 = vld [vmem:[#allocation2 + $0x90] sm:$0xff]  ;;  %v769_v31 = vrot.slane %v644_v55, 1  ;;  %v808_v41 = vsel %vm755_vm4, %v806_v43, %v807_v47  ;;  %v1179_v37 = vrot.slane %v3511_v25, 2 }
  0xad   : > { %632 = vst.msk [vmem:[#allocation2 + $0x169] sm:$0xff] %vm603_vm5, %v3026_v52  ;;  %v786_v38 = vrot.slane %v654_v34, 1  ;;  %v3531_v52 = vld [vmem:[#allocation2 + $0x108] sm:$0xff]  ;;  %v3535_v43 = vld [vmem:[#allocation2 + $0x110] sm:$0xff]  ;;  %v1181_v58 = vrot.slane %v644_v55, 2  ;;  %v1198_v39 = vrot.slane %v654_v34, 2 }
  0xae   : > { %v655_v35 = vld [vmem:[#allocation2 + $0x98] sm:$0xff]  ;;  %v656_v42 = vld [vmem:[#allocation2 + $0xa0] sm:$0x3]  ;;  %633 = vst.msk [vmem:[#allocation2 + $0x171] sm:$0xff] %vm603_vm5, %v3027_v1  ;;  %v768_v47 = vsel %vm755_vm4, %v766_v2, %v767_v4  ;;  %v770_v48 = vsel %vm755_vm4, %v767_v4, %v769_v31  ;;  %v1180_v27 = vsel %vm1167_vm6, %v1178_v30, %v1179_v37  ;;  %v811_v59 = vrot.slane %v3531_v52, 1 }
  0xaf   : > { %v787_v45 = vrot.slane %v655_v35, 1  ;;  %v789_v61 = vrot.slane %v656_v42, 1  ;;  %v3537_v1 = vld [vmem:[#allocation2 + $0x118] sm:$0x3]  ;;  %v3546_v20 = vpack.c.bf16 %v655_v35, %v654_v34  ;;  %v1182_v50 = vsel %vm1167_vm6, %v1179_v37, %v1181_v58 }
  0xb0   : > { %2649 = vmatmul.msk.bf16.gmra.mxu3 %vm257_vm0, %v3508_v21  ;;  %v1199_v13 = vrot.slane %v655_v35, 2  ;;  %v1201_v6 = vrot.slane %v656_v42, 2  ;;  %v812_v55 = vrot.slane %v3535_v43, 1  ;;  %v814_v36 = vrot.slane %v3537_v1, 1 }
  0xb1   : > { %4420 = vst [vmem:[#allocation14_spill] sm:$0xff] %v3546_v20  ;;  %v3552_v21 = vpack.c.bf16 %v1182_v50, %v1180_v27  ;;  %v788_v2 = vsel %vm755_vm4, %v786_v38, %v787_v45  ;;  %v790_v4 = vsel %vm755_vm4, %v787_v45, %v789_v61  ;;  %v3562_v35 = vpack.c.bf16 %v770_v48, %v768_v47 }
  0xb2   : > { %v3556_v30 = vld [vmem:[#allocation2 + $0xa8] sm:$0xff]  ;;  %v1200_v58 = vsel %vm1167_vm6, %v1198_v39, %v1199_v13  ;;  %v1202_v34 = vsel %vm1167_vm6, %v1199_v13, %v1201_v6  ;;  %v3564_v42 = vpack.c.bf16 %v810_v56, %v808_v41  ;;  %v3572_v38 = vpack.c.bf16 %v830_v26, %v828_v9 }
  0xb3   : > { %v3558_v31 = vld [vmem:[#allocation2 + $0xb0] sm:$0xff]  ;;  %v3566_v37 = vpack.c.bf16 %v1202_v34, %v1200_v58  ;;  %v1203_v45 = vrot.slane %v3556_v30, 2  ;;  %v3577_v27 = vpack.c.bf16 %v790_v4, %v788_v2  ;;  %v1221_v13 = vrot.slane %v3483_v23, 2  ;;  %v3586_v41 = vld [vmem:[#allocation2 + $0xb8] sm:$0x3] }
  0xb4   : > { %4421 = vst [vmem:[#allocation15_spill] sm:$0xff] %v3564_v42  ;;  %v3570_v50 = vpack.c.bf16 %v3558_v31, %v3556_v30  ;;  %v1204_v39 = vrot.slane %v3558_v31, 2  ;;  %v3581_v56 = vsel %vm755_vm4, %v771_v60, %v772_v33  ;;  %v3584_v6 = vsel %vm755_vm4, %v772_v33, %v774_v7  ;;  %v2736_v2 = vld [vmem:[%s4371_s2 + $0x18] sm:$0xf] }
  0xb5   : > { %4422 = vst [vmem:[#allocation16_spill] sm:$0xff] %v3566_v37  ;;  %v3589_v9 = vsel %vm755_vm4, %v811_v59, %v812_v55  ;;  %v3592_v26 = vsel %vm755_vm4, %v812_v55, %v814_v36  ;;  %v1226_v47 = vrot.slane %v3537_v1, 2  ;;  %v1183_v48 = vrot.slane %v3502_v53, 2 }
  0xb6   : > { %4423 = vst [vmem:[#allocation17_spill] sm:$0xff] %v3570_v50  ;;  %v791_v33 = vrot.slane %v3556_v30, 1  ;;  %v792_v23 = vrot.slane %v3558_v31, 1  ;;  %v1184_v60 = vrot.slane %v3504_v54, 2  ;;  %v1213_v7 = vrot.slane %v3396_v24, 2 }
  0xb7   : > { %4424 = vst [vmem:[#allocation18_spill] sm:$0xff] %v3572_v38  ;;  %v794_v59 = vrot.slane %v3586_v41, 1  ;;  %v1186_v1 = vrot.slane %v3513_v57, 2  ;;  %v1205_v55 = vsel %vm1167_vm6, %v1203_v45, %v1204_v39  ;;  %v1206_v36 = vrot.slane %v3586_v41, 2 }
  0xb8   : > { %4425 = vst [vmem:[#allocation19_spill] sm:$0xff] %v3577_v27  ;;  %2638 = vmatmul.msk.bf16.gmra.mxu0 %vm257_vm0, %v3562_v35  ;;  %2646 = vmatmul.msk.bf16.gmra.mxu2 %vm257_vm0, %v3564_v42  ;;  %v1185_v4 = vsel %vm1167_vm6, %v1183_v48, %v1184_v60  ;;  %v1214_v30 = vrot.slane %v3399_v28, 2  ;;  %v3617_v24 = vpack.c.bf16 %v3481_v22, %v3474_v15  ;;  %v1218_v57 = vrot.slane %v3474_v15, 2 }
  0xb9   : > { %v1884_v31 = vsel %vm934_vm3, %v2736_v2, 0  ;;  %v1187_v58 = vsel %vm1167_vm6, %v1184_v60, %v1186_v1  ;;  %v1207_v34 = vsel %vm1167_vm6, %v1204_v39, %v1206_v36  ;;  %v1219_v45 = vrot.slane %v3481_v22, 2 }
  0xba   : > { %2642 = vmatmul.msk.bf16.gmra.mxu1 %vm257_vm0, %v3577_v27  ;;  %4426 = vst [vmem:[#allocation20_spill] sm:$0xff] %v3617_v24  ;;  %1893 = vmatpush.bf16.msra.mxu2 %v1884_v31  ;;  %v3624_v41 = vpack.c.bf16 %v1187_v58, %v1185_v4  ;;  %v3626_v48 = vpack.c.bf16 %v1207_v34, %v1205_v55  ;;  %v4428_v61 = vrot.slane %v3401_v29, 2  ;;  %v1223_v1 = vrot.slane %v3531_v52, 2  ;;  %v681_v31 = vld [vmem:[#allocation2 + $0x168] sm:$0xff]  ;;  %v682_v58 = vld [vmem:[#allocation2 + $0x170] sm:$0xff] }
  0xbb   : > { %v1215_v28 = vsel %vm1167_vm6, %v1213_v7, %v1214_v30  ;;  %v1220_v2 = vsel %vm1167_vm6, %v1218_v57, %v1219_v45  ;;  %v1222_v60 = vsel %vm1167_vm6, %v1219_v45, %v1221_v13  ;;  %v3638_v22 = vpack.c.bf16 %v3535_v43, %v3531_v52  ;;  %v2753_v52 = vld [vmem:[%s4371_s2 + $0x1c] sm:$0xf]  ;;  %v683_v34 = vld [vmem:[#allocation2 + $0x178] sm:$0x3] }
  0xbc   : > { %4427 = vst [vmem:[#allocation21_spill] sm:$0xff] %v3626_v48  ;;  %v1217_v24 = vsel %vm1167_vm6, %v1214_v30, %v4428_v61  ;;  %v3640_v39 = vpack.c.bf16 %v1222_v60, %v1220_v2  ;;  %v1224_v7 = vrot.slane %v3535_v43, 2  ;;  %v1228_v29 = vrot.slane %v3372_v3, 2  ;;  %v2719_v3 = vld [vmem:[%s4371_s2 + $0x14] sm:$0xf] }
  0xbd   : > { %v3632_v15 = vpack.c.bf16 %v1217_v24, %v1215_v28  ;;  %v1229_v61 = vrot.slane %v3381_v10, 2  ;;  %v3648_v55 = vpack.c.bf16 %v3426_v44, %v3418_v40  ;;  %v1233_v13 = vrot.slane %v3418_v40, 2 }
  0xbe   : > { %v1234_v36 = vrot.slane %v3426_v44, 2  ;;  %v1225_v10 = vsel %vm1167_vm6, %v1223_v1, %v1224_v7  ;;  %v1227_v43 = vsel %vm1167_vm6, %v1224_v7, %v1226_v47  ;;  %v3664_v40 = vpack.c.bf16 %v3466_v0, %v3464_v63 }
  0xbf   : > { %4429 = vst [vmem:[#allocation22_spill] sm:$0xff] %v3632_v15  ;;  %v1238_v44 = vrot.slane %v3464_v63, 2  ;;  %v2024_v4 = vsel %vm934_vm3, %v2753_v52, 0  ;;  %v1754_v30 = vsel %vm934_vm3, %v2719_v3, 0  ;;  %v3669_v24 = vpack.c.bf16 %v1227_v43, %v1225_v10 }
  0xc0   : > { %2650 = vmatmul.msk.bf16.gmra.mxu3 %vm257_vm0, %v3572_v38  ;;  %v1230_v57 = vsel %vm1167_vm6, %v1228_v29, %v1229_v61  ;;  %1763 = vmatpush.bf16.msra.mxu1 %v1754_v30  ;;  %v4430_v47 = vrot.slane %v3383_v14, 2  ;;  %v1235_v28 = vsel %vm1167_vm6, %v1233_v13, %v1234_v36  ;;  %v4431_v63 = vrot.slane %v3436_v49, 2 }
  0xc1   : > { %2033 = vmatpush.bf16.msra.mxu3 %v2024_v4  ;;  %v1239_v60 = vrot.slane %v3466_v0, 2  ;;  %v793_v1 = vsel %vm755_vm4, %v791_v33, %v792_v23  ;;  %v795_v7 = vsel %vm755_vm4, %v792_v23, %v794_v59  ;;  %v3688_v14 = vpack.c.bf16 %v3584_v6, %v3581_v56 }
  0xc2   : > { %v1232_v45 = vsel %vm1167_vm6, %v1229_v61, %v4430_v47  ;;  %v1237_v2 = vsel %vm1167_vm6, %v1234_v36, %v4431_v63  ;;  %v3692_v61 = vpack.c.bf16 %v3592_v26, %v3589_v9  ;;  %v4432_v0 = vrot.slane %v3476_v17, 2  ;;  %v2770_v17 = vld [vmem:[%s4371_s2 + $0x20] sm:$0xf] }
  0xc3   : > { %v3682_v29 = vpack.c.bf16 %v1232_v45, %v1230_v57  ;;  %v3684_v52 = vpack.c.bf16 %v1237_v2, %v1235_v28  ;;  %v1240_v49 = vsel %vm1167_vm6, %v1238_v44, %v1239_v60  ;;  %v831_v13 = vrot.slane %v681_v31, 1 }
  0xc4   : > { %v1242_v33 = vsel %vm1167_vm6, %v1239_v60, %v4432_v0  ;;  %v832_v23 = vrot.slane %v682_v58, 1  ;;  %v834_v59 = vrot.slane %v683_v34, 1  ;;  %v3700_v3 = vpack.c.bf16 %v795_v7, %v793_v1  ;;  %v2949_v7 = vld [vmem:[%s3100_s23 + $0x78] sm:$0xff]   ;;  %s2791_s23 = sshll.u32 %s4499_s19, 8 }
  0xc5   : > { %v3698_v36 = vpack.c.bf16 %v1242_v33, %v1240_v49  ;;  %v2161_v9 = vsel %vm934_vm3, %v2770_v17, 0  ;;  %v1171_v10 = vrot.slane %v3267_v16, 2  ;;  %v1168_v43 = vrot.slane %v3261_v11, 2  ;;  %s4112_s28 = scalar_lea.vmem %s4373_s4, %s2791_s23 }
  0xc6   : > { %4433 = vst [vmem:[#allocation23_spill] sm:$0xff] %v3700_v3  ;;  %v833_v56 = vsel %vm755_vm4, %v831_v13, %v832_v23  ;;  %v835_v6 = vsel %vm755_vm4, %v832_v23, %v834_v59  ;;  %2170 = vmatpush.bf16.msra.mxu0 %v2161_v9  ;;  %v1169_v44 = vrot.slane %v3263_v12, 2  ;;  %v1246_v4 = vrot.slane %v683_v34, 2  ;;  %v4438_v59 = vld [vmem:[#allocation4_spill] sm:$0xff] }
  0xc7   : > { %v3714_v26 = vpack.c.bf16 %v835_v6, %v833_v56  ;;  %v3721_v30 = vpack.c.bf16 %v682_v58, %v681_v31  ;;  %v1243_v57 = vrot.slane %v681_v31, 2  ;;  %v1244_v47 = vrot.slane %v682_v58, 2 }
  0xc8   : > { %2639 = vmatmul.msk.bf16.gmra.mxu0 %vm257_vm0, %v3688_v14  ;;  %2647 = vmatmul.msk.bf16.gmra.mxu2 %vm257_vm0, %v3692_v61  ;;  %v1170_v45 = vsel %vm1167_vm6, %v1168_v43, %v1169_v44  ;;  %v1172_v28 = vsel %vm1167_vm6, %v1169_v44, %v1171_v10  ;;  %v690_v34 = vpack.c.bf16 %v3263_v12, %v3261_v11  ;;  %v2918_v49 = vunpack.c.l.bf16 %v2949_v7 }
  0xc9   : > { %4434 = vst [vmem:[#allocation24_spill] sm:$0xff] %v3714_v26  ;;  %v1245_v63 = vsel %vm1167_vm6, %v1243_v57, %v1244_v47  ;;  %v1247_v16 = vsel %vm1167_vm6, %v1244_v47, %v1246_v4  ;;  %v1280_v60 = vpack.c.bf16 %v1172_v28, %v1170_v45  ;;  %v691_v31 = vpack.c.bf16 %v3446_v5, %v3439_v8  ;;  %v947_v8 = vpop.f32.mrf.mxu0 }
  0xca   : > { %2643 = vmatmul.msk.bf16.gmra.mxu1 %vm257_vm0, %v3700_v3  ;;  %v3727_v2 = vpack.c.bf16 %v1247_v16, %v1245_v63  ;;  %v3745_v11 = vpack.c.bf16 %v3511_v25, %v3498_v46  ;;  %v3757_v12 = vpack.c.bf16 %v3504_v54, %v3502_v53  ;;  %v4436_v25 = vld [vmem:[#allocation3_spill] sm:$0xff]  ;;  %v2919_v0 = vunpack.c.h.bf16 %v2949_v7 }
  0xcc   : > { %v3038_v13 = vpack.i.bf16 %v2919_v0, %v2918_v49 }
  0xce   : > { %3039 = vrot.lane.b32.xlu0 %v3038_v13, %s3052_s24 }
  0xd0   : > { %2651 = vmatmul.msk.bf16.gmra.mxu3 %vm257_vm0, %v3714_v26 }
  0xd1   : > { %v949_v53 = vpop.f32.mrf.mxu0 }
  0xd8   : > { %2669 = vmatmul.msk.bf16.vlgmr.msrb.gmra.mxu2 %vm257_vm0, %v1280_v60  ;;  %2703 = vmatmul.msk.bf16.vlgmr.msrb.gmra.mxu0 %vm257_vm0, %v3478_v18  ;;  %v4435_v18 = vld [vmem:[#allocation12_spill] sm:$0xff] }
  0xda   : > { %2652 = vmatmul.msk.bf16.vlgmr.msrb.gmra.mxu1 %vm257_vm0, %v690_v34 }
  0xe0   : > { %2686 = vmatmul.msk.bf16.vlgmr.msrb.gmra.mxu3 %vm257_vm0, %v691_v31 }
  0xe8   : > { %2670 = vmatmul.msk.bf16.gmra.mxu2 %vm257_vm0, %v3539_v32  ;;  %2704 = vmatmul.msk.bf16.gmra.mxu0 %vm257_vm0, %v3562_v35 }
  0xea   : > { %2653 = vmatmul.msk.bf16.gmra.mxu1 %vm257_vm0, %v691_v31  ;;  %v4444_v31 = vld [vmem:[#allocation5_spill] sm:$0xff] }
  0xf0   : > { %2687 = vmatmul.msk.bf16.gmra.mxu3 %vm257_vm0, %v3745_v11 }
  0xf8   : > { %2671 = vmatmul.msk.bf16.gmra.mxu2 %vm257_vm0, %v3552_v21  ;;  %2705 = vmatmul.msk.bf16.gmra.mxu0 %vm257_vm0, %v3688_v14 }
  0xfa   : > { %2654 = vmatmul.msk.bf16.gmra.mxu1 %vm257_vm0, %v3745_v11 }
 0x100   : > { %2688 = vmatmul.msk.bf16.gmra.mxu3 %vm257_vm0, %v3757_v12 }
 0x108   : > { %2672 = vmatmul.msk.bf16.gmra.mxu2 %vm257_vm0, %v3624_v41  ;;  %2706 = vmatmul.msk.bf16.gmra.mxu0 %vm257_vm0, %v3366_v62 }
 0x10a   : > { %2655 = vmatmul.msk.bf16.gmra.mxu1 %vm257_vm0, %v3757_v12 }
 0x110   : > { %2689 = vmatmul.msk.bf16.gmra.mxu3 %vm257_vm0, %v3359_v51 }
 0x117   : > { %v3769_v5 = vpop.f32.mrf.mxu1 }
 0x118   : > { %2673 = vmatmul.msk.bf16.gmra.mxu2 %vm257_vm0, %v3390_v19  ;;  %2707 = vmatmul.msk.bf16.gmra.mxu0 %vm257_vm0, %v4435_v18 }
 0x11a   : > { %2656 = vmatmul.msk.bf16.gmra.mxu1 %vm257_vm0, %v3359_v51 }
 0x11b   : > { %v3777_v46 = vpop.f32.mrf.mxu2 }
 0x11f   : > { %v3779_v54 = vpop.f32.mrf.mxu1 }
 0x120   : > { %2690 = vmatmul.msk.bf16.gmra.mxu3 %vm257_vm0, %v4436_v25 }
 0x123   : > { %v3783_v58 = vpop.f32.mrf.mxu2  ;;  %v3785_v1 = vpop.f32.mrf.mxu3 }
 0x124   : > { %4437 = vst [vmem:[#allocation25_spill] sm:$0xff] %v3785_v1 }
 0x125   : > { %v952_v33 = vpop.f32.mrf.mxu0 }
 0x127   : > { %v3788_v23 = vpop.f32.mrf.mxu1 }
 0x128   : > { %2674 = vmatmul.msk.bf16.gmra.mxu2 %vm257_vm0, %v4438_v59  ;;  %2708 = vmatmul.msk.bf16.gmra.mxu0 %vm257_vm0, %v3577_v27 }
 0x12a   : > { %2657 = vmatmul.msk.bf16.gmra.mxu1 %vm257_vm0, %v4436_v25 }
 0x12b   : > { %v3797_v56 = vpop.f32.mrf.mxu2  ;;  %v3799_v6 = vpop.f32.mrf.mxu3 }
 0x12c   : > { %4439 = vst [vmem:[#allocation26_spill] sm:$0xff] %v3799_v6 }
 0x12d   : > { %v954_v17 = vpop.f32.mrf.mxu0 }
 0x12f   : > { %v3801_v9 = vpop.f32.mrf.mxu1 }
 0x130   : > { %2691 = vmatmul.msk.bf16.gmra.mxu3 %vm257_vm0, %v3546_v20 }
 0x133   : > { %v3805_v10 = vpop.f32.mrf.mxu2  ;;  %v3807_v43 = vpop.f32.mrf.mxu3 }
 0x134   : > { %4440 = vst [vmem:[#allocation27_spill] sm:$0xff] %v3807_v43 }
 0x135   : > { %v3809_v44 = vpop.f32.mrf.mxu0 }
 0x137   : > { %v3811_v4 = vpop.f32.mrf.mxu1 }
 0x138   : > { %2675 = vmatmul.msk.bf16.gmra.mxu2 %vm257_vm0, %v3566_v37  ;;  %2709 = vmatmul.msk.bf16.gmra.mxu0 %vm257_vm0, %v3700_v3 }
 0x13a   : > { %2658 = vmatmul.msk.bf16.gmra.mxu1 %vm257_vm0, %v3546_v20 }
 0x13b   : > { %v3819_v57 = vpop.f32.mrf.mxu2  ;;  %v3821_v47 = vpop.f32.mrf.mxu3 }
 0x13c   : > { %4441 = vst [vmem:[#allocation28_spill] sm:$0xff] %v3821_v47 }
 0x13d   : > { %v3823_v45 = vpop.f32.mrf.mxu0 }
 0x13f   : > { %v3825_v28 = vpop.f32.mrf.mxu1 }
 0x140   : > { %2692 = vmatmul.msk.bf16.gmra.mxu3 %vm257_vm0, %v3570_v50 }
 0x143   : > { %v3829_v63 = vpop.f32.mrf.mxu2  ;;  %v3831_v16 = vpop.f32.mrf.mxu3 }
 0x144   : > { %4442 = vst [vmem:[#allocation29_spill] sm:$0xff] %v3829_v63 }
 0x145   : > { %4443 = vst [vmem:[#allocation30_spill] sm:$0xff] %v3831_v16  ;;  %v3833_v60 = vpop.f32.mrf.mxu0  ;;  %v4447_v16 = vld [vmem:[#allocation6_spill] sm:$0xff] }
 0x147   : > { %v3835_v34 = vpop.f32.mrf.mxu1 }
 0x148   : > { %2676 = vmatmul.msk.bf16.gmra.mxu2 %vm257_vm0, %v3626_v48  ;;  %2710 = vmatmul.msk.bf16.gmra.mxu0 %vm257_vm0, %v4444_v31  ;;  %v4450_v48 = vld [vmem:[#allocation7_spill] sm:$0xff] }
 0x14a   : > { %2659 = vmatmul.msk.bf16.gmra.mxu1 %vm257_vm0, %v3570_v50  ;;  %v4451_v50 = vld [vmem:[#allocation11_spill] sm:$0xff] }
 0x14b   : > { %v3843_v7 = vpop.f32.mrf.mxu2  ;;  %v3845_v49 = vpop.f32.mrf.mxu3 }
 0x14c   : > { %4445 = vst [vmem:[#allocation31_spill] sm:$0xff] %v3843_v7 }
 0x14d   : > { %4446 = vst [vmem:[#allocation32_spill] sm:$0xff] %v3845_v49  ;;  %v3847_v0 = vpop.f32.mrf.mxu0 }
 0x14f   : > { %v3849_v13 = vpop.f32.mrf.mxu1 }
 0x150   : > { %2693 = vmatmul.msk.bf16.gmra.mxu3 %vm257_vm0, %v4447_v16 }
 0x153   : > { %v3853_v47 = vpop.f32.mrf.mxu2  ;;  %v3855_v3 = vpop.f32.mrf.mxu3 }
 0x154   : > { %4448 = vst [vmem:[#allocation33_spill] sm:$0xff] %v3853_v47 }
 0x155   : > { %4449 = vst [vmem:[#allocation34_spill] sm:$0xff] %v3855_v3  ;;  %v1628_v43 = vpop.f32.mrf.mxu0  ;;  %v4453_v3 = vld [vmem:[#allocation10_spill] sm:$0xff] }
 0x157   : > { %v1087_v31 = vpop.f32.mrf.mxu1 }
 0x158   : > { %2677 = vmatmul.msk.bf16.gmra.mxu2 %vm257_vm0, %v4450_v48  ;;  %2711 = vmatmul.msk.bf16.gmra.mxu0 %vm257_vm0, %v4451_v50  ;;  %v1088_v49 = vadd.f32 %v1087_v31, %v947_v8 }
 0x15a   : > { %2660 = vmatmul.msk.bf16.gmra.mxu1 %vm257_vm0, %v4447_v16 }
 0x15b   : > { %v3863_v6 = vpop.f32.mrf.mxu3  ;;  %v1358_v27 = vpop.f32.mrf.mxu2 }
 0x15c   : > { %4452 = vst [vmem:[#allocation35_spill] sm:$0xff] %v3863_v6  ;;  %v1438_v1 = vadd.f32 %v1358_v27, %v1088_v49 }
 0x15d   : > { %v1630_v37 = vpop.f32.mrf.mxu0 }
 0x15f   : > { %v1089_v20 = vpop.f32.mrf.mxu1 }
 0x160   : > { %v1090_v47 = vadd.f32 %v1089_v20, %v949_v53  ;;  %2694 = vmatmul.msk.bf16.gmra.mxu3 %vm257_vm0, %v4453_v3 }
 0x163   : > { %v1360_v18 = vpop.f32.mrf.mxu2  ;;  %v1488_v7 = vpop.f32.mrf.mxu3 }
 0x164   : > { %v1439_v48 = vadd.f32 %v1360_v18, %v1090_v47  ;;  %v1568_v59 = vadd.f32 %v1488_v7, %v1438_v1  ;;  %v4454_v7 = vld [vmem:[#allocation20_spill] sm:$0xff] }
 0x165   : > { %v1633_v25 = vpop.f32.mrf.mxu0 }
 0x166   : > { %v3873_v53 = vadd.f32 %v1628_v43, %v1568_v59 }
 0x167   : > { %v1092_v50 = vpop.f32.mrf.mxu1 }
 0x168   : > { %v1093_v8 = vadd.f32 %v1092_v50, %v952_v33  ;;  %2678 = vmatmul.msk.bf16.gmra.mxu2 %vm257_vm0, %v3632_v15  ;;  %2712 = vmatmul.msk.bf16.gmra.mxu0 %vm257_vm0, %v3564_v42 }
 0x16a   : > { %2661 = vmatmul.msk.bf16.gmra.mxu1 %vm257_vm0, %v4453_v3 }
 0x16b   : > { %v1363_v20 = vpop.f32.mrf.mxu2  ;;  %v1490_v27 = vpop.f32.mrf.mxu3 }
 0x16c   : > { %v1440_v31 = vadd.f32 %v1363_v20, %v1093_v8  ;;  %v1569_v49 = vadd.f32 %v1490_v27, %v1439_v48 }
 0x16d   : > { %v1635_v18 = vpop.f32.mrf.mxu0 }
 0x16e   : > { %v3877_v6 = vadd.f32 %v1630_v37, %v1569_v49 }
 0x16f   : > { %v1094_v1 = vpop.f32.mrf.mxu1 }
 0x170   : > { %v1095_v47 = vadd.f32 %v1094_v1, %v954_v17  ;;  %2695 = vmatmul.msk.bf16.gmra.mxu3 %vm257_vm0, %v4454_v7 }
 0x173   : > { %v1365_v50 = vpop.f32.mrf.mxu2  ;;  %v1493_v33 = vpop.f32.mrf.mxu3 }
 0x174   : > { %v1441_v42 = vadd.f32 %v1365_v50, %v1095_v47  ;;  %v1570_v15 = vadd.f32 %v1493_v33, %v1440_v31 }
 0x175   : > { %v1638_v16 = vpop.f32.mrf.mxu0 }
 0x176   : > { %v3886_v17 = vadd.f32 %v1633_v25, %v1570_v15 }
 0x177   : > { %v1097_v3 = vpop.f32.mrf.mxu1 }
 0x178   : > { %v1098_v63 = vadd.f32 %v1097_v3, %v3809_v44  ;;  %2679 = vmatmul.msk.bf16.gmra.mxu2 %vm257_vm0, %v3640_v39  ;;  %2713 = vmatmul.msk.bf16.gmra.mxu0 %vm257_vm0, %v3692_v61 }
 0x17a   : > { %2662 = vmatmul.msk.bf16.gmra.mxu1 %vm257_vm0, %v4454_v7 }
 0x17b   : > { %v1368_v48 = vpop.f32.mrf.mxu2  ;;  %v1495_v59 = vpop.f32.mrf.mxu3 }
 0x17c   : > { %v1442_v37 = vadd.f32 %v1368_v48, %v1098_v63  ;;  %v1571_v43 = vadd.f32 %v1495_v59, %v1441_v42  ;;  %v4455_v42 = vld [vmem:[#allocation9_spill] sm:$0xff] }
 0x17d   : > { %v1640_v8 = vpop.f32.mrf.mxu0 }
 0x17e   : > { %v3891_v31 = vadd.f32 %v1635_v18, %v1571_v43 }
 0x17f   : > { %v1099_v20 = vpop.f32.mrf.mxu1 }
 0x180   : > { %v1100_v27 = vadd.f32 %v1099_v20, %v3823_v45  ;;  %2696 = vmatmul.msk.bf16.gmra.mxu3 %vm257_vm0, %v3638_v22 }
 0x183   : > { %v1370_v3 = vpop.f32.mrf.mxu2  ;;  %v1498_v44 = vpop.f32.mrf.mxu3 }
 0x184   : > { %v1443_v49 = vadd.f32 %v1370_v3, %v1100_v27  ;;  %v1572_v1 = vadd.f32 %v1498_v44, %v1442_v37  ;;  %v4456_v37 = vld [vmem:[#allocation8_spill] sm:$0xff] }
 0x185   : > { %v1643_v47 = vpop.f32.mrf.mxu0 }
 0x186   : > { %v3900_v63 = vadd.f32 %v1638_v16, %v1572_v1  ;;  %v4457_v16 = vld [vmem:[#allocation13_spill] sm:$0xff] }
 0x187   : > { %v1102_v50 = vpop.f32.mrf.mxu1 }
 0x188   : > { %v1103_v15 = vadd.f32 %v1102_v50, %v3833_v60  ;;  %2680 = vmatmul.msk.bf16.gmra.mxu2 %vm257_vm0, %v3669_v24  ;;  %2714 = vmatmul.msk.bf16.gmra.mxu0 %vm257_vm0, %v4455_v42 }
 0x18a   : > { %2663 = vmatmul.msk.bf16.gmra.mxu1 %vm257_vm0, %v3638_v22 }
 0x18b   : > { %v1373_v25 = vpop.f32.mrf.mxu2  ;;  %v1500_v45 = vpop.f32.mrf.mxu3 }
 0x18c   : > { %v1444_v18 = vadd.f32 %v1373_v25, %v1103_v15  ;;  %v1573_v33 = vadd.f32 %v1500_v45, %v1443_v49  ;;  %v2934_v49 = vld [vmem:[%s3245_s27 + $0x78] sm:$0xff]  }
 0x18d   : > { %v1645_v48 = vpop.f32.mrf.mxu0  ;;  %v2854_v1 = vunpack.c.l.bf16 %v2934_v49 }
 0x18e   : > { %v3905_v27 = vadd.f32 %v1640_v8, %v1573_v33 }
 0x18f   : > { %v1104_v59 = vpop.f32.mrf.mxu1  ;;  %409 = vst.msk [vmem:[#allocation2 + $0x181] sm:$0xff] %vm378_vm2, %v2854_v1 }
 0x190   : > { %v1105_v60 = vadd.f32 %v1104_v59, %v3847_v0  ;;  %2697 = vmatmul.msk.bf16.gmra.mxu3 %vm257_vm0, %v4456_v37  ;;  %v2855_v0 = vunpack.c.h.bf16 %v2934_v49  ;;  %v3040_v59 = vpop.permute.xlu0 %3039 }
 0x192   : > { %410 = vst.msk [vmem:[#allocation2 + $0x189] sm:$0xff] %vm378_vm2, %v2855_v0 }
 0x193   : > { %v1375_v43 = vpop.f32.mrf.mxu2  ;;  %v1503_v20 = vpop.f32.mrf.mxu3 }
 0x194   : > { %v1445_v3 = vadd.f32 %v1375_v43, %v1105_v60  ;;  %v1574_v44 = vadd.f32 %v1503_v20, %v1444_v18  ;;  %v3042_v43 = vunpack.i.h.bf16 %v3040_v59  ;;  %v3041_v20 = vunpack.i.l.bf16 %v3040_v59 }
 0x195   : > { %v1648_v50 = vpop.f32.mrf.mxu0 }
 0x196   : > { %v3916_v45 = vadd.f32 %v1643_v47, %v1574_v44  ;;  %634 = vst.msk [vmem:[#allocation2 + $0x181] sm:$0xff] %vm603_vm5, %v3041_v20 }
 0x197   : > { %v1107_v42 = vpop.f32.mrf.mxu1  ;;  %635 = vst.msk [vmem:[#allocation2 + $0x189] sm:$0xff] %vm603_vm5, %v3042_v43 }
 0x198   : > { %2681 = vmatmul.msk.bf16.gmra.mxu2 %vm257_vm0, %v3682_v29  ;;  %2715 = vmatmul.msk.bf16.gmra.mxu0 %vm257_vm0, %v4457_v16  ;;  %v1108_v15 = vadd.f32 %v1107_v42, %v3769_v5 }
 0x19a   : > { %2664 = vmatmul.msk.bf16.gmra.mxu1 %vm257_vm0, %v4456_v37 }
 0x19b   : > { %v1378_v8 = vpop.f32.mrf.mxu2  ;;  %v1505_v25 = vpop.f32.mrf.mxu3 }
 0x19c   : > { %v1446_v18 = vadd.f32 %v1378_v8, %v1108_v15  ;;  %v1575_v33 = vadd.f32 %v1505_v25, %v1445_v3 }
 0x19d   : > { %v1650_v60 = vpop.f32.mrf.mxu0 }
 0x19e   : > { %v3924_v44 = vadd.f32 %v1645_v48, %v1575_v33 }
 0x19f   : > { %v1109_v49 = vpop.f32.mrf.mxu1 }
 0x1a0   : > { %2698 = vmatmul.msk.bf16.gmra.mxu3 %vm257_vm0, %v3648_v55  ;;  %v1110_v5 = vadd.f32 %v1109_v49, %v3779_v54 }
 0x1a3   : > { %v1380_v47 = vpop.f32.mrf.mxu2  ;;  %v1508_v42 = vpop.f32.mrf.mxu3 }
 0x1a4   : > { %v1447_v3 = vadd.f32 %v1380_v47, %v1110_v5  ;;  %v1576_v1 = vadd.f32 %v1508_v42, %v1446_v18 }
 0x1a5   : > { %v1653_v0 = vpop.f32.mrf.mxu0 }
 0x1a6   : > { %v3933_v59 = vadd.f32 %v1648_v50, %v1576_v1  ;;  %v686_v1 = vld [vmem:[#allocation2 + $0x190] sm:$0x3] }
 0x1a7   : > { %v1112_v15 = vpop.f32.mrf.mxu1 }
 0x1a8   : > { %2682 = vmatmul.msk.bf16.gmra.mxu2 %vm257_vm0, %v3684_v52  ;;  %2716 = vmatmul.msk.bf16.gmra.mxu0 %vm257_vm0, %v3572_v38  ;;  %v1113_v8 = vadd.f32 %v1112_v15, %v3788_v23  ;;  %4458 = vst [vmem:[#allocation20_spill] sm:$0xff] %v3933_v59 }
 0x1aa   : > { %2665 = vmatmul.msk.bf16.gmra.mxu1 %vm257_vm0, %v3648_v55 }
 0x1ab   : > { %v1383_v54 = vpop.f32.mrf.mxu2  ;;  %v1510_v25 = vpop.f32.mrf.mxu3 }
 0x1ac   : > { %v1448_v48 = vadd.f32 %v1383_v54, %v1113_v8  ;;  %v1577_v33 = vadd.f32 %v1510_v25, %v1447_v3  ;;  %v685_v3 = vld [vmem:[#allocation2 + $0x188] sm:$0xff] }
 0x1ad   : > { %v1655_v18 = vpop.f32.mrf.mxu0 }
 0x1ae   : > { %v3938_v47 = vadd.f32 %v1650_v60, %v1577_v33 }
 0x1af   : > { %v1114_v43 = vpop.f32.mrf.mxu1 }
 0x1b0   : > { %2699 = vmatmul.msk.bf16.gmra.mxu3 %vm257_vm0, %v3664_v40  ;;  %v1115_v20 = vadd.f32 %v1114_v43, %v3801_v9  ;;  %4459 = vst [vmem:[#allocation8_spill] sm:$0xff] %v3938_v47  ;;  %v684_v9 = vld [vmem:[#allocation2 + $0x180] sm:$0xff] }
 0x1b1   : > { %v1603_v43 = vrot.slane %v684_v9, 1 }
 0x1b3   : > { %v1385_v49 = vpop.f32.mrf.mxu2  ;;  %v1513_v5 = vpop.f32.mrf.mxu3 }
 0x1b4   : > { %v1449_v23 = vadd.f32 %v1385_v49, %v1115_v20  ;;  %v1578_v42 = vadd.f32 %v1513_v5, %v1448_v48  ;;  %v1604_v20 = vrot.slane %v685_v3, 1  ;;  %v1606_v49 = vrot.slane %v686_v1, 1 }
 0x1b5   : > { %v1658_v15 = vpop.f32.mrf.mxu0 }
 0x1b6   : > { %v3947_v54 = vadd.f32 %v1653_v0, %v1578_v42 }
 0x1b7   : > { %v1117_v38 = vpop.f32.mrf.mxu1 }
 0x1b8   : > { %2683 = vmatmul.msk.bf16.gmra.mxu2 %vm257_vm0, %v3698_v36  ;;  %2717 = vmatmul.msk.bf16.gmra.mxu0 %vm257_vm0, %v3714_v26  ;;  %v1118_v50 = vadd.f32 %v1117_v38, %v3811_v4  ;;  %v1605_v38 = vsel %vm755_vm4, %v1603_v43, %v1604_v20  ;;  %v1607_v4 = vsel %vm755_vm4, %v1604_v20, %v1606_v49 }
 0x1ba   : > { %2666 = vmatmul.msk.bf16.gmra.mxu1 %vm257_vm0, %v3664_v40 }
 0x1bb   : > { %v1388_v60 = vpop.f32.mrf.mxu2  ;;  %v1515_v8 = vpop.f32.mrf.mxu3 }
 0x1bc   : > { %v1450_v25 = vadd.f32 %v1388_v60, %v1118_v50  ;;  %v1579_v48 = vadd.f32 %v1515_v8, %v1449_v23  ;;  %v3956_v50 = vpack.c.bf16 %v1607_v4, %v1605_v38  ;;  %v1740_v38 = vrot.slane %v684_v9, 2 }
 0x1bd   : > { %v1660_v33 = vpop.f32.mrf.mxu0  ;;  %v1741_v4 = vrot.slane %v685_v3, 2 }
 0x1be   : > { %v3954_v0 = vadd.f32 %v1655_v18, %v1579_v48  ;;  %4460 = vst [vmem:[#allocation13_spill] sm:$0xff] %v3956_v50 }
 0x1bf   : > { %v1119_v5 = vpop.f32.mrf.mxu1 }
 0x1c0   : > { %2700 = vmatmul.msk.bf16.gmra.mxu3 %vm257_vm0, %v3721_v30  ;;  %v1120_v26 = vadd.f32 %v1119_v5, %v3825_v28 }
 0x1c3   : > { %v1390_v47 = vpop.f32.mrf.mxu2  ;;  %v1518_v59 = vpop.f32.mrf.mxu3 }
 0x1c4   : > { %v1451_v42 = vadd.f32 %v1390_v47, %v1120_v26  ;;  %v1580_v23 = vadd.f32 %v1518_v59, %v1450_v25  ;;  %v3967_v47 = vpack.c.bf16 %v685_v3, %v684_v9 }
 0x1c5   : > { %v1663_v60 = vpop.f32.mrf.mxu0 }
 0x1c6   : > { %v3965_v48 = vadd.f32 %v1658_v15, %v1580_v23 }
 0x1c7   : > { %v1122_v8 = vpop.f32.mrf.mxu1 }
 0x1c8   : > { %2684 = vmatmul.msk.bf16.gmra.mxu2 %vm257_vm0, %v3727_v2  ;;  %2718 = vmatmul.msk.bf16.gmra.mxu0 %vm257_vm0, %v3956_v50  ;;  %v1123_v43 = vadd.f32 %v1122_v8, %v3835_v34  ;;  %4461 = vst [vmem:[#allocation36_spill] sm:$0xff] %v3965_v48  ;;  %v1743_v8 = vrot.slane %v686_v1, 2 }
 0x1ca   : > { %2667 = vmatmul.msk.bf16.gmra.mxu1 %vm257_vm0, %v3721_v30 }
 0x1cb   : > { %v1393_v28 = vpop.f32.mrf.mxu2  ;;  %v1520_v18 = vpop.f32.mrf.mxu3 }
 0x1cc   : > { %v1452_v26 = vadd.f32 %v1393_v28, %v1123_v43  ;;  %v1581_v59 = vadd.f32 %v1520_v18, %v1451_v42  ;;  %v1742_v42 = vsel %vm1167_vm6, %v1740_v38, %v1741_v4  ;;  %v1744_v28 = vsel %vm1167_vm6, %v1741_v4, %v1743_v8 }
 0x1cd   : > { %v1665_v25 = vpop.f32.mrf.mxu0  ;;  %v3976_v18 = vpack.c.bf16 %v1744_v28, %v1742_v42 }
 0x1ce   : > { %v3972_v50 = vadd.f32 %v1660_v33, %v1581_v59 }
 0x1cf   : > { %v1124_v20 = vpop.f32.mrf.mxu1 }
 0x1d0   : > { %2701 = vmatmul.msk.bf16.gmra.mxu3 %vm257_vm0, %v3967_v47  ;;  %v1125_v49 = vadd.f32 %v1124_v20, %v3849_v13 }
 0x1d3   : > { %v1395_v5 = vpop.f32.mrf.mxu2  ;;  %v1523_v34 = vpop.f32.mrf.mxu3 }
 0x1d4   : > { %v1453_v15 = vadd.f32 %v1395_v5, %v1125_v49  ;;  %v1582_v23 = vadd.f32 %v1523_v34, %v1452_v26 }
 0x1d5   : > { %v1668_v43 = vpop.f32.mrf.mxu0 }
 0x1d6   : > { %v3985_v1 = vadd.f32 %v1663_v60, %v1582_v23 }
 0x1d7   : > { %v1127_v48 = vpop.f32.mrf.mxu1 }
 0x1d8   : > { %2737 = vmatmul.msk.bf16.vlgmr.msra.gmra.mxu2 %vm257_vm0, %v3745_v11  ;;  %2771 = vmatmul.msk.bf16.vlgmr.msra.gmra.mxu0 %vm257_vm0, %v3552_v21  ;;  %v1128_v13 = vadd.f32 %v1127_v48, %v3777_v46 }
 0x1da   : > { %2720 = vmatmul.msk.bf16.vlgmr.msra.gmra.mxu1 %vm257_vm0, %v3539_v32 }
 0x1db   : > { %v1398_v9 = vpop.f32.mrf.mxu2  ;;  %v1525_v3 = vpop.f32.mrf.mxu3 }
 0x1dc   : > { %v1454_v33 = vadd.f32 %v1398_v9, %v1128_v13  ;;  %v1583_v26 = vadd.f32 %v1525_v3, %v1453_v15 }
 0x1dd   : > { %v1670_v59 = vpop.f32.mrf.mxu0 }
 0x1de   : > { %v3990_v34 = vadd.f32 %v1665_v25, %v1583_v26 }
 0x1df   : > { %v1129_v20 = vpop.f32.mrf.mxu1 }
 0x1e0   : > { %2754 = vmatmul.msk.bf16.vlgmr.msra.gmra.mxu3 %vm257_vm0, %v3562_v35  ;;  %v1130_v11 = vadd.f32 %v1129_v20, %v3783_v58 }
 0x1e3   : > { %v1400_v49 = vpop.f32.mrf.mxu2  ;;  %v1528_v5 = vpop.f32.mrf.mxu3 }
 0x1e4   : > { %v1455_v46 = vadd.f32 %v1400_v49, %v1130_v11  ;;  %v1584_v48 = vadd.f32 %v1528_v5, %v1454_v33 }
 0x1e5   : > { %v1673_v32 = vpop.f32.mrf.mxu0 }
 0x1e6   : > { %v3999_v4 = vadd.f32 %v1668_v43, %v1584_v48 }
 0x1e7   : > { %v1132_v38 = vpop.f32.mrf.mxu1 }
 0x1e8   : > { %2738 = vmatmul.msk.bf16.gmra.mxu2 %vm257_vm0, %v3757_v12  ;;  %2772 = vmatmul.msk.bf16.gmra.mxu0 %vm257_vm0, %v3624_v41  ;;  %v1133_v60 = vadd.f32 %v1132_v38, %v3797_v56 }
 0x1ea   : > { %2721 = vmatmul.msk.bf16.gmra.mxu1 %vm257_vm0, %v3552_v21 }
 0x1eb   : > { %v1403_v35 = vpop.f32.mrf.mxu2  ;;  %v1530_v58 = vpop.f32.mrf.mxu3 }
 0x1ec   : > { %v1456_v25 = vadd.f32 %v1403_v35, %v1133_v60  ;;  %v1585_v8 = vadd.f32 %v1530_v58, %v1455_v46  ;;  %v4463_v35 = vld [vmem:[#allocation3_spill] sm:$0xff] }
 0x1ed   : > { %v1675_v15 = vpop.f32.mrf.mxu0  ;;  %v4465_v58 = vld [vmem:[#allocation31_spill] sm:$0xff] }
 0x1ee   : > { %v4004_v13 = vadd.f32 %v1670_v59, %v1585_v8 }
 0x1ef   : > { %v1134_v23 = vpop.f32.mrf.mxu1 }
 0x1f0   : > { %2755 = vmatmul.msk.bf16.gmra.mxu3 %vm257_vm0, %v3688_v14  ;;  %v1135_v12 = vadd.f32 %v1134_v23, %v3805_v10 }
 0x1f3   : > { %v1405_v42 = vpop.f32.mrf.mxu2  ;;  %v1533_v28 = vpop.f32.mrf.mxu3 }
 0x1f4   : > { %v1457_v56 = vadd.f32 %v1405_v42, %v1135_v12  ;;  %v1586_v9 = vadd.f32 %v1533_v28, %v1456_v25 }
 0x1f5   : > { %v1678_v21 = vpop.f32.mrf.mxu0 }
 0x1f6   : > { %v4013_v33 = vadd.f32 %v1673_v32, %v1586_v9  ;;  %v4464_v32 = vld [vmem:[#allocation4_spill] sm:$0xff]  ;;  %v4467_v9 = vld [vmem:[#allocation33_spill] sm:$0xff] }
 0x1f7   : > { %v1137_v3 = vpop.f32.mrf.mxu1 }
 0x1f8   : > { %2739 = vmatmul.msk.bf16.gmra.mxu2 %vm257_vm0, %v3359_v51  ;;  %2773 = vmatmul.msk.bf16.gmra.mxu0 %vm257_vm0, %v3390_v19  ;;  %v1138_v43 = vadd.f32 %v1137_v3, %v3819_v57  ;;  %v4462_v51 = vld [vmem:[#allocation29_spill] sm:$0xff] }
 0x1fa   : > { %2722 = vmatmul.msk.bf16.gmra.mxu1 %vm257_vm0, %v3624_v41 }
 0x1fb   : > { %v1408_v14 = vpop.f32.mrf.mxu2  ;;  %v1535_v10 = vpop.f32.mrf.mxu3 }
 0x1fc   : > { %v1458_v26 = vadd.f32 %v1408_v14, %v1138_v43  ;;  %v1587_v59 = vadd.f32 %v1535_v10, %v1457_v56  ;;  %v4466_v56 = vld [vmem:[#allocation12_spill] sm:$0xff] }
 0x1fd   : > { %v1680_v20 = vpop.f32.mrf.mxu0 }
 0x1fe   : > { %v4018_v48 = vadd.f32 %v1675_v15, %v1587_v59 }
 0x1ff   : > { %v1139_v11 = vpop.f32.mrf.mxu1 }
 0x200   : > { %2756 = vmatmul.msk.bf16.gmra.mxu3 %vm257_vm0, %v3366_v62  ;;  %v1140_v49 = vadd.f32 %v1139_v11, %v4462_v51  ;;  %v4468_v51 = vld [vmem:[#allocation14_spill] sm:$0xff] }
 0x203   : > { %v1410_v5 = vpop.f32.mrf.mxu2  ;;  %v1538_v46 = vpop.f32.mrf.mxu3 }
 0x204   : > { %v1459_v57 = vadd.f32 %v1410_v5, %v1140_v49  ;;  %v1588_v38 = vadd.f32 %v1538_v46, %v1458_v26  ;;  %v4470_v49 = vld [vmem:[#allocation25_spill] sm:$0xff] }
 0x205   : > { %v1683_v41 = vpop.f32.mrf.mxu0 }
 0x206   : > { %v4027_v23 = vadd.f32 %v1678_v21, %v1588_v38  ;;  %v4469_v21 = vld [vmem:[#allocation16_spill] sm:$0xff] }
 0x207   : > { %v1142_v60 = vpop.f32.mrf.mxu1 }
 0x208   : > { %2740 = vmatmul.msk.bf16.gmra.mxu2 %vm257_vm0, %v4463_v35  ;;  %2774 = vmatmul.msk.bf16.gmra.mxu0 %vm257_vm0, %v4464_v32  ;;  %v1143_v25 = vadd.f32 %v1142_v60, %v4465_v58 }
 0x20a   : > { %2723 = vmatmul.msk.bf16.gmra.mxu1 %vm257_vm0, %v3390_v19 }
 0x20b   : > { %v1413_v62 = vpop.f32.mrf.mxu2  ;;  %v1540_v8 = vpop.f32.mrf.mxu3 }
 0x20c   : > { %v1460_v15 = vadd.f32 %v1413_v62, %v1143_v25  ;;  %v1589_v12 = vadd.f32 %v1540_v8, %v1459_v57  ;;  %v4471_v25 = vld [vmem:[#allocation19_spill] sm:$0xff]  ;;  %v4472_v62 = vld [vmem:[#allocation26_spill] sm:$0xff] }
 0x20d   : > { %v1685_v42 = vpop.f32.mrf.mxu0 }
 0x20e   : > { %v4032_v10 = vadd.f32 %v1680_v20, %v1589_v12 }
 0x20f   : > { %v1144_v28 = vpop.f32.mrf.mxu1 }
 0x210   : > { %2757 = vmatmul.msk.bf16.gmra.mxu3 %vm257_vm0, %v4466_v56  ;;  %v1145_v3 = vadd.f32 %v1144_v28, %v4467_v9 }
 0x213   : > { %v1415_v43 = vpop.f32.mrf.mxu2  ;;  %v1543_v14 = vpop.f32.mrf.mxu3 }
 0x214   : > { %v1461_v26 = vadd.f32 %v1415_v43, %v1145_v3  ;;  %v1590_v59 = vadd.f32 %v1543_v14, %v1460_v15  ;;  %v4473_v43 = vld [vmem:[#allocation17_spill] sm:$0xff]  ;;  %v4475_v14 = vld [vmem:[#allocation27_spill] sm:$0xff] }
 0x215   : > { %v1688_v19 = vpop.f32.mrf.mxu0 }
 0x216   : > { %v4041_v38 = vadd.f32 %v1683_v41, %v1590_v59  ;;  %v4474_v41 = vld [vmem:[#allocation21_spill] sm:$0xff] }
 0x217   : > { %v1147_v11 = vpop.f32.mrf.mxu1 }
 0x218   : > { %2741 = vmatmul.msk.bf16.gmra.mxu2 %vm257_vm0, %v4468_v51  ;;  %2775 = vmatmul.msk.bf16.gmra.mxu0 %vm257_vm0, %v4469_v21  ;;  %v1148_v5 = vadd.f32 %v1147_v11, %v4470_v49 }
 0x21a   : > { %2724 = vmatmul.msk.bf16.gmra.mxu1 %vm257_vm0, %v4464_v32 }
 0x21b   : > { %v1418_v46 = vpop.f32.mrf.mxu2  ;;  %v1545_v57 = vpop.f32.mrf.mxu3 }
 0x21c   : > { %v1462_v20 = vadd.f32 %v1418_v46, %v1148_v5  ;;  %v1591_v60 = vadd.f32 %v1545_v57, %v1461_v26  ;;  %v4476_v57 = vld [vmem:[#allocation23_spill] sm:$0xff] }
 0x21d   : > { %v1690_v35 = vpop.f32.mrf.mxu0 }
 0x21e   : > { %v4046_v28 = vadd.f32 %v1685_v42, %v1591_v60 }
 0x21f   : > { %v1149_v58 = vpop.f32.mrf.mxu1 }
 0x220   : > { %2758 = vmatmul.msk.bf16.gmra.mxu3 %vm257_vm0, %v4471_v25  ;;  %v1150_v8 = vadd.f32 %v1149_v58, %v4472_v62 }
 0x223   : > { %v1420_v15 = vpop.f32.mrf.mxu2  ;;  %v1548_v12 = vpop.f32.mrf.mxu3 }
 0x224   : > { %v1463_v56 = vadd.f32 %v1420_v15, %v1150_v8  ;;  %v1592_v9 = vadd.f32 %v1548_v12, %v1462_v20  ;;  %v4477_v20 = vld [vmem:[#allocation28_spill] sm:$0xff] }
 0x225   : > { %v1693_v32 = vpop.f32.mrf.mxu0 }
 0x226   : > { %v4055_v51 = vadd.f32 %v1688_v19, %v1592_v9  ;;  %v4479_v19 = vld [vmem:[#allocation7_spill] sm:$0xff] }
 0x227   : > { %v1152_v3 = vpop.f32.mrf.mxu1 }
 0x228   : > { %2742 = vmatmul.msk.bf16.gmra.mxu2 %vm257_vm0, %v4473_v43  ;;  %2776 = vmatmul.msk.bf16.gmra.mxu0 %vm257_vm0, %v4474_v41  ;;  %v1153_v26 = vadd.f32 %v1152_v3, %v4475_v14  ;;  %v4478_v3 = vld [vmem:[#allocation6_spill] sm:$0xff] }
 0x22a   : > { %2725 = vmatmul.msk.bf16.gmra.mxu1 %vm257_vm0, %v4469_v21 }
 0x22b   : > { %v1423_v59 = vpop.f32.mrf.mxu2  ;;  %v1550_v11 = vpop.f32.mrf.mxu3 }
 0x22c   : > { %v1464_v42 = vadd.f32 %v1423_v59, %v1153_v26  ;;  %v1593_v49 = vadd.f32 %v1550_v11, %v1463_v56  ;;  %v4480_v56 = vld [vmem:[#allocation30_spill] sm:$0xff] }
 0x22d   : > { %v1695_v5 = vpop.f32.mrf.mxu0 }
 0x22e   : > { %v4060_v62 = vadd.f32 %v1690_v35, %v1593_v49  ;;  %v4481_v49 = vld [vmem:[#allocation5_spill] sm:$0xff] }
 0x22f   : > { %v1154_v46 = vpop.f32.mrf.mxu1 }
 0x230   : > { %2759 = vmatmul.msk.bf16.gmra.mxu3 %vm257_vm0, %v4476_v57  ;;  %v1155_v60 = vadd.f32 %v1154_v46, %v4477_v20  ;;  %v4482_v46 = vld [vmem:[#allocation32_spill] sm:$0xff] }
 0x233   : > { %v1425_v58 = vpop.f32.mrf.mxu2  ;;  %v1553_v25 = vpop.f32.mrf.mxu3 }
 0x234   : > { %v1465_v8 = vadd.f32 %v1425_v58, %v1155_v60  ;;  %v1594_v15 = vadd.f32 %v1553_v25, %v1464_v42 }
 0x235   : > { %v1698_v21 = vpop.f32.mrf.mxu0 }
 0x236   : > { %v4069_v26 = vadd.f32 %v1693_v32, %v1594_v15  ;;  %v4485_v32 = vld [vmem:[#allocation22_spill] sm:$0xff] }
 0x237   : > { %v1157_v12 = vpop.f32.mrf.mxu1 }
 0x238   : > { %2743 = vmatmul.msk.bf16.gmra.mxu2 %vm257_vm0, %v4478_v3  ;;  %2777 = vmatmul.msk.bf16.gmra.mxu0 %vm257_vm0, %v4479_v19  ;;  %v1158_v9 = vadd.f32 %v1157_v12, %v4480_v56  ;;  %v4484_v56 = vld [vmem:[#allocation10_spill] sm:$0xff] }
 0x23a   : > { %2726 = vmatmul.msk.bf16.gmra.mxu1 %vm257_vm0, %v4474_v41 }
 0x23b   : > { %v1428_v43 = vpop.f32.mrf.mxu2  ;;  %v1555_v14 = vpop.f32.mrf.mxu3 }
 0x23c   : > { %v1466_v35 = vadd.f32 %v1428_v43, %v1158_v9  ;;  %v1595_v59 = vadd.f32 %v1555_v14, %v1465_v8  ;;  %v4486_v8 = vld [vmem:[#allocation34_spill] sm:$0xff] }
 0x23d   : > { %v1700_v11 = vpop.f32.mrf.mxu0 }
 0x23e   : > { %v4074_v58 = vadd.f32 %v1695_v5, %v1595_v59 }
 0x23f   : > { %v1159_v42 = vpop.f32.mrf.mxu1 }
 0x240   : > { %2760 = vmatmul.msk.bf16.gmra.mxu3 %vm257_vm0, %v4481_v49  ;;  %v1160_v57 = vadd.f32 %v1159_v42, %v4482_v46  ;;  %4483 = vst [vmem:[#allocation29_spill] sm:$0xff] %v4074_v58  ;;  %v4487_v49 = vld [vmem:[#allocation11_spill] sm:$0xff] }
 0x241   : > { %v4488_v46 = vld [vmem:[#allocation35_spill] sm:$0xff] }
 0x243   : > { %v1430_v20 = vpop.f32.mrf.mxu2  ;;  %v1558_v60 = vpop.f32.mrf.mxu3 }
 0x244   : > { %v1467_v25 = vadd.f32 %v1430_v20, %v1160_v57  ;;  %v1596_v12 = vadd.f32 %v1558_v60, %v1466_v35 }
 0x245   : > { %v1703_v41 = vpop.f32.mrf.mxu0 }
 0x246   : > { %v4083_v14 = vadd.f32 %v1698_v21, %v1596_v12 }
 0x247   : > { %v1162_v3 = vpop.f32.mrf.mxu1 }
 0x248   : > { %2744 = vmatmul.msk.bf16.gmra.mxu2 %vm257_vm0, %v4484_v56  ;;  %2778 = vmatmul.msk.bf16.gmra.mxu0 %vm257_vm0, %v4485_v32  ;;  %v1163_v15 = vadd.f32 %v1162_v3, %v4486_v8 }
 0x24a   : > { %2727 = vmatmul.msk.bf16.gmra.mxu1 %vm257_vm0, %v4479_v19 }
 0x24b   : > { %v1433_v9 = vpop.f32.mrf.mxu2  ;;  %v1560_v43 = vpop.f32.mrf.mxu3 }
 0x24c   : > { %v1468_v5 = vadd.f32 %v1433_v9, %v1163_v15  ;;  %v1597_v59 = vadd.f32 %v1560_v43, %v1467_v25 }
 0x24d   : > { %v1705_v35 = vpop.f32.mrf.mxu0 }
 0x24e   : > { %v4088_v56 = vadd.f32 %v1700_v11, %v1597_v59 }
 0x24f   : > { %v1164_v42 = vpop.f32.mrf.mxu1 }
 0x250   : > { %2761 = vmatmul.msk.bf16.gmra.mxu3 %vm257_vm0, %v4487_v49  ;;  %v1165_v57 = vadd.f32 %v1164_v42, %v4488_v46 }
 0x253   : > { %v1435_v20 = vpop.f32.mrf.mxu2  ;;  %v1563_v60 = vpop.f32.mrf.mxu3 }
 0x254   : > { %v1469_v3 = vadd.f32 %v1435_v20, %v1165_v57  ;;  %v1598_v8 = vadd.f32 %v1563_v60, %v1468_v5  ;;  %v4489_v5 = vld [vmem:[#allocation15_spill] sm:$0xff] }
 0x255   : > { %v2172_v19 = vpop.f32.mrf.mxu0 }
 0x256   : > { %v4096_v12 = vadd.f32 %v1703_v41, %v1598_v8  ;;  %v4107_v41 = vld [vmem:[%s4372_s3] ss:$0 sm:$0xff] }
 0x257   : > { %v1765_v58 = vpop.f32.mrf.mxu1 }
 0x258   : > { %2745 = vmatmul.msk.bf16.gmra.mxu2 %vm257_vm0, %v4454_v7  ;;  %2779 = vmatmul.msk.bf16.gmra.mxu0 %vm257_vm0, %v3640_v39  ;;  %v1845_v43 = vadd.f32 %v1765_v58, %v3873_v53 }
 0x25a   : > { %2728 = vmatmul.msk.bf16.gmra.mxu1 %vm257_vm0, %v4485_v32 }
 0x25b   : > { %v1565_v21 = vpop.f32.mrf.mxu3  ;;  %v1895_v25 = vpop.f32.mrf.mxu2 }
 0x25c   : > { %v1599_v11 = vadd.f32 %v1565_v21, %v1469_v3  ;;  %v1975_v59 = vadd.f32 %v1895_v25, %v1845_v43 }
 0x25d   : > { %v2174_v15 = vpop.f32.mrf.mxu0 }
 0x25e   : > { %v4101_v49 = vadd.f32 %v1705_v35, %v1599_v11 }
 0x25f   : > { %v1767_v9 = vpop.f32.mrf.mxu1 }
 0x260   : > { %2762 = vmatmul.msk.bf16.gmra.mxu3 %vm257_vm0, %v4489_v5  ;;  %v1846_v58 = vadd.f32 %v1767_v9, %v3877_v6 }
 0x263   : > { %v1897_v7 = vpop.f32.mrf.mxu2  ;;  %v2035_v42 = vpop.f32.mrf.mxu3 }
 0x264   : > { %v2115_v46 = vadd.f32 %v2035_v42, %v1975_v59  ;;  %v1976_v20 = vadd.f32 %v1897_v7, %v1846_v58 }
 0x265   : > { %v2177_v32 = vpop.f32.mrf.mxu0 }
 0x266   : > { %v2252_v57 = vadd.f32 %v2172_v19, %v2115_v46 }
 0x267   : > { %v1770_v53 = vpop.f32.mrf.mxu1 }
 0x268   : > { %v2288_v35 = vadd.f32 %v4107_v41, %v2252_v57  ;;  %2746 = vmatmul.msk.bf16.gmra.mxu2 %vm257_vm0, %v3638_v22  ;;  %2780 = vmatmul.msk.bf16.gmra.mxu0 %vm257_vm0, %v3669_v24  ;;  %v1847_v11 = vadd.f32 %v1770_v53, %v3886_v17 }
 0x26a   : > { %2320 = vst.msk [vmem:[%s4112_s28] sm:$0xff] %vm378_vm2, %v2288_v35  ;;  %2729 = vmatmul.msk.bf16.gmra.mxu1 %vm257_vm0, %v3640_v39  ;;  %v2423_v25 = vmul.f32 %v2288_v35, %v2288_v35  ;;  %v2352_v9 = vsel %vm378_vm2, %v2288_v35, 0.0 }
 0x26b   : > { %v1900_v60 = vpop.f32.mrf.mxu2  ;;  %v2037_v3 = vpop.f32.mrf.mxu3 }
 0x26c   : > { %v2116_v8 = vadd.f32 %v2037_v3, %v1976_v20  ;;  %v1977_v43 = vadd.f32 %v1900_v60, %v1847_v11  ;;  %v2455_v42 = vsel %vm378_vm2, %v2423_v25, 0.0 }
 0x26d   : > { %v2179_v19 = vpop.f32.mrf.mxu0 }
 0x26e   : > { %v2253_v6 = vadd.f32 %v2174_v15, %v2116_v8 }
 0x26f   : > { %v1772_v21 = vpop.f32.mrf.mxu1 }
 0x270   : > { %v2289_v22 = vadd.f32 %v4107_v41, %v2253_v6  ;;  %2763 = vmatmul.msk.bf16.gmra.mxu3 %vm257_vm0, %v3692_v61  ;;  %v1848_v35 = vadd.f32 %v1772_v21, %v3891_v31 }
 0x272   : > { %2321 = vst.msk [vmem:[%s4112_s28 + $0x8] sm:$0xff] %vm378_vm2, %v2289_v22  ;;  %v2353_v39 = vsel %vm378_vm2, %v2289_v22, 0.0  ;;  %v2424_v5 = vmul.f32 %v2289_v22, %v2289_v22 }
 0x273   : > { %v2354_v59 = vadd.f32 %v2353_v39, %v2352_v9  ;;  %v1902_v15 = vpop.f32.mrf.mxu2  ;;  %v2040_v7 = vpop.f32.mrf.mxu3 }
 0x274   : > { %v2456_v17 = vsel %vm378_vm2, %v2424_v5, 0.0  ;;  %v2117_v46 = vadd.f32 %v2040_v7, %v1977_v43  ;;  %v1978_v60 = vadd.f32 %v1902_v15, %v1848_v35  ;;  %v4490_v5 = vld [vmem:[#allocation9_spill] sm:$0xff] }
 0x275   : > { %v2457_v57 = vadd.f32 %v2456_v17, %v2455_v42  ;;  %v2182_v53 = vpop.f32.mrf.mxu0 }
 0x276   : > { %v2254_v61 = vadd.f32 %v2177_v32, %v2117_v46 }
 0x277   : > { %v1775_v58 = vpop.f32.mrf.mxu1 }
 0x278   : > { %v2290_v20 = vadd.f32 %v4107_v41, %v2254_v61  ;;  %2747 = vmatmul.msk.bf16.gmra.mxu2 %vm257_vm0, %v4456_v37  ;;  %2781 = vmatmul.msk.bf16.gmra.mxu0 %vm257_vm0, %v3682_v29  ;;  %v1849_v43 = vadd.f32 %v1775_v58, %v3900_v63 }
 0x27a   : > { %2322 = vst.msk [vmem:[%s4112_s28 + $0x10] sm:$0xff] %vm378_vm2, %v2290_v20  ;;  %v2355_v3 = vsel %vm378_vm2, %v2290_v20, 0.0  ;;  %v2425_v8 = vmul.f32 %v2290_v20, %v2290_v20  ;;  %2730 = vmatmul.msk.bf16.gmra.mxu1 %vm257_vm0, %v3669_v24 }
 0x27b   : > { %v2356_v32 = vadd.f32 %v2355_v3, %v2354_v59  ;;  %v1905_v31 = vpop.f32.mrf.mxu2  ;;  %v2042_v6 = vpop.f32.mrf.mxu3 }
 0x27c   : > { %v2458_v21 = vsel %vm378_vm2, %v2425_v8, 0.0  ;;  %v2118_v25 = vadd.f32 %v2042_v6, %v1978_v60  ;;  %v1979_v15 = vadd.f32 %v1905_v31, %v1849_v43 }
 0x27d   : > { %v2459_v37 = vadd.f32 %v2458_v21, %v2457_v57  ;;  %v2184_v11 = vpop.f32.mrf.mxu0 }
 0x27e   : > { %v2255_v22 = vadd.f32 %v2179_v19, %v2118_v25 }
 0x27f   : > { %v1777_v9 = vpop.f32.mrf.mxu1 }
 0x280   : > { %v2291_v39 = vadd.f32 %v4107_v41, %v2255_v22  ;;  %2764 = vmatmul.msk.bf16.gmra.mxu3 %vm257_vm0, %v4490_v5  ;;  %v1850_v35 = vadd.f32 %v1777_v9, %v3905_v27 }
 0x282   : > { %2323 = vst.msk [vmem:[%s4112_s28 + $0x18] sm:$0xff] %vm378_vm2, %v2291_v39  ;;  %v2357_v24 = vsel %vm378_vm2, %v2291_v39, 0.0  ;;  %v2426_v59 = vmul.f32 %v2291_v39, %v2291_v39 }
 0x283   : > { %v2358_v7 = vadd.f32 %v2357_v24, %v2356_v32  ;;  %v1907_v42 = vpop.f32.mrf.mxu2  ;;  %v2045_v17 = vpop.f32.mrf.mxu3 }
 0x284   : > { %v2460_v19 = vsel %vm378_vm2, %v2426_v59, 0.0  ;;  %v2119_v46 = vadd.f32 %v2045_v17, %v1979_v15  ;;  %v1980_v60 = vadd.f32 %v1907_v42, %v1850_v35 }
 0x285   : > { %v2461_v57 = vadd.f32 %v2460_v19, %v2459_v37  ;;  %v2187_v63 = vpop.f32.mrf.mxu0 }
 0x286   : > { %v2256_v61 = vadd.f32 %v2182_v53, %v2119_v46 }
 0x287   : > { %v1780_v58 = vpop.f32.mrf.mxu1 }
 0x288   : > { %v2292_v20 = vadd.f32 %v4107_v41, %v2256_v61  ;;  %2748 = vmatmul.msk.bf16.gmra.mxu2 %vm257_vm0, %v3648_v55  ;;  %2782 = vmatmul.msk.bf16.gmra.mxu0 %vm257_vm0, %v3684_v52  ;;  %v1851_v22 = vadd.f32 %v1780_v58, %v3916_v45 }
 0x28a   : > { %2324 = vst.msk [vmem:[%s4112_s28 + $0x20] sm:$0xff] %vm378_vm2, %v2292_v20  ;;  %v2359_v3 = vsel %vm378_vm2, %v2292_v20, 0.0  ;;  %v2427_v8 = vmul.f32 %v2292_v20, %v2292_v20  ;;  %2731 = vmatmul.msk.bf16.gmra.mxu1 %vm257_vm0, %v3682_v29 }
 0x28b   : > { %v2360_v53 = vadd.f32 %v2359_v3, %v2358_v7  ;;  %v1910_v27 = vpop.f32.mrf.mxu2  ;;  %v2047_v32 = vpop.f32.mrf.mxu3 }
 0x28c   : > { %v2462_v31 = vsel %vm378_vm2, %v2427_v8, 0.0  ;;  %v2120_v6 = vadd.f32 %v2047_v32, %v1980_v60  ;;  %v1981_v43 = vadd.f32 %v1910_v27, %v1851_v22 }
 0x28d   : > { %v2463_v55 = vadd.f32 %v2462_v31, %v2461_v57  ;;  %v2189_v21 = vpop.f32.mrf.mxu0  ;;  %v4492_v31 = vld [vmem:[#allocation18_spill] sm:$0xff] }
 0x28e   : > { %v2257_v25 = vadd.f32 %v2184_v11, %v2120_v6 }
 0x28f   : > { %v1782_v37 = vpop.f32.mrf.mxu1 }
 0x290   : > { %v2293_v9 = vadd.f32 %v4107_v41, %v2257_v25  ;;  %2765 = vmatmul.msk.bf16.gmra.mxu3 %vm257_vm0, %v4457_v16  ;;  %v1852_v19 = vadd.f32 %v1782_v37, %v3924_v44 }
 0x292   : > { %2325 = vst.msk [vmem:[%s4112_s28 + $0x28] sm:$0xff] %vm378_vm2, %v2293_v9  ;;  %v2361_v29 = vsel %vm378_vm2, %v2293_v9, 0.0  ;;  %v2428_v39 = vmul.f32 %v2293_v9, %v2293_v9 }
 0x293   : > { %v2362_v5 = vadd.f32 %v2361_v29, %v2360_v53  ;;  %v1912_v15 = vpop.f32.mrf.mxu2  ;;  %v2050_v24 = vpop.f32.mrf.mxu3  ;;  %v4491_v53 = vld [vmem:[#allocation20_spill] sm:$0xff] }
 0x294   : > { %v2464_v11 = vsel %vm378_vm2, %v2428_v39, 0.0  ;;  %v2121_v59 = vadd.f32 %v2050_v24, %v1981_v43  ;;  %v1982_v46 = vadd.f32 %v1912_v15, %v1852_v19  ;;  %v4493_v15 = vld [vmem:[#allocation8_spill] sm:$0xff] }
 0x295   : > { %v2465_v7 = vadd.f32 %v2464_v11, %v2463_v55  ;;  %v2192_v45 = vpop.f32.mrf.mxu0 }
 0x296   : > { %v2258_v42 = vadd.f32 %v2187_v63, %v2121_v59 }
 0x297   : > { %v1785_v17 = vpop.f32.mrf.mxu1 }
 0x298   : > { %v2294_v16 = vadd.f32 %v4107_v41, %v2258_v42  ;;  %2749 = vmatmul.msk.bf16.gmra.mxu2 %vm257_vm0, %v3664_v40  ;;  %2783 = vmatmul.msk.bf16.gmra.mxu0 %vm257_vm0, %v3698_v36  ;;  %v1853_v27 = vadd.f32 %v1785_v17, %v4491_v53 }
 0x29a   : > { %2326 = vst.msk [vmem:[%s4112_s28 + $0x30] sm:$0xff] %vm378_vm2, %v2294_v16  ;;  %v2363_v57 = vsel %vm378_vm2, %v2294_v16, 0.0  ;;  %v2429_v61 = vmul.f32 %v2294_v16, %v2294_v16  ;;  %2732 = vmatmul.msk.bf16.gmra.mxu1 %vm257_vm0, %v3684_v52 }
 0x29b   : > { %v2364_v63 = vadd.f32 %v2363_v57, %v2362_v5  ;;  %v1915_v44 = vpop.f32.mrf.mxu2  ;;  %v2052_v58 = vpop.f32.mrf.mxu3 }
 0x29c   : > { %v2466_v35 = vsel %vm378_vm2, %v2429_v61, 0.0  ;;  %v2122_v20 = vadd.f32 %v2052_v58, %v1982_v46  ;;  %v1983_v6 = vadd.f32 %v1915_v44, %v1853_v27 }
 0x29d   : > { %v2467_v40 = vadd.f32 %v2466_v35, %v2465_v7  ;;  %v2194_v60 = vpop.f32.mrf.mxu0  ;;  %v4494_v35 = vld [vmem:[#allocation24_spill] sm:$0xff] }
 0x29e   : > { %v2259_v3 = vadd.f32 %v2189_v21, %v2122_v20 }
 0x29f   : > { %v1787_v8 = vpop.f32.mrf.mxu1 }
 0x2a0   : > { %v2295_v32 = vadd.f32 %v4107_v41, %v2259_v3  ;;  %2766 = vmatmul.msk.bf16.gmra.mxu3 %vm257_vm0, %v4492_v31  ;;  %v1854_v24 = vadd.f32 %v1787_v8, %v4493_v15 }
 0x2a2   : > { %2327 = vst.msk [vmem:[%s4112_s28 + $0x38] sm:$0xff] %vm378_vm2, %v2295_v32  ;;  %v2365_v52 = vsel %vm378_vm2, %v2295_v32, 0.0  ;;  %v2430_v55 = vmul.f32 %v2295_v32, %v2295_v32 }
 0x2a3   : > { %v2366_v25 = vadd.f32 %v2365_v52, %v2364_v63  ;;  %v1917_v37 = vpop.f32.mrf.mxu2  ;;  %v2055_v22 = vpop.f32.mrf.mxu3 }
 0x2a4   : > { %v2468_v21 = vsel %vm378_vm2, %v2430_v55, 0.0  ;;  %v2123_v9 = vadd.f32 %v2055_v22, %v1983_v6  ;;  %v1984_v59 = vadd.f32 %v1917_v37, %v1854_v24 }
 0x2a5   : > { %v2469_v43 = vadd.f32 %v2468_v21, %v2467_v40  ;;  %v2197_v29 = vpop.f32.mrf.mxu0  ;;  %v689_v21 = vld [vmem:[#allocation2 + $0x1a8] sm:$0x3] }
 0x2a6   : > { %v2260_v39 = vadd.f32 %v2192_v45, %v2123_v9 }
 0x2a7   : > { %v1790_v5 = vpop.f32.mrf.mxu1 }
 0x2a8   : > { %v2296_v11 = vadd.f32 %v4107_v41, %v2260_v39  ;;  %2750 = vmatmul.msk.bf16.gmra.mxu2 %vm257_vm0, %v3721_v30  ;;  %2784 = vmatmul.msk.bf16.gmra.mxu0 %vm257_vm0, %v3727_v2  ;;  %v1855_v44 = vadd.f32 %v1790_v5, %v3947_v54  ;;  %v688_v5 = vld [vmem:[#allocation2 + $0x1a0] sm:$0xff] }
 0x2aa   : > { %2328 = vst.msk [vmem:[%s4112_s28 + $0x40] sm:$0xff] %vm378_vm2, %v2296_v11  ;;  %v2367_v7 = vsel %vm378_vm2, %v2296_v11, 0.0  ;;  %v2431_v42 = vmul.f32 %v2296_v11, %v2296_v11  ;;  %2733 = vmatmul.msk.bf16.gmra.mxu1 %vm257_vm0, %v3698_v36 }
 0x2ab   : > { %v2368_v45 = vadd.f32 %v2367_v7, %v2366_v25  ;;  %v1920_v17 = vpop.f32.mrf.mxu2  ;;  %v2057_v19 = vpop.f32.mrf.mxu3  ;;  %v2150_v7 = vrot.slane %v689_v21, 2 }
 0x2ac   : > { %v2470_v16 = vsel %vm378_vm2, %v2431_v42, 0.0  ;;  %v2124_v46 = vadd.f32 %v2057_v19, %v1984_v59  ;;  %v1985_v20 = vadd.f32 %v1920_v17, %v1855_v44  ;;  %v2148_v59 = vrot.slane %v688_v5, 2  ;;  %v4495_v17 = vld [vmem:[#allocation36_spill] sm:$0xff] }
 0x2ad   : > { %v2471_v30 = vadd.f32 %v2470_v16, %v2469_v43  ;;  %v2199_v57 = vpop.f32.mrf.mxu0  ;;  %v4496_v16 = vld [vmem:[#allocation13_spill] sm:$0xff] }
 0x2ae   : > { %v2261_v61 = vadd.f32 %v2194_v60, %v2124_v46 }
 0x2af   : > { %v1792_v63 = vpop.f32.mrf.mxu1 }
 0x2b0   : > { %v2297_v58 = vadd.f32 %v4107_v41, %v2261_v61  ;;  %2767 = vmatmul.msk.bf16.gmra.mxu3 %vm257_vm0, %v4494_v35  ;;  %v1856_v52 = vadd.f32 %v1792_v63, %v3954_v0 }
 0x2b2   : > { %2329 = vst.msk [vmem:[%s4112_s28 + $0x48] sm:$0xff] %vm378_vm2, %v2297_v58  ;;  %v2369_v36 = vsel %vm378_vm2, %v2297_v58, 0.0  ;;  %v2432_v40 = vmul.f32 %v2297_v58, %v2297_v58 }
 0x2b3   : > { %v2370_v3 = vadd.f32 %v2369_v36, %v2368_v45  ;;  %v1922_v8 = vpop.f32.mrf.mxu2  ;;  %v2060_v53 = vpop.f32.mrf.mxu3 }
 0x2b4   : > { %v2472_v60 = vsel %vm378_vm2, %v2432_v40, 0.0  ;;  %v2125_v27 = vadd.f32 %v2060_v53, %v1985_v20  ;;  %v1986_v25 = vadd.f32 %v1922_v8, %v1856_v52 }
 0x2b5   : > { %v2473_v32 = vadd.f32 %v2472_v60, %v2471_v30  ;;  %v2202_v54 = vpop.f32.mrf.mxu0  ;;  %v2151_v30 = vsel %vm1167_vm6, %v2148_v59, %v2150_v7 }
 0x2b6   : > { %v2262_v31 = vadd.f32 %v2197_v29, %v2125_v27  ;;  %v2011_v27 = vrot.slane %v688_v5, 1 }
 0x2b7   : > { %v1795_v6 = vpop.f32.mrf.mxu1 }
 0x2b8   : > { %v2298_v55 = vadd.f32 %v4107_v41, %v2262_v31  ;;  %2751 = vmatmul.msk.bf16.gmra.mxu2 %vm257_vm0, %v3967_v47  ;;  %2785 = vmatmul.msk.bf16.gmra.mxu0 %vm257_vm0, %v3976_v18  ;;  %v687_v47 = vld [vmem:[#allocation2 + $0x198] sm:$0xff]  ;;  %v1857_v19 = vadd.f32 %v1795_v6, %v4495_v17 }
 0x2b9   : > { %v2147_v11 = vrot.slane %v687_v47, 2  ;;  %v1877_v40 = vpack.c.bf16 %v688_v5, %v687_v47  ;;  %v2010_v60 = vrot.slane %v687_v47, 1 }
 0x2ba   : > { %2330 = vst.msk [vmem:[%s4112_s28 + $0x50] sm:$0xff] %vm378_vm2, %v2298_v55  ;;  %v2371_v37 = vsel %vm378_vm2, %v2298_v55, 0.0  ;;  %v2433_v22 = vmul.f32 %v2298_v55, %v2298_v55  ;;  %2734 = vmatmul.msk.bf16.gmra.mxu1 %vm257_vm0, %v3727_v2 }
 0x2bb   : > { %v2372_v9 = vadd.f32 %v2371_v37, %v2370_v3  ;;  %v1925_v0 = vpop.f32.mrf.mxu2  ;;  %v2062_v43 = vpop.f32.mrf.mxu3  ;;  %v2149_v46 = vsel %vm1167_vm6, %v2147_v11, %v2148_v59 }
 0x2bc   : > { %v2474_v29 = vsel %vm378_vm2, %v2433_v22, 0.0  ;;  %v2126_v39 = vadd.f32 %v2062_v43, %v1986_v25  ;;  %v1987_v61 = vadd.f32 %v1925_v0, %v1857_v19  ;;  %v2154_v3 = vpack.c.bf16 %v2151_v30, %v2149_v46 }
 0x2bd   : > { %v2475_v15 = vadd.f32 %v2474_v29, %v2473_v32  ;;  %v2204_v24 = vpop.f32.mrf.mxu0  ;;  %v2013_v32 = vrot.slane %v689_v21, 1  ;;  %v2012_v25 = vsel %vm755_vm4, %v2010_v60, %v2011_v27 }
 0x2be   : > { %v2263_v42 = vadd.f32 %v2199_v57, %v2126_v39 }
 0x2bf   : > { %v1797_v45 = vpop.f32.mrf.mxu1  ;;  %v2014_v37 = vsel %vm755_vm4, %v2011_v27, %v2013_v32 }
 0x2c0   : > { %v2299_v2 = vadd.f32 %v4107_v41, %v2263_v42  ;;  %2768 = vmatmul.msk.bf16.gmra.mxu3 %vm257_vm0, %v4496_v16  ;;  %v1858_v52 = vadd.f32 %v1797_v45, %v3972_v50  ;;  %v2017_v39 = vpack.c.bf16 %v2014_v37, %v2012_v25 }
 0x2c2   : > { %2331 = vst.msk [vmem:[%s4112_s28 + $0x58] sm:$0xff] %vm378_vm2, %v2299_v2  ;;  %v2373_v63 = vsel %vm378_vm2, %v2299_v2, 0.0  ;;  %v2434_v44 = vmul.f32 %v2299_v2, %v2299_v2 }
 0x2c3   : > { %v2374_v58 = vadd.f32 %v2373_v63, %v2372_v9  ;;  %v1927_v57 = vpop.f32.mrf.mxu2  ;;  %v2065_v35 = vpop.f32.mrf.mxu3 }
 0x2c4   : > { %v2476_v20 = vsel %vm378_vm2, %v2434_v44, 0.0  ;;  %v2127_v36 = vadd.f32 %v2065_v35, %v1987_v61  ;;  %v1988_v22 = vadd.f32 %v1927_v57, %v1858_v52 }
 0x2c5   : > { %v2477_v8 = vadd.f32 %v2476_v20, %v2475_v15  ;;  %v2207_v53 = vpop.f32.mrf.mxu0 }
 0x2c6   : > { %v2264_v31 = vadd.f32 %v2202_v54, %v2127_v36 }
 0x2c7   : > { %v1800_v6 = vpop.f32.mrf.mxu1 }
 0x2c8   : > { %v2300_v55 = vadd.f32 %v4107_v41, %v2264_v31  ;;  %2752 = vmatmul.msk.bf16.gmra.mxu2 %vm257_vm0, %v1877_v40  ;;  %2786 = vmatmul.msk.bf16.gmra.mxu0 %vm257_vm0, %v2154_v3  ;;  %v1859_v59 = vadd.f32 %v1800_v6, %v3985_v1 }
 0x2ca   : > { %2332 = vst.msk [vmem:[%s4112_s28 + $0x60] sm:$0xff] %vm378_vm2, %v2300_v55  ;;  %v2375_v9 = vsel %vm378_vm2, %v2300_v55, 0.0  ;;  %v2435_v21 = vmul.f32 %v2300_v55, %v2300_v55  ;;  %2735 = vmatmul.msk.bf16.gmra.mxu1 %vm257_vm0, %v3976_v18 }
 0x2cb   : > { %v2376_v50 = vadd.f32 %v2375_v9, %v2374_v58  ;;  %v1930_v54 = vpop.f32.mrf.mxu2  ;;  %v2067_v0 = vpop.f32.mrf.mxu3 }
 0x2cc   : > { %v2478_v43 = vsel %vm378_vm2, %v2435_v21, 0.0  ;;  %v2128_v29 = vadd.f32 %v2067_v0, %v1988_v22  ;;  %v1989_v42 = vadd.f32 %v1930_v54, %v1859_v59 }
 0x2cd   : > { %v2479_v47 = vadd.f32 %v2478_v43, %v2477_v8  ;;  %v2209_v5 = vpop.f32.mrf.mxu0 }
 0x2ce   : > { %v2265_v15 = vadd.f32 %v2204_v24, %v2128_v29 }
 0x2cf   : > { %v1802_v11 = vpop.f32.mrf.mxu1 }
 0x2d0   : > { %v2301_v7 = vadd.f32 %v4107_v41, %v2265_v15  ;;  %2769 = vmatmul.msk.bf16.gmra.mxu3 %vm257_vm0, %v2017_v39  ;;  %v1860_v63 = vadd.f32 %v1802_v11, %v3990_v34 }
 0x2d2   : > { %2333 = vst.msk [vmem:[%s4112_s28 + $0x68] sm:$0xff] %vm378_vm2, %v2301_v7  ;;  %v2377_v18 = vsel %vm378_vm2, %v2301_v7, 0.0  ;;  %v2436_v45 = vmul.f32 %v2301_v7, %v2301_v7 }
 0x2d3   : > { %v2378_v17 = vadd.f32 %v2377_v18, %v2376_v50  ;;  %v1932_v19 = vpop.f32.mrf.mxu2  ;;  %v2070_v2 = vpop.f32.mrf.mxu3 }
 0x2d4   : > { %v2480_v16 = vsel %vm378_vm2, %v2436_v45, 0.0  ;;  %v2129_v24 = vadd.f32 %v2070_v2, %v1989_v42  ;;  %v1990_v58 = vadd.f32 %v1932_v19, %v1860_v63 }
 0x2d5   : > { %v2481_v46 = vadd.f32 %v2480_v16, %v2479_v47  ;;  %v2212_v30 = vpop.f32.mrf.mxu0 }
 0x2d6   : > { %v2266_v1 = vadd.f32 %v2207_v53, %v2129_v24 }
 0x2d7   : > { %v1805_v61 = vpop.f32.mrf.mxu1 }
 0x2d8   : > { %v2302_v44 = vadd.f32 %v4107_v41, %v2266_v1  ;;  %v1861_v34 = vadd.f32 %v1805_v61, %v3999_v4 }
 0x2da   : > { %2334 = vst.msk [vmem:[%s4112_s28 + $0x70] sm:$0xff] %vm378_vm2, %v2302_v44  ;;  %v2379_v57 = vsel %vm378_vm2, %v2302_v44, 0.0  ;;  %v2437_v35 = vmul.f32 %v2302_v44, %v2302_v44 }
 0x2db   : > { %v2380_v20 = vadd.f32 %v2379_v57, %v2378_v17  ;;  %v1935_v36 = vpop.f32.mrf.mxu2  ;;  %v2072_v40 = vpop.f32.mrf.mxu3 }
 0x2dc   : > { %v2482_v3 = vsel %vm378_vm2, %v2437_v35, 0.0  ;;  %v2130_v8 = vadd.f32 %v2072_v40, %v1990_v58  ;;  %v1991_v6 = vadd.f32 %v1935_v36, %v1861_v34 }
 0x2dd   : > { %v2483_v60 = vadd.f32 %v2482_v3, %v2481_v46  ;;  %v2214_v53 = vpop.f32.mrf.mxu0 }
 0x2de   : > { %v2267_v27 = vadd.f32 %v2209_v5, %v2130_v8 }
 0x2df   : > { %v1807_v32 = vpop.f32.mrf.mxu1 }
 0x2e0   : > { %v2303_v31 = vadd.f32 %v4107_v41, %v2267_v27  ;;  %v1862_v4 = vadd.f32 %v1807_v32, %v4004_v13 }
 0x2e2   : > { %2335 = vst.msk [vmem:[%s4112_s28 + $0x78] sm:$0xff] %vm378_vm2, %v2303_v31  ;;  %v2381_v52 = vsel %vm378_vm2, %v2303_v31, 0.0  ;;  %v2438_v55 = vmul.f32 %v2303_v31, %v2303_v31 }
 0x2e3   : > { %v2382_v25 = vadd.f32 %v2381_v52, %v2380_v20  ;;  %v1937_v37 = vpop.f32.mrf.mxu2  ;;  %v2075_v22 = vpop.f32.mrf.mxu3 }
 0x2e4   : > { %v2484_v9 = vsel %vm378_vm2, %v2438_v55, 0.0  ;;  %v2131_v21 = vadd.f32 %v2075_v22, %v1991_v6  ;;  %v1992_v39 = vadd.f32 %v1937_v37, %v1862_v4 }
 0x2e5   : > { %v2485_v50 = vadd.f32 %v2484_v9, %v2483_v60  ;;  %v2217_v54 = vpop.f32.mrf.mxu0 }
 0x2e6   : > { %v2268_v0 = vadd.f32 %v2212_v30, %v2131_v21 }
 0x2e7   : > { %v1810_v43 = vpop.f32.mrf.mxu1 }
 0x2e8   : > { %v2304_v29 = vadd.f32 %v4107_v41, %v2268_v0  ;;  %v1863_v13 = vadd.f32 %v1810_v43, %v4013_v33 }
 0x2ea   : > { %2336 = vst.msk [vmem:[%s4112_s28 + $0x80] sm:$0xff] %vm378_vm2, %v2304_v29  ;;  %v2383_v47 = vsel %vm378_vm2, %v2304_v29, 0.0  ;;  %v2439_v5 = vmul.f32 %v2304_v29, %v2304_v29 }
 0x2eb   : > { %v2384_v15 = vadd.f32 %v2383_v47, %v2382_v25  ;;  %v1940_v11 = vpop.f32.mrf.mxu2  ;;  %v2077_v59 = vpop.f32.mrf.mxu3 }
 0x2ec   : > { %v2486_v7 = vsel %vm378_vm2, %v2439_v5, 0.0  ;;  %v2132_v42 = vadd.f32 %v2077_v59, %v1992_v39  ;;  %v1993_v16 = vadd.f32 %v1940_v11, %v1863_v13 }
 0x2ed   : > { %v2487_v18 = vadd.f32 %v2486_v7, %v2485_v50  ;;  %v2219_v45 = vpop.f32.mrf.mxu0 }
 0x2ee   : > { %v2269_v17 = vadd.f32 %v2214_v53, %v2132_v42 }
 0x2ef   : > { %v1812_v19 = vpop.f32.mrf.mxu1 }
 0x2f0   : > { %v2305_v2 = vadd.f32 %v4107_v41, %v2269_v17  ;;  %v1864_v33 = vadd.f32 %v1812_v19, %v4018_v48 }
 0x2f2   : > { %2337 = vst.msk [vmem:[%s4112_s28 + $0x88] sm:$0xff] %vm378_vm2, %v2305_v2  ;;  %v2385_v24 = vsel %vm378_vm2, %v2305_v2, 0.0  ;;  %v2440_v46 = vmul.f32 %v2305_v2, %v2305_v2 }
 0x2f3   : > { %v2386_v30 = vadd.f32 %v2385_v24, %v2384_v15  ;;  %v1942_v1 = vpop.f32.mrf.mxu2  ;;  %v2080_v61 = vpop.f32.mrf.mxu3 }
 0x2f4   : > { %v2488_v63 = vsel %vm378_vm2, %v2440_v46, 0.0  ;;  %v2133_v44 = vadd.f32 %v2080_v61, %v1993_v16  ;;  %v1994_v40 = vadd.f32 %v1942_v1, %v1864_v33 }
 0x2f5   : > { %v2489_v58 = vadd.f32 %v2488_v63, %v2487_v18  ;;  %v2222_v57 = vpop.f32.mrf.mxu0 }
 0x2f6   : > { %v2270_v35 = vadd.f32 %v2217_v54, %v2133_v44 }
 0x2f7   : > { %v1815_v20 = vpop.f32.mrf.mxu1 }
 0x2f8   : > { %v2306_v36 = vadd.f32 %v4107_v41, %v2270_v35  ;;  %v1865_v48 = vadd.f32 %v1815_v20, %v4027_v23 }
 0x2fa   : > { %2338 = vst.msk [vmem:[%s4112_s28 + $0x90] sm:$0xff] %vm378_vm2, %v2306_v36  ;;  %v2387_v3 = vsel %vm378_vm2, %v2306_v36, 0.0  ;;  %v2441_v8 = vmul.f32 %v2306_v36, %v2306_v36 }
 0x2fb   : > { %v2388_v60 = vadd.f32 %v2387_v3, %v2386_v30  ;;  %v1945_v53 = vpop.f32.mrf.mxu2  ;;  %v2082_v27 = vpop.f32.mrf.mxu3 }
 0x2fc   : > { %v2490_v32 = vsel %vm378_vm2, %v2441_v8, 0.0  ;;  %v2134_v34 = vadd.f32 %v2082_v27, %v1994_v40  ;;  %v1995_v37 = vadd.f32 %v1945_v53, %v1865_v48 }
 0x2fd   : > { %v2491_v31 = vadd.f32 %v2490_v32, %v2489_v58  ;;  %v2224_v6 = vpop.f32.mrf.mxu0 }
 0x2fe   : > { %v2271_v52 = vadd.f32 %v2219_v45, %v2134_v34 }
 0x2ff   : > { %v1817_v55 = vpop.f32.mrf.mxu1 }
 0x300   : > { %v2307_v25 = vadd.f32 %v4107_v41, %v2271_v52  ;;  %v1866_v23 = vadd.f32 %v1817_v55, %v4032_v10 }
 0x302   : > { %2339 = vst.msk [vmem:[%s4112_s28 + $0x98] sm:$0xff] %vm378_vm2, %v2307_v25  ;;  %v2389_v22 = vsel %vm378_vm2, %v2307_v25, 0.0  ;;  %v2442_v9 = vmul.f32 %v2307_v25, %v2307_v25 }
 0x303   : > { %v2390_v21 = vadd.f32 %v2389_v22, %v2388_v60  ;;  %v1947_v50 = vpop.f32.mrf.mxu2  ;;  %v2085_v54 = vpop.f32.mrf.mxu3 }
 0x304   : > { %v2492_v0 = vsel %vm378_vm2, %v2442_v9, 0.0  ;;  %v2135_v43 = vadd.f32 %v2085_v54, %v1995_v37  ;;  %v1996_v15 = vadd.f32 %v1947_v50, %v1866_v23 }
 0x305   : > { %v2493_v4 = vadd.f32 %v2492_v0, %v2491_v31  ;;  %v2227_v29 = vpop.f32.mrf.mxu0 }
 0x306   : > { %v2272_v39 = vadd.f32 %v2222_v57, %v2135_v43 }
 0x307   : > { %v1820_v47 = vpop.f32.mrf.mxu1 }
 0x308   : > { %v2308_v5 = vadd.f32 %v4107_v41, %v2272_v39  ;;  %v1867_v10 = vadd.f32 %v1820_v47, %v4041_v38 }
 0x30a   : > { %2340 = vst.msk [vmem:[%s4112_s28 + $0xa0] sm:$0xff] %vm378_vm2, %v2308_v5  ;;  %v2391_v11 = vsel %vm378_vm2, %v2308_v5, 0.0  ;;  %v2443_v59 = vmul.f32 %v2308_v5, %v2308_v5 }
 0x30b   : > { %v2392_v7 = vadd.f32 %v2391_v11, %v2390_v21  ;;  %v1950_v42 = vpop.f32.mrf.mxu2  ;;  %v2087_v18 = vpop.f32.mrf.mxu3 }
 0x30c   : > { %v2494_v45 = vsel %vm378_vm2, %v2443_v59, 0.0  ;;  %v2136_v17 = vadd.f32 %v2087_v18, %v1996_v15  ;;  %v1997_v46 = vadd.f32 %v1950_v42, %v1867_v10 }
 0x30d   : > { %v2495_v19 = vadd.f32 %v2494_v45, %v2493_v4  ;;  %v2229_v2 = vpop.f32.mrf.mxu0 }
 0x30e   : > { %v2273_v13 = vadd.f32 %v2224_v6, %v2136_v17 }
 0x30f   : > { %v1822_v16 = vpop.f32.mrf.mxu1 }
 0x310   : > { %v2309_v24 = vadd.f32 %v4107_v41, %v2273_v13  ;;  %v1868_v38 = vadd.f32 %v1822_v16, %v4046_v28 }
 0x312   : > { %2341 = vst.msk [vmem:[%s4112_s28 + $0xa8] sm:$0xff] %vm378_vm2, %v2309_v24  ;;  %v2393_v30 = vsel %vm378_vm2, %v2309_v24, 0.0  ;;  %v2444_v1 = vmul.f32 %v2309_v24, %v2309_v24 }
 0x313   : > { %v2394_v61 = vadd.f32 %v2393_v30, %v2392_v7  ;;  %v1952_v63 = vpop.f32.mrf.mxu2  ;;  %v2090_v44 = vpop.f32.mrf.mxu3 }
 0x314   : > { %v2496_v58 = vsel %vm378_vm2, %v2444_v1, 0.0  ;;  %v2137_v57 = vadd.f32 %v2090_v44, %v1997_v46  ;;  %v1998_v3 = vadd.f32 %v1952_v63, %v1868_v38 }
 0x315   : > { %v2497_v35 = vadd.f32 %v2496_v58, %v2495_v19  ;;  %v2232_v40 = vpop.f32.mrf.mxu0 }
 0x316   : > { %v2274_v20 = vadd.f32 %v2227_v29, %v2137_v57 }
 0x317   : > { %v1825_v33 = vpop.f32.mrf.mxu1 }
 0x318   : > { %v2310_v36 = vadd.f32 %v4107_v41, %v2274_v20  ;;  %v1869_v28 = vadd.f32 %v1825_v33, %v4055_v51 }
 0x31a   : > { %2342 = vst.msk [vmem:[%s4112_s28 + $0xb0] sm:$0xff] %vm378_vm2, %v2310_v36  ;;  %v2395_v8 = vsel %vm378_vm2, %v2310_v36, 0.0  ;;  %v2445_v60 = vmul.f32 %v2310_v36, %v2310_v36 }
 0x31b   : > { %v2396_v53 = vadd.f32 %v2395_v8, %v2394_v61  ;;  %v1955_v27 = vpop.f32.mrf.mxu2  ;;  %v2092_v32 = vpop.f32.mrf.mxu3 }
 0x31c   : > { %v2498_v34 = vsel %vm378_vm2, %v2445_v60, 0.0  ;;  %v2138_v31 = vadd.f32 %v2092_v32, %v1998_v3  ;;  %v1999_v25 = vadd.f32 %v1955_v27, %v1869_v28 }
 0x31d   : > { %v2499_v6 = vadd.f32 %v2498_v34, %v2497_v35  ;;  %v2234_v9 = vpop.f32.mrf.mxu0 }
 0x31e   : > { %v2275_v52 = vadd.f32 %v2229_v2, %v2138_v31 }
 0x31f   : > { %v1827_v55 = vpop.f32.mrf.mxu1 }
 0x320   : > { %v2311_v48 = vadd.f32 %v4107_v41, %v2275_v52  ;;  %v1870_v51 = vadd.f32 %v1827_v55, %v4060_v62 }
 0x322   : > { %2343 = vst.msk [vmem:[%s4112_s28 + $0xb8] sm:$0xff] %vm378_vm2, %v2311_v48  ;;  %v2397_v37 = vsel %vm378_vm2, %v2311_v48, 0.0  ;;  %v2446_v22 = vmul.f32 %v2311_v48, %v2311_v48 }
 0x323   : > { %v2398_v21 = vadd.f32 %v2397_v37, %v2396_v53  ;;  %v1957_v50 = vpop.f32.mrf.mxu2  ;;  %v2095_v54 = vpop.f32.mrf.mxu3 }
 0x324   : > { %v2500_v0 = vsel %vm378_vm2, %v2446_v22, 0.0  ;;  %v2139_v43 = vadd.f32 %v2095_v54, %v1999_v25  ;;  %v2000_v23 = vadd.f32 %v1957_v50, %v1870_v51 }
 0x325   : > { %v2501_v4 = vadd.f32 %v2500_v0, %v2499_v6  ;;  %v2237_v18 = vpop.f32.mrf.mxu0 }
 0x326   : > { %v2276_v29 = vadd.f32 %v2232_v40, %v2139_v43 }
 0x327   : > { %v1830_v39 = vpop.f32.mrf.mxu1 }
 0x328   : > { %v2312_v47 = vadd.f32 %v4107_v41, %v2276_v29  ;;  %v1871_v62 = vadd.f32 %v1830_v39, %v4069_v26  ;;  %v4497_v26 = vld [vmem:[#allocation29_spill] sm:$0xff] }
 0x32a   : > { %2344 = vst.msk [vmem:[%s4112_s28 + $0xc0] sm:$0xff] %vm378_vm2, %v2312_v47  ;;  %v2399_v5 = vsel %vm378_vm2, %v2312_v47, 0.0  ;;  %v2447_v15 = vmul.f32 %v2312_v47, %v2312_v47 }
 0x32b   : > { %v2400_v11 = vadd.f32 %v2399_v5, %v2398_v21  ;;  %v1960_v59 = vpop.f32.mrf.mxu2  ;;  %v2097_v7 = vpop.f32.mrf.mxu3 }
 0x32c   : > { %v2502_v42 = vsel %vm378_vm2, %v2447_v15, 0.0  ;;  %v2140_v45 = vadd.f32 %v2097_v7, %v2000_v23  ;;  %v2001_v16 = vadd.f32 %v1960_v59, %v1871_v62 }
 0x32d   : > { %v2503_v17 = vadd.f32 %v2502_v42, %v2501_v4  ;;  %v2239_v58 = vpop.f32.mrf.mxu0 }
 0x32e   : > { %v2277_v19 = vadd.f32 %v2234_v9, %v2140_v45 }
 0x32f   : > { %v1832_v13 = vpop.f32.mrf.mxu1 }
 0x330   : > { %v2313_v2 = vadd.f32 %v4107_v41, %v2277_v19  ;;  %v1872_v20 = vadd.f32 %v1832_v13, %v4497_v26 }
 0x332   : > { %2345 = vst.msk [vmem:[%s4112_s28 + $0xc8] sm:$0xff] %vm378_vm2, %v2313_v2  ;;  %v2401_v10 = vsel %vm378_vm2, %v2313_v2, 0.0  ;;  %v2448_v24 = vmul.f32 %v2313_v2, %v2313_v2 }
 0x333   : > { %v2402_v46 = vadd.f32 %v2401_v10, %v2400_v11  ;;  %v1962_v30 = vpop.f32.mrf.mxu2  ;;  %v2100_v1 = vpop.f32.mrf.mxu3 }
 0x334   : > { %v2504_v61 = vsel %vm378_vm2, %v2448_v24, 0.0  ;;  %v2141_v63 = vadd.f32 %v2100_v1, %v2001_v16  ;;  %v2002_v38 = vadd.f32 %v1962_v30, %v1872_v20 }
 0x335   : > { %v2505_v44 = vadd.f32 %v2504_v61, %v2503_v17  ;;  %v2242_v6 = vpop.f32.mrf.mxu0 }
 0x336   : > { %v2278_v57 = vadd.f32 %v2237_v18, %v2141_v63 }
 0x337   : > { %v1835_v35 = vpop.f32.mrf.mxu1 }
 0x338   : > { %v2314_v33 = vadd.f32 %v4107_v41, %v2278_v57  ;;  %v1873_v31 = vadd.f32 %v1835_v35, %v4083_v14 }
 0x33a   : > { %2346 = vst.msk [vmem:[%s4112_s28 + $0xd0] sm:$0xff] %vm378_vm2, %v2314_v33  ;;  %v2403_v36 = vsel %vm378_vm2, %v2314_v33, 0.0  ;;  %v2449_v40 = vmul.f32 %v2314_v33, %v2314_v33 }
 0x33b   : > { %v2404_v3 = vadd.f32 %v2403_v36, %v2402_v46  ;;  %v1965_v8 = vpop.f32.mrf.mxu2  ;;  %v2102_v60 = vpop.f32.mrf.mxu3 }
 0x33c   : > { %v2506_v53 = vsel %vm378_vm2, %v2449_v40, 0.0  ;;  %v2142_v27 = vadd.f32 %v2102_v60, %v2002_v38  ;;  %v2003_v28 = vadd.f32 %v1965_v8, %v1873_v31 }
 0x33d   : > { %v2507_v32 = vadd.f32 %v2506_v53, %v2505_v44  ;;  %v2244_v4 = vpop.f32.mrf.mxu0 }
 0x33e   : > { %v2279_v34 = vadd.f32 %v2239_v58, %v2142_v27 }
 0x33f   : > { %v1837_v55 = vpop.f32.mrf.mxu1 }
 0x340   : > { %v2315_v52 = vadd.f32 %v4107_v41, %v2279_v34  ;;  %v1874_v14 = vadd.f32 %v1837_v55, %v4088_v56 }
 0x342   : > { %2347 = vst.msk [vmem:[%s4112_s28 + $0xd8] sm:$0xff] %vm378_vm2, %v2315_v52  ;;  %v2405_v48 = vsel %vm378_vm2, %v2315_v52, 0.0  ;;  %v2450_v25 = vmul.f32 %v2315_v52, %v2315_v52 }
 0x343   : > { %v2406_v37 = vadd.f32 %v2405_v48, %v2404_v3  ;;  %v1967_v22 = vpop.f32.mrf.mxu2  ;;  %v2105_v9 = vpop.f32.mrf.mxu3 }
 0x344   : > { %v2508_v21 = vsel %vm378_vm2, %v2450_v25, 0.0  ;;  %v2143_v50 = vadd.f32 %v2105_v9, %v2003_v28  ;;  %v2004_v29 = vadd.f32 %v1967_v22, %v1874_v14 }
 0x345   : > { %v2509_v54 = vadd.f32 %v2508_v21, %v2507_v32  ;;  %v2247_v62 = vpop.f32.mrf.mxu0 }
 0x346   : > { %v2280_v0 = vadd.f32 %v2242_v6, %v2143_v50 }
 0x347   : > { %v1840_v23 = vpop.f32.mrf.mxu1 }
 0x348   : > { %v2316_v43 = vadd.f32 %v4107_v41, %v2280_v0  ;;  %v1875_v56 = vadd.f32 %v1840_v23, %v4096_v12 }
 0x34a   : > { %2348 = vst.msk [vmem:[%s4112_s28 + $0xe0] sm:$0xff] %vm378_vm2, %v2316_v43  ;;  %v2407_v39 = vsel %vm378_vm2, %v2316_v43, 0.0  ;;  %v2451_v51 = vmul.f32 %v2316_v43, %v2316_v43 }
 0x34b   : > { %v2408_v47 = vadd.f32 %v2407_v39, %v2406_v37  ;;  %v2107_v5 = vpop.f32.mrf.mxu3  ;;  %v1970_v7 = vpop.f32.mrf.mxu2 }
 0x34c   : > { %v2510_v15 = vsel %vm378_vm2, %v2451_v51, 0.0  ;;  %v2144_v11 = vadd.f32 %v2107_v5, %v2004_v29  ;;  %v2005_v45 = vadd.f32 %v1970_v7, %v1875_v56 }
 0x34d   : > { %v2511_v59 = vadd.f32 %v2510_v15, %v2509_v54  ;;  %v2249_v38 = vpop.f32.mrf.mxu0 }
 0x34e   : > { %v2281_v42 = vadd.f32 %v2244_v4, %v2144_v11 }
 0x34f   : > { %v1842_v46 = vpop.f32.mrf.mxu1 }
 0x350   : > { %v2317_v18 = vadd.f32 %v4107_v41, %v2281_v42  ;;  %v1876_v1 = vadd.f32 %v1842_v46, %v4101_v49 }
 0x352   : > { %2349 = vst.msk [vmem:[%s4112_s28 + $0xe8] sm:$0xff] %vm378_vm2, %v2317_v18  ;;  %v2409_v17 = vsel %vm378_vm2, %v2317_v18, 0.0  ;;  %v2452_v19 = vmul.f32 %v2317_v18, %v2317_v18 }
 0x353   : > { %v2410_v13 = vadd.f32 %v2409_v17, %v2408_v47  ;;  %v2110_v2 = vpop.f32.mrf.mxu3  ;;  %v1972_v12 = vpop.f32.mrf.mxu2 }
 0x354   : > { %v2512_v16 = vsel %vm378_vm2, %v2452_v19, 0.0  ;;  %v2145_v10 = vadd.f32 %v2110_v2, %v2005_v45  ;;  %v2006_v63 = vadd.f32 %v1972_v12, %v1876_v1 }
 0x355   : > { %v2513_v24 = vadd.f32 %v2512_v16, %v2511_v59 }
 0x356   : > { %v2282_v30 = vadd.f32 %v2247_v62, %v2145_v10 }
 0x358   : > { %v2318_v61 = vadd.f32 %v4107_v41, %v2282_v30 }
 0x35a   : > { %2350 = vst.msk [vmem:[%s4112_s28 + $0xf0] sm:$0xff] %vm378_vm2, %v2318_v61  ;;  %v2411_v44 = vsel %vm378_vm2, %v2318_v61, 0.0  ;;  %v2453_v58 = vmul.f32 %v2318_v61, %v2318_v61 }
 0x35b   : > { %v2412_v57 = vadd.f32 %v2411_v44, %v2410_v13  ;;  %v2112_v35 = vpop.f32.mrf.mxu3 }
 0x35c   : > { %v2514_v26 = vsel %vm378_vm2, %v2453_v58, 0.0  ;;  %v2146_v20 = vadd.f32 %v2112_v35, %v2006_v63 }
 0x35d   : > { %v2515_v33 = vadd.f32 %v2514_v26, %v2513_v24 }
 0x35e   : > { %v2283_v36 = vadd.f32 %v2249_v38, %v2146_v20 }
 0x360   : > { %v2319_v40 = vadd.f32 %v4107_v41, %v2283_v36 }
 0x362   : > { %2351 = vst.msk [vmem:[%s4112_s28 + $0xf8] sm:$0xff] %vm378_vm2, %v2319_v40  ;;  %v2413_v49 = vsel %vm378_vm2, %v2319_v40, 0.0  ;;  %v2454_v3 = vmul.f32 %v2319_v40, %v2319_v40 }
 0x363   : > { %v2414_v8 = vadd.f32 %v2413_v49, %v2412_v57 }
 0x364   : > { %v2516_v60 = vsel %vm378_vm2, %v2454_v3, 0.0 }
 0x365   : > { %v2415_v53 = vrot.slane %v2414_v8, 4  ;;  %v2517_v27 = vadd.f32 %v2516_v60, %v2515_v33 }
 0x367   : > { %v2416_v32 = vadd.f32 %v2415_v53, %v2414_v8  ;;  %v2518_v34 = vrot.slane %v2517_v27, 4 }
 0x369   : > { %v2417_v31 = vrot.slane %v2416_v32, 2  ;;  %v2519_v6 = vadd.f32 %v2518_v34, %v2517_v27 }
 0x36b   : > { %v2418_v52 = vadd.f32 %v2417_v31, %v2416_v32  ;;  %v2520_v55 = vrot.slane %v2519_v6, 2 }
 0x36d   : > { %v2419_v28 = vrot.slane %v2418_v52, 1  ;;  %v2521_v48 = vadd.f32 %v2520_v55, %v2519_v6 }
 0x36f   : > { %v2420_v41 = vadd.f32 %v2419_v28, %v2418_v52  ;;  %v2522_v25 = vrot.slane %v2521_v48, 1 }
 0x371   : > { %2422 = vst.msk [vmem:[%s255_s7] sm:$0x1] %vm2421_vm7, %v2420_v41  ;;  %v2523_v37 = vadd.f32 %v2522_v25, %v2521_v48 }
 0x373   : > { %2524 = vst.msk [vmem:[%s255_s7 + $0x1] sm:$0x1] %vm2421_vm7, %v2523_v37 }
 0x374 PF: > { %s16_s18 = sadd.s32 1, %s3050_s18  }
 0x375   : > { %p13_p4 = scmp.ge.s32.totalorder %s16_s18, 4  }
 0x377   :  { %15 = sbr.rel (!%p13_p4) target bundleno = 1 (0x1), region = 90 }

// kernel: up_forward.6
= control target key start
LH: loop header
LB: loop body
LE: loop exit
PB: predicated region body
PF: predicated region fallthrough
CT: control target
= control target key end

     0   :  { %s2752_s24 = smov 0   ;;  %s4136_s0 = inlined_call_operand.vmem [shape: f32[2,2,4], index: 0, kind: input, shape index: {}]   ;;  %s4137_s1 = inlined_call_operand.vmem [shape: f32[2,16,16,4], index: 1, kind: input, shape index: {}]   ;;  %s4138_s2 = inlined_call_operand.vmem [shape: f32[1,4], index: 2, kind: input, shape index: {}]   ;;  %s4139_s3 = inlined_call_operand.vmem [shape: f32[1,4], index: 3, kind: input, shape index: {}]   ;;  %s4140_s4 = inlined_call_operand.vmem [shape: bf16[3,3,4,4], index: 4, kind: input, shape index: {}]   ;;  %s4141_s5 = inlined_call_operand.vmem [shape: f32[1,4], index: 5, kind: input, shape index: {}]   ;;  %s4142_s6 = inlined_call_operand.vmem [shape: f32[2,16,16,4], index: 6, kind: output, shape index: {0}]   ;;  %s4143_s7 = inlined_call_operand.vmem [shape: f32[2,2,4], index: 7, kind: output, shape index: {1}]  }
   0x1 LB: > { %s2521_s25 = sadd.s32 4294967295, %s2709_s24   ;;  %p2525_p0 = scmp.ge.s32.totalorder %s2709_s24, 1  ;;  %s2709_s24 = sphi %s2752_s24, %s18_s24  }
   0x2   : > { %p240_p1 = scmp.lt.s32.totalorder %s2709_s24, 3 }
   0x4   : > { %p241_p2 = pnand %p2525_p0, %p240_p1 }
   0x6   : > { %244 = sbr.rel (%p241_p2) target bundleno = 812 (0x32c), region = 44 }
   0xb   : > { %v2531_v0 = vld [vmem:[%s4140_s4 + $0x2] sm:$0x3]  ;;  %vm844_vm0 = vcmask 1041408   ;;  %v291_v1 = vld [vmem:[%s4136_s0] sm:$0x3]  ;;  %vm295_vm1 = vcmask 25600  }
   0xc   : > { %v846_v2 = vsel %vm844_vm0, %v2531_v0, 0  ;;  %v292_v3 = vld [vmem:[%s4136_s0 + $0x2] sm:$0x3]  ;;  %v296_v4 = vsel %vm295_vm1, %v291_v1, 0.0  ;;  %vm458_vm2 = vcmask 31744   ;;  %v2711_v12 = vmov 0.0  }
   0xd   : > { %2687 = vmatpush.bf16.msra.mxu1 %v846_v2  ;;  %2688 = vmatpush.bf16.msra.mxu2 %v846_v2  ;;  %v297_v5 = vsel %vm295_vm1, %v292_v3, 0.0  ;;  %471 = vst.msk [vmem:[#allocation2 + $0x60] sm:$0xff] %vm458_vm2, %v2711_v12  ;;  %p276_p3 = scmp.lt.s32.totalorder %s2521_s25, 1  ;;  %v293_v20 = vld [vmem:[%s4138_s2] sm:$0x1]  ;;  %vm665_vm6 = vcmask 1046528  }
   0xe   : > { %2689 = vmatpush.bf16.msra.mxu3 %v846_v2  ;;  %855 = vmatpush.bf16.msra.mxu0 %v846_v2  ;;  %v298_v6 = vadd.f32 %v297_v5, %v296_v4  ;;  %472 = vst.msk [vmem:[#allocation2 + $0x68] sm:$0xff] %vm458_vm2, %v2711_v12  ;;  %v294_v23 = vld [vmem:[%s4139_s3] sm:$0x1]  ;;  %v2564_v54 = vld [vmem:[%s4140_s4 + $0x4] sm:$0x3]  ;;  %vm1077_vm7 = vcmask 1045504  }
   0xf   : > { %473 = vst.msk [vmem:[#allocation2 + $0x70] sm:$0x3] %vm295_vm1, %v2711_v12  ;;  %s4298_s25 = smov (!%p276_p3, %s2521_s25), 1  ;;  %v1257_v55 = vsel %vm844_vm0, %v2564_v54, 0  ;;  %v2581_v56 = vld [vmem:[%s4140_s4 + $0x6] sm:$0x3] }
  0x10   : > { %v299_v7 = vmul.f32 0.001953125, %v298_v6  ;;  %459 = vst.msk [vmem:[#allocation2] sm:$0xff] %vm458_vm2, %v2711_v12  ;;  %s2685_s9 = sshll.u32 %s4298_s25, 8  ;;  %v616_v57 = vld [vmem:[%s4140_s4] sm:$0x3]  ;;  %v1387_v60 = vsel %vm844_vm0, %v2581_v56, 0 }
  0x11   : > { %460 = vst.msk [vmem:[#allocation2 + $0x8] sm:$0xff] %vm458_vm2, %v2711_v12  ;;  %s2823_s14 = scalar_lea.vmem %s4137_s1, %s2685_s9  ;;  %1266 = vmatpush.bf16.msrb.mxu2 %v1257_v55  ;;  %v986_v61 = vsel %vm844_vm0, %v616_v57, 0  ;;  %v2598_v62 = vld [vmem:[%s4140_s4 + $0x8] sm:$0x3]  ;;  %s3872_s17 = scalar_lea.vmem %s4142_s6, %s2685_s9  ;;  %vm2331_vm8 = vcmask 24576  }
  0x12   : > { %v300_v8 = vmul.f32 %v299_v7, %v299_v7  ;;  %461 = vst.msk [vmem:[#allocation2 + $0x10] sm:$0x3] %vm295_vm1, %v2711_v12  ;;  %v330_v24 = vld [vmem:[%s2823_s14 + $0x30] sm:$0xff]  ;;  %v331_v25 = vld [vmem:[%s2823_s14 + $0x38] sm:$0xff]  ;;  %1396 = vmatpush.bf16.msrb.mxu3 %v1387_v60  ;;  %995 = vmatpush.bf16.msrb.mxu1 %v986_v61  ;;  %v1527_v2 = vsel %vm844_vm0, %v2598_v62, 0  ;;  %v332_v4 = vld [vmem:[%s2823_s14 + $0x40] sm:$0xff] }
  0x13   : > { %462 = vst.msk [vmem:[#allocation2 + $0x18] sm:$0xff] %vm458_vm2, %v2711_v12  ;;  %v338_v43 = vld [vmem:[%s2823_s14 + $0x70] sm:$0xff]  ;;  %v339_v49 = vld [vmem:[%s2823_s14 + $0x78] sm:$0xff]  ;;  %1536 = vmatpush.bf16.msrb.mxu0 %v1527_v2  ;;  %v333_v6 = vld [vmem:[%s2823_s14 + $0x48] sm:$0xff]  ;;  %s2530_s19 = sshll.u32 %s4298_s25, 1 }
  0x14   : > { %v302_v9 = vrot.slane %v300_v8, 7  ;;  %463 = vst.msk [vmem:[#allocation2 + $0x20] sm:$0xff] %vm458_vm2, %v2711_v12  ;;  %v346_v53 = vld [vmem:[%s2823_s14 + $0xb0] sm:$0xff]  ;;  %v347_v1 = vld [vmem:[%s2823_s14 + $0xb8] sm:$0xff]  ;;  %v340_v8 = vld [vmem:[%s2823_s14 + $0x80] sm:$0xff]  ;;  %s289_s22 = scalar_lea.vmem %s4143_s7, %s2530_s19 }
  0x15   : > { %464 = vst.msk [vmem:[#allocation2 + $0x28] sm:$0x3] %vm295_vm1, %v2711_v12  ;;  %v351_v55 = vld [vmem:[%s2823_s14 + $0xd8] sm:$0xff]  ;;  %v326_v62 = vld [vmem:[%s2823_s14 + $0x10] sm:$0xff] }
  0x16   : > { %v304_v10 = vsub.f32 %v299_v7, %v302_v9  ;;  %465 = vst.msk [vmem:[#allocation2 + $0x30] sm:$0xff] %vm458_vm2, %v2711_v12 }
  0x17   : > { %466 = vst.msk [vmem:[#allocation2 + $0x38] sm:$0xff] %vm458_vm2, %v2711_v12  ;;  %v2874_v36 = vld [vmem:[#allocation2] sm:$0xff] }
  0x18   : > { %v305_v11 = vadd.f32 1e-05, %v304_v10  ;;  %467 = vst.msk [vmem:[#allocation2 + $0x40] sm:$0x3] %vm295_vm1, %v2711_v12  ;;  %v2876_v37 = vld [vmem:[#allocation2 + $0x8] sm:$0xff]  ;;  %v666_v39 = vrot.slane %v2874_v36, 1 }
  0x19   : > { %468 = vst.msk [vmem:[#allocation2 + $0x48] sm:$0xff] %vm458_vm2, %v2711_v12  ;;  %v2878_v38 = vld [vmem:[#allocation2 + $0x10] sm:$0x3]  ;;  %v667_v40 = vrot.slane %v2876_v37, 1 }
  0x1a   : > { %2700 = vrsqrt.f32 %v305_v11  ;;  %vm312_vm3 = vweird.f32 %v305_v11  ;;  %469 = vst.msk [vmem:[#allocation2 + $0x50] sm:$0xff] %vm458_vm2, %v2711_v12  ;;  %v669_v41 = vrot.slane %v2878_v38, 1 }
  0x1b   : > { %470 = vst.msk [vmem:[#allocation2 + $0x58] sm:$0x3] %vm295_vm1, %v2711_v12  ;;  %v668_v44 = vsel %vm665_vm6, %v666_v39, %v667_v40  ;;  %v342_v39 = vld [vmem:[%s2823_s14 + $0x90] sm:$0xff] }
  0x1c   : > { %474 = vst.msk [vmem:[#allocation2 + $0x78] sm:$0xff] %vm458_vm2, %v2711_v12  ;;  %v670_v45 = vsel %vm665_vm6, %v667_v40, %v669_v41  ;;  %v343_v40 = vld [vmem:[%s2823_s14 + $0x98] sm:$0xff] }
  0x1d   : > { %475 = vst.msk [vmem:[#allocation2 + $0x80] sm:$0xff] %vm458_vm2, %v2711_v12  ;;  %v778_v50 = vpack.c.bf16 %v670_v45, %v668_v44 }
  0x1e   : > { %476 = vst.msk [vmem:[#allocation2 + $0x88] sm:$0x3] %vm295_vm1, %v2711_v12 }
  0x1f   : > { %477 = vst.msk [vmem:[#allocation2 + $0x90] sm:$0xff] %vm458_vm2, %v2711_v12  ;;  %2532 = vmatmul.msk.bf16.vlgmr.msra.gmra.mxu0 %vm458_vm2, %v778_v50 }
  0x20   : > { %v2701_v13 = vpop.eup %2700  ;;  %478 = vst.msk [vmem:[#allocation2 + $0x98] sm:$0xff] %vm458_vm2, %v2711_v12 }
  0x21   : > { %v307_v14 = vmul.f32 %v2701_v13, %v305_v11  ;;  %vm313_vm4 = vweird.f32 %v2701_v13  ;;  %479 = vst.msk [vmem:[#allocation2 + $0xa0] sm:$0x3] %vm295_vm1, %v2711_v12  ;;  %v341_v11 = vld [vmem:[%s2823_s14 + $0x88] sm:$0xff] }
  0x22   : > { %vm314_vm5 = vmor %vm312_vm3, %vm313_vm4  ;;  %480 = vst.msk [vmem:[#allocation2 + $0xa8] sm:$0xff] %vm458_vm2, %v2711_v12 }
  0x23   : > { %v308_v15 = vmul.f32 %v2701_v13, %v307_v14  ;;  %481 = vst.msk [vmem:[#allocation2 + $0xb0] sm:$0xff] %vm458_vm2, %v2711_v12 }
  0x24   : > { %482 = vst.msk [vmem:[#allocation2 + $0xb8] sm:$0x3] %vm295_vm1, %v2711_v12 }
  0x25   : > { %v309_v16 = vmul.f32 0.5, %v308_v15  ;;  %483 = vst.msk [vmem:[#allocation2 + $0xc0] sm:$0xff] %vm458_vm2, %v2711_v12  ;;  %v348_v15 = vld [vmem:[%s2823_s14 + $0xc0] sm:$0xff] }
  0x26   : > { %484 = vst.msk [vmem:[#allocation2 + $0xc8] sm:$0xff] %vm458_vm2, %v2711_v12 }
  0x27   : > { %v310_v17 = vsub.f32 1.5, %v309_v16  ;;  %485 = vst.msk [vmem:[#allocation2 + $0xd0] sm:$0x3] %vm295_vm1, %v2711_v12 }
  0x28   : > { %486 = vst.msk [vmem:[#allocation2 + $0xd8] sm:$0xff] %vm458_vm2, %v2711_v12 }
  0x29   : > { %v311_v18 = vmul.f32 %v2701_v13, %v310_v17  ;;  %487 = vst.msk [vmem:[#allocation2 + $0xe0] sm:$0xff] %vm458_vm2, %v2711_v12 }
  0x2a   : > { %488 = vst.msk [vmem:[#allocation2 + $0xe8] sm:$0x3] %vm295_vm1, %v2711_v12 }
  0x2b   : > { %v315_v19 = vsel %vm314_vm5, %v2701_v13, %v311_v18  ;;  %489 = vst.msk [vmem:[#allocation2 + $0xf0] sm:$0xff] %vm458_vm2, %v2711_v12  ;;  %v349_v18 = vld [vmem:[%s2823_s14 + $0xc8] sm:$0xff] }
  0x2c   : > { %317 = vst [vmem:[#allocation1] sm:$0xff] %v315_v19 }
  0x2d   : > { %490 = vst.msk [vmem:[#allocation2 + $0xf8] sm:$0xff] %vm458_vm2, %v2711_v12 }
  0x2e   : > { %491 = vst.msk [vmem:[#allocation2 + $0x100] sm:$0x3] %vm295_vm1, %v2711_v12 }
  0x2f   : > { %492 = vst.msk [vmem:[#allocation2 + $0x108] sm:$0xff] %vm458_vm2, %v2711_v12 }
  0x30   : > { %493 = vst.msk [vmem:[#allocation2 + $0x110] sm:$0xff] %vm458_vm2, %v2711_v12 }
  0x31   : > { %494 = vst.msk [vmem:[#allocation2 + $0x118] sm:$0x3] %vm295_vm1, %v2711_v12 }
  0x32   : > { %495 = vst.msk [vmem:[#allocation2 + $0x120] sm:$0xff] %vm458_vm2, %v2711_v12 }
  0x33   : > { %v319_v21 = vld [vmem:[#allocation1 + $0x1] ss:$9 sm:$0xff]  ;;  %496 = vst.msk [vmem:[#allocation2 + $0x128] sm:$0xff] %vm458_vm2, %v2711_v12 }
  0x34   : > { %v321_v22 = vmul.f32 %v319_v21, %v293_v20  ;;  %497 = vst.msk [vmem:[#allocation2 + $0x130] sm:$0x3] %vm295_vm1, %v2711_v12  ;;  %v324_v21 = vld [vmem:[%s2823_s14] sm:$0xff] }
  0x35   : > { %498 = vst.msk [vmem:[#allocation2 + $0x138] sm:$0xff] %vm458_vm2, %v2711_v12 }
  0x36   : > { %v322_v26 = vmul.f32 %v321_v22, %v299_v7  ;;  %v2838_v27 = vperm.slane %v321_v22, 0  ;;  %499 = vst.msk [vmem:[#allocation2 + $0x140] sm:$0xff] %vm458_vm2, %v2711_v12 }
  0x37   : > { %500 = vst.msk [vmem:[#allocation2 + $0x148] sm:$0x3] %vm295_vm1, %v2711_v12 }
  0x38   : > { %4194 = vst [vmem:[#allocation3_spill] sm:$0xff] %v2838_v27  ;;  %v323_v28 = vsub.f32 %v294_v23, %v322_v26  ;;  %v365_v29 = vmul.f32 %v2838_v27, %v330_v24  ;;  %v366_v30 = vmul.f32 %v2838_v27, %v331_v25  ;;  %v373_v0 = vmul.f32 %v2838_v27, %v338_v43  ;;  %v325_v25 = vld [vmem:[%s2823_s14 + $0x8] sm:$0xff]  ;;  %v334_v26 = vld [vmem:[%s2823_s14 + $0x50] sm:$0xff] }
  0x39   : > { %501 = vst.msk [vmem:[#allocation2 + $0x150] sm:$0xff] %vm458_vm2, %v2711_v12  ;;  %v374_v3 = vmul.f32 %v2838_v27, %v339_v49  ;;  %v381_v5 = vmul.f32 %v2838_v27, %v346_v53  ;;  %v382_v7 = vmul.f32 %v2838_v27, %v347_v1  ;;  %v367_v10 = vmul.f32 %v2838_v27, %v332_v4 }
  0x3a   : > { %v2850_v31 = vperm.slane %v323_v28, 0  ;;  %502 = vst.msk [vmem:[#allocation2 + $0x158] sm:$0xff] %vm458_vm2, %v2711_v12  ;;  %v368_v14 = vmul.f32 %v2838_v27, %v333_v6  ;;  %v375_v17 = vmul.f32 %v2838_v27, %v340_v8  ;;  %v376_v20 = vmul.f32 %v2838_v27, %v341_v11 }
  0x3b   : > { %503 = vst.msk [vmem:[#allocation2 + $0x160] sm:$0x3] %vm295_vm1, %v2711_v12  ;;  %v383_v24 = vmul.f32 %v2838_v27, %v348_v15  ;;  %v360_v44 = vmul.f32 %v2838_v27, %v325_v25  ;;  %v369_v45 = vmul.f32 %v2838_v27, %v334_v26  ;;  %v377_v53 = vmul.f32 %v2838_v27, %v342_v39 }
  0x3c   : > { %4195 = vst [vmem:[#allocation4_spill] sm:$0xff] %v2850_v31  ;;  %v400_v32 = vadd.f32 %v2850_v31, %v365_v29  ;;  %v401_v33 = vadd.f32 %v2850_v31, %v366_v30  ;;  %v408_v9 = vadd.f32 %v2850_v31, %v373_v0  ;;  %v409_v13 = vadd.f32 %v2850_v31, %v374_v3  ;;  %v327_v0 = vld [vmem:[%s2823_s14 + $0x18] sm:$0xff] }
  0x3d   : > { %504 = vst.msk [vmem:[#allocation2 + $0x168] sm:$0xff] %vm458_vm2, %v2711_v12  ;;  %v416_v16 = vadd.f32 %v2850_v31, %v381_v5  ;;  %v417_v19 = vadd.f32 %v2850_v31, %v382_v7  ;;  %v402_v23 = vadd.f32 %v2850_v31, %v367_v10  ;;  %v403_v29 = vadd.f32 %v2850_v31, %v368_v14 }
  0x3e   : > { %v432_v34 = vmax.f32 %v400_v32, 0.0  ;;  %v433_v35 = vmax.f32 %v401_v33, 0.0  ;;  %505 = vst.msk [vmem:[#allocation2 + $0x170] sm:$0xff] %vm458_vm2, %v2711_v12  ;;  %v440_v22 = vmax.f32 %v408_v9, 0.0  ;;  %v441_v28 = vmax.f32 %v409_v13, 0.0  ;;  %v335_v32 = vld [vmem:[%s2823_s14 + $0x58] sm:$0xff] }
  0x3f   : > { %506 = vst.msk [vmem:[#allocation2 + $0x178] sm:$0x3] %vm295_vm1, %v2711_v12  ;;  %v384_v30 = vmul.f32 %v2838_v27, %v349_v18  ;;  %v448_v33 = vmax.f32 %v416_v16, 0.0  ;;  %v449_v41 = vmax.f32 %v417_v19, 0.0  ;;  %v411_v43 = vadd.f32 %v2850_v31, %v376_v20 }
  0x40   : > { %520 = vst.msk [vmem:[#allocation2 + $0x61] sm:$0xff] %vm458_vm2, %v432_v34  ;;  %v410_v34 = vadd.f32 %v2850_v31, %v375_v17  ;;  %v434_v49 = vmax.f32 %v402_v23, 0.0  ;;  %v418_v50 = vadd.f32 %v2850_v31, %v383_v24  ;;  %v378_v54 = vmul.f32 %v2838_v27, %v343_v40 }
  0x41   : > { %521 = vst.msk [vmem:[#allocation2 + $0x69] sm:$0xff] %vm458_vm2, %v433_v35  ;;  %v359_v35 = vmul.f32 %v2838_v27, %v324_v21  ;;  %v395_v60 = vadd.f32 %v2850_v31, %v360_v44  ;;  %v404_v61 = vadd.f32 %v2850_v31, %v369_v45  ;;  %v386_v3 = vmul.f32 %v2838_v27, %v351_v55 }
  0x42   : > { %507 = vst.msk [vmem:[#allocation2 + $0x180] sm:$0xff] %vm458_vm2, %v2711_v12  ;;  %v442_v56 = vmax.f32 %v410_v34, 0.0  ;;  %v450_v1 = vmax.f32 %v418_v50, 0.0  ;;  %v412_v5 = vadd.f32 %v2850_v31, %v377_v53  ;;  %v413_v6 = vadd.f32 %v2850_v31, %v378_v54  ;;  %v337_v53 = vld [vmem:[%s2823_s14 + $0x68] sm:$0xff] }
  0x43   : > { %508 = vst.msk [vmem:[#allocation2 + $0x188] sm:$0xff] %vm458_vm2, %v2711_v12  ;;  %v394_v57 = vadd.f32 %v2850_v31, %v359_v35  ;;  %v361_v9 = vmul.f32 %v2838_v27, %v326_v62  ;;  %v362_v10 = vmul.f32 %v2838_v27, %v327_v0  ;;  %v427_v13 = vmax.f32 %v395_v60, 0.0 }
  0x44   : > { %509 = vst.msk [vmem:[#allocation2 + $0x190] sm:$0x3] %vm295_vm1, %v2711_v12  ;;  %v436_v14 = vmax.f32 %v404_v61, 0.0  ;;  %v421_v19 = vadd.f32 %v2850_v31, %v386_v3  ;;  %v444_v23 = vmax.f32 %v412_v5, 0.0  ;;  %v445_v24 = vmax.f32 %v413_v6, 0.0 }
  0x45   : > { %510 = vst.msk [vmem:[#allocation2 + $0x198] sm:$0xff] %vm458_vm2, %v2711_v12  ;;  %v426_v7 = vmax.f32 %v394_v57, 0.0  ;;  %v372_v60 = vmul.f32 %v2838_v27, %v337_v53 }
  0x46   : > { %511 = vst.msk [vmem:[#allocation2 + $0x1a0] sm:$0xff] %vm458_vm2, %v2711_v12 }
  0x47   : > { %v2887_v42 = vld [vmem:[#allocation2 + $0x60] sm:$0xff]  ;;  %512 = vst.msk [vmem:[#allocation2 + $0x1a8] sm:$0x3] %vm295_vm1, %v2711_v12  ;;  %v435_v12 = vmax.f32 %v403_v29, 0.0 }
  0x48   : > { %v2894_v46 = vld [vmem:[#allocation2 + $0x68] sm:$0xff]  ;;  %v2896_v47 = vld [vmem:[#allocation2 + $0x70] sm:$0x3]  ;;  %v686_v48 = vrot.slane %v2887_v42, 1  ;;  %528 = vst.msk [vmem:[#allocation2 + $0xc1] sm:$0xff] %vm458_vm2, %v440_v22 }
  0x49   : > { %v687_v51 = vrot.slane %v2894_v46, 1  ;;  %v689_v52 = vrot.slane %v2896_v47, 1  ;;  %529 = vst.msk [vmem:[#allocation2 + $0xc9] sm:$0xff] %vm458_vm2, %v441_v28 }
  0x4a   : > { %536 = vst.msk [vmem:[#allocation2 + $0x121] sm:$0xff] %vm458_vm2, %v448_v33 }
  0x4b   : > { %v688_v58 = vsel %vm665_vm6, %v686_v48, %v687_v51  ;;  %v690_v59 = vsel %vm665_vm6, %v687_v51, %v689_v52  ;;  %v350_v48 = vld [vmem:[%s2823_s14 + $0xd0] sm:$0xff]  ;;  %v370_v51 = vmul.f32 %v2838_v27, %v335_v32  ;;  %v419_v52 = vadd.f32 %v2850_v31, %v384_v30  ;;  %537 = vst.msk [vmem:[#allocation2 + $0x129] sm:$0xff] %vm458_vm2, %v449_v41 }
  0x4c   : > { %v2929_v63 = vpack.c.bf16 %v690_v59, %v688_v58  ;;  %v385_v58 = vmul.f32 %v2838_v27, %v350_v48  ;;  %v443_v59 = vmax.f32 %v411_v43, 0.0  ;;  %522 = vst.msk [vmem:[#allocation2 + $0x79] sm:$0xff] %vm458_vm2, %v434_v49  ;;  %v396_v30 = vadd.f32 %v2850_v31, %v361_v9 }
  0x4d   : > { %v405_v2 = vadd.f32 %v2850_v31, %v370_v51  ;;  %523 = vst.msk [vmem:[#allocation2 + $0x81] sm:$0xff] %vm458_vm2, %v435_v12  ;;  %v451_v4 = vmax.f32 %v419_v52, 0.0  ;;  %v397_v32 = vadd.f32 %v2850_v31, %v362_v10  ;;  %v453_v48 = vmax.f32 %v421_v19, 0.0  ;;  %v336_v52 = vld [vmem:[%s2823_s14 + $0x60] sm:$0xff] }
  0x4e   : > { %2536 = vmatmul.msk.bf16.vlgmr.msra.gmra.mxu1 %vm458_vm2, %v2929_v63  ;;  %530 = vst.msk [vmem:[#allocation2 + $0xd9] sm:$0xff] %vm458_vm2, %v442_v56  ;;  %v3017_v8 = vadd.f32 %v2850_v31, %v385_v58  ;;  %v428_v58 = vmax.f32 %v396_v30, 0.0  ;;  %v344_v10 = vld [vmem:[%s2823_s14 + $0xa0] sm:$0xff]  ;;  %v407_v19 = vadd.f32 %v2850_v31, %v372_v60 }
  0x4f   : > { %v3021_v11 = vld [vmem:[#allocation2 + $0xc0] sm:$0xff]  ;;  %531 = vst.msk [vmem:[#allocation2 + $0xe1] sm:$0xff] %vm458_vm2, %v443_v59  ;;  %v437_v18 = vmax.f32 %v405_v2, 0.0  ;;  %v371_v59 = vmul.f32 %v2838_v27, %v336_v52 }
  0x50   : > { %v3024_v15 = vld [vmem:[#allocation2 + $0xc8] sm:$0xff]  ;;  %v3026_v16 = vld [vmem:[#allocation2 + $0xd0] sm:$0x3]  ;;  %v706_v17 = vrot.slane %v3021_v11, 1  ;;  %538 = vst.msk [vmem:[#allocation2 + $0x139] sm:$0xff] %vm458_vm2, %v450_v1  ;;  %v452_v29 = vmax.f32 %v3017_v8, 0.0 }
  0x51   : > { %v707_v20 = vrot.slane %v3024_v15, 1  ;;  %v709_v21 = vrot.slane %v3026_v16, 1  ;;  %v3033_v22 = vld [vmem:[#allocation2 + $0x120] sm:$0xff]  ;;  %539 = vst.msk [vmem:[#allocation2 + $0x141] sm:$0xff] %vm458_vm2, %v451_v4  ;;  %v429_v1 = vmax.f32 %v397_v32, 0.0  ;;  %v406_v5 = vadd.f32 %v2850_v31, %v371_v59 }
  0x52   : > { %4196 = vst [vmem:[#allocation5_spill] sm:$0xff] %v3033_v22  ;;  %v3036_v25 = vld [vmem:[#allocation2 + $0x128] sm:$0xff]  ;;  %v3038_v26 = vld [vmem:[#allocation2 + $0x130] sm:$0x3]  ;;  %v726_v28 = vrot.slane %v3033_v22, 1 }
  0x53   : > { %4197 = vst [vmem:[#allocation6_spill] sm:$0xff] %v3036_v25  ;;  %v708_v33 = vsel %vm665_vm6, %v706_v17, %v707_v20  ;;  %v710_v34 = vsel %vm665_vm6, %v707_v20, %v709_v21  ;;  %v727_v35 = vrot.slane %v3036_v25, 1  ;;  %v729_v39 = vrot.slane %v3038_v26, 1  ;;  %v3049_v40 = vld [vmem:[#allocation2 + $0x78] sm:$0xff] }
  0x54   : > { %4198 = vst [vmem:[#allocation7_spill] sm:$0xff] %v3038_v26  ;;  %v3052_v41 = vpack.c.bf16 %v710_v34, %v708_v33  ;;  %v3054_v43 = vld [vmem:[#allocation2 + $0x80] sm:$0xff]  ;;  %v3056_v44 = vld [vmem:[#allocation2 + $0x88] sm:$0x3]  ;;  %v691_v45 = vrot.slane %v3049_v40, 1  ;;  %v438_v33 = vmax.f32 %v406_v5, 0.0 }
  0x55   : > { %514 = vst.msk [vmem:[#allocation2 + $0x19] sm:$0xff] %vm458_vm2, %v426_v7  ;;  %v728_v49 = vsel %vm665_vm6, %v726_v28, %v727_v35  ;;  %v730_v50 = vsel %vm665_vm6, %v727_v35, %v729_v39  ;;  %v692_v51 = vrot.slane %v3054_v43, 1  ;;  %v694_v12 = vrot.slane %v3056_v44, 1  ;;  %v3071_v55 = vld [vmem:[#allocation2 + $0xd8] sm:$0xff]  ;;  %v345_v28 = vld [vmem:[%s2823_s14 + $0xa8] sm:$0xff] }
  0x56   : > { %515 = vst.msk [vmem:[#allocation2 + $0x21] sm:$0xff] %vm458_vm2, %v427_v13  ;;  %2540 = vmatmul.msk.bf16.vlgmr.msra.gmra.mxu2 %vm458_vm2, %v3052_v41  ;;  %v3069_v54 = vpack.c.bf16 %v730_v50, %v728_v49  ;;  %v3073_v56 = vld [vmem:[#allocation2 + $0xe0] sm:$0xff]  ;;  %v3075_v57 = vld [vmem:[#allocation2 + $0xe8] sm:$0x3]  ;;  %v711_v6 = vrot.slane %v3071_v55, 1  ;;  %v439_v34 = vmax.f32 %v407_v19, 0.0  ;;  %v379_v49 = vmul.f32 %v2838_v27, %v344_v10 }
  0x57   : > { %4199 = vst [vmem:[#allocation8_spill] sm:$0xff] %v3052_v41  ;;  %v693_v61 = vsel %vm665_vm6, %v691_v45, %v692_v51  ;;  %v695_v62 = vsel %vm665_vm6, %v692_v51, %v694_v12  ;;  %v3082_v0 = vld [vmem:[#allocation2 + $0x138] sm:$0xff]  ;;  %v712_v7 = vrot.slane %v3073_v56, 1  ;;  %v714_v8 = vrot.slane %v3075_v57, 1 }
  0x58   : > { %524 = vst.msk [vmem:[#allocation2 + $0x91] sm:$0xff] %vm458_vm2, %v436_v14  ;;  %2544 = vmatmul.msk.bf16.vlgmr.msra.gmra.mxu3 %vm458_vm2, %v3069_v54  ;;  %v3087_v2 = vpack.c.bf16 %v695_v62, %v693_v61  ;;  %v3089_v3 = vld [vmem:[#allocation2 + $0x140] sm:$0xff]  ;;  %v3091_v4 = vld [vmem:[#allocation2 + $0x148] sm:$0x3]  ;;  %v731_v13 = vrot.slane %v3082_v0, 1  ;;  %v380_v50 = vmul.f32 %v2838_v27, %v345_v28  ;;  %v414_v60 = vadd.f32 %v2850_v31, %v379_v49  ;;  %v352_v62 = vld [vmem:[%s2823_s14 + $0xe0] sm:$0xff] }
  0x59   : > { %525 = vst.msk [vmem:[#allocation2 + $0x99] sm:$0xff] %vm458_vm2, %v437_v18  ;;  %v732_v20 = vrot.slane %v3089_v3, 1  ;;  %v734_v21 = vrot.slane %v3091_v4, 1  ;;  %v713_v45 = vsel %vm665_vm6, %v711_v6, %v712_v7  ;;  %v715_v51 = vsel %vm665_vm6, %v712_v7, %v714_v8  ;;  %v328_v10 = vld [vmem:[%s2823_s14 + $0x20] sm:$0xff] }
  0x5a   : > { %4200 = vst [vmem:[#allocation9_spill] sm:$0xff] %v3069_v54  ;;  %v3146_v5 = vpack.c.bf16 %v715_v51, %v713_v45  ;;  %v415_v8 = vadd.f32 %v2850_v31, %v380_v50  ;;  %v363_v49 = vmul.f32 %v2838_v27, %v328_v10 }
  0x5b   : > { %532 = vst.msk [vmem:[#allocation2 + $0xf1] sm:$0xff] %vm458_vm2, %v444_v23  ;;  %v735_v59 = vsel %vm665_vm6, %v732_v20, %v734_v21 }
  0x5c   : > { %4201 = vst [vmem:[#allocation10_spill] sm:$0xff] %v3082_v0  ;;  %v3098_v9 = vld [vmem:[#allocation2 + $0x18] sm:$0xff]  ;;  %v447_v28 = vmax.f32 %v415_v8, 0.0  ;;  %v2666_v0 = vld [vmem:[%s4140_s4 + $0x10] sm:$0x3] }
  0x5d   : > { %533 = vst.msk [vmem:[#allocation2 + $0xf9] sm:$0xff] %vm458_vm2, %v445_v24  ;;  %v3105_v14 = vld [vmem:[#allocation2 + $0x20] sm:$0xff]  ;;  %v3107_v17 = vld [vmem:[#allocation2 + $0x28] sm:$0x3]  ;;  %v671_v18 = vrot.slane %v3098_v9, 1  ;;  %v2071_v26 = vsel %vm844_vm0, %v2666_v0, 0 }
  0x5e   : > { %4202 = vst [vmem:[#allocation11_spill] sm:$0xff] %v3089_v3  ;;  %2537 = vmatmul.msk.bf16.gmra.mxu1 %vm458_vm2, %v3087_v2  ;;  %v672_v23 = vrot.slane %v3105_v14, 1  ;;  %v674_v24 = vrot.slane %v3107_v17, 1  ;;  %2080 = vmatpush.bf16.msra.mxu0 %v2071_v26 }
  0x5f   : > { %4203 = vst [vmem:[#allocation12_spill] sm:$0xff] %v3091_v4 }
  0x60   : > { %540 = vst.msk [vmem:[#allocation2 + $0x151] sm:$0xff] %vm458_vm2, %v452_v29  ;;  %v3118_v29 = vld [vmem:[#allocation2 + $0x90] sm:$0xff]  ;;  %v3120_v30 = vld [vmem:[#allocation2 + $0x98] sm:$0xff]  ;;  %v3122_v32 = vld [vmem:[#allocation2 + $0xa0] sm:$0x3]  ;;  %v673_v35 = vsel %vm665_vm6, %v671_v18, %v672_v23  ;;  %v675_v39 = vsel %vm665_vm6, %v672_v23, %v674_v24  ;;  %v446_v24 = vmax.f32 %v414_v60, 0.0 }
  0x61   : > { %541 = vst.msk [vmem:[#allocation2 + $0x159] sm:$0xff] %vm458_vm2, %v453_v48  ;;  %v3127_v48 = vpack.c.bf16 %v675_v39, %v673_v35  ;;  %v696_v12 = vrot.slane %v3118_v29, 1  ;;  %v697_v52 = vrot.slane %v3120_v30, 1  ;;  %v699_v53 = vrot.slane %v3122_v32, 1 }
  0x62   : > { %516 = vst.msk [vmem:[#allocation2 + $0x31] sm:$0xff] %vm458_vm2, %v428_v58  ;;  %v733_v58 = vsel %vm665_vm6, %v731_v13, %v732_v20  ;;  %v329_v20 = vld [vmem:[%s2823_s14 + $0x28] sm:$0xff]  ;;  %v3159_v21 = vld [vmem:[#allocation2 + $0xf0] sm:$0xff] }
  0x63   : > { %517 = vst.msk [vmem:[#allocation2 + $0x39] sm:$0xff] %vm458_vm2, %v429_v1  ;;  %2533 = vmatmul.msk.bf16.gmra.mxu0 %vm458_vm2, %v3127_v48  ;;  %v353_v1 = vld [vmem:[%s2823_s14 + $0xe8] sm:$0xff]  ;;  %v3154_v13 = vpack.c.bf16 %v735_v59, %v733_v58  ;;  %v698_v18 = vsel %vm665_vm6, %v696_v12, %v697_v52  ;;  %v700_v19 = vsel %vm665_vm6, %v697_v52, %v699_v53  ;;  %v1081_v52 = vrot.slane %v2878_v38, 2 }
  0x64   : > { %526 = vst.msk [vmem:[#allocation2 + $0xa9] sm:$0xff] %vm458_vm2, %v438_v33  ;;  %v387_v33 = vmul.f32 %v2838_v27, %v352_v62  ;;  %v388_v45 = vmul.f32 %v2838_v27, %v353_v1  ;;  %v3171_v50 = vpack.c.bf16 %v700_v19, %v698_v18  ;;  %v364_v12 = vmul.f32 %v2838_v27, %v329_v20  ;;  %v3183_v60 = vld [vmem:[#allocation2 + $0x100] sm:$0x3] }
  0x65   : > { %527 = vst.msk [vmem:[#allocation2 + $0xb1] sm:$0xff] %vm458_vm2, %v439_v34  ;;  %v3163_v34 = vld [vmem:[#allocation2 + $0xf8] sm:$0xff]  ;;  %v716_v53 = vrot.slane %v3159_v21, 1  ;;  %v398_v59 = vadd.f32 %v2850_v31, %v363_v49  ;;  %v1078_v49 = vrot.slane %v2874_v36, 2 }
  0x66   : > { %4204 = vst [vmem:[#allocation13_spill] sm:$0xff] %v3146_v5  ;;  %2541 = vmatmul.msk.bf16.gmra.mxu2 %vm458_vm2, %v3146_v5  ;;  %v422_v51 = vadd.f32 %v2850_v31, %v387_v33  ;;  %v423_v58 = vadd.f32 %v2850_v31, %v388_v45  ;;  %v717_v62 = vrot.slane %v3163_v34, 1  ;;  %v399_v8 = vadd.f32 %v2850_v31, %v364_v12 }
  0x67   : > { %4205 = vst [vmem:[#allocation14_spill] sm:$0xff] %v3154_v13  ;;  %v3189_v10 = vld [vmem:[#allocation2 + $0x150] sm:$0xff] }
  0x68   : > { %4206 = vst [vmem:[#allocation15_spill] sm:$0xff] %v3171_v50  ;;  %2545 = vmatmul.msk.bf16.gmra.mxu3 %vm458_vm2, %v3154_v13  ;;  %v454_v1 = vmax.f32 %v422_v51, 0.0  ;;  %v3191_v18 = vld [vmem:[#allocation2 + $0x158] sm:$0xff]  ;;  %v3197_v33 = vld [vmem:[#allocation2 + $0x160] sm:$0x3]  ;;  %v431_v45 = vmax.f32 %v399_v8, 0.0 }
  0x69   : > { %v3142_v61 = vld [vmem:[#allocation2 + $0x30] sm:$0xff]  ;;  %534 = vst.msk [vmem:[#allocation2 + $0x109] sm:$0xff] %vm458_vm2, %v446_v24  ;;  %v455_v24 = vmax.f32 %v423_v58, 0.0  ;;  %v719_v51 = vrot.slane %v3183_v60, 1  ;;  %v739_v8 = vrot.slane %v3197_v33, 1 }
  0x6a   : > { %v3148_v6 = vld [vmem:[#allocation2 + $0x38] sm:$0xff]  ;;  %v3150_v7 = vld [vmem:[#allocation2 + $0x40] sm:$0x3]  ;;  %v676_v23 = vrot.slane %v3142_v61, 1  ;;  %535 = vst.msk [vmem:[#allocation2 + $0x111] sm:$0xff] %vm458_vm2, %v447_v28  ;;  %v430_v28 = vmax.f32 %v398_v59, 0.0 }
  0x6b   : > { %v677_v35 = vrot.slane %v3148_v6, 1  ;;  %v679_v39 = vrot.slane %v3150_v7, 1  ;;  %4207 = vst [vmem:[#allocation16_spill] sm:$0xff] %v3183_v60  ;;  %v3207_v12 = vld [vmem:[#allocation2 + $0xa8] sm:$0xff] }
  0x6c   : > { %4208 = vst [vmem:[#allocation17_spill] sm:$0xff] %v3189_v10  ;;  %v3209_v58 = vld [vmem:[#allocation2 + $0xb0] sm:$0xff]  ;;  %v3211_v59 = vld [vmem:[#allocation2 + $0xb8] sm:$0x3] }
  0x6d   : > { %4209 = vst [vmem:[#allocation18_spill] sm:$0xff] %v3191_v18  ;;  %v678_v19 = vsel %vm665_vm6, %v676_v23, %v677_v35  ;;  %v680_v20 = vsel %vm665_vm6, %v677_v35, %v679_v39  ;;  %v1079_v23 = vrot.slane %v2876_v37, 2  ;;  %v736_v35 = vrot.slane %v3189_v10, 1 }
  0x6e   : > { %2538 = vmatmul.msk.bf16.gmra.mxu1 %vm458_vm2, %v3171_v50  ;;  %4210 = vst [vmem:[#allocation19_spill] sm:$0xff] %v3197_v33  ;;  %v3205_v39 = vpack.c.bf16 %v680_v20, %v678_v19  ;;  %v718_v20 = vsel %vm665_vm6, %v716_v53, %v717_v62  ;;  %v720_v10 = vsel %vm665_vm6, %v717_v62, %v719_v51  ;;  %v704_v33 = vrot.slane %v3211_v59, 1 }
  0x6f   : > { %542 = vst.msk [vmem:[#allocation2 + $0x169] sm:$0xff] %vm458_vm2, %v454_v1  ;;  %v737_v1 = vrot.slane %v3191_v18, 1  ;;  %v3221_v19 = vsel %vm1077_vm7, %v1079_v23, %v1081_v52  ;;  %v702_v18 = vrot.slane %v3209_v58, 1 }
  0x70   : > { %543 = vst.msk [vmem:[#allocation2 + $0x171] sm:$0xff] %vm458_vm2, %v455_v24  ;;  %v3218_v24 = vsel %vm1077_vm7, %v1078_v49, %v1079_v23  ;;  %v3234_v49 = vpack.c.bf16 %v720_v10, %v718_v20 }
  0x71   : > { %518 = vst.msk [vmem:[#allocation2 + $0x49] sm:$0xff] %vm458_vm2, %v430_v28  ;;  %v701_v28 = vrot.slane %v3207_v12, 1  ;;  %v740_v52 = vsel %vm665_vm6, %v737_v1, %v739_v8  ;;  %v705_v23 = vsel %vm665_vm6, %v702_v18, %v704_v33  ;;  %v3255_v33 = vld [vmem:[#allocation2 + $0x110] sm:$0xff]  ;;  %v3257_v8 = vld [vmem:[#allocation2 + $0x118] sm:$0x3] }
  0x72   : > { %519 = vst.msk [vmem:[#allocation2 + $0x51] sm:$0xff] %vm458_vm2, %v431_v45  ;;  %v738_v45 = vsel %vm665_vm6, %v736_v35, %v737_v1  ;;  %v724_v25 = vrot.slane %v3257_v8, 1 }
  0x73   : > { %2534 = vmatmul.msk.bf16.gmra.mxu0 %vm458_vm2, %v3205_v39  ;;  %v703_v53 = vsel %vm665_vm6, %v701_v28, %v702_v18  ;;  %v3240_v51 = vpack.c.bf16 %v740_v52, %v738_v45  ;;  %v3253_v18 = vld [vmem:[#allocation2 + $0x108] sm:$0xff]  ;;  %4214 = vst [vmem:[#allocation23_spill] sm:$0xff] %v3255_v33  ;;  %v2632_v45 = vld [vmem:[%s4140_s4 + $0xc] sm:$0x3]  ;;  %v2649_v52 = vld [vmem:[%s4140_s4 + $0xe] sm:$0x3] }
  0x74   : > { %v3251_v10 = vpack.c.bf16 %v705_v23, %v703_v53  ;;  %4213 = vst [vmem:[#allocation22_spill] sm:$0xff] %v3253_v18  ;;  %v2615_v53 = vld [vmem:[%s4140_s4 + $0xa] sm:$0x3]  ;;  %v1794_v27 = vsel %vm844_vm0, %v2632_v45, 0  ;;  %v1086_v45 = vrot.slane %v3107_v17, 2 }
  0x75   : > { %4211 = vst [vmem:[#allocation20_spill] sm:$0xff] %v3240_v51  ;;  %v1664_v3 = vsel %vm844_vm0, %v2615_v53, 0  ;;  %1803 = vmatpush.bf16.msra.mxu2 %v1794_v27  ;;  %v722_v53 = vrot.slane %v3255_v33, 1 }
  0x76   : > { %2542 = vmatmul.msk.bf16.gmra.mxu2 %vm458_vm2, %v3234_v49  ;;  %4212 = vst [vmem:[#allocation21_spill] sm:$0xff] %v3251_v10  ;;  %v3261_v20 = vld [vmem:[#allocation2 + $0x168] sm:$0xff]  ;;  %1673 = vmatpush.bf16.msra.mxu1 %v1664_v3 }
  0x77   : > { %v3273_v23 = vld [vmem:[#allocation2 + $0x170] sm:$0xff]  ;;  %v3284_v13 = vld [vmem:[#allocation2 + $0x178] sm:$0x3]  ;;  %v741_v54 = vrot.slane %v3261_v20, 1 }
  0x78   : > { %v3238_v62 = vld [vmem:[#allocation2 + $0x48] sm:$0xff]  ;;  %2546 = vmatmul.msk.bf16.gmra.mxu3 %vm458_vm2, %v3240_v51  ;;  %v742_v60 = vrot.slane %v3273_v23, 1  ;;  %v744_v17 = vrot.slane %v3284_v13, 1 }
  0x79   : > { %v3242_v38 = vld [vmem:[#allocation2 + $0x50] sm:$0xff]  ;;  %v3244_v4 = vld [vmem:[#allocation2 + $0x58] sm:$0x3]  ;;  %v681_v31 = vrot.slane %v3238_v62, 1 }
  0x7a   : > { %v682_v35 = vrot.slane %v3242_v38, 1  ;;  %v684_v1 = vrot.slane %v3244_v4, 1  ;;  %v743_v26 = vsel %vm665_vm6, %v741_v54, %v742_v60  ;;  %v745_v3 = vsel %vm665_vm6, %v742_v60, %v744_v17 }
  0x7b   : > { %v1089_v54 = vrot.slane %v3148_v6, 2  ;;  %v1091_v60 = vrot.slane %v3150_v7, 2  ;;  %v1093_v7 = vrot.slane %v3238_v62, 2 }
  0x7c   : > { %v683_v28 = vsel %vm665_vm6, %v681_v31, %v682_v35  ;;  %v685_v51 = vsel %vm665_vm6, %v682_v35, %v684_v1  ;;  %v1934_v31 = vsel %vm844_vm0, %v2649_v52, 0  ;;  %v1083_v35 = vrot.slane %v3098_v9, 2 }
  0x7d   : > { %v1084_v1 = vrot.slane %v3105_v14, 2  ;;  %v721_v52 = vrot.slane %v3253_v18, 1  ;;  %1943 = vmatpush.bf16.msra.mxu3 %v1934_v31  ;;  %v3293_v22 = vpack.c.bf16 %v685_v51, %v683_v28  ;;  %v725_v31 = vsel %vm665_vm6, %v722_v53, %v724_v25 }
  0x7e   : > { %2539 = vmatmul.msk.bf16.gmra.mxu1 %vm458_vm2, %v3251_v10  ;;  %v3310_v28 = vpack.c.bf16 %v745_v3, %v743_v26  ;;  %v4217_v25 = vpack.c.bf16 %v2876_v37, %v2874_v36  ;;  %v601_v36 = vpack.c.bf16 %v3105_v14, %v3098_v9  ;;  %v4218_v37 = vpack.c.bf16 %v3221_v19, %v3218_v24 }
  0x7f   : > { %v1085_v27 = vsel %vm1077_vm7, %v1083_v35, %v1084_v1  ;;  %v1087_v0 = vsel %vm1077_vm7, %v1084_v1, %v1086_v45  ;;  %v723_v33 = vsel %vm665_vm6, %v721_v52, %v722_v53  ;;  %v1088_v35 = vrot.slane %v3142_v61, 2 }
  0x80   : > { %v3300_v18 = vpack.c.bf16 %v1087_v0, %v1085_v27  ;;  %v3308_v51 = vpack.c.bf16 %v725_v31, %v723_v33  ;;  %4216 = vst [vmem:[#allocation25_spill] sm:$0xff] %v3310_v28  ;;  %v1092_v1 = vsel %vm1077_vm7, %v1089_v54, %v1091_v60  ;;  %v1094_v52 = vrot.slane %v3242_v38, 2 }
  0x81   : > { %v1090_v33 = vsel %vm1077_vm7, %v1088_v35, %v1089_v54  ;;  %v1096_v53 = vrot.slane %v3244_v4, 2  ;;  %v3348_v14 = vpack.c.bf16 %v3148_v6, %v3142_v61  ;;  %v3360_v4 = vpack.c.bf16 %v3242_v38, %v3238_v62 }
  0x82   : > { %4215 = vst [vmem:[#allocation24_spill] sm:$0xff] %v3308_v51  ;;  %v3325_v45 = vpack.c.bf16 %v1092_v1, %v1090_v33  ;;  %v3374_v6 = vpack.c.bf16 %v2894_v46, %v2887_v42  ;;  %v1098_v24 = vrot.slane %v2887_v42, 2  ;;  %v1099_v19 = vrot.slane %v2894_v46, 2 }
  0x83   : > { %2535 = vmatmul.msk.bf16.gmra.mxu0 %vm458_vm2, %v3293_v22  ;;  %v1097_v27 = vsel %vm1077_vm7, %v1094_v52, %v1096_v53  ;;  %v1101_v62 = vrot.slane %v2896_v47, 2  ;;  %v3399_v42 = vpack.c.bf16 %v3054_v43, %v3049_v40  ;;  %v1103_v35 = vrot.slane %v3049_v40, 2 }
  0x84   : > { %v1100_v17 = vsel %vm1077_vm7, %v1098_v24, %v1099_v19  ;;  %v1104_v54 = vrot.slane %v3054_v43, 2  ;;  %v1106_v60 = vrot.slane %v3056_v44, 2  ;;  %v3432_v43 = vpack.c.bf16 %v3120_v30, %v3118_v29 }
  0x85   : > { %v1102_v31 = vsel %vm1077_vm7, %v1099_v19, %v1101_v62  ;;  %v1108_v24 = vrot.slane %v3118_v29, 2  ;;  %v1109_v19 = vrot.slane %v3120_v30, 2  ;;  %v1111_v62 = vrot.slane %v3122_v32, 2 }
  0x86   : > { %2543 = vmatmul.msk.bf16.gmra.mxu2 %vm458_vm2, %v3308_v51  ;;  %v3393_v26 = vpack.c.bf16 %v1102_v31, %v1100_v17  ;;  %v1105_v1 = vsel %vm1077_vm7, %v1103_v35, %v1104_v54  ;;  %4221 = vst [vmem:[#allocation28_spill] sm:$0xff] %v3432_v43  ;;  %v3467_v30 = vpack.c.bf16 %v3209_v58, %v3207_v12 }
  0x87   : > { %v1110_v31 = vsel %vm1077_vm7, %v1108_v24, %v1109_v19  ;;  %v1112_v35 = vsel %vm1077_vm7, %v1109_v19, %v1111_v62  ;;  %v1113_v62 = vrot.slane %v3207_v12, 2 }
  0x88   : > { %2547 = vmatmul.msk.bf16.gmra.mxu3 %vm458_vm2, %v3310_v28  ;;  %4225 = vst [vmem:[#allocation32_spill] sm:$0xff] %v3467_v30 }
  0x8e   : > { %2548 = vmatmul.msk.bf16.vlgmr.msrb.gmra.mxu1 %vm458_vm2, %v4217_v25 }
  0x93   : > { %2599 = vmatmul.msk.bf16.vlgmr.msrb.gmra.mxu0 %vm458_vm2, %v3127_v48  ;;  %v1095_v48 = vsel %vm1077_vm7, %v1093_v7, %v1094_v52 }
  0x94   : > { %v3342_v9 = vpack.c.bf16 %v1097_v27, %v1095_v48 }
  0x96   : > { %2565 = vmatmul.msk.bf16.vlgmr.msrb.gmra.mxu2 %vm458_vm2, %v4218_v37 }
  0x98   : > { %2582 = vmatmul.msk.bf16.vlgmr.msrb.gmra.mxu3 %vm458_vm2, %v601_v36 }
  0x9c   : > { %v3380_v38 = vpop.f32.mrf.mxu0 }
  0x9e   : > { %2549 = vmatmul.msk.bf16.gmra.mxu1 %vm458_vm2, %v601_v36  ;;  %v1107_v36 = vsel %vm1077_vm7, %v1104_v54, %v1106_v60 }
  0x9f   : > { %v3426_v52 = vpack.c.bf16 %v1107_v36, %v1105_v1  ;;  %v3461_v1 = vpack.c.bf16 %v1112_v35, %v1110_v31  ;;  %v1114_v31 = vrot.slane %v3209_v58, 2  ;;  %v1116_v35 = vrot.slane %v3211_v59, 2 }
  0xa0   : > { %v3502_v58 = vpack.c.bf16 %v3024_v15, %v3021_v11 }
  0xa1   : > { %4223 = vst [vmem:[#allocation30_spill] sm:$0xff] %v3461_v1 }
  0xa2   : > { %4229 = vst [vmem:[#allocation36_spill] sm:$0xff] %v3502_v58 }
  0xa3   : > { %2600 = vmatmul.msk.bf16.gmra.mxu0 %vm458_vm2, %v3205_v39 }
  0xa4   : > { %v3395_v3 = vpop.f32.mrf.mxu0 }
  0xa6   : > { %2566 = vmatmul.msk.bf16.gmra.mxu2 %vm458_vm2, %v3300_v18 }
  0xa8   : > { %2583 = vmatmul.msk.bf16.gmra.mxu3 %vm458_vm2, %v3348_v14 }
  0xae   : > { %2550 = vmatmul.msk.bf16.gmra.mxu1 %vm458_vm2, %v3348_v14 }
  0xb3   : > { %2601 = vmatmul.msk.bf16.gmra.mxu0 %vm458_vm2, %v3293_v22 }
  0xb6   : > { %2567 = vmatmul.msk.bf16.gmra.mxu2 %vm458_vm2, %v3325_v45 }
  0xb8   : > { %2584 = vmatmul.msk.bf16.gmra.mxu3 %vm458_vm2, %v3360_v4 }
  0xbe   : > { %2551 = vmatmul.msk.bf16.gmra.mxu1 %vm458_vm2, %v3360_v4 }
  0xc3   : > { %2602 = vmatmul.msk.bf16.gmra.mxu0 %vm458_vm2, %v2929_v63 }
  0xc6   : > { %2568 = vmatmul.msk.bf16.gmra.mxu2 %vm458_vm2, %v3342_v9 }
  0xc8   : > { %2585 = vmatmul.msk.bf16.gmra.mxu3 %vm458_vm2, %v3374_v6 }
  0xcb   : > { %v3370_v61 = vpop.f32.mrf.mxu1 }
  0xce   : > { %2552 = vmatmul.msk.bf16.gmra.mxu1 %vm458_vm2, %v3374_v6 }
  0xd3   : > { %v3387_v0 = vpop.f32.mrf.mxu1  ;;  %2603 = vmatmul.msk.bf16.gmra.mxu0 %vm458_vm2, %v3087_v2 }
  0xd6   : > { %2569 = vmatmul.msk.bf16.gmra.mxu2 %vm458_vm2, %v3393_v26 }
  0xd8   : > { %2586 = vmatmul.msk.bf16.gmra.mxu3 %vm458_vm2, %v3399_v42 }
  0xd9   : > { %v3407_v47 = vpop.f32.mrf.mxu2 }
  0xdb   : > { %v3403_v46 = vpop.f32.mrf.mxu1  ;;  %v3411_v25 = vpop.f32.mrf.mxu3 }
  0xdc   : > { %4219 = vst [vmem:[#allocation26_spill] sm:$0xff] %v3411_v25 }
  0xde   : > { %2553 = vmatmul.msk.bf16.gmra.mxu1 %vm458_vm2, %v3399_v42 }
  0xe0   : > { %v3416_v33 = vpop.f32.mrf.mxu0 }
  0xe1   : > { %v3424_v7 = vpop.f32.mrf.mxu2 }
  0xe3   : > { %v3420_v37 = vpop.f32.mrf.mxu1  ;;  %2604 = vmatmul.msk.bf16.gmra.mxu0 %vm458_vm2, %v3171_v50  ;;  %v3428_v40 = vpop.f32.mrf.mxu3 }
  0xe4   : > { %4220 = vst [vmem:[#allocation27_spill] sm:$0xff] %v3428_v40 }
  0xe6   : > { %2570 = vmatmul.msk.bf16.gmra.mxu2 %vm458_vm2, %v3426_v52 }
  0xe8   : > { %v3434_v44 = vpop.f32.mrf.mxu0  ;;  %2587 = vmatmul.msk.bf16.gmra.mxu3 %vm458_vm2, %v3432_v43 }
  0xe9   : > { %v3442_v48 = vpop.f32.mrf.mxu2 }
  0xeb   : > { %v3438_v53 = vpop.f32.mrf.mxu1  ;;  %v3446_v27 = vpop.f32.mrf.mxu3 }
  0xec   : > { %4222 = vst [vmem:[#allocation29_spill] sm:$0xff] %v3446_v27  ;;  %v1117_v27 = vsel %vm1077_vm7, %v1114_v31, %v1116_v35  ;;  %v1118_v35 = vrot.slane %v3021_v11, 2  ;;  %v3532_v11 = vpack.c.bf16 %v3073_v56, %v3071_v55 }
  0xee   : > { %2554 = vmatmul.msk.bf16.gmra.mxu1 %vm458_vm2, %v3432_v43  ;;  %4233 = vst [vmem:[#allocation40_spill] sm:$0xff] %v3532_v11 }
  0xf0   : > { %v3451_v17 = vpop.f32.mrf.mxu0 }
  0xf1   : > { %v3459_v60 = vpop.f32.mrf.mxu2 }
  0xf3   : > { %v3455_v54 = vpop.f32.mrf.mxu1  ;;  %2605 = vmatmul.msk.bf16.gmra.mxu0 %vm458_vm2, %v3251_v10  ;;  %v3463_v29 = vpop.f32.mrf.mxu3  ;;  %v1115_v10 = vsel %vm1077_vm7, %v1113_v62, %v1114_v31 }
  0xf4   : > { %4224 = vst [vmem:[#allocation31_spill] sm:$0xff] %v3463_v29 }
  0xf6   : > { %2571 = vmatmul.msk.bf16.gmra.mxu2 %vm458_vm2, %v3461_v1 }
  0xf8   : > { %v3469_v32 = vpop.f32.mrf.mxu0  ;;  %2588 = vmatmul.msk.bf16.gmra.mxu3 %vm458_vm2, %v3467_v30 }
  0xf9   : > { %v3477_v24 = vpop.f32.mrf.mxu2 }
  0xfb   : > { %v3473_v36 = vpop.f32.mrf.mxu1  ;;  %v3481_v19 = vpop.f32.mrf.mxu3 }
  0xfc   : > { %4226 = vst [vmem:[#allocation33_spill] sm:$0xff] %v3481_v19  ;;  %v3496_v19 = vpack.c.bf16 %v1117_v27, %v1115_v10  ;;  %v1121_v10 = vrot.slane %v3026_v16, 2 }
  0xfe   : > { %2555 = vmatmul.msk.bf16.gmra.mxu1 %vm458_vm2, %v3467_v30  ;;  %4227 = vst [vmem:[#allocation34_spill] sm:$0xff] %v3496_v19 }
 0x100   : > { %v3486_v29 = vpop.f32.mrf.mxu0 }
 0x101   : > { %v3494_v30 = vpop.f32.mrf.mxu2 }
 0x103   : > { %v3490_v40 = vpop.f32.mrf.mxu1  ;;  %2606 = vmatmul.msk.bf16.gmra.mxu0 %vm458_vm2, %v3052_v41  ;;  %v3498_v12 = vpop.f32.mrf.mxu3 }
 0x104   : > { %4228 = vst [vmem:[#allocation35_spill] sm:$0xff] %v3498_v12  ;;  %v1119_v12 = vrot.slane %v3024_v15, 2 }
 0x106   : > { %2572 = vmatmul.msk.bf16.gmra.mxu2 %vm458_vm2, %v3496_v19  ;;  %v1120_v19 = vsel %vm1077_vm7, %v1118_v35, %v1119_v12  ;;  %v1122_v50 = vsel %vm1077_vm7, %v1119_v12, %v1121_v10 }
 0x107   : > { %v3526_v16 = vpack.c.bf16 %v1122_v50, %v1120_v19  ;;  %v1126_v19 = vrot.slane %v3075_v57, 2 }
 0x108   : > { %v3504_v59 = vpop.f32.mrf.mxu0  ;;  %2589 = vmatmul.msk.bf16.gmra.mxu3 %vm458_vm2, %v3502_v58 }
 0x109   : > { %v3510_v31 = vpop.f32.mrf.mxu2  ;;  %4231 = vst [vmem:[#allocation38_spill] sm:$0xff] %v3526_v16 }
 0x10b   : > { %v997_v62 = vpop.f32.mrf.mxu1  ;;  %v3515_v27 = vpop.f32.mrf.mxu3 }
 0x10c   : > { %4230 = vst [vmem:[#allocation37_spill] sm:$0xff] %v3515_v27  ;;  %v998_v10 = vadd.f32 %v997_v62, %v3380_v38 }
 0x10e   : > { %2556 = vmatmul.msk.bf16.gmra.mxu1 %vm458_vm2, %v3502_v58 }
 0x110   : > { %v1538_v41 = vpop.f32.mrf.mxu0 }
 0x111   : > { %v3524_v58 = vpop.f32.mrf.mxu2 }
 0x113   : > { %v999_v25 = vpop.f32.mrf.mxu1  ;;  %2607 = vmatmul.msk.bf16.gmra.mxu0 %vm458_vm2, %v3146_v5  ;;  %v3528_v27 = vpop.f32.mrf.mxu3  ;;  %v1124_v5 = vrot.slane %v3073_v56, 2 }
 0x114   : > { %v1000_v43 = vadd.f32 %v999_v25, %v3395_v3  ;;  %4232 = vst [vmem:[#allocation39_spill] sm:$0xff] %v3528_v27  ;;  %v1123_v27 = vrot.slane %v3071_v55, 2 }
 0x116   : > { %2573 = vmatmul.msk.bf16.gmra.mxu2 %vm458_vm2, %v3526_v16  ;;  %v1125_v62 = vsel %vm1077_vm7, %v1123_v27, %v1124_v5 }
 0x118   : > { %v1540_v15 = vpop.f32.mrf.mxu0  ;;  %2590 = vmatmul.msk.bf16.gmra.mxu3 %vm458_vm2, %v3532_v11 }
 0x119   : > { %v1268_v50 = vpop.f32.mrf.mxu2 }
 0x11a   : > { %v1348_v25 = vadd.f32 %v1268_v50, %v998_v10 }
 0x11b   : > { %v1002_v12 = vpop.f32.mrf.mxu1  ;;  %v1398_v35 = vpop.f32.mrf.mxu3 }
 0x11c   : > { %v1003_v3 = vadd.f32 %v1002_v12, %v3416_v33  ;;  %v1478_v16 = vadd.f32 %v1398_v35, %v1348_v25  ;;  %v1127_v33 = vsel %vm1077_vm7, %v1124_v5, %v1126_v19  ;;  %v4234_v19 = vld [vmem:[#allocation16_spill] sm:$0xff] }
 0x11d   : > { %v1131_v35 = vrot.slane %v4234_v19, 2 }
 0x11e   : > { %2557 = vmatmul.msk.bf16.gmra.mxu1 %vm458_vm2, %v3532_v11  ;;  %v3545_v38 = vadd.f32 %v1538_v41, %v1478_v16  ;;  %v3552_v11 = vpack.c.bf16 %v1127_v33, %v1125_v62  ;;  %v3556_v41 = vpack.c.bf16 %v3163_v34, %v3159_v21  ;;  %v1128_v33 = vrot.slane %v3159_v21, 2 }
 0x120   : > { %v1543_v1 = vpop.f32.mrf.mxu0 }
 0x121   : > { %v1270_v57 = vpop.f32.mrf.mxu2 }
 0x122   : > { %v1349_v50 = vadd.f32 %v1270_v57, %v1000_v43 }
 0x123   : > { %v1004_v12 = vpop.f32.mrf.mxu1  ;;  %2608 = vmatmul.msk.bf16.gmra.mxu0 %vm458_vm2, %v3234_v49  ;;  %v1400_v55 = vpop.f32.mrf.mxu3 }
 0x124   : > { %v1005_v10 = vadd.f32 %v1004_v12, %v3434_v44  ;;  %v1479_v56 = vadd.f32 %v1400_v55, %v1349_v50  ;;  %v1129_v12 = vrot.slane %v3163_v34, 2 }
 0x126   : > { %2574 = vmatmul.msk.bf16.gmra.mxu2 %vm458_vm2, %v3552_v11  ;;  %v3560_v5 = vadd.f32 %v1540_v15, %v1479_v56  ;;  %v1130_v55 = vsel %vm1077_vm7, %v1128_v33, %v1129_v12 }
 0x128   : > { %v1545_v16 = vpop.f32.mrf.mxu0  ;;  %2591 = vmatmul.msk.bf16.gmra.mxu3 %vm458_vm2, %v3556_v41 }
 0x129   : > { %v1273_v44 = vpop.f32.mrf.mxu2 }
 0x12a   : > { %v1350_v25 = vadd.f32 %v1273_v44, %v1003_v3 }
 0x12b   : > { %v1007_v27 = vpop.f32.mrf.mxu1  ;;  %v1403_v62 = vpop.f32.mrf.mxu3 }
 0x12c   : > { %v1008_v43 = vadd.f32 %v1007_v27, %v3451_v17  ;;  %v1480_v15 = vadd.f32 %v1403_v62, %v1350_v25  ;;  %v1132_v17 = vsel %vm1077_vm7, %v1129_v12, %v1131_v35  ;;  %v4236_v25 = vld [vmem:[#allocation22_spill] sm:$0xff]  ;;  %v4237_v62 = vld [vmem:[#allocation23_spill] sm:$0xff] }
 0x12d   : > { %v3577_v19 = vpack.c.bf16 %v1132_v17, %v1130_v55  ;;  %v1136_v55 = vrot.slane %v3257_v8, 2 }
 0x12e   : > { %2558 = vmatmul.msk.bf16.gmra.mxu1 %vm458_vm2, %v3556_v41  ;;  %v3570_v50 = vadd.f32 %v1543_v1, %v1480_v15  ;;  %v3581_v1 = vpack.c.bf16 %v4237_v62, %v4236_v25 }
 0x130   : > { %v1548_v57 = vpop.f32.mrf.mxu0  ;;  %4235 = vst [vmem:[#allocation16_spill] sm:$0xff] %v3570_v50 }
 0x131   : > { %v1275_v27 = vpop.f32.mrf.mxu2  ;;  %4238 = vst [vmem:[#allocation22_spill] sm:$0xff] %v3581_v1 }
 0x132   : > { %v1351_v44 = vadd.f32 %v1275_v27, %v1005_v10  ;;  %v1134_v27 = vrot.slane %v4237_v62, 2 }
 0x133   : > { %v1009_v56 = vpop.f32.mrf.mxu1  ;;  %2609 = vmatmul.msk.bf16.gmra.mxu0 %vm458_vm2, %v3308_v51  ;;  %v1405_v21 = vpop.f32.mrf.mxu3 }
 0x134   : > { %v1010_v3 = vadd.f32 %v1009_v56, %v3469_v32  ;;  %v1481_v34 = vadd.f32 %v1405_v21, %v1351_v44  ;;  %v1133_v56 = vrot.slane %v4236_v25, 2 }
 0x136   : > { %2575 = vmatmul.msk.bf16.gmra.mxu2 %vm458_vm2, %v3577_v19  ;;  %v3585_v35 = vadd.f32 %v1545_v16, %v1481_v34  ;;  %v1135_v34 = vsel %vm1077_vm7, %v1133_v56, %v1134_v27 }
 0x138   : > { %v1550_v15 = vpop.f32.mrf.mxu0  ;;  %4239 = vst [vmem:[#allocation23_spill] sm:$0xff] %v3585_v35  ;;  %2592 = vmatmul.msk.bf16.gmra.mxu3 %vm458_vm2, %v3581_v1 }
 0x139   : > { %v1278_v10 = vpop.f32.mrf.mxu2 }
 0x13a   : > { %v1352_v12 = vadd.f32 %v1278_v10, %v1008_v43  ;;  %v4241_v43 = vld [vmem:[#allocation9_spill] sm:$0xff] }
 0x13b   : > { %v1012_v33 = vpop.f32.mrf.mxu1  ;;  %v1408_v17 = vpop.f32.mrf.mxu3 }
 0x13c   : > { %v1013_v32 = vadd.f32 %v1012_v33, %v3486_v29  ;;  %v1482_v16 = vadd.f32 %v1408_v17, %v1352_v12  ;;  %v1137_v29 = vsel %vm1077_vm7, %v1134_v27, %v1136_v55  ;;  %v4242_v12 = vld [vmem:[#allocation5_spill] sm:$0xff]  ;;  %v4243_v17 = vld [vmem:[#allocation6_spill] sm:$0xff] }
 0x13d   : > { %v3602_v51 = vpack.c.bf16 %v1137_v29, %v1135_v34  ;;  %v1138_v29 = vrot.slane %v4242_v12, 2 }
 0x13e   : > { %2559 = vmatmul.msk.bf16.gmra.mxu1 %vm458_vm2, %v3581_v1  ;;  %v3595_v21 = vadd.f32 %v1548_v57, %v1482_v16  ;;  %v3606_v57 = vpack.c.bf16 %v4243_v17, %v4242_v12 }
 0x140   : > { %v1553_v44 = vpop.f32.mrf.mxu0  ;;  %4240 = vst [vmem:[#allocation41_spill] sm:$0xff] %v3595_v21 }
 0x141   : > { %v1280_v8 = vpop.f32.mrf.mxu2  ;;  %4244 = vst [vmem:[#allocation5_spill] sm:$0xff] %v3606_v57 }
 0x142   : > { %v1353_v35 = vadd.f32 %v1280_v8, %v1010_v3 }
 0x143   : > { %v1014_v33 = vpop.f32.mrf.mxu1  ;;  %2610 = vmatmul.msk.bf16.gmra.mxu0 %vm458_vm2, %v4241_v43  ;;  %v1410_v25 = vpop.f32.mrf.mxu3 }
 0x144   : > { %v1015_v10 = vadd.f32 %v1014_v33, %v3504_v59  ;;  %v1483_v62 = vadd.f32 %v1410_v25, %v1353_v35  ;;  %v4246_v35 = vld [vmem:[#allocation7_spill] sm:$0xff]  ;;  %v1139_v33 = vrot.slane %v4243_v17, 2 }
 0x145   : > { %v1141_v27 = vrot.slane %v4246_v35, 2 }
 0x146   : > { %2576 = vmatmul.msk.bf16.gmra.mxu2 %vm458_vm2, %v3602_v51  ;;  %v3610_v55 = vadd.f32 %v1550_v15, %v1483_v62  ;;  %v1140_v62 = vsel %vm1077_vm7, %v1138_v29, %v1139_v33  ;;  %v354_v29 = vld [vmem:[%s2823_s14 + $0xf0] sm:$0xff] }
 0x148   : > { %v1555_v16 = vpop.f32.mrf.mxu0  ;;  %4245 = vst [vmem:[#allocation6_spill] sm:$0xff] %v3610_v55  ;;  %2593 = vmatmul.msk.bf16.gmra.mxu3 %vm458_vm2, %v3606_v57  ;;  %v4248_v55 = vld [vmem:[#allocation14_spill] sm:$0xff] }
 0x149   : > { %v1283_v59 = vpop.f32.mrf.mxu2 }
 0x14a   : > { %v1354_v3 = vadd.f32 %v1283_v59, %v1013_v32  ;;  %v1142_v32 = vsel %vm1077_vm7, %v1139_v33, %v1141_v27  ;;  %v355_v27 = vld [vmem:[%s2823_s14 + $0xf8] sm:$0xff] }
 0x14b   : > { %v1017_v56 = vpop.f32.mrf.mxu1  ;;  %v1413_v34 = vpop.f32.mrf.mxu3  ;;  %v3625_v21 = vpack.c.bf16 %v1142_v32, %v1140_v62  ;;  %v4253_v32 = vld [vmem:[#allocation4_spill] sm:$0xff] }
 0x14c   : > { %v1484_v8 = vadd.f32 %v1413_v34, %v1354_v3  ;;  %v4251_v3 = vld [vmem:[#allocation11_spill] sm:$0xff]  ;;  %v1018_v62 = vadd.f32 %v1017_v56, %v3370_v61 }
 0x14d   : > { %4249 = vst [vmem:[#allocation42_spill] sm:$0xff] %v3625_v21 }
 0x14e   : > { %2560 = vmatmul.msk.bf16.gmra.mxu1 %vm458_vm2, %v3606_v57  ;;  %v3619_v25 = vadd.f32 %v1553_v44, %v1484_v8  ;;  %v4250_v57 = vld [vmem:[#allocation10_spill] sm:$0xff] }
 0x14f   : > { %v3629_v34 = vpack.c.bf16 %v4251_v3, %v4250_v57 }
 0x150   : > { %v1558_v15 = vpop.f32.mrf.mxu0  ;;  %4247 = vst [vmem:[#allocation7_spill] sm:$0xff] %v3619_v25 }
 0x151   : > { %v1285_v35 = vpop.f32.mrf.mxu2 }
 0x152   : > { %v1355_v43 = vadd.f32 %v1285_v35, %v1015_v10 }
 0x153   : > { %v1019_v59 = vpop.f32.mrf.mxu1  ;;  %2611 = vmatmul.msk.bf16.gmra.mxu0 %vm458_vm2, %v4248_v55  ;;  %v1415_v12 = vpop.f32.mrf.mxu3  ;;  %v4252_v55 = vld [vmem:[#allocation3_spill] sm:$0xff] }
 0x154   : > { %v1485_v17 = vadd.f32 %v1415_v12, %v1355_v43  ;;  %v389_v25 = vmul.f32 %v4252_v55, %v354_v29  ;;  %v390_v10 = vmul.f32 %v4252_v55, %v355_v27  ;;  %v1144_v55 = vrot.slane %v4251_v3, 2 }
 0x156   : > { %2577 = vmatmul.msk.bf16.gmra.mxu2 %vm458_vm2, %v3625_v21  ;;  %v3635_v33 = vadd.f32 %v1555_v16, %v1485_v17  ;;  %v424_v35 = vadd.f32 %v4253_v32, %v389_v25  ;;  %v425_v12 = vadd.f32 %v4253_v32, %v390_v10  ;;  %v4254_v21 = vld [vmem:[#allocation12_spill] sm:$0xff]  ;;  %v1143_v17 = vrot.slane %v4250_v57, 2 }
 0x157   : > { %v1146_v50 = vrot.slane %v4254_v21, 2  ;;  %v4255_v57 = vld [vmem:[#allocation20_spill] sm:$0xff] }
 0x158   : > { %v1560_v44 = vpop.f32.mrf.mxu0  ;;  %2594 = vmatmul.msk.bf16.gmra.mxu3 %vm458_vm2, %v3629_v34  ;;  %v456_v61 = vmax.f32 %v424_v35, 0.0  ;;  %v457_v56 = vmax.f32 %v425_v12, 0.0  ;;  %v1145_v21 = vsel %vm1077_vm7, %v1143_v17, %v1144_v55 }
 0x159   : > { %v1288_v43 = vpop.f32.mrf.mxu2  ;;  %v1147_v10 = vsel %vm1077_vm7, %v1144_v55, %v1146_v50 }
 0x15a   : > { %v1356_v1 = vadd.f32 %v1288_v43, %v1018_v62  ;;  %544 = vst.msk [vmem:[#allocation2 + $0x181] sm:$0xff] %vm458_vm2, %v456_v61  ;;  %v1020_v43 = vadd.f32 %v1019_v59, %v3387_v0  ;;  %v4257_v61 = vld [vmem:[#allocation18_spill] sm:$0xff] }
 0x15b   : > { %v1022_v8 = vpop.f32.mrf.mxu1  ;;  %v1418_v16 = vpop.f32.mrf.mxu3  ;;  %545 = vst.msk [vmem:[#allocation2 + $0x189] sm:$0xff] %vm458_vm2, %v457_v56 }
 0x15c   : > { %v1486_v29 = vadd.f32 %v1418_v16, %v1356_v1  ;;  %v3658_v1 = vpack.c.bf16 %v1147_v10, %v1145_v21  ;;  %v4256_v16 = vld [vmem:[#allocation17_spill] sm:$0xff]  ;;  %v1023_v0 = vadd.f32 %v1022_v8, %v3403_v46 }
 0x15e   : > { %2561 = vmatmul.msk.bf16.gmra.mxu1 %vm458_vm2, %v3629_v34  ;;  %v3651_v25 = vadd.f32 %v1558_v15, %v1486_v29  ;;  %v3662_v15 = vpack.c.bf16 %v4257_v61, %v4256_v16  ;;  %v4259_v29 = vld [vmem:[#allocation19_spill] sm:$0xff] }
 0x15f   : > { %v1151_v21 = vrot.slane %v4259_v29, 2 }
 0x160   : > { %v1563_v27 = vpop.f32.mrf.mxu0 }
 0x161   : > { %v1290_v3 = vpop.f32.mrf.mxu2 }
 0x162   : > { %v1357_v32 = vadd.f32 %v1290_v3, %v1020_v43  ;;  %v1148_v43 = vrot.slane %v4256_v16, 2  ;;  %v1149_v3 = vrot.slane %v4257_v61, 2  ;;  %v3685_v16 = vld [vmem:[#allocation2 + $0x180] sm:$0xff]  ;;  %v3687_v61 = vld [vmem:[#allocation2 + $0x188] sm:$0xff] }
 0x163   : > { %v1024_v62 = vpop.f32.mrf.mxu1  ;;  %2612 = vmatmul.msk.bf16.gmra.mxu0 %vm458_vm2, %v4255_v57  ;;  %v1420_v35 = vpop.f32.mrf.mxu3 }
 0x164   : > { %v1487_v12 = vadd.f32 %v1420_v35, %v1357_v32  ;;  %v1150_v46 = vsel %vm1077_vm7, %v1148_v43, %v1149_v3  ;;  %v1152_v8 = vsel %vm1077_vm7, %v1149_v3, %v1151_v21  ;;  %v3693_v21 = vpack.c.bf16 %v3273_v23, %v3261_v20 }
 0x165   : > { %v1514_v43 = vrot.slane %v3687_v61, 1 }
 0x166   : > { %2578 = vmatmul.msk.bf16.gmra.mxu2 %vm458_vm2, %v3658_v1  ;;  %v3666_v17 = vadd.f32 %v1560_v44, %v1487_v12 }
 0x168   : > { %v1565_v56 = vpop.f32.mrf.mxu0  ;;  %4258 = vst [vmem:[#allocation10_spill] sm:$0xff] %v3666_v17  ;;  %2595 = vmatmul.msk.bf16.gmra.mxu3 %vm458_vm2, %v3662_v15  ;;  %v3683_v17 = vpack.c.bf16 %v1152_v8, %v1150_v46 }
 0x169   : > { %v1293_v59 = vpop.f32.mrf.mxu2 }
 0x16a   : > { %v1358_v55 = vadd.f32 %v1293_v59, %v1023_v0  ;;  %v1025_v0 = vadd.f32 %v1024_v62, %v3420_v37  ;;  %v1513_v62 = vrot.slane %v3685_v16, 1 }
 0x16b   : > { %v1027_v50 = vpop.f32.mrf.mxu1  ;;  %v1423_v10 = vpop.f32.mrf.mxu3 }
 0x16c   : > { %v1488_v32 = vadd.f32 %v1423_v10, %v1358_v55  ;;  %v1028_v8 = vadd.f32 %v1027_v50, %v3438_v53 }
 0x16e   : > { %2562 = vmatmul.msk.bf16.gmra.mxu1 %vm458_vm2, %v3662_v15  ;;  %v3676_v35 = vadd.f32 %v1563_v27, %v1488_v32  ;;  %v3689_v27 = vld [vmem:[#allocation2 + $0x190] sm:$0x3] }
 0x16f   : > { %v1516_v3 = vrot.slane %v3689_v27, 1 }
 0x170   : > { %v1568_v44 = vpop.f32.mrf.mxu0  ;;  %4260 = vst [vmem:[#allocation11_spill] sm:$0xff] %v3676_v35 }
 0x171   : > { %v1295_v59 = vpop.f32.mrf.mxu2 }
 0x172   : > { %v1359_v29 = vadd.f32 %v1295_v59, %v1025_v0  ;;  %v1515_v59 = vsel %vm665_vm6, %v1513_v62, %v1514_v43 }
 0x173   : > { %v1029_v12 = vpop.f32.mrf.mxu1  ;;  %2613 = vmatmul.msk.bf16.gmra.mxu0 %vm458_vm2, %v3310_v28  ;;  %v1425_v55 = vpop.f32.mrf.mxu3  ;;  %v1156_v28 = vrot.slane %v3284_v13, 2 }
 0x174   : > { %v1489_v10 = vadd.f32 %v1425_v55, %v1359_v29  ;;  %v1517_v29 = vsel %vm665_vm6, %v1514_v43, %v1516_v3 }
 0x175   : > { %v3712_v50 = vpack.c.bf16 %v1517_v29, %v1515_v59 }
 0x176   : > { %2579 = vmatmul.msk.bf16.gmra.mxu2 %vm458_vm2, %v3683_v17  ;;  %v3700_v32 = vadd.f32 %v1565_v56, %v1489_v10  ;;  %v1153_v56 = vrot.slane %v3261_v20, 2  ;;  %v1154_v10 = vrot.slane %v3273_v23, 2 }
 0x178   : > { %v1570_v37 = vpop.f32.mrf.mxu0  ;;  %4261 = vst [vmem:[#allocation3_spill] sm:$0xff] %v3700_v32  ;;  %2596 = vmatmul.msk.bf16.gmra.mxu3 %vm458_vm2, %v3693_v21  ;;  %v1155_v62 = vsel %vm1077_vm7, %v1153_v56, %v1154_v10  ;;  %v1157_v43 = vsel %vm1077_vm7, %v1154_v10, %v1156_v28 }
 0x179   : > { %v1298_v0 = vpop.f32.mrf.mxu2 }
 0x17a   : > { %v1360_v55 = vadd.f32 %v1298_v0, %v1028_v8  ;;  %v1030_v8 = vadd.f32 %v1029_v12, %v3455_v54  ;;  %v3721_v0 = vpack.c.bf16 %v1157_v43, %v1155_v62 }
 0x17b   : > { %v1032_v46 = vpop.f32.mrf.mxu1  ;;  %v1428_v35 = vpop.f32.mrf.mxu3 }
 0x17c   : > { %v1490_v53 = vadd.f32 %v1428_v35, %v1360_v55  ;;  %v1033_v12 = vadd.f32 %v1032_v46, %v3473_v36 }
 0x17e   : > { %2563 = vmatmul.msk.bf16.gmra.mxu1 %vm458_vm2, %v3693_v21  ;;  %v3714_v57 = vadd.f32 %v1568_v44, %v1490_v53  ;;  %v3725_v44 = vpack.c.bf16 %v3687_v61, %v3685_v16 }
 0x180   : > { %v1573_v32 = vpop.f32.mrf.mxu0 }
 0x181   : > { %v1300_v13 = vpop.f32.mrf.mxu2 }
 0x182   : > { %v1361_v20 = vadd.f32 %v1300_v13, %v1030_v8 }
 0x183   : > { %v1034_v3 = vpop.f32.mrf.mxu1  ;;  %2614 = vmatmul.msk.bf16.gmra.mxu0 %vm458_vm2, %v3712_v50  ;;  %v1430_v23 = vpop.f32.mrf.mxu3 }
 0x184   : > { %v1491_v35 = vadd.f32 %v1430_v23, %v1361_v20 }
 0x186   : > { %2580 = vmatmul.msk.bf16.gmra.mxu2 %vm458_vm2, %v3721_v0  ;;  %v3729_v28 = vadd.f32 %v1570_v37, %v1491_v35  ;;  %v1035_v37 = vadd.f32 %v1034_v3, %v3490_v40 }
 0x188   : > { %v1575_v59 = vpop.f32.mrf.mxu0  ;;  %2597 = vmatmul.msk.bf16.gmra.mxu3 %vm458_vm2, %v3725_v44 }
 0x189   : > { %v1303_v29 = vpop.f32.mrf.mxu2 }
 0x18a   : > { %v1362_v55 = vadd.f32 %v1303_v29, %v1033_v12 }
 0x18b   : > { %v1037_v54 = vpop.f32.mrf.mxu1  ;;  %v1433_v56 = vpop.f32.mrf.mxu3 }
 0x18c   : > { %v1492_v10 = vadd.f32 %v1433_v56, %v1362_v55 }
 0x18e   : > { %2616 = vmatmul.msk.bf16.vlgmr.msra.gmra.mxu1 %vm458_vm2, %v3300_v18  ;;  %v3736_v62 = vadd.f32 %v1573_v32, %v1492_v10  ;;  %v1038_v32 = vadd.f32 %v1037_v54, %v3407_v47 }
 0x190   : > { %v1578_v53 = vpop.f32.mrf.mxu0 }
 0x191   : > { %v1305_v36 = vpop.f32.mrf.mxu2 }
 0x192   : > { %v1363_v46 = vadd.f32 %v1305_v36, %v1035_v37 }
 0x193   : > { %v1039_v43 = vpop.f32.mrf.mxu1  ;;  %2667 = vmatmul.msk.bf16.vlgmr.msra.gmra.mxu0 %vm458_vm2, %v3325_v45  ;;  %v1435_v8 = vpop.f32.mrf.mxu3 }
 0x194   : > { %v1493_v13 = vadd.f32 %v1435_v8, %v1363_v46 }
 0x196   : > { %2633 = vmatmul.msk.bf16.vlgmr.msra.gmra.mxu2 %vm458_vm2, %v3348_v14  ;;  %v3743_v18 = vadd.f32 %v1575_v59, %v1493_v13  ;;  %v1040_v14 = vadd.f32 %v1039_v43, %v3424_v7 }
 0x198   : > { %v1580_v20 = vpop.f32.mrf.mxu0  ;;  %2650 = vmatmul.msk.bf16.vlgmr.msra.gmra.mxu3 %vm458_vm2, %v3205_v39 }
 0x199   : > { %v1308_v40 = vpop.f32.mrf.mxu2 }
 0x19a   : > { %v1364_v3 = vadd.f32 %v1308_v40, %v1038_v32 }
 0x19b   : > { %v1042_v23 = vpop.f32.mrf.mxu1  ;;  %v1438_v35 = vpop.f32.mrf.mxu3 }
 0x19c   : > { %v1494_v12 = vadd.f32 %v1438_v35, %v1364_v3 }
 0x19e   : > { %2617 = vmatmul.msk.bf16.gmra.mxu1 %vm458_vm2, %v3325_v45  ;;  %v3750_v55 = vadd.f32 %v1578_v53, %v1494_v12  ;;  %v1043_v53 = vadd.f32 %v1042_v23, %v3442_v48 }
 0x1a0   : > { %v1583_v29 = vpop.f32.mrf.mxu0 }
 0x1a1   : > { %v1310_v47 = vpop.f32.mrf.mxu2 }
 0x1a2   : > { %v1365_v59 = vadd.f32 %v1310_v47, %v1040_v14 }
 0x1a3   : > { %v1044_v56 = vpop.f32.mrf.mxu1  ;;  %2668 = vmatmul.msk.bf16.gmra.mxu0 %vm458_vm2, %v3342_v9  ;;  %v1440_v54 = vpop.f32.mrf.mxu3 }
 0x1a4   : > { %v1495_v39 = vadd.f32 %v1440_v54, %v1365_v59 }
 0x1a6   : > { %2634 = vmatmul.msk.bf16.gmra.mxu2 %vm458_vm2, %v3360_v4  ;;  %v3757_v45 = vadd.f32 %v1580_v20, %v1495_v39  ;;  %v1045_v4 = vadd.f32 %v1044_v56, %v3459_v60 }
 0x1a8   : > { %v1585_v10 = vpop.f32.mrf.mxu0  ;;  %2651 = vmatmul.msk.bf16.gmra.mxu3 %vm458_vm2, %v3293_v22 }
 0x1a9   : > { %v1313_v7 = vpop.f32.mrf.mxu2 }
 0x1aa   : > { %v1366_v43 = vadd.f32 %v1313_v7, %v1043_v53 }
 0x1ab   : > { %v1047_v37 = vpop.f32.mrf.mxu1  ;;  %v1443_v36 = vpop.f32.mrf.mxu3 }
 0x1ac   : > { %v1496_v46 = vadd.f32 %v1443_v36, %v1366_v43  ;;  %v1048_v35 = vadd.f32 %v1047_v37, %v3477_v24 }
 0x1ae   : > { %2618 = vmatmul.msk.bf16.gmra.mxu1 %vm458_vm2, %v3342_v9  ;;  %v3764_v13 = vadd.f32 %v1583_v29, %v1496_v46 }
 0x1b0   : > { %v1588_v8 = vpop.f32.mrf.mxu0 }
 0x1b1   : > { %v1315_v48 = vpop.f32.mrf.mxu2 }
 0x1b2   : > { %v1367_v20 = vadd.f32 %v1315_v48, %v1045_v4  ;;  %v4262_v4 = vld [vmem:[#allocation30_spill] sm:$0xff] }
 0x1b3   : > { %v1049_v32 = vpop.f32.mrf.mxu1  ;;  %2669 = vmatmul.msk.bf16.gmra.mxu0 %vm458_vm2, %v3393_v26  ;;  %v1445_v23 = vpop.f32.mrf.mxu3 }
 0x1b4   : > { %v1497_v22 = vadd.f32 %v1445_v23, %v1367_v20 }
 0x1b6   : > { %2635 = vmatmul.msk.bf16.gmra.mxu2 %vm458_vm2, %v3374_v6  ;;  %v3771_v9 = vadd.f32 %v1585_v10, %v1497_v22  ;;  %v1050_v6 = vadd.f32 %v1049_v32, %v3494_v30  ;;  %v4263_v22 = vld [vmem:[#allocation28_spill] sm:$0xff] }
 0x1b8   : > { %v1590_v40 = vpop.f32.mrf.mxu0  ;;  %2652 = vmatmul.msk.bf16.gmra.mxu3 %vm458_vm2, %v2929_v63 }
 0x1b9   : > { %v1318_v60 = vpop.f32.mrf.mxu2 }
 0x1ba   : > { %v1368_v12 = vadd.f32 %v1318_v60, %v1048_v35  ;;  %v4265_v60 = vld [vmem:[#allocation15_spill] sm:$0xff] }
 0x1bb   : > { %v1052_v3 = vpop.f32.mrf.mxu1  ;;  %v1448_v29 = vpop.f32.mrf.mxu3 }
 0x1bc   : > { %v1498_v56 = vadd.f32 %v1448_v29, %v1368_v12  ;;  %v1053_v53 = vadd.f32 %v1052_v3, %v3510_v31  ;;  %v4264_v3 = vld [vmem:[#allocation26_spill] sm:$0xff] }
 0x1be   : > { %2619 = vmatmul.msk.bf16.gmra.mxu1 %vm458_vm2, %v3393_v26  ;;  %v3778_v47 = vadd.f32 %v1588_v8, %v1498_v56 }
 0x1c0   : > { %v1593_v14 = vpop.f32.mrf.mxu0 }
 0x1c1   : > { %v1320_v24 = vpop.f32.mrf.mxu2 }
 0x1c2   : > { %v1369_v54 = vadd.f32 %v1320_v24, %v1050_v6  ;;  %v4266_v24 = vld [vmem:[#allocation27_spill] sm:$0xff] }
 0x1c3   : > { %v1054_v59 = vpop.f32.mrf.mxu1  ;;  %2670 = vmatmul.msk.bf16.gmra.mxu0 %vm458_vm2, %v3426_v52  ;;  %v1450_v39 = vpop.f32.mrf.mxu3 }
 0x1c4   : > { %v1499_v63 = vadd.f32 %v1450_v39, %v1369_v54  ;;  %v4267_v39 = vld [vmem:[#allocation34_spill] sm:$0xff] }
 0x1c6   : > { %2636 = vmatmul.msk.bf16.gmra.mxu2 %vm458_vm2, %v3399_v42  ;;  %v3785_v26 = vadd.f32 %v1590_v40, %v1499_v63  ;;  %v1055_v42 = vadd.f32 %v1054_v59, %v3524_v58 }
 0x1c8   : > { %v1595_v10 = vpop.f32.mrf.mxu0  ;;  %2653 = vmatmul.msk.bf16.gmra.mxu3 %vm458_vm2, %v3087_v2 }
 0x1c9   : > { %v1323_v30 = vpop.f32.mrf.mxu2 }
 0x1ca   : > { %v1370_v7 = vadd.f32 %v1323_v30, %v1053_v53 }
 0x1cb   : > { %v1057_v37 = vpop.f32.mrf.mxu1  ;;  %v1453_v43 = vpop.f32.mrf.mxu3 }
 0x1cc   : > { %v1500_v36 = vadd.f32 %v1453_v43, %v1370_v7  ;;  %v1058_v35 = vadd.f32 %v1057_v37, %v4264_v3  ;;  %v4268_v7 = vld [vmem:[#allocation32_spill] sm:$0xff] }
 0x1ce   : > { %2620 = vmatmul.msk.bf16.gmra.mxu1 %vm458_vm2, %v3426_v52  ;;  %v3792_v8 = vadd.f32 %v1593_v14, %v1500_v36 }
 0x1d0   : > { %v1598_v46 = vpop.f32.mrf.mxu0 }
 0x1d1   : > { %v1325_v31 = vpop.f32.mrf.mxu2 }
 0x1d2   : > { %v1371_v48 = vadd.f32 %v1325_v31, %v1055_v42  ;;  %v4269_v42 = vld [vmem:[#allocation29_spill] sm:$0xff] }
 0x1d3   : > { %v1059_v32 = vpop.f32.mrf.mxu1  ;;  %2671 = vmatmul.msk.bf16.gmra.mxu0 %vm458_vm2, %v4262_v4  ;;  %v1455_v20 = vpop.f32.mrf.mxu3 }
 0x1d4   : > { %v1501_v2 = vadd.f32 %v1455_v20, %v1371_v48  ;;  %v1060_v54 = vadd.f32 %v1059_v32, %v4266_v24  ;;  %v4273_v24 = vld [vmem:[#allocation36_spill] sm:$0xff] }
 0x1d6   : > { %2637 = vmatmul.msk.bf16.gmra.mxu2 %vm458_vm2, %v4263_v22  ;;  %v3799_v52 = vadd.f32 %v1595_v10, %v1501_v2 }
 0x1d8   : > { %v1600_v23 = vpop.f32.mrf.mxu0  ;;  %2654 = vmatmul.msk.bf16.gmra.mxu3 %vm458_vm2, %v4265_v60  ;;  %v4272_v60 = vld [vmem:[#allocation38_spill] sm:$0xff] }
 0x1d9   : > { %v1328_v58 = vpop.f32.mrf.mxu2 }
 0x1da   : > { %v1372_v12 = vadd.f32 %v1328_v58, %v1058_v35  ;;  %v4271_v35 = vld [vmem:[#allocation31_spill] sm:$0xff] }
 0x1db   : > { %v1062_v40 = vpop.f32.mrf.mxu1  ;;  %v1458_v29 = vpop.f32.mrf.mxu3 }
 0x1dc   : > { %v1502_v56 = vadd.f32 %v1458_v29, %v1372_v12 }
 0x1de   : > { %2621 = vmatmul.msk.bf16.gmra.mxu1 %vm458_vm2, %v4262_v4  ;;  %v3806_v59 = vadd.f32 %v1598_v46, %v1502_v56  ;;  %v1063_v46 = vadd.f32 %v1062_v40, %v4269_v42  ;;  %v4270_v4 = vld [vmem:[#allocation21_spill] sm:$0xff] }
 0x1e0   : > { %v1603_v14 = vpop.f32.mrf.mxu0 }
 0x1e1   : > { %v1330_v63 = vpop.f32.mrf.mxu2 }
 0x1e2   : > { %v1373_v10 = vadd.f32 %v1330_v63, %v1060_v54  ;;  %v4274_v63 = vld [vmem:[#allocation33_spill] sm:$0xff] }
 0x1e3   : > { %v1064_v6 = vpop.f32.mrf.mxu1  ;;  %2672 = vmatmul.msk.bf16.gmra.mxu0 %vm458_vm2, %v4267_v39  ;;  %v1460_v37 = vpop.f32.mrf.mxu3 }
 0x1e4   : > { %v1503_v53 = vadd.f32 %v1460_v37, %v1373_v10  ;;  %v4275_v10 = vld [vmem:[#allocation8_spill] sm:$0xff] }
 0x1e6   : > { %2638 = vmatmul.msk.bf16.gmra.mxu2 %vm458_vm2, %v4268_v7  ;;  %v3813_v43 = vadd.f32 %v1600_v23, %v1503_v53  ;;  %v1065_v23 = vadd.f32 %v1064_v6, %v4271_v35 }
 0x1e8   : > { %v1605_v30 = vpop.f32.mrf.mxu0  ;;  %2655 = vmatmul.msk.bf16.gmra.mxu3 %vm458_vm2, %v4270_v4 }
 0x1e9   : > { %v1333_v32 = vpop.f32.mrf.mxu2 }
 0x1ea   : > { %v1374_v31 = vadd.f32 %v1333_v32, %v1063_v46  ;;  %v4276_v32 = vld [vmem:[#allocation35_spill] sm:$0xff] }
 0x1eb   : > { %v1067_v36 = vpop.f32.mrf.mxu1  ;;  %v1463_v48 = vpop.f32.mrf.mxu3 }
 0x1ec   : > { %v1504_v20 = vadd.f32 %v1463_v48, %v1374_v31 }
 0x1ee   : > { %2622 = vmatmul.msk.bf16.gmra.mxu1 %vm458_vm2, %v4267_v39  ;;  %v3820_v22 = vadd.f32 %v1603_v14, %v1504_v20  ;;  %v1068_v14 = vadd.f32 %v1067_v36, %v4274_v63 }
 0x1f0   : > { %v1608_v2 = vpop.f32.mrf.mxu0 }
 0x1f1   : > { %v1335_v40 = vpop.f32.mrf.mxu2 }
 0x1f2   : > { %v1375_v58 = vadd.f32 %v1335_v40, %v1065_v23  ;;  %v4277_v23 = vld [vmem:[#allocation40_spill] sm:$0xff] }
 0x1f3   : > { %v1069_v3 = vpop.f32.mrf.mxu1  ;;  %2673 = vmatmul.msk.bf16.gmra.mxu0 %vm458_vm2, %v4272_v60  ;;  %v1465_v12 = vpop.f32.mrf.mxu3 }
 0x1f4   : > { %v1505_v29 = vadd.f32 %v1465_v12, %v1375_v58  ;;  %v4278_v58 = vld [vmem:[#allocation37_spill] sm:$0xff] }
 0x1f5   : > { %v4279_v12 = vld [vmem:[#allocation13_spill] sm:$0xff] }
 0x1f6   : > { %2639 = vmatmul.msk.bf16.gmra.mxu2 %vm458_vm2, %v4273_v24  ;;  %v3827_v54 = vadd.f32 %v1605_v30, %v1505_v29  ;;  %v1070_v30 = vadd.f32 %v1069_v3, %v4276_v32 }
 0x1f8   : > { %v1610_v56 = vpop.f32.mrf.mxu0  ;;  %2656 = vmatmul.msk.bf16.gmra.mxu3 %vm458_vm2, %v4275_v10 }
 0x1f9   : > { %v1338_v6 = vpop.f32.mrf.mxu2 }
 0x1fa   : > { %v1376_v37 = vadd.f32 %v1338_v6, %v1068_v14 }
 0x1fb   : > { %v1072_v39 = vpop.f32.mrf.mxu1  ;;  %v1468_v53 = vpop.f32.mrf.mxu3 }
 0x1fc   : > { %v1506_v7 = vadd.f32 %v1468_v53, %v1376_v37  ;;  %v4280_v37 = vld [vmem:[#allocation39_spill] sm:$0xff] }
 0x1fe   : > { %2623 = vmatmul.msk.bf16.gmra.mxu1 %vm458_vm2, %v4272_v60  ;;  %v3834_v46 = vadd.f32 %v1608_v2, %v1506_v7  ;;  %v1073_v2 = vadd.f32 %v1072_v39, %v4278_v58 }
 0x200   : > { %v1613_v42 = vpop.f32.mrf.mxu0 }
 0x201   : > { %v1340_v36 = vpop.f32.mrf.mxu2 }
 0x202   : > { %v1377_v31 = vadd.f32 %v1340_v36, %v1070_v30 }
 0x203   : > { %v1074_v4 = vpop.f32.mrf.mxu1  ;;  %2674 = vmatmul.msk.bf16.gmra.mxu0 %vm458_vm2, %v3552_v11  ;;  %v1470_v48 = vpop.f32.mrf.mxu3 }
 0x204   : > { %v1507_v20 = vadd.f32 %v1470_v48, %v1377_v31 }
 0x206   : > { %2640 = vmatmul.msk.bf16.gmra.mxu2 %vm458_vm2, %v4277_v23  ;;  %v3841_v60 = vadd.f32 %v1610_v56, %v1507_v20  ;;  %v1075_v56 = vadd.f32 %v1074_v4, %v4280_v37  ;;  %v3865_v23 = vld [vmem:[%s4141_s5] ss:$0 sm:$0xff] }
 0x208   : > { %v1615_v35 = vpop.f32.mrf.mxu0  ;;  %2657 = vmatmul.msk.bf16.gmra.mxu3 %vm458_vm2, %v4279_v12 }
 0x209   : > { %v1343_v3 = vpop.f32.mrf.mxu2 }
 0x20a   : > { %v1378_v29 = vadd.f32 %v1343_v3, %v1073_v2 }
 0x20b   : > { %v1675_v40 = vpop.f32.mrf.mxu1  ;;  %v1473_v24 = vpop.f32.mrf.mxu3 }
 0x20c   : > { %v1508_v63 = vadd.f32 %v1473_v24, %v1378_v29  ;;  %v4281_v24 = vld [vmem:[#allocation22_spill] sm:$0xff] }
 0x20e   : > { %2624 = vmatmul.msk.bf16.gmra.mxu1 %vm458_vm2, %v3552_v11  ;;  %v3848_v10 = vadd.f32 %v1613_v42, %v1508_v63  ;;  %v1755_v42 = vadd.f32 %v1675_v40, %v3545_v38 }
 0x210   : > { %v2082_v14 = vpop.f32.mrf.mxu0 }
 0x211   : > { %v1345_v39 = vpop.f32.mrf.mxu2 }
 0x212   : > { %v1379_v53 = vadd.f32 %v1345_v39, %v1075_v56  ;;  %v4283_v56 = vld [vmem:[#allocation24_spill] sm:$0xff] }
 0x213   : > { %v1677_v6 = vpop.f32.mrf.mxu1  ;;  %2675 = vmatmul.msk.bf16.gmra.mxu0 %vm458_vm2, %v3577_v19  ;;  %v1475_v7 = vpop.f32.mrf.mxu3 }
 0x214   : > { %v1509_v32 = vadd.f32 %v1475_v7, %v1379_v53 }
 0x216   : > { %2641 = vmatmul.msk.bf16.gmra.mxu2 %vm458_vm2, %v3556_v41  ;;  %v3855_v11 = vadd.f32 %v1615_v35, %v1509_v32 }
 0x218   : > { %v2084_v30 = vpop.f32.mrf.mxu0  ;;  %2658 = vmatmul.msk.bf16.gmra.mxu3 %vm458_vm2, %v3234_v49 }
 0x219   : > { %v1805_v4 = vpop.f32.mrf.mxu2 }
 0x21a   : > { %v1885_v31 = vadd.f32 %v1805_v4, %v1755_v42 }
 0x21b   : > { %v1680_v36 = vpop.f32.mrf.mxu1  ;;  %v1945_v48 = vpop.f32.mrf.mxu3 }
 0x21c   : > { %v2025_v20 = vadd.f32 %v1945_v48, %v1885_v31 }
 0x21e   : > { %2625 = vmatmul.msk.bf16.gmra.mxu1 %vm458_vm2, %v3577_v19  ;;  %v2162_v35 = vadd.f32 %v2082_v14, %v2025_v20  ;;  %v1756_v19 = vadd.f32 %v1677_v6, %v3560_v5  ;;  %v4282_v5 = vld [vmem:[#allocation16_spill] sm:$0xff] }
 0x21f   : > { %v1757_v6 = vadd.f32 %v1680_v36, %v4282_v5 }
 0x220   : > { %v2087_v41 = vpop.f32.mrf.mxu0  ;;  %v2198_v38 = vadd.f32 %v3865_v23, %v2162_v35 }
 0x221   : > { %v1807_v40 = vpop.f32.mrf.mxu2 }
 0x222   : > { %2230 = vst.msk [vmem:[%s3872_s17] sm:$0xff] %vm458_vm2, %v2198_v38  ;;  %v1886_v58 = vadd.f32 %v1807_v40, %v1756_v19  ;;  %v2333_v14 = vmul.f32 %v2198_v38, %v2198_v38  ;;  %v2262_v53 = vsel %vm458_vm2, %v2198_v38, 0.0 }
 0x223   : > { %v1682_v49 = vpop.f32.mrf.mxu1  ;;  %2676 = vmatmul.msk.bf16.gmra.mxu0 %vm458_vm2, %v3602_v51  ;;  %v1947_v2 = vpop.f32.mrf.mxu3 }
 0x224   : > { %v2026_v12 = vadd.f32 %v1947_v2, %v1886_v58  ;;  %v2365_v36 = vsel %vm458_vm2, %v2333_v14, 0.0  ;;  %v4284_v58 = vld [vmem:[#allocation23_spill] sm:$0xff] }
 0x225   : > { %v1758_v2 = vadd.f32 %v1682_v49, %v4284_v58  ;;  %v4286_v49 = vld [vmem:[#allocation5_spill] sm:$0xff] }
 0x226   : > { %v2163_v29 = vadd.f32 %v2084_v30, %v2026_v12  ;;  %2642 = vmatmul.msk.bf16.gmra.mxu2 %vm458_vm2, %v4281_v24  ;;  %v4285_v12 = vld [vmem:[#allocation42_spill] sm:$0xff] }
 0x228   : > { %v2089_v3 = vpop.f32.mrf.mxu0  ;;  %v2199_v37 = vadd.f32 %v3865_v23, %v2163_v29  ;;  %2659 = vmatmul.msk.bf16.gmra.mxu3 %vm458_vm2, %v4283_v56 }
 0x229   : > { %v1810_v39 = vpop.f32.mrf.mxu2 }
 0x22a   : > { %2231 = vst.msk [vmem:[%s3872_s17 + $0x8] sm:$0xff] %vm458_vm2, %v2199_v37  ;;  %v2263_v7 = vsel %vm458_vm2, %v2199_v37, 0.0  ;;  %v2334_v32 = vmul.f32 %v2199_v37, %v2199_v37  ;;  %v1887_v30 = vadd.f32 %v1810_v39, %v1757_v6 }
 0x22b   : > { %v1685_v63 = vpop.f32.mrf.mxu1  ;;  %v2264_v42 = vadd.f32 %v2263_v7, %v2262_v53  ;;  %v1950_v4 = vpop.f32.mrf.mxu3 }
 0x22c   : > { %v2366_v31 = vsel %vm458_vm2, %v2334_v32, 0.0  ;;  %v2027_v48 = vadd.f32 %v1950_v4, %v1887_v30  ;;  %v4287_v30 = vld [vmem:[#allocation41_spill] sm:$0xff] }
 0x22d   : > { %v2367_v20 = vadd.f32 %v2366_v31, %v2365_v36  ;;  %v1759_v4 = vadd.f32 %v1685_v63, %v4287_v30  ;;  %v4288_v36 = vld [vmem:[#allocation9_spill] sm:$0xff] }
 0x22e   : > { %2626 = vmatmul.msk.bf16.gmra.mxu1 %vm458_vm2, %v3602_v51  ;;  %v2164_v38 = vadd.f32 %v2087_v41, %v2027_v48 }
 0x230   : > { %v2092_v35 = vpop.f32.mrf.mxu0  ;;  %v2200_v40 = vadd.f32 %v3865_v23, %v2164_v38 }
 0x231   : > { %v1812_v29 = vpop.f32.mrf.mxu2 }
 0x232   : > { %2232 = vst.msk [vmem:[%s3872_s17 + $0x10] sm:$0xff] %vm458_vm2, %v2200_v40  ;;  %v2265_v51 = vsel %vm458_vm2, %v2200_v40, 0.0  ;;  %v2335_v24 = vmul.f32 %v2200_v40, %v2200_v40  ;;  %v1888_v14 = vadd.f32 %v1812_v29, %v1758_v2 }
 0x233   : > { %v1687_v19 = vpop.f32.mrf.mxu1  ;;  %2677 = vmatmul.msk.bf16.gmra.mxu0 %vm458_vm2, %v4285_v12  ;;  %v2266_v37 = vadd.f32 %v2265_v51, %v2264_v42  ;;  %v1952_v5 = vpop.f32.mrf.mxu3 }
 0x234   : > { %v2368_v41 = vsel %vm458_vm2, %v2335_v24, 0.0  ;;  %v2028_v6 = vadd.f32 %v1952_v5, %v1888_v14  ;;  %v4289_v14 = vld [vmem:[#allocation6_spill] sm:$0xff] }
 0x235   : > { %v2369_v56 = vadd.f32 %v2368_v41, %v2367_v20  ;;  %v1760_v5 = vadd.f32 %v1687_v19, %v4289_v14 }
 0x236   : > { %v2165_v53 = vadd.f32 %v2089_v3, %v2028_v6  ;;  %2643 = vmatmul.msk.bf16.gmra.mxu2 %vm458_vm2, %v4286_v49 }
 0x238   : > { %v2094_v39 = vpop.f32.mrf.mxu0  ;;  %v2201_v32 = vadd.f32 %v3865_v23, %v2165_v53  ;;  %2660 = vmatmul.msk.bf16.gmra.mxu3 %vm458_vm2, %v4288_v36 }
 0x239   : > { %v1815_v31 = vpop.f32.mrf.mxu2 }
 0x23a   : > { %2233 = vst.msk [vmem:[%s3872_s17 + $0x18] sm:$0xff] %vm458_vm2, %v2201_v32  ;;  %v2267_v42 = vsel %vm458_vm2, %v2201_v32, 0.0  ;;  %v2336_v48 = vmul.f32 %v2201_v32, %v2201_v32  ;;  %v1889_v20 = vadd.f32 %v1815_v31, %v1759_v4  ;;  %v4290_v31 = vld [vmem:[#allocation7_spill] sm:$0xff] }
 0x23b   : > { %v1690_v7 = vpop.f32.mrf.mxu1  ;;  %v2268_v3 = vadd.f32 %v2267_v42, %v2266_v37  ;;  %v1955_v38 = vpop.f32.mrf.mxu3 }
 0x23c   : > { %v2370_v40 = vsel %vm458_vm2, %v2336_v48, 0.0  ;;  %v2029_v58 = vadd.f32 %v1955_v38, %v1889_v20  ;;  %v1761_v42 = vadd.f32 %v1690_v7, %v4290_v31  ;;  %v4291_v48 = vld [vmem:[#allocation14_spill] sm:$0xff] }
 0x23d   : > { %v2371_v63 = vadd.f32 %v2370_v40, %v2369_v56 }
 0x23e   : > { %2627 = vmatmul.msk.bf16.gmra.mxu1 %vm458_vm2, %v4285_v12  ;;  %v2166_v29 = vadd.f32 %v2092_v35, %v2029_v58 }
 0x240   : > { %v2097_v2 = vpop.f32.mrf.mxu0  ;;  %v2202_v24 = vadd.f32 %v3865_v23, %v2166_v29 }
 0x241   : > { %v1817_v41 = vpop.f32.mrf.mxu2 }
 0x242   : > { %2234 = vst.msk [vmem:[%s3872_s17 + $0x20] sm:$0xff] %vm458_vm2, %v2202_v24  ;;  %v2269_v12 = vsel %vm458_vm2, %v2202_v24, 0.0  ;;  %v2337_v37 = vmul.f32 %v2202_v24, %v2202_v24  ;;  %v1890_v6 = vadd.f32 %v1817_v41, %v1760_v5 }
 0x243   : > { %v1692_v51 = vpop.f32.mrf.mxu1  ;;  %2678 = vmatmul.msk.bf16.gmra.mxu0 %vm458_vm2, %v3658_v1  ;;  %v2270_v53 = vadd.f32 %v2269_v12, %v2268_v3  ;;  %v1957_v56 = vpop.f32.mrf.mxu3 }
 0x244   : > { %v2372_v35 = vsel %vm458_vm2, %v2337_v37, 0.0  ;;  %v2030_v49 = vadd.f32 %v1957_v56, %v1890_v6  ;;  %v1762_v41 = vadd.f32 %v1692_v51, %v3635_v33  ;;  %v1651_v56 = vrot.slane %v3687_v61, 2 }
 0x245   : > { %v2373_v32 = vadd.f32 %v2372_v35, %v2371_v63 }
 0x246   : > { %v2167_v4 = vadd.f32 %v2094_v39, %v2030_v49  ;;  %2644 = vmatmul.msk.bf16.gmra.mxu2 %vm458_vm2, %v3629_v34 }
 0x248   : > { %v2099_v30 = vpop.f32.mrf.mxu0  ;;  %v2203_v36 = vadd.f32 %v3865_v23, %v2167_v4  ;;  %2661 = vmatmul.msk.bf16.gmra.mxu3 %vm458_vm2, %v4291_v48  ;;  %v1653_v4 = vrot.slane %v3689_v27, 2 }
 0x249   : > { %v1820_v20 = vpop.f32.mrf.mxu2 }
 0x24a   : > { %2235 = vst.msk [vmem:[%s3872_s17 + $0x28] sm:$0xff] %vm458_vm2, %v2203_v36  ;;  %v2271_v3 = vsel %vm458_vm2, %v2203_v36, 0.0  ;;  %v2338_v38 = vmul.f32 %v2203_v36, %v2203_v36  ;;  %v1891_v40 = vadd.f32 %v1820_v20, %v1761_v42  ;;  %v4292_v20 = vld [vmem:[#allocation20_spill] sm:$0xff] }
 0x24b   : > { %v1695_v19 = vpop.f32.mrf.mxu1  ;;  %v2272_v34 = vadd.f32 %v2271_v3, %v2270_v53  ;;  %v1960_v39 = vpop.f32.mrf.mxu3  ;;  %v1650_v53 = vrot.slane %v3685_v16, 2  ;;  %v1654_v16 = vsel %vm1077_vm7, %v1651_v56, %v1653_v4 }
 0x24c   : > { %v2374_v58 = vsel %vm458_vm2, %v2338_v38, 0.0  ;;  %v2031_v63 = vadd.f32 %v1960_v39, %v1891_v40  ;;  %v1763_v48 = vadd.f32 %v1695_v19, %v3651_v25 }
 0x24d   : > { %v2375_v7 = vadd.f32 %v2374_v58, %v2373_v32  ;;  %v1652_v42 = vsel %vm1077_vm7, %v1650_v53, %v1651_v56 }
 0x24e   : > { %2628 = vmatmul.msk.bf16.gmra.mxu1 %vm458_vm2, %v3658_v1  ;;  %v2168_v24 = vadd.f32 %v2097_v2, %v2031_v63  ;;  %v3953_v3 = vpack.c.bf16 %v1654_v16, %v1652_v42 }
 0x250   : > { %v2102_v29 = vpop.f32.mrf.mxu0  ;;  %v2204_v5 = vadd.f32 %v3865_v23, %v2168_v24 }
 0x251   : > { %v1822_v12 = vpop.f32.mrf.mxu2 }
 0x252   : > { %2236 = vst.msk [vmem:[%s3872_s17 + $0x30] sm:$0xff] %vm458_vm2, %v2204_v5  ;;  %v2273_v1 = vsel %vm458_vm2, %v2204_v5, 0.0  ;;  %v2339_v37 = vmul.f32 %v2204_v5, %v2204_v5  ;;  %v1892_v6 = vadd.f32 %v1822_v12, %v1762_v41  ;;  %v4293_v5 = vld [vmem:[#allocation10_spill] sm:$0xff] }
 0x253   : > { %v1697_v14 = vpop.f32.mrf.mxu1  ;;  %2679 = vmatmul.msk.bf16.gmra.mxu0 %vm458_vm2, %v3683_v17  ;;  %v2274_v2 = vadd.f32 %v2273_v1, %v2272_v34  ;;  %v1962_v35 = vpop.f32.mrf.mxu3 }
 0x254   : > { %v2376_v49 = vsel %vm458_vm2, %v2339_v37, 0.0  ;;  %v2032_v33 = vadd.f32 %v1962_v35, %v1892_v6  ;;  %v1764_v41 = vadd.f32 %v1697_v14, %v4293_v5 }
 0x255   : > { %v2377_v51 = vadd.f32 %v2376_v49, %v2375_v7 }
 0x256   : > { %v2169_v36 = vadd.f32 %v2099_v30, %v2032_v33  ;;  %2645 = vmatmul.msk.bf16.gmra.mxu2 %vm458_vm2, %v3662_v15 }
 0x258   : > { %v2104_v32 = vpop.f32.mrf.mxu0  ;;  %v2205_v61 = vadd.f32 %v3865_v23, %v2169_v36  ;;  %2662 = vmatmul.msk.bf16.gmra.mxu3 %vm458_vm2, %v4292_v20  ;;  %v4295_v36 = vld [vmem:[#allocation25_spill] sm:$0xff] }
 0x259   : > { %v1825_v38 = vpop.f32.mrf.mxu2 }
 0x25a   : > { %2237 = vst.msk [vmem:[%s3872_s17 + $0x38] sm:$0xff] %vm458_vm2, %v2205_v61  ;;  %v2275_v27 = vsel %vm458_vm2, %v2205_v61, 0.0  ;;  %v2340_v15 = vmul.f32 %v2205_v61, %v2205_v61  ;;  %v1893_v30 = vadd.f32 %v1825_v38, %v1763_v48 }
 0x25b   : > { %v1700_v31 = vpop.f32.mrf.mxu1  ;;  %v2276_v40 = vadd.f32 %v2275_v27, %v2274_v2  ;;  %v1965_v34 = vpop.f32.mrf.mxu3 }
 0x25c   : > { %v2378_v25 = vsel %vm458_vm2, %v2340_v15, 0.0  ;;  %v2033_v19 = vadd.f32 %v1965_v34, %v1893_v30  ;;  %v4296_v34 = vld [vmem:[#allocation3_spill] sm:$0xff] }
 0x25d   : > { %v2379_v39 = vadd.f32 %v2378_v25, %v2377_v51  ;;  %v4294_v51 = vld [vmem:[#allocation11_spill] sm:$0xff] }
 0x25e   : > { %2629 = vmatmul.msk.bf16.gmra.mxu1 %vm458_vm2, %v3683_v17  ;;  %v2170_v63 = vadd.f32 %v2102_v29, %v2033_v19  ;;  %v1765_v4 = vadd.f32 %v1700_v31, %v4294_v51 }
 0x260   : > { %v2107_v58 = vpop.f32.mrf.mxu0  ;;  %v2206_v24 = vadd.f32 %v3865_v23, %v2170_v63 }
 0x261   : > { %v1827_v12 = vpop.f32.mrf.mxu2 }
 0x262   : > { %2238 = vst.msk [vmem:[%s3872_s17 + $0x40] sm:$0xff] %vm458_vm2, %v2206_v24  ;;  %v2277_v17 = vsel %vm458_vm2, %v2206_v24, 0.0  ;;  %v2341_v1 = vmul.f32 %v2206_v24, %v2206_v24  ;;  %v1894_v37 = vadd.f32 %v1827_v12, %v1764_v41  ;;  %v597_v12 = vld [vmem:[#allocation2 + $0x198] sm:$0xff] }
 0x263   : > { %v1702_v7 = vpop.f32.mrf.mxu1  ;;  %2680 = vmatmul.msk.bf16.gmra.mxu0 %vm458_vm2, %v3721_v0  ;;  %v2278_v6 = vadd.f32 %v2277_v17, %v2276_v40  ;;  %v1967_v53 = vpop.f32.mrf.mxu3  ;;  %v598_v17 = vld [vmem:[#allocation2 + $0x1a0] sm:$0xff] }
 0x264   : > { %v2380_v29 = vsel %vm458_vm2, %v2341_v1, 0.0  ;;  %v2034_v56 = vadd.f32 %v1967_v53, %v1894_v37  ;;  %v1766_v25 = vadd.f32 %v1702_v7, %v4296_v34  ;;  %v599_v1 = vld [vmem:[#allocation2 + $0x1a8] sm:$0x3]  ;;  %v2058_v53 = vrot.slane %v598_v17, 2 }
 0x265   : > { %v2381_v2 = vadd.f32 %v2380_v29, %v2379_v39  ;;  %v2060_v29 = vrot.slane %v599_v1, 2 }
 0x266   : > { %v2171_v49 = vadd.f32 %v2104_v32, %v2034_v56  ;;  %2646 = vmatmul.msk.bf16.gmra.mxu2 %vm458_vm2, %v3693_v21 }
 0x268   : > { %v2109_v35 = vpop.f32.mrf.mxu0  ;;  %v2207_v33 = vadd.f32 %v3865_v23, %v2171_v49  ;;  %2663 = vmatmul.msk.bf16.gmra.mxu3 %vm458_vm2, %v4295_v36  ;;  %v2061_v36 = vsel %vm1077_vm7, %v2058_v53, %v2060_v29 }
 0x269   : > { %v1830_v42 = vpop.f32.mrf.mxu2 }
 0x26a   : > { %2239 = vst.msk [vmem:[%s3872_s17 + $0x48] sm:$0xff] %vm458_vm2, %v2207_v33  ;;  %v2279_v16 = vsel %vm458_vm2, %v2207_v33, 0.0  ;;  %v2342_v61 = vmul.f32 %v2207_v33, %v2207_v33  ;;  %v1895_v48 = vadd.f32 %v1830_v42, %v1765_v4 }
 0x26b   : > { %v1705_v14 = vpop.f32.mrf.mxu1  ;;  %v2280_v21 = vadd.f32 %v2279_v16, %v2278_v6  ;;  %v1970_v32 = vpop.f32.mrf.mxu3  ;;  %v2057_v6 = vrot.slane %v597_v12, 2 }
 0x26c   : > { %v2382_v20 = vsel %vm458_vm2, %v2342_v61, 0.0  ;;  %v2035_v38 = vadd.f32 %v1970_v32, %v1895_v48  ;;  %v1767_v33 = vadd.f32 %v1705_v14, %v3714_v57  ;;  %v1920_v32 = vrot.slane %v597_v12, 1 }
 0x26d   : > { %v2383_v31 = vadd.f32 %v2382_v20, %v2381_v2  ;;  %v2059_v4 = vsel %vm1077_vm7, %v2057_v6, %v2058_v53  ;;  %v1921_v20 = vrot.slane %v598_v17, 1 }
 0x26e   : > { %2630 = vmatmul.msk.bf16.gmra.mxu1 %vm458_vm2, %v3721_v0  ;;  %v2172_v15 = vadd.f32 %v2107_v58, %v2035_v38  ;;  %v2064_v14 = vpack.c.bf16 %v2061_v36, %v2059_v4  ;;  %v1923_v38 = vrot.slane %v599_v1, 1 }
 0x270   : > { %v2112_v27 = vpop.f32.mrf.mxu0  ;;  %v2208_v40 = vadd.f32 %v3865_v23, %v2172_v15 }
 0x271   : > { %v1832_v19 = vpop.f32.mrf.mxu2 }
 0x272   : > { %2240 = vst.msk [vmem:[%s3872_s17 + $0x50] sm:$0xff] %vm458_vm2, %v2208_v40  ;;  %v2281_v0 = vsel %vm458_vm2, %v2208_v40, 0.0  ;;  %v2343_v39 = vmul.f32 %v2208_v40, %v2208_v40  ;;  %v1896_v63 = vadd.f32 %v1832_v19, %v1766_v25  ;;  %v1922_v25 = vsel %vm665_vm6, %v1920_v32, %v1921_v20 }
 0x273   : > { %v1707_v30 = vpop.f32.mrf.mxu1  ;;  %2681 = vmatmul.msk.bf16.gmra.mxu0 %vm458_vm2, %v3953_v3  ;;  %v2282_v24 = vadd.f32 %v2281_v0, %v2280_v21  ;;  %v1972_v5 = vpop.f32.mrf.mxu3  ;;  %v1924_v19 = vsel %vm665_vm6, %v1921_v20, %v1923_v38 }
 0x274   : > { %v2384_v41 = vsel %vm458_vm2, %v2343_v39, 0.0  ;;  %v2036_v58 = vadd.f32 %v1972_v5, %v1896_v63  ;;  %v1768_v34 = vadd.f32 %v1707_v30, %v3729_v28  ;;  %v1927_v30 = vpack.c.bf16 %v1924_v19, %v1922_v25 }
 0x275   : > { %v2385_v7 = vadd.f32 %v2384_v41, %v2383_v31 }
 0x276   : > { %v2173_v56 = vadd.f32 %v2109_v35, %v2036_v58  ;;  %2647 = vmatmul.msk.bf16.gmra.mxu2 %vm458_vm2, %v3725_v44 }
 0x278   : > { %v2114_v37 = vpop.f32.mrf.mxu0  ;;  %v2209_v49 = vadd.f32 %v3865_v23, %v2173_v56  ;;  %2664 = vmatmul.msk.bf16.gmra.mxu3 %vm458_vm2, %v3712_v50 }
 0x279   : > { %v1835_v51 = vpop.f32.mrf.mxu2 }
 0x27a   : > { %2241 = vst.msk [vmem:[%s3872_s17 + $0x58] sm:$0xff] %vm458_vm2, %v2209_v49  ;;  %v2283_v35 = vsel %vm458_vm2, %v2209_v49, 0.0  ;;  %v2344_v42 = vmul.f32 %v2209_v49, %v2209_v49  ;;  %v1897_v16 = vadd.f32 %v1835_v51, %v1767_v33 }
 0x27b   : > { %v1710_v2 = vpop.f32.mrf.mxu1  ;;  %v2284_v44 = vadd.f32 %v2283_v35, %v2282_v24  ;;  %v1975_v61 = vpop.f32.mrf.mxu3 }
 0x27c   : > { %v2386_v57 = vsel %vm458_vm2, %v2344_v42, 0.0  ;;  %v2037_v50 = vadd.f32 %v1975_v61, %v1897_v16  ;;  %v1769_v29 = vadd.f32 %v1710_v2, %v3736_v62 }
 0x27d   : > { %v2387_v48 = vadd.f32 %v2386_v57, %v2385_v7 }
 0x27e   : > { %2631 = vmatmul.msk.bf16.gmra.mxu1 %vm458_vm2, %v3953_v3  ;;  %v2174_v31 = vadd.f32 %v2112_v27, %v2037_v50  ;;  %v1787_v27 = vpack.c.bf16 %v598_v17, %v597_v12 }
 0x280   : > { %v2117_v21 = vpop.f32.mrf.mxu0  ;;  %v2210_v40 = vadd.f32 %v3865_v23, %v2174_v31 }
 0x281   : > { %v1837_v3 = vpop.f32.mrf.mxu2 }
 0x282   : > { %2242 = vst.msk [vmem:[%s3872_s17 + $0x60] sm:$0xff] %vm458_vm2, %v2210_v40  ;;  %v2285_v0 = vsel %vm458_vm2, %v2210_v40, 0.0  ;;  %v2345_v39 = vmul.f32 %v2210_v40, %v2210_v40  ;;  %v1898_v63 = vadd.f32 %v1837_v3, %v1768_v34 }
 0x283   : > { %v1712_v15 = vpop.f32.mrf.mxu1  ;;  %2682 = vmatmul.msk.bf16.gmra.mxu0 %vm458_vm2, %v2064_v14  ;;  %v2286_v24 = vadd.f32 %v2285_v0, %v2284_v44  ;;  %v1977_v5 = vpop.f32.mrf.mxu3 }
 0x284   : > { %v2388_v41 = vsel %vm458_vm2, %v2345_v39, 0.0  ;;  %v2038_v28 = vadd.f32 %v1977_v5, %v1898_v63  ;;  %v1770_v2 = vadd.f32 %v1712_v15, %v3743_v18 }
 0x285   : > { %v2389_v58 = vadd.f32 %v2388_v41, %v2387_v48 }
 0x286   : > { %v2175_v7 = vadd.f32 %v2114_v37, %v2038_v28  ;;  %2648 = vmatmul.msk.bf16.gmra.mxu2 %vm458_vm2, %v1787_v27 }
 0x288   : > { %v2119_v1 = vpop.f32.mrf.mxu0  ;;  %v2211_v53 = vadd.f32 %v3865_v23, %v2175_v7  ;;  %2665 = vmatmul.msk.bf16.gmra.mxu3 %vm458_vm2, %v1927_v30 }
 0x289   : > { %v1840_v56 = vpop.f32.mrf.mxu2 }
 0x28a   : > { %2243 = vst.msk [vmem:[%s3872_s17 + $0x68] sm:$0xff] %vm458_vm2, %v2211_v53  ;;  %v2287_v12 = vsel %vm458_vm2, %v2211_v53, 0.0  ;;  %v2346_v17 = vmul.f32 %v2211_v53, %v2211_v53  ;;  %v1899_v49 = vadd.f32 %v1840_v56, %v1769_v29 }
 0x28b   : > { %v1715_v6 = vpop.f32.mrf.mxu1  ;;  %v2288_v33 = vadd.f32 %v2287_v12, %v2286_v24  ;;  %v1980_v51 = vpop.f32.mrf.mxu3 }
 0x28c   : > { %v2390_v37 = vsel %vm458_vm2, %v2346_v17, 0.0  ;;  %v2039_v4 = vadd.f32 %v1980_v51, %v1899_v49  ;;  %v1771_v18 = vadd.f32 %v1715_v6, %v3750_v55 }
 0x28d   : > { %v2391_v36 = vadd.f32 %v2390_v37, %v2389_v58 }
 0x28e   : > { %v2176_v42 = vadd.f32 %v2117_v21, %v2039_v4 }
 0x290   : > { %v2122_v35 = vpop.f32.mrf.mxu0  ;;  %v2212_v62 = vadd.f32 %v3865_v23, %v2176_v42 }
 0x291   : > { %v1842_v44 = vpop.f32.mrf.mxu2 }
 0x292   : > { %2244 = vst.msk [vmem:[%s3872_s17 + $0x70] sm:$0xff] %vm458_vm2, %v2212_v62  ;;  %v2289_v61 = vsel %vm458_vm2, %v2212_v62, 0.0  ;;  %v2347_v57 = vmul.f32 %v2212_v62, %v2212_v62  ;;  %v1900_v50 = vadd.f32 %v1842_v44, %v1770_v2 }
 0x293   : > { %v1717_v16 = vpop.f32.mrf.mxu1  ;;  %v2290_v14 = vadd.f32 %v2289_v61, %v2288_v33  ;;  %v1982_v48 = vpop.f32.mrf.mxu3 }
 0x294   : > { %v2392_v32 = vsel %vm458_vm2, %v2347_v57, 0.0  ;;  %v2040_v20 = vadd.f32 %v1982_v48, %v1900_v50  ;;  %v1772_v55 = vadd.f32 %v1717_v16, %v3757_v45 }
 0x295   : > { %v2393_v38 = vadd.f32 %v2392_v32, %v2391_v36 }
 0x296   : > { %v2177_v31 = vadd.f32 %v2119_v1, %v2040_v20 }
 0x298   : > { %v2124_v21 = vpop.f32.mrf.mxu0  ;;  %v2213_v34 = vadd.f32 %v3865_v23, %v2177_v31 }
 0x299   : > { %v1845_v15 = vpop.f32.mrf.mxu2 }
 0x29a   : > { %2245 = vst.msk [vmem:[%s3872_s17 + $0x78] sm:$0xff] %vm458_vm2, %v2213_v34  ;;  %v2291_v3 = vsel %vm458_vm2, %v2213_v34, 0.0  ;;  %v2348_v25 = vmul.f32 %v2213_v34, %v2213_v34  ;;  %v1901_v19 = vadd.f32 %v1845_v15, %v1771_v18 }
 0x29b   : > { %v1720_v40 = vpop.f32.mrf.mxu1  ;;  %v2292_v0 = vadd.f32 %v2291_v3, %v2290_v14  ;;  %v1985_v39 = vpop.f32.mrf.mxu3 }
 0x29c   : > { %v2394_v63 = vsel %vm458_vm2, %v2348_v25, 0.0  ;;  %v2041_v27 = vadd.f32 %v1985_v39, %v1901_v19  ;;  %v1773_v45 = vadd.f32 %v1720_v40, %v3764_v13 }
 0x29d   : > { %v2395_v24 = vadd.f32 %v2394_v63, %v2393_v38 }
 0x29e   : > { %v2178_v41 = vadd.f32 %v2122_v35, %v2041_v27 }
 0x2a0   : > { %v2127_v5 = vpop.f32.mrf.mxu0  ;;  %v2214_v30 = vadd.f32 %v3865_v23, %v2178_v41 }
 0x2a1   : > { %v1847_v58 = vpop.f32.mrf.mxu2 }
 0x2a2   : > { %2246 = vst.msk [vmem:[%s3872_s17 + $0x80] sm:$0xff] %vm458_vm2, %v2214_v30  ;;  %v2293_v1 = vsel %vm458_vm2, %v2214_v30, 0.0  ;;  %v2349_v7 = vmul.f32 %v2214_v30, %v2214_v30  ;;  %v1902_v6 = vadd.f32 %v1847_v58, %v1772_v55 }
 0x2a3   : > { %v1722_v28 = vpop.f32.mrf.mxu1  ;;  %v2294_v53 = vadd.f32 %v2293_v1, %v2292_v0  ;;  %v1987_v29 = vpop.f32.mrf.mxu3 }
 0x2a4   : > { %v2396_v56 = vsel %vm458_vm2, %v2349_v7, 0.0  ;;  %v2042_v12 = vadd.f32 %v1987_v29, %v1902_v6  ;;  %v1774_v13 = vadd.f32 %v1722_v28, %v3771_v9 }
 0x2a5   : > { %v2397_v17 = vadd.f32 %v2396_v56, %v2395_v24 }
 0x2a6   : > { %v2179_v33 = vadd.f32 %v2124_v21, %v2042_v12 }
 0x2a8   : > { %v2129_v49 = vpop.f32.mrf.mxu0  ;;  %v2215_v37 = vadd.f32 %v3865_v23, %v2179_v33 }
 0x2a9   : > { %v1850_v4 = vpop.f32.mrf.mxu2 }
 0x2aa   : > { %2247 = vst.msk [vmem:[%s3872_s17 + $0x88] sm:$0xff] %vm458_vm2, %v2215_v37  ;;  %v2295_v36 = vsel %vm458_vm2, %v2215_v37, 0.0  ;;  %v2350_v35 = vmul.f32 %v2215_v37, %v2215_v37  ;;  %v1903_v42 = vadd.f32 %v1850_v4, %v1773_v45 }
 0x2ab   : > { %v1725_v51 = vpop.f32.mrf.mxu1  ;;  %v2296_v16 = vadd.f32 %v2295_v36, %v2294_v53  ;;  %v1990_v62 = vpop.f32.mrf.mxu3 }
 0x2ac   : > { %v2398_v2 = vsel %vm458_vm2, %v2350_v35, 0.0  ;;  %v2043_v44 = vadd.f32 %v1990_v62, %v1903_v42  ;;  %v1775_v9 = vadd.f32 %v1725_v51, %v3778_v47 }
 0x2ad   : > { %v2399_v61 = vadd.f32 %v2398_v2, %v2397_v17 }
 0x2ae   : > { %v2180_v50 = vadd.f32 %v2127_v5, %v2043_v44 }
 0x2b0   : > { %v2132_v57 = vpop.f32.mrf.mxu0  ;;  %v2216_v48 = vadd.f32 %v3865_v23, %v2180_v50 }
 0x2b1   : > { %v1852_v32 = vpop.f32.mrf.mxu2 }
 0x2b2   : > { %2248 = vst.msk [vmem:[%s3872_s17 + $0x90] sm:$0xff] %vm458_vm2, %v2216_v48  ;;  %v2297_v20 = vsel %vm458_vm2, %v2216_v48, 0.0  ;;  %v2351_v38 = vmul.f32 %v2216_v48, %v2216_v48  ;;  %v1904_v21 = vadd.f32 %v1852_v32, %v1774_v13 }
 0x2b3   : > { %v1727_v14 = vpop.f32.mrf.mxu1  ;;  %v2298_v31 = vadd.f32 %v2297_v20, %v2296_v16  ;;  %v1992_v40 = vpop.f32.mrf.mxu3 }
 0x2b4   : > { %v2400_v34 = vsel %vm458_vm2, %v2351_v38, 0.0  ;;  %v2044_v18 = vadd.f32 %v1992_v40, %v1904_v21  ;;  %v1776_v47 = vadd.f32 %v1727_v14, %v3785_v26 }
 0x2b5   : > { %v2401_v15 = vadd.f32 %v2400_v34, %v2399_v61 }
 0x2b6   : > { %v2181_v25 = vadd.f32 %v2129_v49, %v2044_v18 }
 0x2b8   : > { %v2134_v3 = vpop.f32.mrf.mxu0  ;;  %v2217_v0 = vadd.f32 %v3865_v23, %v2181_v25 }
 0x2b9   : > { %v1855_v39 = vpop.f32.mrf.mxu2 }
 0x2ba   : > { %2249 = vst.msk [vmem:[%s3872_s17 + $0x98] sm:$0xff] %vm458_vm2, %v2217_v0  ;;  %v2299_v63 = vsel %vm458_vm2, %v2217_v0, 0.0  ;;  %v2352_v27 = vmul.f32 %v2217_v0, %v2217_v0  ;;  %v1905_v24 = vadd.f32 %v1855_v39, %v1775_v9 }
 0x2bb   : > { %v1730_v19 = vpop.f32.mrf.mxu1  ;;  %v2300_v5 = vadd.f32 %v2299_v63, %v2298_v31  ;;  %v1995_v41 = vpop.f32.mrf.mxu3 }
 0x2bc   : > { %v2402_v28 = vsel %vm458_vm2, %v2352_v27, 0.0  ;;  %v2045_v30 = vadd.f32 %v1995_v41, %v1905_v24  ;;  %v1777_v26 = vadd.f32 %v1730_v19, %v3792_v8 }
 0x2bd   : > { %v2403_v55 = vadd.f32 %v2402_v28, %v2401_v15 }
 0x2be   : > { %v2182_v1 = vadd.f32 %v2132_v57, %v2045_v30 }
 0x2c0   : > { %v2137_v58 = vpop.f32.mrf.mxu0  ;;  %v2218_v6 = vadd.f32 %v3865_v23, %v2182_v1 }
 0x2c1   : > { %v1857_v53 = vpop.f32.mrf.mxu2 }
 0x2c2   : > { %2250 = vst.msk [vmem:[%s3872_s17 + $0xa0] sm:$0xff] %vm458_vm2, %v2218_v6  ;;  %v2301_v29 = vsel %vm458_vm2, %v2218_v6, 0.0  ;;  %v2353_v56 = vmul.f32 %v2218_v6, %v2218_v6  ;;  %v1906_v12 = vadd.f32 %v1857_v53, %v1776_v47 }
 0x2c3   : > { %v1732_v7 = vpop.f32.mrf.mxu1  ;;  %v2302_v17 = vadd.f32 %v2301_v29, %v2300_v5  ;;  %v1997_v49 = vpop.f32.mrf.mxu3 }
 0x2c4   : > { %v2404_v33 = vsel %vm458_vm2, %v2353_v56, 0.0  ;;  %v2046_v51 = vadd.f32 %v1997_v49, %v1906_v12  ;;  %v1778_v8 = vadd.f32 %v1732_v7, %v3799_v52 }
 0x2c5   : > { %v2405_v37 = vadd.f32 %v2404_v33, %v2403_v55 }
 0x2c6   : > { %v2183_v4 = vadd.f32 %v2134_v3, %v2046_v51 }
 0x2c8   : > { %v2139_v45 = vpop.f32.mrf.mxu0  ;;  %v2219_v35 = vadd.f32 %v3865_v23, %v2183_v4 }
 0x2c9   : > { %v1860_v42 = vpop.f32.mrf.mxu2 }
 0x2ca   : > { %2251 = vst.msk [vmem:[%s3872_s17 + $0xa8] sm:$0xff] %vm458_vm2, %v2219_v35  ;;  %v2303_v16 = vsel %vm458_vm2, %v2219_v35, 0.0  ;;  %v2354_v62 = vmul.f32 %v2219_v35, %v2219_v35  ;;  %v1907_v2 = vadd.f32 %v1860_v42, %v1777_v26 }
 0x2cb   : > { %v1735_v36 = vpop.f32.mrf.mxu1  ;;  %v2304_v44 = vadd.f32 %v2303_v16, %v2302_v17  ;;  %v2000_v61 = vpop.f32.mrf.mxu3 }
 0x2cc   : > { %v2406_v57 = vsel %vm458_vm2, %v2354_v62, 0.0  ;;  %v2047_v50 = vadd.f32 %v2000_v61, %v1907_v2  ;;  %v1779_v52 = vadd.f32 %v1735_v36, %v3806_v59 }
 0x2cd   : > { %v2407_v14 = vadd.f32 %v2406_v57, %v2405_v37 }
 0x2ce   : > { %v2184_v48 = vadd.f32 %v2137_v58, %v2047_v50 }
 0x2d0   : > { %v2142_v13 = vpop.f32.mrf.mxu0  ;;  %v2220_v32 = vadd.f32 %v3865_v23, %v2184_v48 }
 0x2d1   : > { %v1862_v20 = vpop.f32.mrf.mxu2 }
 0x2d2   : > { %2252 = vst.msk [vmem:[%s3872_s17 + $0xb0] sm:$0xff] %vm458_vm2, %v2220_v32  ;;  %v2305_v21 = vsel %vm458_vm2, %v2220_v32, 0.0  ;;  %v2355_v31 = vmul.f32 %v2220_v32, %v2220_v32  ;;  %v1908_v40 = vadd.f32 %v1862_v20, %v1778_v8 }
 0x2d3   : > { %v1737_v38 = vpop.f32.mrf.mxu1  ;;  %v2306_v34 = vadd.f32 %v2305_v21, %v2304_v44  ;;  %v2002_v18 = vpop.f32.mrf.mxu3 }
 0x2d4   : > { %v2408_v15 = vsel %vm458_vm2, %v2355_v31, 0.0  ;;  %v2048_v3 = vadd.f32 %v2002_v18, %v1908_v40  ;;  %v1780_v59 = vadd.f32 %v1737_v38, %v3813_v43 }
 0x2d5   : > { %v2409_v25 = vadd.f32 %v2408_v15, %v2407_v14 }
 0x2d6   : > { %v2185_v19 = vadd.f32 %v2139_v45, %v2048_v3 }
 0x2d8   : > { %v2221_v0 = vadd.f32 %v3865_v23, %v2185_v19  ;;  %v2144_v39 = vpop.f32.mrf.mxu0 }
 0x2d9   : > { %v1865_v9 = vpop.f32.mrf.mxu2 }
 0x2da   : > { %2253 = vst.msk [vmem:[%s3872_s17 + $0xb8] sm:$0xff] %vm458_vm2, %v2221_v0  ;;  %v2307_v63 = vsel %vm458_vm2, %v2221_v0, 0.0  ;;  %v2356_v27 = vmul.f32 %v2221_v0, %v2221_v0  ;;  %v1909_v24 = vadd.f32 %v1865_v9, %v1779_v52 }
 0x2db   : > { %v2308_v5 = vadd.f32 %v2307_v63, %v2306_v34  ;;  %v2005_v41 = vpop.f32.mrf.mxu3  ;;  %v1740_v28 = vpop.f32.mrf.mxu1 }
 0x2dc   : > { %v2410_v30 = vsel %vm458_vm2, %v2356_v27, 0.0  ;;  %v2049_v55 = vadd.f32 %v2005_v41, %v1909_v24  ;;  %v1781_v43 = vadd.f32 %v1740_v28, %v3820_v22 }
 0x2dd   : > { %v2411_v58 = vadd.f32 %v2410_v30, %v2409_v25 }
 0x2de   : > { %v2186_v1 = vadd.f32 %v2142_v13, %v2049_v55 }
 0x2e0   : > { %v2222_v7 = vadd.f32 %v3865_v23, %v2186_v1  ;;  %v2147_v17 = vpop.f32.mrf.mxu0 }
 0x2e1   : > { %v1867_v6 = vpop.f32.mrf.mxu2 }
 0x2e2   : > { %2254 = vst.msk [vmem:[%s3872_s17 + $0xc0] sm:$0xff] %vm458_vm2, %v2222_v7  ;;  %v2309_v47 = vsel %vm458_vm2, %v2222_v7, 0.0  ;;  %v2357_v53 = vmul.f32 %v2222_v7, %v2222_v7  ;;  %v1910_v29 = vadd.f32 %v1867_v6, %v1780_v59 }
 0x2e3   : > { %v2310_v56 = vadd.f32 %v2309_v47, %v2308_v5  ;;  %v2007_v12 = vpop.f32.mrf.mxu3  ;;  %v1742_v37 = vpop.f32.mrf.mxu1 }
 0x2e4   : > { %v2412_v49 = vsel %vm458_vm2, %v2357_v53, 0.0  ;;  %v2050_v33 = vadd.f32 %v2007_v12, %v1910_v29  ;;  %v1782_v22 = vadd.f32 %v1742_v37, %v3827_v54 }
 0x2e5   : > { %v2413_v51 = vadd.f32 %v2412_v49, %v2411_v58 }
 0x2e6   : > { %v2187_v45 = vadd.f32 %v2144_v39, %v2050_v33 }
 0x2e8   : > { %v2223_v4 = vadd.f32 %v3865_v23, %v2187_v45  ;;  %v2149_v57 = vpop.f32.mrf.mxu0 }
 0x2e9   : > { %v1870_v36 = vpop.f32.mrf.mxu2 }
 0x2ea   : > { %2255 = vst.msk [vmem:[%s3872_s17 + $0xc8] sm:$0xff] %vm458_vm2, %v2223_v4  ;;  %v2311_v35 = vsel %vm458_vm2, %v2223_v4, 0.0  ;;  %v2358_v26 = vmul.f32 %v2223_v4, %v2223_v4  ;;  %v1911_v42 = vadd.f32 %v1870_v36, %v1781_v43 }
 0x2eb   : > { %v2312_v16 = vadd.f32 %v2311_v35, %v2310_v56  ;;  %v2010_v62 = vpop.f32.mrf.mxu3  ;;  %v1745_v14 = vpop.f32.mrf.mxu1 }
 0x2ec   : > { %v2414_v2 = vsel %vm458_vm2, %v2358_v26, 0.0  ;;  %v2051_v44 = vadd.f32 %v2010_v62, %v1911_v42  ;;  %v1783_v54 = vadd.f32 %v1745_v14, %v3834_v46 }
 0x2ed   : > { %v2415_v61 = vadd.f32 %v2414_v2, %v2413_v51 }
 0x2ee   : > { %v2188_v50 = vadd.f32 %v2147_v17, %v2051_v44 }
 0x2f0   : > { %v2224_v48 = vadd.f32 %v3865_v23, %v2188_v50  ;;  %v2152_v15 = vpop.f32.mrf.mxu0 }
 0x2f1   : > { %v1872_v13 = vpop.f32.mrf.mxu2 }
 0x2f2   : > { %2256 = vst.msk [vmem:[%s3872_s17 + $0xd0] sm:$0xff] %vm458_vm2, %v2224_v48  ;;  %v2313_v32 = vsel %vm458_vm2, %v2224_v48, 0.0  ;;  %v2359_v8 = vmul.f32 %v2224_v48, %v2224_v48  ;;  %v1912_v20 = vadd.f32 %v1872_v13, %v1782_v22 }
 0x2f3   : > { %v2314_v38 = vadd.f32 %v2313_v32, %v2312_v16  ;;  %v2012_v21 = vpop.f32.mrf.mxu3  ;;  %v1747_v19 = vpop.f32.mrf.mxu1 }
 0x2f4   : > { %v2416_v31 = vsel %vm458_vm2, %v2359_v8, 0.0  ;;  %v2052_v40 = vadd.f32 %v2012_v21, %v1912_v20  ;;  %v1784_v46 = vadd.f32 %v1747_v19, %v3841_v60 }
 0x2f5   : > { %v2417_v34 = vadd.f32 %v2416_v31, %v2415_v61 }
 0x2f6   : > { %v2189_v18 = vadd.f32 %v2149_v57, %v2052_v40 }
 0x2f8   : > { %v2225_v3 = vadd.f32 %v3865_v23, %v2189_v18  ;;  %v2154_v30 = vpop.f32.mrf.mxu0 }
 0x2f9   : > { %v1875_v25 = vpop.f32.mrf.mxu2 }
 0x2fa   : > { %2257 = vst.msk [vmem:[%s3872_s17 + $0xd8] sm:$0xff] %vm458_vm2, %v2225_v3  ;;  %v2315_v0 = vsel %vm458_vm2, %v2225_v3, 0.0  ;;  %v2360_v52 = vmul.f32 %v2225_v3, %v2225_v3  ;;  %v1913_v9 = vadd.f32 %v1875_v25, %v1783_v54 }
 0x2fb   : > { %v2316_v39 = vadd.f32 %v2315_v0, %v2314_v38  ;;  %v2015_v63 = vpop.f32.mrf.mxu3  ;;  %v1750_v47 = vpop.f32.mrf.mxu1 }
 0x2fc   : > { %v2418_v27 = vsel %vm458_vm2, %v2360_v52, 0.0  ;;  %v2053_v24 = vadd.f32 %v2015_v63, %v1913_v9  ;;  %v1785_v60 = vadd.f32 %v1750_v47, %v3848_v10 }
 0x2fd   : > { %v2419_v5 = vadd.f32 %v2418_v27, %v2417_v34 }
 0x2fe   : > { %v2190_v41 = vadd.f32 %v2152_v15, %v2053_v24 }
 0x300   : > { %v2226_v28 = vadd.f32 %v3865_v23, %v2190_v41  ;;  %v2157_v4 = vpop.f32.mrf.mxu0 }
 0x301   : > { %v1877_v55 = vpop.f32.mrf.mxu2 }
 0x302   : > { %2258 = vst.msk [vmem:[%s3872_s17 + $0xe0] sm:$0xff] %vm458_vm2, %v2226_v28  ;;  %v2317_v58 = vsel %vm458_vm2, %v2226_v28, 0.0  ;;  %v2361_v1 = vmul.f32 %v2226_v28, %v2226_v28  ;;  %v1914_v7 = vadd.f32 %v1877_v55, %v1784_v46 }
 0x303   : > { %v2318_v59 = vadd.f32 %v2317_v58, %v2316_v39  ;;  %v2017_v6 = vpop.f32.mrf.mxu3  ;;  %v1752_v42 = vpop.f32.mrf.mxu1 }
 0x304   : > { %v2420_v53 = vsel %vm458_vm2, %v2361_v1, 0.0  ;;  %v2054_v29 = vadd.f32 %v2017_v6, %v1914_v7  ;;  %v1786_v10 = vadd.f32 %v1752_v42, %v3855_v11  ;;  %v2702_v11 = vld [vmem:[%s4141_s5] ss:$0 sm:$0xff] }
 0x305   : > { %v2421_v56 = vadd.f32 %v2420_v53, %v2419_v5 }
 0x306   : > { %v2191_v12 = vadd.f32 %v2154_v30, %v2054_v29 }
 0x308   : > { %v2227_v17 = vadd.f32 %v3865_v23, %v2191_v12  ;;  %v2159_v32 = vpop.f32.mrf.mxu0 }
 0x309   : > { %v1880_v49 = vpop.f32.mrf.mxu2 }
 0x30a   : > { %2259 = vst.msk [vmem:[%s3872_s17 + $0xe8] sm:$0xff] %vm458_vm2, %v2227_v17  ;;  %v2319_v33 = vsel %vm458_vm2, %v2227_v17, 0.0  ;;  %v2362_v51 = vmul.f32 %v2227_v17, %v2227_v17  ;;  %v1915_v37 = vadd.f32 %v1880_v49, %v1785_v60 }
 0x30b   : > { %v2320_v45 = vadd.f32 %v2319_v33, %v2318_v59  ;;  %v2020_v43 = vpop.f32.mrf.mxu3 }
 0x30c   : > { %v2422_v36 = vsel %vm458_vm2, %v2362_v51, 0.0  ;;  %v2055_v35 = vadd.f32 %v2020_v43, %v1915_v37 }
 0x30d   : > { %v2423_v26 = vadd.f32 %v2422_v36, %v2421_v56 }
 0x30e   : > { %v2192_v16 = vadd.f32 %v2157_v4, %v2055_v35 }
 0x310   : > { %v2228_v62 = vadd.f32 %v3865_v23, %v2192_v16 }
 0x311   : > { %v1882_v2 = vpop.f32.mrf.mxu2 }
 0x312   : > { %2260 = vst.msk [vmem:[%s3872_s17 + $0xf0] sm:$0xff] %vm458_vm2, %v2228_v62  ;;  %v2321_v44 = vsel %vm458_vm2, %v2228_v62, 0.0  ;;  %v2363_v61 = vmul.f32 %v2228_v62, %v2228_v62  ;;  %v1916_v57 = vadd.f32 %v1882_v2, %v1786_v10 }
 0x313   : > { %v2322_v50 = vadd.f32 %v2321_v44, %v2320_v45  ;;  %v2022_v14 = vpop.f32.mrf.mxu3 }
 0x314   : > { %v2424_v48 = vsel %vm458_vm2, %v2363_v61, 0.0  ;;  %v2056_v22 = vadd.f32 %v2022_v14, %v1916_v57 }
 0x315   : > { %v2425_v13 = vadd.f32 %v2424_v48, %v2423_v26 }
 0x316   : > { %v2193_v8 = vadd.f32 %v2159_v32, %v2056_v22 }
 0x318   : > { %v2229_v23 = vadd.f32 %v2702_v11, %v2193_v8 }
 0x31a   : > { %2261 = vst.msk [vmem:[%s3872_s17 + $0xf8] sm:$0xff] %vm458_vm2, %v2229_v23  ;;  %v2323_v20 = vsel %vm458_vm2, %v2229_v23, 0.0  ;;  %v2364_v38 = vmul.f32 %v2229_v23, %v2229_v23 }
 0x31b   : > { %v2324_v21 = vadd.f32 %v2323_v20, %v2322_v50 }
 0x31c   : > { %v2426_v31 = vsel %vm458_vm2, %v2364_v38, 0.0 }
 0x31d   : > { %v2325_v40 = vrot.slane %v2324_v21, 4  ;;  %v2427_v34 = vadd.f32 %v2426_v31, %v2425_v13 }
 0x31f   : > { %v2326_v18 = vadd.f32 %v2325_v40, %v2324_v21  ;;  %v2428_v15 = vrot.slane %v2427_v34, 4 }
 0x321   : > { %v2327_v3 = vrot.slane %v2326_v18, 2  ;;  %v2429_v54 = vadd.f32 %v2428_v15, %v2427_v34 }
 0x323   : > { %v2328_v25 = vadd.f32 %v2327_v3, %v2326_v18  ;;  %v2430_v19 = vrot.slane %v2429_v54, 2 }
 0x325   : > { %v2329_v0 = vrot.slane %v2328_v25, 1  ;;  %v2431_v52 = vadd.f32 %v2430_v19, %v2429_v54 }
 0x327   : > { %v2330_v9 = vadd.f32 %v2329_v0, %v2328_v25  ;;  %v2432_v39 = vrot.slane %v2431_v52, 1 }
 0x329   : > { %2332 = vst.msk [vmem:[%s289_s22] sm:$0x1] %vm2331_vm8, %v2330_v9  ;;  %v2433_v63 = vadd.f32 %v2432_v39, %v2431_v52 }
 0x32b   : > { %2434 = vst.msk [vmem:[%s289_s22 + $0x1] sm:$0x1] %vm2331_vm8, %v2433_v63 }
 0x32c PF: > { %s18_s24 = sadd.s32 1, %s2709_s24  }
 0x32d   : > { %p15_p4 = scmp.ge.s32.totalorder %s18_s24, 4  }
 0x32f   :  { %17 = sbr.rel (!%p15_p4) target bundleno = 1 (0x1), region = 96 }

</bundles_post_ra>
